<compile_context>
chip_gen: v7x
topology: tpu7x:2x2x1
jax: 0.10.0
libtpu: 0.0.40
codegen_flags: <defaults>
</compile_context>

<pallas_src>
import functools

import jax
import jax.numpy as jnp
from jax.experimental import pallas as pl
from jax.experimental.pallas import tpu as pltpu

_EPS = 1e-5    # BatchNorm2d default eps
_PADL = 8      # left zero-border width inside padded scratch (keeps stores sublane-aligned)


# ------------------------------- fused kernel -------------------------------


def _flood_kernel(x_ref, w1_ref, p1_ref, w2_ref, p2_ref, w3_ref, p3_ref,
                  w4_ref, p4_ref, w5_ref, p5_ref, o_ref,
                  pad1, pad2, pad3, col, *, h, w, nf):
    f32 = jnp.float32
    bf16 = jnp.bfloat16

    def conv3x3_relu_bn(pad_ref, hh, ww, cin, w_ref, p_ref):
        """3x3 'same' conv as ONE im2col matmul, then conv-bias + ReLU + folded BN."""
        xp = pad_ref[...]                               # (hh+2, ww+16, cin), zero border
        n = hh * ww
        for k in range(9):                              # build (n, 9*cin) im2col matrix
            dy, dx = k // 3, k % 3
            tap = xp[dy:dy + hh, _PADL - 1 + dx:_PADL - 1 + dx + ww, :]
            col[0:n, k * cin:(k + 1) * cin] = tap.reshape(n, cin)
        patches = col[0:n, 0:9 * cin].astype(bf16)
        y = jnp.dot(patches, w_ref[...], preferred_element_type=f32)   # (n, cout)
        p = p_ref[...]                                  # (3, cout): [bias, bn_scale, bn_bias]
        y = jnp.maximum(y + p[0:1, :], 0.0)             # conv bias + ReLU
        return y * p[1:2, :] + p[2:3, :]                # folded BatchNorm (eval stats)

    def maxpool2(y, hh, ww, c):
        return y.reshape(hh // 2, 2, ww // 2, 2, c).max(axis=3).max(axis=1)

    def up2x2(y, hh, ww, cout):
        """Interleave a packed ConvTranspose(k=2,s=2) result (hh*ww, 4*cout) -> (2hh,2ww,cout)."""
        sub = [y[:, q * cout:(q + 1) * cout].reshape(hh, ww, cout) for q in range(4)]
        u0 = jnp.stack([sub[0], sub[1]], axis=2)        # (hh, ww, 2, cout)   (i = 0)
        u1 = jnp.stack([sub[2], sub[3]], axis=2)        # (hh, ww, 2, cout)   (i = 1)
        t = jnp.stack([u0, u1], axis=1)                 # (hh, 2, ww, 2, cout)
        return t.reshape(2 * hh, 2 * ww, cout)

    h2, w2 = h // 2, w // 2
    h4, w4 = h // 4, w // 4
    lo = _PADL

    # -------------------------------- encoder --------------------------------
    # conv1: 2 -> nf (3x3, pad 1) + ReLU + BN
    pad1[...] = jnp.zeros_like(pad1)
    pad1[1:h + 1, lo:lo + w, :] = x_ref[0]
    a1 = conv3x3_relu_bn(pad1, h, w, 2, w1_ref, p1_ref)            # (h*w, nf)

    # conv2: nf -> nf (3x3, pad 1) + ReLU + BN, then MaxPool2d(2)
    pad2[...] = jnp.zeros_like(pad2)
    pad2[1:h + 1, lo:lo + w, :] = a1.reshape(h, w, nf)
    a2 = conv3x3_relu_bn(pad2, h, w, nf, w2_ref, p2_ref)           # (h*w, nf)
    a2 = maxpool2(a2, h, w, nf)                                    # (h2, w2, nf)
    # TODO(synk): nn.Dropout(0.2) is identity in eval mode; training-mode masking
    # is not implemented.

    # conv3: nf -> 2*nf (3x3, pad 1) + ReLU + BN, then MaxPool2d(2)
    pad3[...] = jnp.zeros_like(pad3)
    pad3[1:h2 + 1, lo:lo + w2, :] = a2
    a3 = conv3x3_relu_bn(pad3, h2, w2, nf, w3_ref, p3_ref)         # (h2*w2, 2nf)
    a3 = maxpool2(a3, h2, w2, 2 * nf)                              # (h4, w4, 2nf)

    # -------------------------------- decoder --------------------------------
    # deconv1: ConvTranspose2d(2nf -> nf, k=2, s=2) + ReLU + BN, packed over the 4 taps
    x4 = a3.reshape(h4 * w4, 2 * nf).astype(bf16)
    y4 = jnp.dot(x4, w4_ref[...], preferred_element_type=f32)      # (h4*w4, 4*nf)
    p4 = p4_ref[...]                                               # (3, 4*nf) tap-tiled
    y4 = jnp.maximum(y4 + p4[0:1, :], 0.0)
    y4 = y4 * p4[1:2, :] + p4[2:3, :]
    a4 = up2x2(y4, h4, w4, nf)                                     # (h2, w2, nf)

    # deconv2: ConvTranspose2d(nf -> 1, k=2, s=2) + Sigmoid
    x5 = a4.reshape(h2 * w2, nf).astype(bf16)
    y5 = jnp.dot(x5, w5_ref[...], preferred_element_type=f32)      # (h2*w2, 4)
    y5 = jax.nn.sigmoid(y5 + p5_ref[...])                          # bias (1, 4), tap-tiled
    out = up2x2(y5, h2, w2, 1)                                     # (h, w, 1)
    o_ref[0] = out.astype(o_ref.dtype)


# --------------------------------- wrapper -----------------------------------


def _full_spec(a):
    return pl.BlockSpec(a.shape, lambda i, _n=a.ndim: (0,) * _n)


def _fold_bn(p):
    scale = p["gamma"] * jax.lax.rsqrt(p["var"] + _EPS)
    bias = p["beta"] - p["mean"] * scale
    return scale, bias


@jax.jit
def flood_cnn_forward(x_nchw, params):
    """Forward pass of FloodCNN (eval mode). Input/output are NCHW like PyTorch."""
    b, cin, h, w = x_nchw.shape
    nf = params["conv1"]["w"].shape[-1]
    assert h % 4 == 0 and w % 4 == 0

    # NHWC activations inside the kernel; the (tiny) input transpose stays in XLA.
    x = jnp.transpose(x_nchw, (0, 2, 3, 1)).astype(jnp.float32)

    def conv_pack(p):
        cout = p["w"].shape[-1]
        wmat = p["w"].reshape(-1, cout).astype(jnp.bfloat16)           # (9*cin, cout)
        scale, bias = _fold_bn(p)
        pk = jnp.stack([p["b"], scale, bias]).astype(jnp.float32)      # (3, cout)
        return wmat, pk

    def deconv_pack(p, with_bn):
        cin_, cout = p["w"].shape[2], p["w"].shape[3]
        # (2,2,cin,cout) -> (cin, 4*cout), columns ordered [(i*2+j)*cout + c]
        wmat = jnp.transpose(p["w"], (2, 0, 1, 3)).reshape(cin_, 4 * cout)
        wmat = wmat.astype(jnp.bfloat16)
        if with_bn:
            scale, bias = _fold_bn(p)
            pk = jnp.stack([jnp.tile(p["b"], 4), jnp.tile(scale, 4),
                            jnp.tile(bias, 4)]).astype(jnp.float32)    # (3, 4*cout)
        else:
            pk = jnp.tile(p["b"], 4).reshape(1, 4 * cout).astype(jnp.float32)
        return wmat, pk

    w1, p1 = conv_pack(params["conv1"])
    w2, p2 = conv_pack(params["conv2"])
    w3, p3 = conv_pack(params["conv3"])
    w4, p4 = deconv_pack(params["deconv1"], with_bn=True)
    w5, p5 = deconv_pack(params["deconv2"], with_bn=False)

    kernel = functools.partial(_flood_kernel, h=h, w=w, nf=nf)
    out = pl.pallas_call(
        kernel,
        out_shape=jax.ShapeDtypeStruct((b, h, w, 1), jnp.float32),
        grid=(b,),
        in_specs=[
            pl.BlockSpec((1, h, w, cin), lambda i: (i, 0, 0, 0)),
            _full_spec(w1), _full_spec(p1),
            _full_spec(w2), _full_spec(p2),
            _full_spec(w3), _full_spec(p3),
            _full_spec(w4), _full_spec(p4),
            _full_spec(w5), _full_spec(p5),
        ],
        out_specs=pl.BlockSpec((1, h, w, 1), lambda i: (i, 0, 0, 0)),
        scratch_shapes=[
            pltpu.VMEM((h + 2, w + 16, cin), jnp.float32),           # padded conv1 input
            pltpu.VMEM((h + 2, w + 16, nf), jnp.float32),            # padded conv2 input
            pltpu.VMEM((h // 2 + 2, w // 2 + 16, nf), jnp.float32),  # padded conv3 input
            pltpu.VMEM((h * w, 9 * nf), jnp.float32),                # shared im2col matrix
        ],
        compiler_params=pltpu.CompilerParams(
            dimension_semantics=("parallel",)),
    )(x, w1, p1, w2, p2, w3, p3, w4, p4, w5, p5)

    # cout == 1, so NHWC (B,H,W,1) -> NCHW (B,1,H,W) is a pure (free) reshape.
    return out.reshape(b, 1, h, w)


# ------------------------- pure-JAX reference (check) -------------------------


def _reference_forward(x_nchw, params):
    x = jnp.transpose(x_nchw, (0, 2, 3, 1)).astype(jnp.float32)

    def conv_bn(z, p):
        y = jax.lax.conv_general_dilated(
            z, p["w"], (1, 1), "SAME",
            dimension_numbers=("NHWC", "HWIO", "NHWC")) + p["b"]
        y = jnp.maximum(y, 0.0)
        return (y - p["mean"]) * jax.lax.rsqrt(p["var"] + _EPS) * p["gamma"] + p["beta"]

    def pool(z):
        b, h, w, c = z.shape
        return z.reshape(b, h // 2, 2, w // 2, 2, c).max(axis=(2, 4))

    def deconv(z, p):
        y = jnp.einsum("bhwc,ijcd->bhiwjd", z, p["w"])
        b, h, _, w, _, d = y.shape
        return y.reshape(b, 2 * h, 2 * w, d) + p["b"]

    y = conv_bn(x, params["conv1"])
    y = conv_bn(y, params["conv2"])
    y = pool(y)
    y = conv_bn(y, params["conv3"])
    y = pool(y)
    p = params["deconv1"]
    y = jnp.maximum(deconv(y, p), 0.0)
    y = (y - p["mean"]) * jax.lax.rsqrt(p["var"] + _EPS) * p["gamma"] + p["beta"]
    y = jax.nn.sigmoid(deconv(y, params["deconv2"]))
    return jnp.transpose(y, (0, 3, 1, 2))


# ------------------------------ parameter init --------------------------------


def init_params(key, num_filters=16):
    keys = iter(jax.random.split(key, 32))

    def bn(cout):
        return {
            "gamma": 1.0 + 0.1 * jax.random.normal(next(keys), (cout,), jnp.float32),
            "beta": 0.1 * jax.random.normal(next(keys), (cout,), jnp.float32),
            "mean": 0.1 * jax.random.normal(next(keys), (cout,), jnp.float32),
            "var": 0.5 + jax.random.uniform(next(keys), (cout,), jnp.float32),
        }

    def conv(cin, cout, k, with_bn=True):
        scale = 1.0 / (cin * k * k) ** 0.5
        p = {
            "w": jax.random.uniform(next(keys), (k, k, cin, cout), jnp.float32,
                                    -scale, scale),
            "b": jax.random.uniform(next(keys), (cout,), jnp.float32, -scale, scale),
        }
        if with_bn:
            p.update(bn(cout))
        return p

    nf = num_filters
    return {
        "conv1": conv(2, nf, 3),
        "conv2": conv(nf, nf, 3),
        "conv3": conv(nf, 2 * nf, 3),
        "deconv1": conv(2 * nf, nf, 2),
        "deconv2": conv(nf, 1, 2, with_bn=False),   # final sigmoid layer: no BN
    }


# ---------------------------------- main --------------------------------------


if __name__ == "__main__":
    key = jax.random.PRNGKey(0)
    k_x, k_p = jax.random.split(key)

    # PyTorch-style NCHW input: batch=2, in_channels=2, 16x16 spatial.
    x = jax.random.normal(k_x, (2, 2, 16, 16), jnp.float32)
    params = init_params(k_p, num_filters=16)

    out = jax.block_until_ready(flood_cnn_forward(x, params))

    assert out.shape == (2, 1, 16, 16), out.shape
    assert out.dtype == jnp.float32
    assert bool(jnp.all(jnp.isfinite(out)))
    assert bool(jnp.all((out >= 0.0) & (out <= 1.0)))      # sigmoid range

    ref = jax.block_until_ready(_reference_forward(x, params))
    max_err = float(jnp.max(jnp.abs(out - ref)))
    assert max_err < 5e-2, f"max abs err vs reference: {max_err}"

    print("KERNEL_OK")
</pallas_src>

<mosaic_0001>
module attributes {stable_mosaic.version = 11 : i64} {
  func.func @_flood_kernel(%arg0: i32, %arg1: memref<1x16x16x2xf32, #tpu.memory_space<vmem>>, %arg2: memref<18x16xbf16, #tpu.memory_space<vmem>>, %arg3: memref<3x16xf32, #tpu.memory_space<vmem>>, %arg4: memref<144x16xbf16, #tpu.memory_space<vmem>>, %arg5: memref<3x16xf32, #tpu.memory_space<vmem>>, %arg6: memref<144x32xbf16, #tpu.memory_space<vmem>>, %arg7: memref<3x32xf32, #tpu.memory_space<vmem>>, %arg8: memref<32x64xbf16, #tpu.memory_space<vmem>>, %arg9: memref<3x64xf32, #tpu.memory_space<vmem>>, %arg10: memref<16x4xbf16, #tpu.memory_space<vmem>>, %arg11: memref<1x4xf32, #tpu.memory_space<vmem>>, %arg12: memref<1x16x16x1xf32, #tpu.memory_space<vmem>>, %arg13: memref<18x32x2xf32, #tpu.memory_space<vmem>>, %arg14: memref<18x32x16xf32, #tpu.memory_space<vmem>>, %arg15: memref<10x24x16xf32, #tpu.memory_space<vmem>>, %arg16: memref<256x144xf32, #tpu.memory_space<vmem>>) attributes {dimension_semantics = [#tpu.dimension_semantics<parallel>], iteration_bounds = array<i64: 2>, scalar_prefetch = 0 : i64, scratch_operands = 4 : i64, tpu.core_type = #tpu.core_type<tc>, window_params = [{transform_indices = @transform_0, window_bounds = array<i64: 1, 16, 16, 2>}, {pipeline_mode = #tpu.pipeline_mode<synchronous>, transform_indices = @transform_1, window_bounds = array<i64: 18, 16>}, {pipeline_mode = #tpu.pipeline_mode<synchronous>, transform_indices = @transform_2, window_bounds = array<i64: 3, 16>}, {pipeline_mode = #tpu.pipeline_mode<synchronous>, transform_indices = @transform_3, window_bounds = array<i64: 144, 16>}, {pipeline_mode = #tpu.pipeline_mode<synchronous>, transform_indices = @transform_4, window_bounds = array<i64: 3, 16>}, {pipeline_mode = #tpu.pipeline_mode<synchronous>, transform_indices = @transform_5, window_bounds = array<i64: 144, 32>}, {pipeline_mode = #tpu.pipeline_mode<synchronous>, transform_indices = @transform_6, window_bounds = array<i64: 3, 32>}, {pipeline_mode = #tpu.pipeline_mode<synchronous>, transform_indices = @transform_7, window_bounds = array<i64: 32, 64>}, {pipeline_mode = #tpu.pipeline_mode<synchronous>, transform_indices = @transform_8, window_bounds = array<i64: 3, 64>}, {pipeline_mode = #tpu.pipeline_mode<synchronous>, transform_indices = @transform_9, window_bounds = array<i64: 16, 4>}, {pipeline_mode = #tpu.pipeline_mode<synchronous>, transform_indices = @transform_10, window_bounds = array<i64: 1, 4>}, {transform_indices = @transform_11, window_bounds = array<i64: 1, 16, 16, 1>}]} {
    %cst = arith.constant 0.000000e+00 : f32
    %0 = vector.broadcast %cst : f32 to vector<18x32x2xf32>
    %c0 = arith.constant 0 : index
    %c0_0 = arith.constant 0 : index
    %c0_1 = arith.constant 0 : index
    %1 = vector.load %arg13[%c0, %c0_0, %c0_1] : memref<18x32x2xf32, #tpu.memory_space<vmem>>, vector<18x32x2xf32>
    tpu.vector_store %arg13[%c0, %c0_0, %c0_1], %0 {strides = array<i32>} : memref<18x32x2xf32, #tpu.memory_space<vmem>>, vector<18x32x2xf32>,
    %c0_2 = arith.constant 0 : index
    %c0_3 = arith.constant 0 : index
    %c0_4 = arith.constant 0 : index
    %c0_5 = arith.constant 0 : index
    %2 = vector.load %arg1[%c0_2, %c0_3, %c0_4, %c0_5] : memref<1x16x16x2xf32, #tpu.memory_space<vmem>>, vector<1x16x16x2xf32>
    %3 = vector.shape_cast %2 : vector<1x16x16x2xf32> to vector<16x16x2xf32>
    %c1 = arith.constant 1 : index
    %c8 = arith.constant 8 : index
    %c0_6 = arith.constant 0 : index
    %4 = vector.load %arg13[%c1, %c8, %c0_6] : memref<18x32x2xf32, #tpu.memory_space<vmem>>, vector<16x16x2xf32>
    tpu.vector_store %arg13[%c1, %c8, %c0_6], %3 {strides = array<i32>} : memref<18x32x2xf32, #tpu.memory_space<vmem>>, vector<16x16x2xf32>,
    %c0_7 = arith.constant 0 : index
    %c0_8 = arith.constant 0 : index
    %c0_9 = arith.constant 0 : index
    %5 = vector.load %arg13[%c0_7, %c0_8, %c0_9] : memref<18x32x2xf32, #tpu.memory_space<vmem>>, vector<18x32x2xf32>
    %6 = vector.extract_strided_slice %5 {offsets = [0, 7, 0], sizes = [16, 16, 2], strides = [1, 1, 1]} : vector<18x32x2xf32> to vector<16x16x2xf32>
    %7 = vector.shape_cast %6 : vector<16x16x2xf32> to vector<256x2xf32>
    %c0_10 = arith.constant 0 : index
    %c0_11 = arith.constant 0 : index
    %8 = vector.load %arg16[%c0_10, %c0_11] : memref<256x144xf32, #tpu.memory_space<vmem>>, vector<256x2xf32>
    tpu.vector_store %arg16[%c0_10, %c0_11], %7 {strides = array<i32>} : memref<256x144xf32, #tpu.memory_space<vmem>>, vector<256x2xf32>,
    %9 = vector.extract_strided_slice %5 {offsets = [0, 8, 0], sizes = [16, 16, 2], strides = [1, 1, 1]} : vector<18x32x2xf32> to vector<16x16x2xf32>
    %10 = vector.shape_cast %9 : vector<16x16x2xf32> to vector<256x2xf32>
    %c0_12 = arith.constant 0 : index
    %c2 = arith.constant 2 : index
    %11 = vector.load %arg16[%c0_12, %c2] : memref<256x144xf32, #tpu.memory_space<vmem>>, vector<256x2xf32>
    tpu.vector_store %arg16[%c0_12, %c2], %10 {strides = array<i32>} : memref<256x144xf32, #tpu.memory_space<vmem>>, vector<256x2xf32>,
    %12 = vector.extract_strided_slice %5 {offsets = [0, 9, 0], sizes = [16, 16, 2], strides = [1, 1, 1]} : vector<18x32x2xf32> to vector<16x16x2xf32>
    %13 = vector.shape_cast %12 : vector<16x16x2xf32> to vector<256x2xf32>
    %c0_13 = arith.constant 0 : index
    %c4 = arith.constant 4 : index
    %14 = vector.load %arg16[%c0_13, %c4] : memref<256x144xf32, #tpu.memory_space<vmem>>, vector<256x2xf32>
    tpu.vector_store %arg16[%c0_13, %c4], %13 {strides = array<i32>} : memref<256x144xf32, #tpu.memory_space<vmem>>, vector<256x2xf32>,
    %15 = vector.extract_strided_slice %5 {offsets = [1, 7, 0], sizes = [16, 16, 2], strides = [1, 1, 1]} : vector<18x32x2xf32> to vector<16x16x2xf32>
    %16 = vector.shape_cast %15 : vector<16x16x2xf32> to vector<256x2xf32>
    %c0_14 = arith.constant 0 : index
    %c6 = arith.constant 6 : index
    %17 = vector.load %arg16[%c0_14, %c6] : memref<256x144xf32, #tpu.memory_space<vmem>>, vector<256x2xf32>
    tpu.vector_store %arg16[%c0_14, %c6], %16 {strides = array<i32>} : memref<256x144xf32, #tpu.memory_space<vmem>>, vector<256x2xf32>,
    %18 = vector.extract_strided_slice %5 {offsets = [1, 8, 0], sizes = [16, 16, 2], strides = [1, 1, 1]} : vector<18x32x2xf32> to vector<16x16x2xf32>
    %19 = vector.shape_cast %18 : vector<16x16x2xf32> to vector<256x2xf32>
    %c0_15 = arith.constant 0 : index
    %c8_16 = arith.constant 8 : index
    %20 = vector.load %arg16[%c0_15, %c8_16] : memref<256x144xf32, #tpu.memory_space<vmem>>, vector<256x2xf32>
    tpu.vector_store %arg16[%c0_15, %c8_16], %19 {strides = array<i32>} : memref<256x144xf32, #tpu.memory_space<vmem>>, vector<256x2xf32>,
    %21 = vector.extract_strided_slice %5 {offsets = [1, 9, 0], sizes = [16, 16, 2], strides = [1, 1, 1]} : vector<18x32x2xf32> to vector<16x16x2xf32>
    %22 = vector.shape_cast %21 : vector<16x16x2xf32> to vector<256x2xf32>
    %c0_17 = arith.constant 0 : index
    %c10 = arith.constant 10 : index
    %23 = vector.load %arg16[%c0_17, %c10] : memref<256x144xf32, #tpu.memory_space<vmem>>, vector<256x2xf32>
    tpu.vector_store %arg16[%c0_17, %c10], %22 {strides = array<i32>} : memref<256x144xf32, #tpu.memory_space<vmem>>, vector<256x2xf32>,
    %24 = vector.extract_strided_slice %5 {offsets = [2, 7, 0], sizes = [16, 16, 2], strides = [1, 1, 1]} : vector<18x32x2xf32> to vector<16x16x2xf32>
    %25 = vector.shape_cast %24 : vector<16x16x2xf32> to vector<256x2xf32>
    %c0_18 = arith.constant 0 : index
    %c12 = arith.constant 12 : index
    %26 = vector.load %arg16[%c0_18, %c12] : memref<256x144xf32, #tpu.memory_space<vmem>>, vector<256x2xf32>
    tpu.vector_store %arg16[%c0_18, %c12], %25 {strides = array<i32>} : memref<256x144xf32, #tpu.memory_space<vmem>>, vector<256x2xf32>,
    %27 = vector.extract_strided_slice %5 {offsets = [2, 8, 0], sizes = [16, 16, 2], strides = [1, 1, 1]} : vector<18x32x2xf32> to vector<16x16x2xf32>
    %28 = vector.shape_cast %27 : vector<16x16x2xf32> to vector<256x2xf32>
    %c0_19 = arith.constant 0 : index
    %c14 = arith.constant 14 : index
    %29 = vector.load %arg16[%c0_19, %c14] : memref<256x144xf32, #tpu.memory_space<vmem>>, vector<256x2xf32>
    tpu.vector_store %arg16[%c0_19, %c14], %28 {strides = array<i32>} : memref<256x144xf32, #tpu.memory_space<vmem>>, vector<256x2xf32>,
    %30 = vector.extract_strided_slice %5 {offsets = [2, 9, 0], sizes = [16, 16, 2], strides = [1, 1, 1]} : vector<18x32x2xf32> to vector<16x16x2xf32>
    %31 = vector.shape_cast %30 : vector<16x16x2xf32> to vector<256x2xf32>
    %c0_20 = arith.constant 0 : index
    %c16 = arith.constant 16 : index
    %32 = vector.load %arg16[%c0_20, %c16] : memref<256x144xf32, #tpu.memory_space<vmem>>, vector<256x2xf32>
    tpu.vector_store %arg16[%c0_20, %c16], %31 {strides = array<i32>} : memref<256x144xf32, #tpu.memory_space<vmem>>, vector<256x2xf32>,
    %c0_21 = arith.constant 0 : index
    %c0_22 = arith.constant 0 : index
    %33 = vector.load %arg16[%c0_21, %c0_22] : memref<256x144xf32, #tpu.memory_space<vmem>>, vector<256x18xf32>
    %34 = arith.truncf %33 : vector<256x18xf32> to vector<256x18xbf16>
    %c0_23 = arith.constant 0 : index
    %c0_24 = arith.constant 0 : index
    %35 = vector.load %arg2[%c0_23, %c0_24] : memref<18x16xbf16, #tpu.memory_space<vmem>>, vector<18x16xbf16>
    %cst_25 = arith.constant dense<0.000000e+00> : vector<256x16xf32>
    %36 = tpu.matmul %34, %35, %cst_25 {dimension_numbers = #tpu.dot_dimension_numbers<[1], [0], [0], [1], [0, 0, 1, 1], [], []>} : vector<256x18xbf16>, vector<18x16xbf16>, vector<256x16xf32> -> vector<256x16xf32>
    %c0_26 = arith.constant 0 : index
    %c0_27 = arith.constant 0 : index
    %37 = vector.load %arg3[%c0_26, %c0_27] : memref<3x16xf32, #tpu.memory_space<vmem>>, vector<3x16xf32>
    %38 = vector.extract_strided_slice %37 {offsets = [0, 0], sizes = [1, 16], strides = [1, 1]} : vector<3x16xf32> to vector<1x16xf32>
    %39 = vector.broadcast %38 : vector<1x16xf32> to vector<256x16xf32>
    %40 = arith.addf %36, %39 : vector<256x16xf32>
    %cst_28 = arith.constant 0.000000e+00 : f32
    %41 = vector.broadcast %cst_28 : f32 to vector<256x16xf32>
    %42 = arith.maximumf %40, %41 : vector<256x16xf32>
    %43 = vector.extract_strided_slice %37 {offsets = [1, 0], sizes = [1, 16], strides = [1, 1]} : vector<3x16xf32> to vector<1x16xf32>
    %44 = vector.broadcast %43 : vector<1x16xf32> to vector<256x16xf32>
    %45 = arith.mulf %42, %44 : vector<256x16xf32>
    %46 = vector.extract_strided_slice %37 {offsets = [2, 0], sizes = [1, 16], strides = [1, 1]} : vector<3x16xf32> to vector<1x16xf32>
    %47 = vector.broadcast %46 : vector<1x16xf32> to vector<256x16xf32>
    %48 = arith.addf %45, %47 : vector<256x16xf32>
    %cst_29 = arith.constant 0.000000e+00 : f32
    %49 = vector.broadcast %cst_29 : f32 to vector<18x32x16xf32>
    %c0_30 = arith.constant 0 : index
    %c0_31 = arith.constant 0 : index
    %c0_32 = arith.constant 0 : index
    %50 = vector.load %arg14[%c0_30, %c0_31, %c0_32] : memref<18x32x16xf32, #tpu.memory_space<vmem>>, vector<18x32x16xf32>
    tpu.vector_store %arg14[%c0_30, %c0_31, %c0_32], %49 {strides = array<i32>} : memref<18x32x16xf32, #tpu.memory_space<vmem>>, vector<18x32x16xf32>,
    %51 = vector.shape_cast %48 : vector<256x16xf32> to vector<16x16x16xf32>
    %c1_33 = arith.constant 1 : index
    %c8_34 = arith.constant 8 : index
    %c0_35 = arith.constant 0 : index
    %52 = vector.load %arg14[%c1_33, %c8_34, %c0_35] : memref<18x32x16xf32, #tpu.memory_space<vmem>>, vector<16x16x16xf32>
    tpu.vector_store %arg14[%c1_33, %c8_34, %c0_35], %51 {strides = array<i32>} : memref<18x32x16xf32, #tpu.memory_space<vmem>>, vector<16x16x16xf32>,
    %c0_36 = arith.constant 0 : index
    %c0_37 = arith.constant 0 : index
    %c0_38 = arith.constant 0 : index
    %53 = vector.load %arg14[%c0_36, %c0_37, %c0_38] : memref<18x32x16xf32, #tpu.memory_space<vmem>>, vector<18x32x16xf32>
    %54 = vector.extract_strided_slice %53 {offsets = [0, 7, 0], sizes = [16, 16, 16], strides = [1, 1, 1]} : vector<18x32x16xf32> to vector<16x16x16xf32>
    %55 = vector.shape_cast %54 : vector<16x16x16xf32> to vector<256x16xf32>
    %c0_39 = arith.constant 0 : index
    %c0_40 = arith.constant 0 : index
    %56 = vector.load %arg16[%c0_39, %c0_40] : memref<256x144xf32, #tpu.memory_space<vmem>>, vector<256x16xf32>
    tpu.vector_store %arg16[%c0_39, %c0_40], %55 {strides = array<i32>} : memref<256x144xf32, #tpu.memory_space<vmem>>, vector<256x16xf32>,
    %57 = vector.extract_strided_slice %53 {offsets = [0, 8, 0], sizes = [16, 16, 16], strides = [1, 1, 1]} : vector<18x32x16xf32> to vector<16x16x16xf32>
    %58 = vector.shape_cast %57 : vector<16x16x16xf32> to vector<256x16xf32>
    %c0_41 = arith.constant 0 : index
    %c16_42 = arith.constant 16 : index
    %59 = vector.load %arg16[%c0_41, %c16_42] : memref<256x144xf32, #tpu.memory_space<vmem>>, vector<256x16xf32>
    tpu.vector_store %arg16[%c0_41, %c16_42], %58 {strides = array<i32>} : memref<256x144xf32, #tpu.memory_space<vmem>>, vector<256x16xf32>,
    %60 = vector.extract_strided_slice %53 {offsets = [0, 9, 0], sizes = [16, 16, 16], strides = [1, 1, 1]} : vector<18x32x16xf32> to vector<16x16x16xf32>
    %61 = vector.shape_cast %60 : vector<16x16x16xf32> to vector<256x16xf32>
    %c0_43 = arith.constant 0 : index
    %c32 = arith.constant 32 : index
    %62 = vector.load %arg16[%c0_43, %c32] : memref<256x144xf32, #tpu.memory_space<vmem>>, vector<256x16xf32>
    tpu.vector_store %arg16[%c0_43, %c32], %61 {strides = array<i32>} : memref<256x144xf32, #tpu.memory_space<vmem>>, vector<256x16xf32>,
    %63 = vector.extract_strided_slice %53 {offsets = [1, 7, 0], sizes = [16, 16, 16], strides = [1, 1, 1]} : vector<18x32x16xf32> to vector<16x16x16xf32>
    %64 = vector.shape_cast %63 : vector<16x16x16xf32> to vector<256x16xf32>
    %c0_44 = arith.constant 0 : index
    %c48 = arith.constant 48 : index
    %65 = vector.load %arg16[%c0_44, %c48] : memref<256x144xf32, #tpu.memory_space<vmem>>, vector<256x16xf32>
    tpu.vector_store %arg16[%c0_44, %c48], %64 {strides = array<i32>} : memref<256x144xf32, #tpu.memory_space<vmem>>, vector<256x16xf32>,
    %66 = vector.extract_strided_slice %53 {offsets = [1, 8, 0], sizes = [16, 16, 16], strides = [1, 1, 1]} : vector<18x32x16xf32> to vector<16x16x16xf32>
    %67 = vector.shape_cast %66 : vector<16x16x16xf32> to vector<256x16xf32>
    %c0_45 = arith.constant 0 : index
    %c64 = arith.constant 64 : index
    %68 = vector.load %arg16[%c0_45, %c64] : memref<256x144xf32, #tpu.memory_space<vmem>>, vector<256x16xf32>
    tpu.vector_store %arg16[%c0_45, %c64], %67 {strides = array<i32>} : memref<256x144xf32, #tpu.memory_space<vmem>>, vector<256x16xf32>,
    %69 = vector.extract_strided_slice %53 {offsets = [1, 9, 0], sizes = [16, 16, 16], strides = [1, 1, 1]} : vector<18x32x16xf32> to vector<16x16x16xf32>
    %70 = vector.shape_cast %69 : vector<16x16x16xf32> to vector<256x16xf32>
    %c0_46 = arith.constant 0 : index
    %c80 = arith.constant 80 : index
    %71 = vector.load %arg16[%c0_46, %c80] : memref<256x144xf32, #tpu.memory_space<vmem>>, vector<256x16xf32>
    tpu.vector_store %arg16[%c0_46, %c80], %70 {strides = array<i32>} : memref<256x144xf32, #tpu.memory_space<vmem>>, vector<256x16xf32>,
    %72 = vector.extract_strided_slice %53 {offsets = [2, 7, 0], sizes = [16, 16, 16], strides = [1, 1, 1]} : vector<18x32x16xf32> to vector<16x16x16xf32>
    %73 = vector.shape_cast %72 : vector<16x16x16xf32> to vector<256x16xf32>
    %c0_47 = arith.constant 0 : index
    %c96 = arith.constant 96 : index
    %74 = vector.load %arg16[%c0_47, %c96] : memref<256x144xf32, #tpu.memory_space<vmem>>, vector<256x16xf32>
    tpu.vector_store %arg16[%c0_47, %c96], %73 {strides = array<i32>} : memref<256x144xf32, #tpu.memory_space<vmem>>, vector<256x16xf32>,
    %75 = vector.extract_strided_slice %53 {offsets = [2, 8, 0], sizes = [16, 16, 16], strides = [1, 1, 1]} : vector<18x32x16xf32> to vector<16x16x16xf32>
    %76 = vector.shape_cast %75 : vector<16x16x16xf32> to vector<256x16xf32>
    %c0_48 = arith.constant 0 : index
    %c112 = arith.constant 112 : index
    %77 = vector.load %arg16[%c0_48, %c112] : memref<256x144xf32, #tpu.memory_space<vmem>>, vector<256x16xf32>
    tpu.vector_store %arg16[%c0_48, %c112], %76 {strides = array<i32>} : memref<256x144xf32, #tpu.memory_space<vmem>>, vector<256x16xf32>,
    %78 = vector.extract_strided_slice %53 {offsets = [2, 9, 0], sizes = [16, 16, 16], strides = [1, 1, 1]} : vector<18x32x16xf32> to vector<16x16x16xf32>
    %79 = vector.shape_cast %78 : vector<16x16x16xf32> to vector<256x16xf32>
    %c0_49 = arith.constant 0 : index
    %c128 = arith.constant 128 : index
    %80 = vector.load %arg16[%c0_49, %c128] : memref<256x144xf32, #tpu.memory_space<vmem>>, vector<256x16xf32>
    tpu.vector_store %arg16[%c0_49, %c128], %79 {strides = array<i32>} : memref<256x144xf32, #tpu.memory_space<vmem>>, vector<256x16xf32>,
    %c0_50 = arith.constant 0 : index
    %c0_51 = arith.constant 0 : index
    %81 = vector.load %arg16[%c0_50, %c0_51] : memref<256x144xf32, #tpu.memory_space<vmem>>, vector<256x144xf32>
    %82 = arith.truncf %81 : vector<256x144xf32> to vector<256x144xbf16>
    %c0_52 = arith.constant 0 : index
    %c0_53 = arith.constant 0 : index
    %83 = vector.load %arg4[%c0_52, %c0_53] : memref<144x16xbf16, #tpu.memory_space<vmem>>, vector<144x16xbf16>
    %cst_54 = arith.constant dense<0.000000e+00> : vector<256x16xf32>
    %84 = tpu.matmul %82, %83, %cst_54 {dimension_numbers = #tpu.dot_dimension_numbers<[1], [0], [0], [1], [0, 0, 1, 1], [], []>} : vector<256x144xbf16>, vector<144x16xbf16>, vector<256x16xf32> -> vector<256x16xf32>
    %c0_55 = arith.constant 0 : index
    %c0_56 = arith.constant 0 : index
    %85 = vector.load %arg5[%c0_55, %c0_56] : memref<3x16xf32, #tpu.memory_space<vmem>>, vector<3x16xf32>
    %86 = vector.extract_strided_slice %85 {offsets = [0, 0], sizes = [1, 16], strides = [1, 1]} : vector<3x16xf32> to vector<1x16xf32>
    %87 = vector.broadcast %86 : vector<1x16xf32> to vector<256x16xf32>
    %88 = arith.addf %84, %87 : vector<256x16xf32>
    %cst_57 = arith.constant 0.000000e+00 : f32
    %89 = vector.broadcast %cst_57 : f32 to vector<256x16xf32>
    %90 = arith.maximumf %88, %89 : vector<256x16xf32>
    %91 = vector.extract_strided_slice %85 {offsets = [1, 0], sizes = [1, 16], strides = [1, 1]} : vector<3x16xf32> to vector<1x16xf32>
    %92 = vector.broadcast %91 : vector<1x16xf32> to vector<256x16xf32>
    %93 = arith.mulf %90, %92 : vector<256x16xf32>
    %94 = vector.extract_strided_slice %85 {offsets = [2, 0], sizes = [1, 16], strides = [1, 1]} : vector<3x16xf32> to vector<1x16xf32>
    %95 = vector.broadcast %94 : vector<1x16xf32> to vector<256x16xf32>
    %96 = arith.addf %93, %95 : vector<256x16xf32>
    %97 = vector.shape_cast %96 : vector<256x16xf32> to vector<8x2x8x2x16xf32>
    %cst_58 = arith.constant dense<0xFF800000> : vector<8x2x8x16xf32>
    %98 = vector.multi_reduction <maximumf>, %97, %cst_58 [3] : vector<8x2x8x2x16xf32> to vector<8x2x8x16xf32>
    %cst_59 = arith.constant dense<0xFF800000> : vector<8x8x16xf32>
    %99 = vector.multi_reduction <maximumf>, %98, %cst_59 [1] : vector<8x2x8x16xf32> to vector<8x8x16xf32>
    %cst_60 = arith.constant 0.000000e+00 : f32
    %100 = vector.broadcast %cst_60 : f32 to vector<10x24x16xf32>
    %c0_61 = arith.constant 0 : index
    %c0_62 = arith.constant 0 : index
    %c0_63 = arith.constant 0 : index
    %101 = vector.load %arg15[%c0_61, %c0_62, %c0_63] : memref<10x24x16xf32, #tpu.memory_space<vmem>>, vector<10x24x16xf32>
    tpu.vector_store %arg15[%c0_61, %c0_62, %c0_63], %100 {strides = array<i32>} : memref<10x24x16xf32, #tpu.memory_space<vmem>>, vector<10x24x16xf32>,
    %c1_64 = arith.constant 1 : index
    %c8_65 = arith.constant 8 : index
    %c0_66 = arith.constant 0 : index
    %102 = vector.load %arg15[%c1_64, %c8_65, %c0_66] : memref<10x24x16xf32, #tpu.memory_space<vmem>>, vector<8x8x16xf32>
    tpu.vector_store %arg15[%c1_64, %c8_65, %c0_66], %99 {strides = array<i32>} : memref<10x24x16xf32, #tpu.memory_space<vmem>>, vector<8x8x16xf32>,
    %c0_67 = arith.constant 0 : index
    %c0_68 = arith.constant 0 : index
    %c0_69 = arith.constant 0 : index
    %103 = vector.load %arg15[%c0_67, %c0_68, %c0_69] : memref<10x24x16xf32, #tpu.memory_space<vmem>>, vector<10x24x16xf32>
    %104 = vector.extract_strided_slice %103 {offsets = [0, 7, 0], sizes = [8, 8, 16], strides = [1, 1, 1]} : vector<10x24x16xf32> to vector<8x8x16xf32>
    %105 = vector.shape_cast %104 : vector<8x8x16xf32> to vector<64x16xf32>
    %c0_70 = arith.constant 0 : index
    %c0_71 = arith.constant 0 : index
    %106 = vector.load %arg16[%c0_70, %c0_71] : memref<256x144xf32, #tpu.memory_space<vmem>>, vector<64x16xf32>
    tpu.vector_store %arg16[%c0_70, %c0_71], %105 {strides = array<i32>} : memref<256x144xf32, #tpu.memory_space<vmem>>, vector<64x16xf32>,
    %107 = vector.extract_strided_slice %103 {offsets = [0, 8, 0], sizes = [8, 8, 16], strides = [1, 1, 1]} : vector<10x24x16xf32> to vector<8x8x16xf32>
    %108 = vector.shape_cast %107 : vector<8x8x16xf32> to vector<64x16xf32>
    %c0_72 = arith.constant 0 : index
    %c16_73 = arith.constant 16 : index
    %109 = vector.load %arg16[%c0_72, %c16_73] : memref<256x144xf32, #tpu.memory_space<vmem>>, vector<64x16xf32>
    tpu.vector_store %arg16[%c0_72, %c16_73], %108 {strides = array<i32>} : memref<256x144xf32, #tpu.memory_space<vmem>>, vector<64x16xf32>,
    %110 = vector.extract_strided_slice %103 {offsets = [0, 9, 0], sizes = [8, 8, 16], strides = [1, 1, 1]} : vector<10x24x16xf32> to vector<8x8x16xf32>
    %111 = vector.shape_cast %110 : vector<8x8x16xf32> to vector<64x16xf32>
    %c0_74 = arith.constant 0 : index
    %c32_75 = arith.constant 32 : index
    %112 = vector.load %arg16[%c0_74, %c32_75] : memref<256x144xf32, #tpu.memory_space<vmem>>, vector<64x16xf32>
    tpu.vector_store %arg16[%c0_74, %c32_75], %111 {strides = array<i32>} : memref<256x144xf32, #tpu.memory_space<vmem>>, vector<64x16xf32>,
    %113 = vector.extract_strided_slice %103 {offsets = [1, 7, 0], sizes = [8, 8, 16], strides = [1, 1, 1]} : vector<10x24x16xf32> to vector<8x8x16xf32>
    %114 = vector.shape_cast %113 : vector<8x8x16xf32> to vector<64x16xf32>
    %c0_76 = arith.constant 0 : index
    %c48_77 = arith.constant 48 : index
    %115 = vector.load %arg16[%c0_76, %c48_77] : memref<256x144xf32, #tpu.memory_space<vmem>>, vector<64x16xf32>
    tpu.vector_store %arg16[%c0_76, %c48_77], %114 {strides = array<i32>} : memref<256x144xf32, #tpu.memory_space<vmem>>, vector<64x16xf32>,
    %116 = vector.extract_strided_slice %103 {offsets = [1, 8, 0], sizes = [8, 8, 16], strides = [1, 1, 1]} : vector<10x24x16xf32> to vector<8x8x16xf32>
    %117 = vector.shape_cast %116 : vector<8x8x16xf32> to vector<64x16xf32>
    %c0_78 = arith.constant 0 : index
    %c64_79 = arith.constant 64 : index
    %118 = vector.load %arg16[%c0_78, %c64_79] : memref<256x144xf32, #tpu.memory_space<vmem>>, vector<64x16xf32>
    tpu.vector_store %arg16[%c0_78, %c64_79], %117 {strides = array<i32>} : memref<256x144xf32, #tpu.memory_space<vmem>>, vector<64x16xf32>,
    %119 = vector.extract_strided_slice %103 {offsets = [1, 9, 0], sizes = [8, 8, 16], strides = [1, 1, 1]} : vector<10x24x16xf32> to vector<8x8x16xf32>
    %120 = vector.shape_cast %119 : vector<8x8x16xf32> to vector<64x16xf32>
    %c0_80 = arith.constant 0 : index
    %c80_81 = arith.constant 80 : index
    %121 = vector.load %arg16[%c0_80, %c80_81] : memref<256x144xf32, #tpu.memory_space<vmem>>, vector<64x16xf32>
    tpu.vector_store %arg16[%c0_80, %c80_81], %120 {strides = array<i32>} : memref<256x144xf32, #tpu.memory_space<vmem>>, vector<64x16xf32>,
    %122 = vector.extract_strided_slice %103 {offsets = [2, 7, 0], sizes = [8, 8, 16], strides = [1, 1, 1]} : vector<10x24x16xf32> to vector<8x8x16xf32>
    %123 = vector.shape_cast %122 : vector<8x8x16xf32> to vector<64x16xf32>
    %c0_82 = arith.constant 0 : index
    %c96_83 = arith.constant 96 : index
    %124 = vector.load %arg16[%c0_82, %c96_83] : memref<256x144xf32, #tpu.memory_space<vmem>>, vector<64x16xf32>
    tpu.vector_store %arg16[%c0_82, %c96_83], %123 {strides = array<i32>} : memref<256x144xf32, #tpu.memory_space<vmem>>, vector<64x16xf32>,
    %125 = vector.extract_strided_slice %103 {offsets = [2, 8, 0], sizes = [8, 8, 16], strides = [1, 1, 1]} : vector<10x24x16xf32> to vector<8x8x16xf32>
    %126 = vector.shape_cast %125 : vector<8x8x16xf32> to vector<64x16xf32>
    %c0_84 = arith.constant 0 : index
    %c112_85 = arith.constant 112 : index
    %127 = vector.load %arg16[%c0_84, %c112_85] : memref<256x144xf32, #tpu.memory_space<vmem>>, vector<64x16xf32>
    tpu.vector_store %arg16[%c0_84, %c112_85], %126 {strides = array<i32>} : memref<256x144xf32, #tpu.memory_space<vmem>>, vector<64x16xf32>,
    %128 = vector.extract_strided_slice %103 {offsets = [2, 9, 0], sizes = [8, 8, 16], strides = [1, 1, 1]} : vector<10x24x16xf32> to vector<8x8x16xf32>
    %129 = vector.shape_cast %128 : vector<8x8x16xf32> to vector<64x16xf32>
    %c0_86 = arith.constant 0 : index
    %c128_87 = arith.constant 128 : index
    %130 = vector.load %arg16[%c0_86, %c128_87] : memref<256x144xf32, #tpu.memory_space<vmem>>, vector<64x16xf32>
    tpu.vector_store %arg16[%c0_86, %c128_87], %129 {strides = array<i32>} : memref<256x144xf32, #tpu.memory_space<vmem>>, vector<64x16xf32>,
    %c0_88 = arith.constant 0 : index
    %c0_89 = arith.constant 0 : index
    %131 = vector.load %arg16[%c0_88, %c0_89] : memref<256x144xf32, #tpu.memory_space<vmem>>, vector<64x144xf32>
    %132 = arith.truncf %131 : vector<64x144xf32> to vector<64x144xbf16>
    %c0_90 = arith.constant 0 : index
    %c0_91 = arith.constant 0 : index
    %133 = vector.load %arg6[%c0_90, %c0_91] : memref<144x32xbf16, #tpu.memory_space<vmem>>, vector<144x32xbf16>
    %cst_92 = arith.constant dense<0.000000e+00> : vector<64x32xf32>
    %134 = tpu.matmul %132, %133, %cst_92 {dimension_numbers = #tpu.dot_dimension_numbers<[1], [0], [0], [1], [0, 0, 1, 1], [], []>} : vector<64x144xbf16>, vector<144x32xbf16>, vector<64x32xf32> -> vector<64x32xf32>
    %c0_93 = arith.constant 0 : index
    %c0_94 = arith.constant 0 : index
    %135 = vector.load %arg7[%c0_93, %c0_94] : memref<3x32xf32, #tpu.memory_space<vmem>>, vector<3x32xf32>
    %136 = vector.extract_strided_slice %135 {offsets = [0, 0], sizes = [1, 32], strides = [1, 1]} : vector<3x32xf32> to vector<1x32xf32>
    %137 = vector.broadcast %136 : vector<1x32xf32> to vector<64x32xf32>
    %138 = arith.addf %134, %137 : vector<64x32xf32>
    %cst_95 = arith.constant 0.000000e+00 : f32
    %139 = vector.broadcast %cst_95 : f32 to vector<64x32xf32>
    %140 = arith.maximumf %138, %139 : vector<64x32xf32>
    %141 = vector.extract_strided_slice %135 {offsets = [1, 0], sizes = [1, 32], strides = [1, 1]} : vector<3x32xf32> to vector<1x32xf32>
    %142 = vector.broadcast %141 : vector<1x32xf32> to vector<64x32xf32>
    %143 = arith.mulf %140, %142 : vector<64x32xf32>
    %144 = vector.extract_strided_slice %135 {offsets = [2, 0], sizes = [1, 32], strides = [1, 1]} : vector<3x32xf32> to vector<1x32xf32>
    %145 = vector.broadcast %144 : vector<1x32xf32> to vector<64x32xf32>
    %146 = arith.addf %143, %145 : vector<64x32xf32>
    %147 = vector.shape_cast %146 : vector<64x32xf32> to vector<4x2x4x2x32xf32>
    %cst_96 = arith.constant dense<0xFF800000> : vector<4x2x4x32xf32>
    %148 = vector.multi_reduction <maximumf>, %147, %cst_96 [3] : vector<4x2x4x2x32xf32> to vector<4x2x4x32xf32>
    %cst_97 = arith.constant dense<0xFF800000> : vector<4x4x32xf32>
    %149 = vector.multi_reduction <maximumf>, %148, %cst_97 [1] : vector<4x2x4x32xf32> to vector<4x4x32xf32>
    %150 = vector.shape_cast %149 : vector<4x4x32xf32> to vector<16x32xf32>
    %151 = arith.truncf %150 : vector<16x32xf32> to vector<16x32xbf16>
    %c0_98 = arith.constant 0 : index
    %c0_99 = arith.constant 0 : index
    %152 = vector.load %arg8[%c0_98, %c0_99] : memref<32x64xbf16, #tpu.memory_space<vmem>>, vector<32x64xbf16>
    %cst_100 = arith.constant dense<0.000000e+00> : vector<16x64xf32>
    %153 = tpu.matmul %151, %152, %cst_100 {dimension_numbers = #tpu.dot_dimension_numbers<[1], [0], [0], [1], [0, 0, 1, 1], [], []>} : vector<16x32xbf16>, vector<32x64xbf16>, vector<16x64xf32> -> vector<16x64xf32>
    %c0_101 = arith.constant 0 : index
    %c0_102 = arith.constant 0 : index
    %154 = vector.load %arg9[%c0_101, %c0_102] : memref<3x64xf32, #tpu.memory_space<vmem>>, vector<3x64xf32>
    %155 = vector.extract_strided_slice %154 {offsets = [0, 0], sizes = [1, 64], strides = [1, 1]} : vector<3x64xf32> to vector<1x64xf32>
    %156 = vector.broadcast %155 : vector<1x64xf32> to vector<16x64xf32>
    %157 = arith.addf %153, %156 : vector<16x64xf32>
    %cst_103 = arith.constant 0.000000e+00 : f32
    %158 = vector.broadcast %cst_103 : f32 to vector<16x64xf32>
    %159 = arith.maximumf %157, %158 : vector<16x64xf32>
    %160 = vector.extract_strided_slice %154 {offsets = [1, 0], sizes = [1, 64], strides = [1, 1]} : vector<3x64xf32> to vector<1x64xf32>
    %161 = vector.broadcast %160 : vector<1x64xf32> to vector<16x64xf32>
    %162 = arith.mulf %159, %161 : vector<16x64xf32>
    %163 = vector.extract_strided_slice %154 {offsets = [2, 0], sizes = [1, 64], strides = [1, 1]} : vector<3x64xf32> to vector<1x64xf32>
    %164 = vector.broadcast %163 : vector<1x64xf32> to vector<16x64xf32>
    %165 = arith.addf %162, %164 : vector<16x64xf32>
    %166 = vector.extract_strided_slice %165 {offsets = [0, 0], sizes = [16, 16], strides = [1, 1]} : vector<16x64xf32> to vector<16x16xf32>
    %167 = vector.shape_cast %166 : vector<16x16xf32> to vector<4x4x16xf32>
    %168 = vector.extract_strided_slice %165 {offsets = [0, 16], sizes = [16, 16], strides = [1, 1]} : vector<16x64xf32> to vector<16x16xf32>
    %169 = vector.shape_cast %168 : vector<16x16xf32> to vector<4x4x16xf32>
    %170 = vector.extract_strided_slice %165 {offsets = [0, 32], sizes = [16, 16], strides = [1, 1]} : vector<16x64xf32> to vector<16x16xf32>
    %171 = vector.shape_cast %170 : vector<16x16xf32> to vector<4x4x16xf32>
    %172 = vector.extract_strided_slice %165 {offsets = [0, 48], sizes = [16, 16], strides = [1, 1]} : vector<16x64xf32> to vector<16x16xf32>
    %173 = vector.shape_cast %172 : vector<16x16xf32> to vector<4x4x16xf32>
    %174 = vector.shape_cast %167 : vector<4x4x16xf32> to vector<4x4x1x16xf32>
    %175 = vector.shape_cast %169 : vector<4x4x16xf32> to vector<4x4x1x16xf32>
    %176 = tpu.concatenate %174, %175 in 2 : vector<4x4x1x16xf32>, vector<4x4x1x16xf32> -> vector<4x4x2x16xf32>
    %177 = vector.shape_cast %171 : vector<4x4x16xf32> to vector<4x4x1x16xf32>
    %178 = vector.shape_cast %173 : vector<4x4x16xf32> to vector<4x4x1x16xf32>
    %179 = tpu.concatenate %177, %178 in 2 : vector<4x4x1x16xf32>, vector<4x4x1x16xf32> -> vector<4x4x2x16xf32>
    %180 = vector.shape_cast %176 : vector<4x4x2x16xf32> to vector<4x1x4x2x16xf32>
    %181 = vector.shape_cast %179 : vector<4x4x2x16xf32> to vector<4x1x4x2x16xf32>
    %182 = tpu.concatenate %180, %181 in 1 : vector<4x1x4x2x16xf32>, vector<4x1x4x2x16xf32> -> vector<4x2x4x2x16xf32>
    %183 = vector.shape_cast %182 : vector<4x2x4x2x16xf32> to vector<8x8x16xf32>
    %184 = vector.shape_cast %183 : vector<8x8x16xf32> to vector<64x16xf32>
    %185 = arith.truncf %184 : vector<64x16xf32> to vector<64x16xbf16>
    %c0_104 = arith.constant 0 : index
    %c0_105 = arith.constant 0 : index
    %186 = vector.load %arg10[%c0_104, %c0_105] : memref<16x4xbf16, #tpu.memory_space<vmem>>, vector<16x4xbf16>
    %cst_106 = arith.constant dense<0.000000e+00> : vector<64x4xf32>
    %187 = tpu.matmul %185, %186, %cst_106 {dimension_numbers = #tpu.dot_dimension_numbers<[1], [0], [0], [1], [0, 0, 1, 1], [], []>} : vector<64x16xbf16>, vector<16x4xbf16>, vector<64x4xf32> -> vector<64x4xf32>
    %c0_107 = arith.constant 0 : index
    %c0_108 = arith.constant 0 : index
    %188 = vector.load %arg11[%c0_107, %c0_108] : memref<1x4xf32, #tpu.memory_space<vmem>>, vector<1x4xf32>
    %189 = vector.broadcast %188 : vector<1x4xf32> to vector<64x4xf32>
    %190 = arith.addf %187, %189 : vector<64x4xf32>
    %191 = arith.negf %190 : vector<64x4xf32>
    %192 = math.exp %191 : vector<64x4xf32>
    %cst_109 = arith.constant 1.000000e+00 : f32
    %193 = vector.broadcast %cst_109 : f32 to vector<64x4xf32>
    %194 = arith.addf %193, %192 : vector<64x4xf32>
    %195 = arith.divf %193, %194 : vector<64x4xf32>
    %196 = vector.extract_strided_slice %195 {offsets = [0, 0], sizes = [64, 1], strides = [1, 1]} : vector<64x4xf32> to vector<64x1xf32>
    %197 = vector.shape_cast %196 : vector<64x1xf32> to vector<8x8x1xf32>
    %198 = vector.extract_strided_slice %195 {offsets = [0, 1], sizes = [64, 1], strides = [1, 1]} : vector<64x4xf32> to vector<64x1xf32>
    %199 = vector.shape_cast %198 : vector<64x1xf32> to vector<8x8x1xf32>
    %200 = vector.extract_strided_slice %195 {offsets = [0, 2], sizes = [64, 1], strides = [1, 1]} : vector<64x4xf32> to vector<64x1xf32>
    %201 = vector.shape_cast %200 : vector<64x1xf32> to vector<8x8x1xf32>
    %202 = vector.extract_strided_slice %195 {offsets = [0, 3], sizes = [64, 1], strides = [1, 1]} : vector<64x4xf32> to vector<64x1xf32>
    %203 = vector.shape_cast %202 : vector<64x1xf32> to vector<8x8x1xf32>
    %204 = vector.shape_cast %197 : vector<8x8x1xf32> to vector<8x8x1x1xf32>
    %205 = vector.shape_cast %199 : vector<8x8x1xf32> to vector<8x8x1x1xf32>
    %206 = tpu.concatenate %204, %205 in 2 : vector<8x8x1x1xf32>, vector<8x8x1x1xf32> -> vector<8x8x2x1xf32>
    %207 = vector.shape_cast %201 : vector<8x8x1xf32> to vector<8x8x1x1xf32>
    %208 = vector.shape_cast %203 : vector<8x8x1xf32> to vector<8x8x1x1xf32>
    %209 = tpu.concatenate %207, %208 in 2 : vector<8x8x1x1xf32>, vector<8x8x1x1xf32> -> vector<8x8x2x1xf32>
    %210 = vector.shape_cast %206 : vector<8x8x2x1xf32> to vector<8x1x8x2x1xf32>
    %211 = vector.shape_cast %209 : vector<8x8x2x1xf32> to vector<8x1x8x2x1xf32>
    %212 = tpu.concatenate %210, %211 in 1 : vector<8x1x8x2x1xf32>, vector<8x1x8x2x1xf32> -> vector<8x2x8x2x1xf32>
    %213 = vector.shape_cast %212 : vector<8x2x8x2x1xf32> to vector<16x16x1xf32>
    %c0_110 = arith.constant 0 : index
    %c0_111 = arith.constant 0 : index
    %c0_112 = arith.constant 0 : index
    %c0_113 = arith.constant 0 : index
    %214 = vector.load %arg12[%c0_110, %c0_111, %c0_112, %c0_113] : memref<1x16x16x1xf32, #tpu.memory_space<vmem>>, vector<1x16x16x1xf32>
    %215 = vector.shape_cast %214 : vector<1x16x16x1xf32> to vector<16x16x1xf32>
    %216 = vector.shape_cast %213 : vector<16x16x1xf32> to vector<1x16x16x1xf32>
    tpu.vector_store %arg12[%c0_110, %c0_111, %c0_112, %c0_113], %216 {strides = array<i32>} : memref<1x16x16x1xf32, #tpu.memory_space<vmem>>, vector<1x16x16x1xf32>,
    return
  }
  func.func @transform_0(%arg0: i32) -> (i32, i32, i32, i32) {
    %c0_i32 = arith.constant 0 : i32
    %c0_i32_0 = arith.constant 0 : i32
    %c0_i32_1 = arith.constant 0 : i32
    %c0_i32_2 = arith.constant 0 : i32
    return %arg0, %c0_i32, %c0_i32_0, %c0_i32_1 : i32, i32, i32, i32
  }
  func.func @transform_1(%arg0: i32) -> (i32, i32) {
    %c0_i32 = arith.constant 0 : i32
    %c0_i32_0 = arith.constant 0 : i32
    %c0_i32_1 = arith.constant 0 : i32
    return %c0_i32, %c0_i32_0 : i32, i32
  }
  func.func @transform_2(%arg0: i32) -> (i32, i32) {
    %c0_i32 = arith.constant 0 : i32
    %c0_i32_0 = arith.constant 0 : i32
    %c0_i32_1 = arith.constant 0 : i32
    return %c0_i32, %c0_i32_0 : i32, i32
  }
  func.func @transform_3(%arg0: i32) -> (i32, i32) {
    %c0_i32 = arith.constant 0 : i32
    %c0_i32_0 = arith.constant 0 : i32
    %c0_i32_1 = arith.constant 0 : i32
    return %c0_i32, %c0_i32_0 : i32, i32
  }
  func.func @transform_4(%arg0: i32) -> (i32, i32) {
    %c0_i32 = arith.constant 0 : i32
    %c0_i32_0 = arith.constant 0 : i32
    %c0_i32_1 = arith.constant 0 : i32
    return %c0_i32, %c0_i32_0 : i32, i32
  }
  func.func @transform_5(%arg0: i32) -> (i32, i32) {
    %c0_i32 = arith.constant 0 : i32
    %c0_i32_0 = arith.constant 0 : i32
    %c0_i32_1 = arith.constant 0 : i32
    return %c0_i32, %c0_i32_0 : i32, i32
  }
  func.func @transform_6(%arg0: i32) -> (i32, i32) {
    %c0_i32 = arith.constant 0 : i32
    %c0_i32_0 = arith.constant 0 : i32
    %c0_i32_1 = arith.constant 0 : i32
    return %c0_i32, %c0_i32_0 : i32, i32
  }
  func.func @transform_7(%arg0: i32) -> (i32, i32) {
    %c0_i32 = arith.constant 0 : i32
    %c0_i32_0 = arith.constant 0 : i32
    %c0_i32_1 = arith.constant 0 : i32
    return %c0_i32, %c0_i32_0 : i32, i32
  }
  func.func @transform_8(%arg0: i32) -> (i32, i32) {
    %c0_i32 = arith.constant 0 : i32
    %c0_i32_0 = arith.constant 0 : i32
    %c0_i32_1 = arith.constant 0 : i32
    return %c0_i32, %c0_i32_0 : i32, i32
  }
  func.func @transform_9(%arg0: i32) -> (i32, i32) {
    %c0_i32 = arith.constant 0 : i32
    %c0_i32_0 = arith.constant 0 : i32
    %c0_i32_1 = arith.constant 0 : i32
    return %c0_i32, %c0_i32_0 : i32, i32
  }
  func.func @transform_10(%arg0: i32) -> (i32, i32) {
    %c0_i32 = arith.constant 0 : i32
    %c0_i32_0 = arith.constant 0 : i32
    %c0_i32_1 = arith.constant 0 : i32
    return %c0_i32, %c0_i32_0 : i32, i32
  }
  func.func @transform_11(%arg0: i32) -> (i32, i32, i32, i32) {
    %c0_i32 = arith.constant 0 : i32
    %c0_i32_0 = arith.constant 0 : i32
    %c0_i32_1 = arith.constant 0 : i32
    %c0_i32_2 = arith.constant 0 : i32
    return %arg0, %c0_i32, %c0_i32_0, %c0_i32_1 : i32, i32, i32, i32
  }
}

</mosaic_0001>

<bundles_post_ra>
// kernel: tile.31
= control target key start
LH: loop header
LB: loop body
LE: loop exit
PB: predicated region body
PF: predicated region fallthrough
CT: control target
= control target key end

     0   :  { %s22_s0 = inlined_call_operand.vmem [shape: f32[16], index: 0, kind: input, shape index: {}]   ;;  %s23_s1 = inlined_call_operand.vmem [shape: f32[4,16], index: 1, kind: output, shape index: {}]  }
   0x1   :  { %v4_v0 = vld [vmem:[%s22_s0] ss:$0 sm:$0xff] }
   0x2   :  { %5 = vst [vmem:[%s23_s1] sm:$0xf] %v4_v0 }

// kernel: tile.34
= control target key start
LH: loop header
LB: loop body
LE: loop exit
PB: predicated region body
PF: predicated region fallthrough
CT: control target
= control target key end

     0   :  { %vm7_vm0 = vcmask 130048   ;;  %s37_s8 = smov 16   ;;  %s38_s9 = smov 32   ;;  %vm13_vm1 = vcmask 523648   ;;  %vm19_vm2 = vcmask 392448   ;;  %vm25_vm3 = vcmask 261248   ;;  %s55_s0 = inlined_call_operand.vmem [shape: f32[4,16], index: 0, kind: input, shape index: {}]   ;;  %s56_s1 = inlined_call_operand.vmem [shape: f32[1,64], index: 1, kind: output, shape index: {}]  }
   0x1   :  { %v4_v0 = vld [vmem:[%s55_s0] sm:$0xf]  ;;  %s36_s0 = smov 48  }
   0x2   :  { %5 = vst [vmem:[#allocation1] sm:$0xf] %v4_v0 }
   0x9   :  { %v10_v1 = vld [vmem:[#allocation1 + $0x3] sm:$0x1]   ;;  %v22_v2 = vld [vmem:[#allocation1 + $0x1] sm:$0x1]   ;;  %v6_v3 = vld [vmem:[#allocation1] sm:$0x1]  }
   0xa   :  { %11 = vrot.lane.b32.xlu0 %v10_v1, %s36_s0  ;;  %23 = vrot.lane.b32.xlu1 %v22_v2, %s37_s8  ;;  %v16_v4 = vld [vmem:[#allocation1 + $0x2] sm:$0x1]   ;;  %8 = vst.msk [vmem:[#allocation0] sm:$0x1] %vm7_vm0, %v6_v3  }
   0xe   :  { %17 = vrot.lane.b32.xlu0 %v16_v4, %s38_s9 }
  0x7c   :  { %v12_v5 = vpop.permute.xlu0 %11   ;;  %v24_v6 = vpop.permute.xlu1 %23  }
  0x7d   :  { %14 = vst.msk [vmem:[#allocation0] sm:$0x1] %vm13_vm1, %v12_v5  }
  0x80   :  { %v18_v7 = vpop.permute.xlu0 %17  }
  0x81   :  { %20 = vst.msk [vmem:[#allocation0] sm:$0x1] %vm19_vm2, %v18_v7  }
  0x82   :  { %26 = vst.msk [vmem:[#allocation0] sm:$0x1] %vm25_vm3, %v24_v6  }
  0x89   :  { %v30_v8 = vld [vmem:[#allocation0] sm:$0x1] }
  0x8a   :  { %32 = vst [vmem:[%s56_s1] sm:$0x1] %v30_v8 }

// kernel: flood_cnn_forward.1
= control target key start
LH: loop header
LB: loop body
LE: loop exit
PB: predicated region body
PF: predicated region fallthrough
CT: control target
= control target key end

     0   :  { %s10179_s17 = smov 0   ;;  %s15144_s0 = inlined_call_operand.vmem [shape: f32[2,16,16,2], index: 0, kind: input, shape index: {}]   ;;  %s15145_s1 = inlined_call_operand.vmem [shape: bf16[18,16], index: 1, kind: input, shape index: {}]   ;;  %s15146_s2 = inlined_call_operand.vmem [shape: f32[3,16], index: 2, kind: input, shape index: {}]   ;;  %s15147_s3 = inlined_call_operand.vmem [shape: bf16[144,16], index: 3, kind: input, shape index: {}]   ;;  %s15148_s4 = inlined_call_operand.vmem [shape: f32[3,16], index: 4, kind: input, shape index: {}]   ;;  %s15149_s5 = inlined_call_operand.vmem [shape: bf16[144,32], index: 5, kind: input, shape index: {}]   ;;  %s15150_s6 = inlined_call_operand.vmem [shape: f32[3,32], index: 6, kind: input, shape index: {}]   ;;  %s15151_s7 = inlined_call_operand.vmem [shape: bf16[32,64], index: 7, kind: input, shape index: {}]   ;;  %s15152_s8 = inlined_call_operand.vmem [shape: f32[3,64], index: 8, kind: input, shape index: {}]   ;;  %s15153_s9 = inlined_call_operand.vmem [shape: bf16[16,4], index: 9, kind: input, shape index: {}]   ;;  %s15154_s10 = inlined_call_operand.vmem [shape: f32[1,4], index: 10, kind: input, shape index: {}]   ;;  %s15155_s11 = inlined_call_operand.vmem [shape: f32[2,16,16,1], index: 11, kind: output, shape index: {}]  }
   0x1 LB: > { %s9834_s18 = sadd.s32 4294967295, %s10096_s17   ;;  %p9838_p0 = scmp.ge.s32.totalorder %s10096_s17, 1  ;;  %s10096_s17 = sphi %s10179_s17, %s21_s17  }
   0x2   : > { %p337_p1 = scmp.lt.s32.totalorder %s10096_s17, 3 }
   0x4   : > { %p338_p2 = pnand %p9838_p0, %p337_p1 }
   0x6   : > { %341 = sbr.rel (%p338_p2) target bundleno = 2896 (0xb50), region = 64 }
   0xd   : > { %vm388_vm0 = vcmask 15360   ;;  %v10098_v0 = vmov 0.0   ;;  %p377_p3 = scmp.lt.s32.totalorder %s9834_s18, 1  ;;  %vm15158_vm1 = vcmask 1046528   ;;  %s10099_s23 = smov 2   ;;  %vm15159_vm2 = vcmask 1040384  }
   0xe   : > { %390 = vst.msk [vmem:[#allocation2 + $0x8] sm:$0xff] %vm388_vm0, %v10098_v0  ;;  %389 = vst.msk [vmem:[#allocation2] sm:$0xff] %vm388_vm0, %v10098_v0  ;;  %s10100_s24 = smov 4   ;;  %s10101_s25 = smov 6   ;;  %vm887_vm3 = vcmask 31760   ;;  %vm1113_vm4 = vcmask 48160  }
   0xf   : > { %391 = vst.msk [vmem:[#allocation2 + $0x10] sm:$0xff] %vm388_vm0, %v10098_v0  ;;  %392 = vst.msk [vmem:[#allocation2 + $0x18] sm:$0xff] %vm388_vm0, %v10098_v0  ;;  %s15317_s18 = smov (!%p377_p3, %s9834_s18), 1  ;;  %s10102_s26 = smov 8   ;;  %vm1250_vm5 = vcmask 64560   ;;  %vm1379_vm6 = vcmask 80960  }
  0x10   : > { %393 = vst.msk [vmem:[#allocation2 + $0x20] sm:$0xff] %vm388_vm0, %v10098_v0  ;;  %394 = vst.msk [vmem:[#allocation2 + $0x28] sm:$0xff] %vm388_vm0, %v10098_v0  ;;  %s9918_s19 = sshll.u32 %s15317_s18, 8  ;;  %s10103_s27 = smov 10   ;;  %vm1514_vm7 = vcmask 97360   ;;  %vm1651_vm8 = vcmask 113760  }
  0x11   : > { %395 = vst.msk [vmem:[#allocation2 + $0x30] sm:$0xff] %vm388_vm0, %v10098_v0  ;;  %396 = vst.msk [vmem:[#allocation2 + $0x38] sm:$0xff] %vm388_vm0, %v10098_v0  ;;  %s10343_s22 = scalar_lea.vmem %s15144_s0, %s9918_s19  ;;  %s10104_s28 = smov 12   ;;  %vm1780_vm9 = vcmask 130160   ;;  %vm1915_vm10 = vcmask 146560   ;;  %vm2013_vm11 = vcmask 146432  }
  0x12   : > { %397 = vst.msk [vmem:[#allocation2 + $0x40] sm:$0xff] %vm388_vm0, %v10098_v0  ;;  %398 = vst.msk [vmem:[#allocation2 + $0x48] sm:$0xff] %vm388_vm0, %v10098_v0  ;;  %v461_v1 = vld [vmem:[%s10343_s22] sm:$0xff]  ;;  %v462_v2 = vld [vmem:[%s10343_s22 + $0x8] sm:$0xff]  ;;  %s10105_s29 = smov 14   ;;  %s10106_s15 = smov 16  }
  0x13   : > { %399 = vst.msk [vmem:[#allocation2 + $0x50] sm:$0xff] %vm388_vm0, %v10098_v0  ;;  %400 = vst.msk [vmem:[#allocation2 + $0x58] sm:$0xff] %vm388_vm0, %v10098_v0  ;;  %v463_v3 = vld [vmem:[%s10343_s22 + $0x10] sm:$0xff]  ;;  %v464_v11 = vld [vmem:[%s10343_s22 + $0x18] sm:$0xff]  ;;  %vm2330_vm12 = vcmask 130048   ;;  %s10108_s12 = smov 32  }
  0x14   : > { %401 = vst.msk [vmem:[#allocation2 + $0x60] sm:$0xff] %vm388_vm0, %v10098_v0  ;;  %402 = vst.msk [vmem:[#allocation2 + $0x68] sm:$0xff] %vm388_vm0, %v10098_v0  ;;  %v465_v15 = vld [vmem:[%s10343_s22 + $0x20] sm:$0xff]  ;;  %v466_v16 = vld [vmem:[%s10343_s22 + $0x28] sm:$0xff]  ;;  %s10109_s16 = smov 48   ;;  %vm2796_vm13 = vcmask 261248  }
  0x15   : > { %403 = vst.msk [vmem:[#allocation2 + $0x70] sm:$0xff] %vm388_vm0, %v10098_v0  ;;  %404 = vst.msk [vmem:[#allocation2 + $0x78] sm:$0xff] %vm388_vm0, %v10098_v0  ;;  %v527_v4 = vld [vmem:[#allocation2 + $0x8] sm:$0xff]  ;;  %v467_v18 = vld [vmem:[%s10343_s22 + $0x30] sm:$0xff]  ;;  %vm3021_vm14 = vcmask 392448   ;;  %vm3158_vm15 = vcmask 523648  }
  0x16   : > { %405 = vst.msk [vmem:[#allocation2 + $0x80] sm:$0xff] %vm388_vm0, %v10098_v0  ;;  %406 = vst.msk [vmem:[#allocation2 + $0x88] sm:$0xff] %vm388_vm0, %v10098_v0  ;;  %v528_v5 = vld [vmem:[#allocation2 + $0x10] sm:$0xff]  ;;  %v529_v6 = vld [vmem:[#allocation2 + $0x18] sm:$0xff]  ;;  %791 = vrot.lane.b32.xlu0 %v527_v4, %s10099_s23  ;;  %v648_v7 = vrot.slane %v527_v4, 7  ;;  %v937_v10 = vrot.slane %v527_v4, 1 }
  0x17   : > { %407 = vst.msk [vmem:[#allocation2 + $0x90] sm:$0xff] %vm388_vm0, %v10098_v0  ;;  %408 = vst.msk [vmem:[#allocation2 + $0x98] sm:$0xff] %vm388_vm0, %v10098_v0  ;;  %v938_v8 = vrot.slane %v528_v5, 1  ;;  %v940_v9 = vrot.slane %v529_v6, 1  ;;  %v650_v12 = vrot.slane %v528_v5, 7  ;;  %v530_v14 = vld [vmem:[#allocation2 + $0x20] sm:$0xff] }
  0x18   : > { %409 = vst.msk [vmem:[#allocation2 + $0xa0] sm:$0xff] %vm388_vm0, %v10098_v0  ;;  %410 = vst.msk [vmem:[#allocation2 + $0xa8] sm:$0xff] %vm388_vm0, %v10098_v0  ;;  %v533_v20 = vld [vmem:[#allocation2 + $0x38] sm:$0xff]  ;;  %v469_v22 = vld [vmem:[%s10343_s22 + $0x40] sm:$0xff]  ;;  %v652_v24 = vrot.slane %v530_v14, 7 }
  0x19   : > { %411 = vst.msk [vmem:[#allocation2 + $0xb0] sm:$0xff] %vm388_vm0, %v10098_v0  ;;  %412 = vst.msk [vmem:[#allocation2 + $0xb8] sm:$0xff] %vm388_vm0, %v10098_v0  ;;  %v941_v13 = vsel %vm15158_vm1, %v938_v8, %v940_v9  ;;  %v534_v17 = vld [vmem:[#allocation2 + $0x40] sm:$0xff]  ;;  %v651_v19 = vsel %vm15159_vm2, %v648_v7, %v650_v12  ;;  %v468_v21 = vld [vmem:[%s10343_s22 + $0x38] sm:$0xff]  ;;  %v939_v23 = vsel %vm15158_vm1, %v937_v10, %v938_v8  ;;  %v945_v38 = vrot.slane %v533_v20, 1 }
  0x1a   : > { %413 = vst.msk [vmem:[#allocation2 + $0xc0] sm:$0xff] %vm388_vm0, %v10098_v0  ;;  %414 = vst.msk [vmem:[#allocation2 + $0xc8] sm:$0xff] %vm388_vm0, %v10098_v0  ;;  %1019 = vrot.lane.b32.xlu1 %v941_v13, %s10100_s24  ;;  %793 = vrot.lane.b32.xlu0 %v528_v5, %s10099_s23  ;;  %v470_v26 = vld [vmem:[%s10343_s22 + $0x48] sm:$0xff]  ;;  %v526_v27 = vld [vmem:[#allocation2] sm:$0xff]  ;;  %v657_v31 = vrot.slane %v534_v17, 7 }
  0x1b   : > { %415 = vst.msk [vmem:[#allocation2 + $0xd0] sm:$0xff] %vm388_vm0, %v10098_v0  ;;  %416 = vst.msk [vmem:[#allocation2 + $0xd8] sm:$0xff] %vm388_vm0, %v10098_v0  ;;  %v538_v25 = vld [vmem:[#allocation2 + $0x60] sm:$0xff]  ;;  %v647_v32 = vrot.slane %v526_v27, 7  ;;  %v471_v41 = vld [vmem:[%s10343_s22 + $0x50] sm:$0xff] }
  0x1c   : > { %417 = vst.msk [vmem:[#allocation2 + $0xe0] sm:$0xff] %vm388_vm0, %v10098_v0  ;;  %418 = vst.msk [vmem:[#allocation2 + $0xe8] sm:$0xff] %vm388_vm0, %v10098_v0  ;;  %v662_v46 = vrot.slane %v538_v25, 7  ;;  %v472_v56 = vld [vmem:[%s10343_s22 + $0x58] sm:$0xff] }
  0x1d   : > { %419 = vst.msk [vmem:[#allocation2 + $0xf0] sm:$0xff] %vm388_vm0, %v10098_v0  ;;  %420 = vst.msk [vmem:[#allocation2 + $0xf8] sm:$0xff] %vm388_vm0, %v10098_v0  ;;  %v542_v37 = vld [vmem:[#allocation2 + $0x80] sm:$0xff]  ;;  %v649_v40 = vsel %vm15159_vm2, %v647_v32, %v648_v7  ;;  %v537_v20 = vld [vmem:[#allocation2 + $0x58] sm:$0xff] }
  0x1e   : > { %421 = vst.msk [vmem:[#allocation2 + $0x100] sm:$0xff] %vm388_vm0, %v10098_v0  ;;  %422 = vst.msk [vmem:[#allocation2 + $0x108] sm:$0xff] %vm388_vm0, %v10098_v0  ;;  %1017 = vrot.lane.b32.xlu0 %v939_v23, %s10100_s24  ;;  %v667_v51 = vrot.slane %v542_v37, 7 }
  0x1f   : > { %423 = vst.msk [vmem:[#allocation2 + $0x110] sm:$0xff] %vm388_vm0, %v10098_v0  ;;  %424 = vst.msk [vmem:[#allocation2 + $0x118] sm:$0xff] %vm388_vm0, %v10098_v0  ;;  %v546_v52 = vld [vmem:[#allocation2 + $0xa0] sm:$0xff] }
  0x20   : > { %425 = vst.msk [vmem:[#allocation2 + $0x120] sm:$0xff] %vm388_vm0, %v10098_v0  ;;  %426 = vst.msk [vmem:[#allocation2 + $0x128] sm:$0xff] %vm388_vm0, %v10098_v0 }
  0x21   : > { %427 = vst.msk [vmem:[#allocation2 + $0x130] sm:$0xff] %vm388_vm0, %v10098_v0  ;;  %428 = vst.msk [vmem:[#allocation2 + $0x138] sm:$0xff] %vm388_vm0, %v10098_v0  ;;  %v550_v8 = vld [vmem:[#allocation2 + $0xc0] sm:$0xff] }
  0x22   : > { %429 = vst.msk [vmem:[#allocation2 + $0x140] sm:$0xff] %vm388_vm0, %v10098_v0  ;;  %430 = vst.msk [vmem:[#allocation2 + $0x148] sm:$0xff] %vm388_vm0, %v10098_v0  ;;  %v677_v12 = vrot.slane %v550_v8, 7 }
  0x23   : > { %431 = vst.msk [vmem:[#allocation2 + $0x150] sm:$0xff] %vm388_vm0, %v10098_v0  ;;  %432 = vst.msk [vmem:[#allocation2 + $0x158] sm:$0xff] %vm388_vm0, %v10098_v0 }
  0x24   : > { %433 = vst.msk [vmem:[#allocation2 + $0x160] sm:$0xff] %vm388_vm0, %v10098_v0  ;;  %434 = vst.msk [vmem:[#allocation2 + $0x168] sm:$0xff] %vm388_vm0, %v10098_v0 }
  0x25   : > { %435 = vst.msk [vmem:[#allocation2 + $0x170] sm:$0xff] %vm388_vm0, %v10098_v0  ;;  %436 = vst.msk [vmem:[#allocation2 + $0x178] sm:$0xff] %vm388_vm0, %v10098_v0 }
  0x26   : > { %437 = vst.msk [vmem:[#allocation2 + $0x180] sm:$0xff] %vm388_vm0, %v10098_v0  ;;  %438 = vst.msk [vmem:[#allocation2 + $0x188] sm:$0xff] %vm388_vm0, %v10098_v0 }
  0x27   : > { %439 = vst.msk [vmem:[#allocation2 + $0x190] sm:$0xff] %vm388_vm0, %v10098_v0  ;;  %440 = vst.msk [vmem:[#allocation2 + $0x198] sm:$0xff] %vm388_vm0, %v10098_v0 }
  0x28   : > { %441 = vst.msk [vmem:[#allocation2 + $0x1a0] sm:$0xff] %vm388_vm0, %v10098_v0  ;;  %442 = vst.msk [vmem:[#allocation2 + $0x1a8] sm:$0xff] %vm388_vm0, %v10098_v0 }
  0x29   : > { %443 = vst.msk [vmem:[#allocation2 + $0x1b0] sm:$0xff] %vm388_vm0, %v10098_v0  ;;  %444 = vst.msk [vmem:[#allocation2 + $0x1b8] sm:$0xff] %vm388_vm0, %v10098_v0 }
  0x2a   : > { %445 = vst.msk [vmem:[#allocation2 + $0x1c0] sm:$0xff] %vm388_vm0, %v10098_v0  ;;  %446 = vst.msk [vmem:[#allocation2 + $0x1c8] sm:$0xff] %vm388_vm0, %v10098_v0 }
  0x2b   : > { %447 = vst.msk [vmem:[#allocation2 + $0x1d0] sm:$0xff] %vm388_vm0, %v10098_v0  ;;  %448 = vst.msk [vmem:[#allocation2 + $0x1d8] sm:$0xff] %vm388_vm0, %v10098_v0 }
  0x2c   : > { %449 = vst.msk [vmem:[#allocation2 + $0x1e0] sm:$0xff] %vm388_vm0, %v10098_v0  ;;  %450 = vst.msk [vmem:[#allocation2 + $0x1e8] sm:$0xff] %vm388_vm0, %v10098_v0 }
  0x2d   : > { %451 = vst.msk [vmem:[#allocation2 + $0x1f0] sm:$0xff] %vm388_vm0, %v10098_v0  ;;  %452 = vst.msk [vmem:[#allocation2 + $0x1f8] sm:$0xff] %vm388_vm0, %v10098_v0 }
  0x2e   : > { %453 = vst.msk [vmem:[#allocation2 + $0x200] sm:$0xff] %vm388_vm0, %v10098_v0  ;;  %454 = vst.msk [vmem:[#allocation2 + $0x208] sm:$0xff] %vm388_vm0, %v10098_v0 }
  0x2f   : > { %455 = vst.msk [vmem:[#allocation2 + $0x210] sm:$0xff] %vm388_vm0, %v10098_v0  ;;  %456 = vst.msk [vmem:[#allocation2 + $0x218] sm:$0xff] %vm388_vm0, %v10098_v0 }
  0x30   : > { %457 = vst.msk [vmem:[#allocation2 + $0x220] sm:$0xff] %vm388_vm0, %v10098_v0  ;;  %458 = vst.msk [vmem:[#allocation2 + $0x228] sm:$0xff] %vm388_vm0, %v10098_v0 }
  0x31   : > { %459 = vst.msk [vmem:[#allocation2 + $0x230] sm:$0xff] %vm388_vm0, %v10098_v0  ;;  %460 = vst.msk [vmem:[#allocation2 + $0x238] sm:$0xff] %vm388_vm0, %v10098_v0 }
  0x32   : > { %494 = vst.msk [vmem:[#allocation2 + $0x28] sm:$0xff] %vm388_vm0, %v461_v1  ;;  %495 = vst.msk [vmem:[#allocation2 + $0x30] sm:$0xff] %vm388_vm0, %v462_v2  ;;  %v672_v1 = vrot.slane %v546_v52, 7 }
  0x33   : > { %496 = vst.msk [vmem:[#allocation2 + $0x48] sm:$0xff] %vm388_vm0, %v463_v3  ;;  %497 = vst.msk [vmem:[#allocation2 + $0x50] sm:$0xff] %vm388_vm0, %v464_v11 }
  0x34   : > { %498 = vst.msk [vmem:[#allocation2 + $0x68] sm:$0xff] %vm388_vm0, %v465_v15  ;;  %499 = vst.msk [vmem:[#allocation2 + $0x70] sm:$0xff] %vm388_vm0, %v466_v16 }
  0x35   : > { %500 = vst.msk [vmem:[#allocation2 + $0x88] sm:$0xff] %vm388_vm0, %v467_v18  ;;  %760 = vst.msk [vmem:[#allocation5 + $0x10] sm:$0xff] %vm388_vm0, %v651_v19 }
  0x36   : > { %501 = vst.msk [vmem:[#allocation2 + $0x90] sm:$0xff] %vm388_vm0, %v468_v21  ;;  %502 = vst.msk [vmem:[#allocation2 + $0xa8] sm:$0xff] %vm388_vm0, %v469_v22  ;;  %v950_v21 = vrot.slane %v537_v20, 1  ;;  %v473_v22 = vld [vmem:[%s10343_s22 + $0x60] sm:$0xff]  ;;  %v549_v20 = vld [vmem:[#allocation2 + $0xb8] sm:$0xff] }
  0x37   : > { %503 = vst.msk [vmem:[#allocation2 + $0xb0] sm:$0xff] %vm388_vm0, %v470_v26  ;;  %759 = vst.msk [vmem:[#allocation5] sm:$0xff] %vm388_vm0, %v649_v40  ;;  %v554_v26 = vld [vmem:[#allocation2 + $0xe0] sm:$0xff] }
  0x38   : > { %504 = vst.msk [vmem:[#allocation2 + $0xc8] sm:$0xff] %vm388_vm0, %v471_v41  ;;  %505 = vst.msk [vmem:[#allocation2 + $0xd0] sm:$0xff] %vm388_vm0, %v472_v56 }
  0x39   : > { %v10371_v28 = vld [vmem:[#allocation2 + $0x28] sm:$0xff]  ;;  %v10373_v29 = vld [vmem:[#allocation2 + $0x30] sm:$0xff]  ;;  %506 = vst.msk [vmem:[#allocation2 + $0xe8] sm:$0xff] %vm388_vm0, %v473_v22  ;;  %v965_v22 = vrot.slane %v549_v20, 1  ;;  %v570_v20 = vld [vmem:[#allocation2 + $0x160] sm:$0xff] }
  0x3a   : > { %v10375_v30 = vld [vmem:[#allocation2 + $0x48] sm:$0xff]  ;;  %795 = vrot.lane.b32.xlu1 %v10371_v28, %s10099_s23  ;;  %v942_v33 = vrot.slane %v10371_v28, 1  ;;  %v943_v34 = vrot.slane %v10373_v29, 1  ;;  %v653_v35 = vrot.slane %v10371_v28, 7  ;;  %v655_v36 = vrot.slane %v10373_v29, 7  ;;  %v10393_v45 = vld [vmem:[#allocation2 + $0x50] sm:$0xff] }
  0x3b   : > { %v658_v39 = vrot.slane %v10375_v30, 7  ;;  %v660_v48 = vrot.slane %v10393_v45, 7  ;;  %v10403_v49 = vld [vmem:[#allocation2 + $0x68] sm:$0xff]  ;;  %v10405_v50 = vld [vmem:[#allocation2 + $0x70] sm:$0xff]  ;;  %v947_v18 = vrot.slane %v10375_v30, 1  ;;  %v948_v19 = vrot.slane %v10393_v45, 1 }
  0x3c   : > { %v10389_v42 = vsel %vm15158_vm1, %v942_v33, %v943_v34  ;;  %v654_v43 = vsel %vm15159_vm2, %v652_v24, %v653_v35  ;;  %v656_v44 = vsel %vm15159_vm2, %v653_v35, %v655_v36  ;;  %v663_v53 = vrot.slane %v10403_v49, 7  ;;  %v10413_v55 = vld [vmem:[#allocation2 + $0x88] sm:$0xff]  ;;  %v10030_v35 = vld [vmem:[%s15145_s1] sm:$0xff]   ;;  %2340 = vst.msk [vmem:[#allocation3 + $0x48] sm:$0xff] %vm2330_vm12, %v10098_v0  ;;  %2331 = vst.msk [vmem:[#allocation3] sm:$0xff] %vm2330_vm12, %v10098_v0 }
  0x3d   : > { %761 = vst.msk [vmem:[#allocation5 + $0x20] sm:$0xff] %vm388_vm0, %v654_v43  ;;  %762 = vst.msk [vmem:[#allocation5 + $0x30] sm:$0xff] %vm388_vm0, %v656_v44  ;;  %v10400_v47 = vsel %vm15159_vm2, %v657_v31, %v658_v39  ;;  %v665_v54 = vrot.slane %v10405_v50, 7  ;;  %1021 = vrot.lane.b32.xlu0 %v10389_v42, %s10100_s24  ;;  %v946_v57 = vsel %vm15158_vm1, %v943_v34, %v945_v38  ;;  %v668_v59 = vrot.slane %v10413_v55, 7  ;;  %v10423_v60 = vld [vmem:[#allocation2 + $0x90] sm:$0xff]  ;;  %v10425_v61 = vld [vmem:[#allocation2 + $0xa8] sm:$0xff] }
  0x3e   : > { %797 = vrot.lane.b32.xlu1 %v10373_v29, %s10099_s23  ;;  %763 = vst.msk [vmem:[#allocation5 + $0x40] sm:$0xff] %vm388_vm0, %v10400_v47  ;;  %v10420_v58 = vsel %vm15159_vm2, %v658_v39, %v660_v48  ;;  %v10431_v62 = vsel %vm15159_vm2, %v662_v46, %v663_v53  ;;  %v10436_v2 = vld [vmem:[#allocation2 + $0xb0] sm:$0xff]  ;;  %v670_v4 = vrot.slane %v10423_v60, 7  ;;  %v673_v5 = vrot.slane %v10425_v61, 7  ;;  %v474_v24 = vld [vmem:[%s10343_s22 + $0x68] sm:$0xff]  ;;  %9946 = vmatprep.subr.bf16.mxu0 %v10030_v35  ;;  %v541_v38 = vld [vmem:[#allocation2 + $0x78] sm:$0xff] }
  0x3f   : > { %764 = vst.msk [vmem:[#allocation5 + $0x50] sm:$0xff] %vm388_vm0, %v10420_v58  ;;  %v10434_v63 = vsel %vm15159_vm2, %v663_v53, %v665_v54  ;;  %765 = vst.msk [vmem:[#allocation5 + $0x60] sm:$0xff] %vm388_vm0, %v10431_v62  ;;  %v10443_v3 = vsel %vm15159_vm2, %v667_v51, %v668_v59  ;;  %v675_v6 = vrot.slane %v10436_v2, 7  ;;  %v10455_v9 = vld [vmem:[#allocation2 + $0xc8] sm:$0xff]  ;;  %v10471_v14 = vld [vmem:[#allocation2 + $0xd0] sm:$0xff]  ;;  %v949_v23 = vsel %vm15158_vm1, %v947_v18, %v948_v19 }
  0x40   : > { %766 = vst.msk [vmem:[#allocation5 + $0x70] sm:$0xff] %vm388_vm0, %v10434_v63  ;;  %767 = vst.msk [vmem:[#allocation5 + $0x80] sm:$0xff] %vm388_vm0, %v10443_v3  ;;  %v10453_v7 = vsel %vm15159_vm2, %v668_v59, %v670_v4  ;;  %v10460_v10 = vsel %vm15159_vm2, %v672_v1, %v673_v5  ;;  %v678_v13 = vrot.slane %v10455_v9, 7  ;;  %v680_v16 = vrot.slane %v10471_v14, 7  ;;  %v10511_v27 = vld [vmem:[#allocation2 + $0xe8] sm:$0xff]  ;;  %9947 = vmatpush3.bf16.msra.mxu0 %v10030_v35  ;;  %v476_v46 = vld [vmem:[%s10343_s22 + $0x78] sm:$0xff] }
  0x41   : > { %1154 = vrot.lane.b32.xlu0 %v654_v43, %s10101_s25  ;;  %768 = vst.msk [vmem:[#allocation5 + $0x90] sm:$0xff] %vm388_vm0, %v10453_v7  ;;  %v10463_v11 = vsel %vm15159_vm2, %v673_v5, %v675_v6  ;;  %769 = vst.msk [vmem:[#allocation5 + $0xa0] sm:$0xff] %vm388_vm0, %v10460_v10  ;;  %v951_v25 = vsel %vm15158_vm1, %v948_v19, %v950_v21  ;;  %v952_v36 = vrot.slane %v10403_v49, 1  ;;  %v953_v37 = vrot.slane %v10405_v50, 1  ;;  %v562_v1 = vld [vmem:[#allocation2 + $0x120] sm:$0xff] }
  0x42   : > { %1023 = vrot.lane.b32.xlu1 %v946_v57, %s10100_s24  ;;  %770 = vst.msk [vmem:[#allocation5 + $0xb0] sm:$0xff] %vm388_vm0, %v10463_v11  ;;  %v10476_v15 = vsel %vm15159_vm2, %v677_v12, %v678_v13  ;;  %v10482_v17 = vsel %vm15159_vm2, %v678_v13, %v680_v16  ;;  %507 = vst.msk [vmem:[#allocation2 + $0xf0] sm:$0xff] %vm388_vm0, %v474_v24  ;;  %v10031_v39 = vld [vmem:[%s15145_s1 + $0x8] ss:$0 sps:$4 sm:$0x11]   ;;  %v955_v40 = vrot.slane %v541_v38, 1 }
  0x43   : > { %771 = vst.msk [vmem:[#allocation5 + $0xc0] sm:$0xff] %vm388_vm0, %v10476_v15  ;;  %772 = vst.msk [vmem:[#allocation5 + $0xd0] sm:$0xff] %vm388_vm0, %v10482_v17  ;;  %10000 = vmatprep.subr.msk.bf16.mxu0 %vm15159_vm2, %v10031_v39  ;;  %v2063_v41 = vsel %vm15159_vm2, %v10031_v39, 0  ;;  %v957_v56 = vrot.slane %v10413_v55, 1  ;;  %v692_v5 = vrot.slane %v562_v1, 7  ;;  %v962_v18 = vrot.slane %v10425_v61, 1 }
  0x44   : > { %9949 = vmatpush3.bf16.msra.mxu0 %v2063_v41  ;;  %v956_v43 = vsel %vm15158_vm1, %v953_v37, %v955_v40  ;;  %509 = vst.msk [vmem:[#allocation2 + $0x110] sm:$0xff] %vm388_vm0, %v476_v46  ;;  %v963_v19 = vrot.slane %v10436_v2, 1  ;;  %v480_v39 = vld [vmem:[%s10343_s22 + $0x98] sm:$0xff]  ;;  %v481_v1 = vld [vmem:[%s10343_s22 + $0xa0] sm:$0xff] }
  0x45   : > { %1158 = vrot.lane.b32.xlu0 %v10400_v47, %s10101_s25  ;;  %513 = vst.msk [vmem:[#allocation2 + $0x150] sm:$0xff] %vm388_vm0, %v480_v39  ;;  %514 = vst.msk [vmem:[#allocation2 + $0x168] sm:$0xff] %vm388_vm0, %v481_v1  ;;  %v484_v1 = vld [vmem:[%s10343_s22 + $0xb8] sm:$0xff] }
  0x46   : > { %1156 = vrot.lane.b32.xlu1 %v656_v44, %s10101_s25  ;;  %v475_v44 = vld [vmem:[%s10343_s22 + $0x70] sm:$0xff]  ;;  %v10663_v24 = vsel %vm15158_vm1, %v962_v18, %v963_v19  ;;  %517 = vst.msk [vmem:[#allocation2 + $0x190] sm:$0xff] %vm388_vm0, %v484_v1 }
  0x47   : > { %508 = vst.msk [vmem:[#allocation2 + $0x108] sm:$0xff] %vm388_vm0, %v475_v44 }
  0x48   : > { %2332 = vst.msk [vmem:[#allocation3 + $0x8] sm:$0xff] %vm2330_vm12, %v10098_v0  ;;  %2333 = vst.msk [vmem:[#allocation3 + $0x10] sm:$0xff] %vm2330_vm12, %v10098_v0 }
  0x49   : > { %1283 = vrot.lane.b32.xlu0 %v10371_v28, %s10102_s26  ;;  %v682_v28 = vrot.slane %v554_v26, 7  ;;  %v10519_v32 = vld [vmem:[#allocation2 + $0xf0] sm:$0xff]  ;;  %v10672_v26 = vsel %vm15158_vm1, %v963_v19, %v965_v22  ;;  %2334 = vst.msk [vmem:[#allocation3 + $0x18] sm:$0xff] %vm2330_vm12, %v10098_v0  ;;  %2335 = vst.msk [vmem:[#allocation3 + $0x20] sm:$0xff] %vm2330_vm12, %v10098_v0 }
  0x4a   : > { %1160 = vrot.lane.b32.xlu1 %v10420_v58, %s10101_s25  ;;  %v685_v33 = vrot.slane %v10519_v32, 7  ;;  %v973_v39 = vrot.slane %v10519_v32, 1  ;;  %2336 = vst.msk [vmem:[#allocation3 + $0x28] sm:$0xff] %vm2330_vm12, %v10098_v0  ;;  %2337 = vst.msk [vmem:[#allocation3 + $0x30] sm:$0xff] %vm2330_vm12, %v10098_v0 }
  0x4b   : > { %v10583_v52 = vld [vmem:[#allocation2 + $0x110] sm:$0xff]  ;;  %2338 = vst.msk [vmem:[#allocation3 + $0x38] sm:$0xff] %vm2330_vm12, %v10098_v0  ;;  %2339 = vst.msk [vmem:[#allocation3 + $0x40] sm:$0xff] %vm2330_vm12, %v10098_v0 }
  0x4c   : > { %v690_v53 = vrot.slane %v10583_v52, 7  ;;  %2341 = vst.msk [vmem:[#allocation3 + $0x50] sm:$0xff] %vm2330_vm12, %v10098_v0  ;;  %2342 = vst.msk [vmem:[#allocation3 + $0x58] sm:$0xff] %vm2330_vm12, %v10098_v0 }
  0x4d   : > { %1287 = vrot.lane.b32.xlu0 %v10375_v30, %s10102_s26  ;;  %2343 = vst.msk [vmem:[#allocation3 + $0x60] sm:$0xff] %vm2330_vm12, %v10098_v0  ;;  %2344 = vst.msk [vmem:[#allocation3 + $0x68] sm:$0xff] %vm2330_vm12, %v10098_v0 }
  0x4e   : > { %1285 = vrot.lane.b32.xlu1 %v10373_v29, %s10102_s26  ;;  %v683_v29 = vrot.slane %v10511_v27, 7  ;;  %2345 = vst.msk [vmem:[#allocation3 + $0x70] sm:$0xff] %vm2330_vm12, %v10098_v0  ;;  %2346 = vst.msk [vmem:[#allocation3 + $0x78] sm:$0xff] %vm2330_vm12, %v10098_v0 }
  0x4f   : > { %2347 = vst.msk [vmem:[#allocation3 + $0x80] sm:$0xff] %vm2330_vm12, %v10098_v0  ;;  %2348 = vst.msk [vmem:[#allocation3 + $0x88] sm:$0xff] %vm2330_vm12, %v10098_v0 }
  0x50   : > { %v10517_v31 = vsel %vm15159_vm2, %v682_v28, %v683_v29  ;;  %v10527_v34 = vsel %vm15159_vm2, %v683_v29, %v685_v33  ;;  %2349 = vst.msk [vmem:[#allocation3 + $0x90] sm:$0xff] %vm2330_vm12, %v10098_v0  ;;  %2350 = vst.msk [vmem:[#allocation3 + $0x98] sm:$0xff] %vm2330_vm12, %v10098_v0 }
  0x51   : > { %1418 = vrot.lane.b32.xlu0 %v10389_v42, %s10103_s27  ;;  %773 = vst.msk [vmem:[#allocation5 + $0xe0] sm:$0xff] %vm388_vm0, %v10517_v31  ;;  %774 = vst.msk [vmem:[#allocation5 + $0xf0] sm:$0xff] %vm388_vm0, %v10527_v34  ;;  %v954_v42 = vsel %vm15158_vm1, %v952_v36, %v953_v37 }
  0x52   : > { %1289 = vrot.lane.b32.xlu1 %v10393_v45, %s10102_s26  ;;  %2351 = vst.msk [vmem:[#allocation3 + $0xa0] sm:$0xff] %vm2330_vm12, %v10098_v0  ;;  %2352 = vst.msk [vmem:[#allocation3 + $0xa8] sm:$0xff] %vm2330_vm12, %v10098_v0 }
  0x53   : > { %2353 = vst.msk [vmem:[#allocation3 + $0xb0] sm:$0xff] %vm2330_vm12, %v10098_v0  ;;  %2354 = vst.msk [vmem:[#allocation3 + $0xb8] sm:$0xff] %vm2330_vm12, %v10098_v0 }
  0x54   : > { %2355 = vst.msk [vmem:[#allocation3 + $0xc0] sm:$0xff] %vm2330_vm12, %v10098_v0  ;;  %2356 = vst.msk [vmem:[#allocation3 + $0xc8] sm:$0xff] %vm2330_vm12, %v10098_v0 }
  0x55   : > { %1422 = vrot.lane.b32.xlu0 %v949_v23, %s10103_s27  ;;  %2357 = vst.msk [vmem:[#allocation3 + $0xd0] sm:$0xff] %vm2330_vm12, %v10098_v0  ;;  %2358 = vst.msk [vmem:[#allocation3 + $0xd8] sm:$0xff] %vm2330_vm12, %v10098_v0 }
  0x56   : > { %1420 = vrot.lane.b32.xlu1 %v946_v57, %s10103_s27  ;;  %v958_v57 = vrot.slane %v10423_v60, 1  ;;  %2359 = vst.msk [vmem:[#allocation3 + $0xe0] sm:$0xff] %vm2330_vm12, %v10098_v0  ;;  %2360 = vst.msk [vmem:[#allocation3 + $0xe8] sm:$0xff] %vm2330_vm12, %v10098_v0 }
  0x57   : > { %2361 = vst.msk [vmem:[#allocation3 + $0xf0] sm:$0xff] %vm2330_vm12, %v10098_v0  ;;  %2362 = vst.msk [vmem:[#allocation3 + $0xf8] sm:$0xff] %vm2330_vm12, %v10098_v0 }
  0x58   : > { %2363 = vst.msk [vmem:[#allocation3 + $0x100] sm:$0xff] %vm2330_vm12, %v10098_v0  ;;  %2364 = vst.msk [vmem:[#allocation3 + $0x108] sm:$0xff] %vm2330_vm12, %v10098_v0 }
  0x59   : > { %1555 = vrot.lane.b32.xlu0 %v10400_v47, %s10104_s28  ;;  %2365 = vst.msk [vmem:[#allocation3 + $0x110] sm:$0xff] %vm2330_vm12, %v10098_v0  ;;  %2366 = vst.msk [vmem:[#allocation3 + $0x118] sm:$0xff] %vm2330_vm12, %v10098_v0 }
  0x5a   : > { %1424 = vrot.lane.b32.xlu1 %v951_v25, %s10103_s27  ;;  %2367 = vst.msk [vmem:[#allocation3 + $0x120] sm:$0xff] %vm2330_vm12, %v10098_v0  ;;  %2368 = vst.msk [vmem:[#allocation3 + $0x128] sm:$0xff] %vm2330_vm12, %v10098_v0 }
  0x5b   : > { %2369 = vst.msk [vmem:[#allocation3 + $0x130] sm:$0xff] %vm2330_vm12, %v10098_v0  ;;  %2370 = vst.msk [vmem:[#allocation3 + $0x138] sm:$0xff] %vm2330_vm12, %v10098_v0 }
  0x5c   : > { %2371 = vst.msk [vmem:[#allocation3 + $0x140] sm:$0xff] %vm2330_vm12, %v10098_v0  ;;  %2372 = vst.msk [vmem:[#allocation3 + $0x148] sm:$0xff] %vm2330_vm12, %v10098_v0 }
  0x5d   : > { %1559 = vrot.lane.b32.xlu0 %v10431_v62, %s10104_s28  ;;  %2373 = vst.msk [vmem:[#allocation3 + $0x150] sm:$0xff] %vm2330_vm12, %v10098_v0  ;;  %2374 = vst.msk [vmem:[#allocation3 + $0x158] sm:$0xff] %vm2330_vm12, %v10098_v0 }
  0x5e   : > { %1557 = vrot.lane.b32.xlu1 %v10420_v58, %s10104_s28  ;;  %v545_v58 = vld [vmem:[#allocation2 + $0x98] sm:$0xff]  ;;  %2375 = vst.msk [vmem:[#allocation3 + $0x160] sm:$0xff] %vm2330_vm12, %v10098_v0  ;;  %2376 = vst.msk [vmem:[#allocation3 + $0x168] sm:$0xff] %vm2330_vm12, %v10098_v0 }
  0x5f   : > { %v960_v59 = vrot.slane %v545_v58, 1  ;;  %2377 = vst.msk [vmem:[#allocation3 + $0x170] sm:$0xff] %vm2330_vm12, %v10098_v0  ;;  %2378 = vst.msk [vmem:[#allocation3 + $0x178] sm:$0xff] %vm2330_vm12, %v10098_v0 }
  0x60   : > { %2379 = vst.msk [vmem:[#allocation3 + $0x180] sm:$0xff] %vm2330_vm12, %v10098_v0  ;;  %2380 = vst.msk [vmem:[#allocation3 + $0x188] sm:$0xff] %vm2330_vm12, %v10098_v0 }
  0x61   : > { %1684 = vrot.lane.b32.xlu0 %v10375_v30, %s10105_s29  ;;  %2381 = vst.msk [vmem:[#allocation3 + $0x190] sm:$0xff] %vm2330_vm12, %v10098_v0  ;;  %2382 = vst.msk [vmem:[#allocation3 + $0x198] sm:$0xff] %vm2330_vm12, %v10098_v0 }
  0x62   : > { %1561 = vrot.lane.b32.xlu1 %v10434_v63, %s10104_s28  ;;  %2383 = vst.msk [vmem:[#allocation3 + $0x1a0] sm:$0xff] %vm2330_vm12, %v10098_v0  ;;  %2384 = vst.msk [vmem:[#allocation3 + $0x1a8] sm:$0xff] %vm2330_vm12, %v10098_v0 }
  0x63   : > { %2385 = vst.msk [vmem:[#allocation3 + $0x1b0] sm:$0xff] %vm2330_vm12, %v10098_v0  ;;  %2386 = vst.msk [vmem:[#allocation3 + $0x1b8] sm:$0xff] %vm2330_vm12, %v10098_v0 }
  0x64   : > { %2387 = vst.msk [vmem:[#allocation3 + $0x1c0] sm:$0xff] %vm2330_vm12, %v10098_v0  ;;  %2388 = vst.msk [vmem:[#allocation3 + $0x1c8] sm:$0xff] %vm2330_vm12, %v10098_v0 }
  0x65   : > { %1688 = vrot.lane.b32.xlu0 %v10403_v49, %s10105_s29  ;;  %2389 = vst.msk [vmem:[#allocation3 + $0x1d0] sm:$0xff] %vm2330_vm12, %v10098_v0  ;;  %2390 = vst.msk [vmem:[#allocation3 + $0x1d8] sm:$0xff] %vm2330_vm12, %v10098_v0 }
  0x66   : > { %1686 = vrot.lane.b32.xlu1 %v10393_v45, %s10105_s29  ;;  %2391 = vst.msk [vmem:[#allocation3 + $0x1e0] sm:$0xff] %vm2330_vm12, %v10098_v0  ;;  %2392 = vst.msk [vmem:[#allocation3 + $0x1e8] sm:$0xff] %vm2330_vm12, %v10098_v0 }
  0x67   : > { %2393 = vst.msk [vmem:[#allocation3 + $0x1f0] sm:$0xff] %vm2330_vm12, %v10098_v0  ;;  %2394 = vst.msk [vmem:[#allocation3 + $0x1f8] sm:$0xff] %vm2330_vm12, %v10098_v0 }
  0x68   : > { %2395 = vst.msk [vmem:[#allocation3 + $0x200] sm:$0xff] %vm2330_vm12, %v10098_v0  ;;  %2396 = vst.msk [vmem:[#allocation3 + $0x208] sm:$0xff] %vm2330_vm12, %v10098_v0 }
  0x69   : > { %1819 = vrot.lane.b32.xlu0 %v949_v23, %s10106_s15  ;;  %2397 = vst.msk [vmem:[#allocation3 + $0x210] sm:$0xff] %vm2330_vm12, %v10098_v0  ;;  %2398 = vst.msk [vmem:[#allocation3 + $0x218] sm:$0xff] %vm2330_vm12, %v10098_v0 }
  0x6a   : > { %1690 = vrot.lane.b32.xlu1 %v10405_v50, %s10105_s29  ;;  %2399 = vst.msk [vmem:[#allocation3 + $0x220] sm:$0xff] %vm2330_vm12, %v10098_v0  ;;  %2400 = vst.msk [vmem:[#allocation3 + $0x228] sm:$0xff] %vm2330_vm12, %v10098_v0 }
  0x6b   : > { %2401 = vst.msk [vmem:[#allocation3 + $0x230] sm:$0xff] %vm2330_vm12, %v10098_v0  ;;  %2402 = vst.msk [vmem:[#allocation3 + $0x238] sm:$0xff] %vm2330_vm12, %v10098_v0 }
  0x6c   : > { %6070 = vst.msk [vmem:[#allocation4] sm:$0xff] %vm2330_vm12, %v10098_v0  ;;  %6071 = vst.msk [vmem:[#allocation4 + $0x8] sm:$0xff] %vm2330_vm12, %v10098_v0 }
  0x6d   : > { %1823 = vrot.lane.b32.xlu0 %v954_v42, %s10106_s15  ;;  %6072 = vst.msk [vmem:[#allocation4 + $0x10] sm:$0xff] %vm2330_vm12, %v10098_v0  ;;  %6073 = vst.msk [vmem:[#allocation4 + $0x18] sm:$0xff] %vm2330_vm12, %v10098_v0 }
  0x6e   : > { %1821 = vrot.lane.b32.xlu1 %v951_v25, %s10106_s15  ;;  %6074 = vst.msk [vmem:[#allocation4 + $0x20] sm:$0xff] %vm2330_vm12, %v10098_v0  ;;  %6075 = vst.msk [vmem:[#allocation4 + $0x28] sm:$0xff] %vm2330_vm12, %v10098_v0 }
  0x6f   : > { %6076 = vst.msk [vmem:[#allocation4 + $0x30] sm:$0xff] %vm2330_vm12, %v10098_v0  ;;  %6077 = vst.msk [vmem:[#allocation4 + $0x38] sm:$0xff] %vm2330_vm12, %v10098_v0 }
  0x70   : > { %6078 = vst.msk [vmem:[#allocation4 + $0x40] sm:$0xff] %vm2330_vm12, %v10098_v0  ;;  %6079 = vst.msk [vmem:[#allocation4 + $0x48] sm:$0xff] %vm2330_vm12, %v10098_v0 }
  0x71   : > { %799 = vrot.lane.b32.xlu0 %v10375_v30, %s10099_s23  ;;  %v558_v30 = vld [vmem:[#allocation2 + $0x100] sm:$0xff]  ;;  %6080 = vst.msk [vmem:[#allocation4 + $0x50] sm:$0xff] %vm2330_vm12, %v10098_v0  ;;  %6081 = vst.msk [vmem:[#allocation4 + $0x58] sm:$0xff] %vm2330_vm12, %v10098_v0 }
  0x72   : > { %1825 = vrot.lane.b32.xlu1 %v956_v43, %s10106_s15  ;;  %v687_v47 = vrot.slane %v558_v30, 7  ;;  %6082 = vst.msk [vmem:[#allocation4 + $0x60] sm:$0xff] %vm2330_vm12, %v10098_v0  ;;  %6083 = vst.msk [vmem:[#allocation4 + $0x68] sm:$0xff] %vm2330_vm12, %v10098_v0 }
  0x73   : > { %6084 = vst.msk [vmem:[#allocation4 + $0x70] sm:$0xff] %vm2330_vm12, %v10098_v0  ;;  %6085 = vst.msk [vmem:[#allocation4 + $0x78] sm:$0xff] %vm2330_vm12, %v10098_v0 }
  0x74   : > { %6086 = vst.msk [vmem:[#allocation4 + $0x80] sm:$0xff] %vm2330_vm12, %v10098_v0  ;;  %6087 = vst.msk [vmem:[#allocation4 + $0x88] sm:$0xff] %vm2330_vm12, %v10098_v0 }
  0x75   : > { %803 = vrot.lane.b32.xlu0 %v10403_v49, %s10099_s23  ;;  %6088 = vst.msk [vmem:[#allocation4 + $0x90] sm:$0xff] %vm2330_vm12, %v10098_v0  ;;  %6089 = vst.msk [vmem:[#allocation4 + $0x98] sm:$0xff] %vm2330_vm12, %v10098_v0 }
  0x76   : > { %801 = vrot.lane.b32.xlu1 %v10393_v45, %s10099_s23  ;;  %v10575_v45 = vld [vmem:[#allocation2 + $0x108] sm:$0xff]  ;;  %6090 = vst.msk [vmem:[#allocation4 + $0xa0] sm:$0xff] %vm2330_vm12, %v10098_v0  ;;  %6091 = vst.msk [vmem:[#allocation4 + $0xa8] sm:$0xff] %vm2330_vm12, %v10098_v0 }
  0x77   : > { %v688_v48 = vrot.slane %v10575_v45, 7  ;;  %6092 = vst.msk [vmem:[#allocation4 + $0xb0] sm:$0xff] %vm2330_vm12, %v10098_v0  ;;  %6093 = vst.msk [vmem:[#allocation4 + $0xb8] sm:$0xff] %vm2330_vm12, %v10098_v0 }
  0x78   : > { %6094 = vst.msk [vmem:[#allocation4 + $0xc0] sm:$0xff] %vm2330_vm12, %v10098_v0  ;;  %6095 = vst.msk [vmem:[#allocation4 + $0xc8] sm:$0xff] %vm2330_vm12, %v10098_v0 }
  0x79   : > { %1025 = vrot.lane.b32.xlu0 %v949_v23, %s10100_s24  ;;  %v10581_v51 = vsel %vm15159_vm2, %v687_v47, %v688_v48  ;;  %v10591_v54 = vsel %vm15159_vm2, %v688_v48, %v690_v53  ;;  %6096 = vst.msk [vmem:[#allocation4 + $0xd0] sm:$0xff] %vm2330_vm12, %v10098_v0  ;;  %6097 = vst.msk [vmem:[#allocation4 + $0xd8] sm:$0xff] %vm2330_vm12, %v10098_v0 }
  0x7a   : > { %805 = vrot.lane.b32.xlu1 %v10405_v50, %s10099_s23  ;;  %775 = vst.msk [vmem:[#allocation5 + $0x100] sm:$0xff] %vm388_vm0, %v10581_v51  ;;  %776 = vst.msk [vmem:[#allocation5 + $0x110] sm:$0xff] %vm388_vm0, %v10591_v54 }
  0x7b   : > { %6098 = vst.msk [vmem:[#allocation4 + $0xe0] sm:$0xff] %vm2330_vm12, %v10098_v0  ;;  %6099 = vst.msk [vmem:[#allocation4 + $0xe8] sm:$0xff] %vm2330_vm12, %v10098_v0 }
  0x7d   : > { %1029 = vrot.lane.b32.xlu0 %v954_v42, %s10100_s24 }
  0x7e   : > { %1027 = vrot.lane.b32.xlu1 %v951_v25, %s10100_s24 }
  0x81   : > { %1162 = vrot.lane.b32.xlu0 %v10431_v62, %s10101_s25  ;;  %v477_v62 = vld [vmem:[%s10343_s22 + $0x80] sm:$0xff] }
  0x82   : > { %1031 = vrot.lane.b32.xlu1 %v956_v43, %s10100_s24  ;;  %510 = vst.msk [vmem:[#allocation2 + $0x128] sm:$0xff] %vm388_vm0, %v477_v62 }
  0x85   : > { %1166 = vrot.lane.b32.xlu0 %v10443_v3, %s10101_s25 }
  0x86   : > { %1164 = vrot.lane.b32.xlu1 %v10434_v63, %s10101_s25  ;;  %v10618_v63 = vsel %vm15158_vm1, %v958_v57, %v960_v59 }
  0x89   : > { %1291 = vrot.lane.b32.xlu0 %v10403_v49, %s10102_s26  ;;  %v10610_v49 = vsel %vm15158_vm1, %v957_v56, %v958_v57  ;;  %v10625_v4 = vld [vmem:[#allocation2 + $0x128] sm:$0xff] }
  0x8a   : > { %1168 = vrot.lane.b32.xlu1 %v10453_v7, %s10101_s25  ;;  %v693_v6 = vrot.slane %v10625_v4, 7 }
  0x8c   : > { %v10631_v8 = vsel %vm15159_vm2, %v692_v5, %v693_v6  ;;  %v1020_v16 = vpop.permute.xlu1 %1019 }
  0x8d   : > { %1295 = vrot.lane.b32.xlu0 %v10413_v55, %s10102_s26  ;;  %777 = vst.msk [vmem:[#allocation5 + $0x120] sm:$0xff] %vm388_vm0, %v10631_v8 }
  0x8e   : > { %1293 = vrot.lane.b32.xlu1 %v10405_v50, %s10102_s26  ;;  %v478_v50 = vld [vmem:[%s10343_s22 + $0x88] sm:$0xff] }
  0x8f   : > { %511 = vst.msk [vmem:[#allocation2 + $0x130] sm:$0xff] %vm388_vm0, %v478_v50  ;;  %v968_v50 = vrot.slane %v10471_v14, 1 }
  0x91   : > { %1426 = vrot.lane.b32.xlu0 %v954_v42, %s10103_s27  ;;  %v566_v42 = vld [vmem:[#allocation2 + $0x140] sm:$0xff] }
  0x92   : > { %1297 = vrot.lane.b32.xlu1 %v10423_v60, %s10102_s26  ;;  %v697_v46 = vrot.slane %v566_v42, 7 }
  0x95   : > { %1430 = vrot.lane.b32.xlu0 %v10610_v49, %s10103_s27 }
  0x96   : > { %1428 = vrot.lane.b32.xlu1 %v956_v43, %s10103_s27  ;;  %v10633_v12 = vld [vmem:[#allocation2 + $0x130] sm:$0xff] }
  0x97   : > { %v983_v1 = vrot.slane %v10633_v12, 1 }
  0x99   : > { %1563 = vrot.lane.b32.xlu0 %v10443_v3, %s10104_s28  ;;  %v695_v3 = vrot.slane %v10633_v12, 7 }
  0x9a   : > { %1432 = vrot.lane.b32.xlu1 %v10618_v63, %s10103_s27 }
  0x9b   : > { %v10641_v13 = vsel %vm15159_vm2, %v693_v6, %v695_v3 }
  0x9c   : > { %778 = vst.msk [vmem:[#allocation5 + $0x130] sm:$0xff] %vm388_vm0, %v10641_v13 }
  0x9d   : > { %1567 = vrot.lane.b32.xlu0 %v10460_v10, %s10104_s28 }
  0x9e   : > { %1565 = vrot.lane.b32.xlu1 %v10453_v7, %s10104_s28  ;;  %v792_v7 = vpop.permute.xlu0 %791 }
  0x9f   : > { %888 = vst.msk [vmem:[#allocation5] sm:$0xff] %vm887_vm3, %v792_v7  ;;  %v482_v7 = vld [vmem:[%s10343_s22 + $0xa8] sm:$0xff] }
  0xa0   : > { %515 = vst.msk [vmem:[#allocation2 + $0x170] sm:$0xff] %vm388_vm0, %v482_v7 }
  0xa1   : > { %1692 = vrot.lane.b32.xlu0 %v10413_v55, %s10105_s29 }
  0xa2   : > { %1569 = vrot.lane.b32.xlu1 %v10463_v11, %s10104_s28  ;;  %v794_v21 = vpop.permute.xlu0 %793 }
  0xa3   : > { %889 = vst.msk [vmem:[#allocation5 + $0x10] sm:$0xff] %vm887_vm3, %v794_v21  ;;  %v10772_v21 = vld [vmem:[#allocation2 + $0x168] sm:$0xff] }
  0xa4   : > { %1115 = vst.msk [vmem:[#allocation5 + $0x10] sm:$0xff] %vm1113_vm4, %v1020_v16 }
  0xa5   : > { %1696 = vrot.lane.b32.xlu0 %v10425_v61, %s10105_s29 }
  0xa6   : > { %1694 = vrot.lane.b32.xlu1 %v10423_v60, %s10105_s29  ;;  %v1018_v25 = vpop.permute.xlu0 %1017 }
  0xa7   : > { %1114 = vst.msk [vmem:[#allocation5] sm:$0xff] %vm1113_vm4, %v1018_v25 }
  0xa9   : > { %1827 = vrot.lane.b32.xlu0 %v10610_v49, %s10106_s15 }
  0xaa   : > { %1698 = vrot.lane.b32.xlu1 %v10436_v2, %s10105_s29 }
  0xac   : > { %v796_v23 = vpop.permute.xlu1 %795 }
  0xad   : > { %890 = vst.msk [vmem:[#allocation5 + $0x20] sm:$0xff] %vm887_vm3, %v796_v23  ;;  %1831 = vrot.lane.b32.xlu0 %v10663_v24, %s10106_s15  ;;  %v702_v23 = vrot.slane %v570_v20, 7 }
  0xae   : > { %1829 = vrot.lane.b32.xlu1 %v10618_v63, %s10106_s15 }
  0xaf   : > { %v1022_v29 = vpop.permute.xlu0 %1021 }
  0xb0   : > { %v798_v28 = vpop.permute.xlu1 %797  ;;  %1116 = vst.msk [vmem:[#allocation5 + $0x20] sm:$0xff] %vm1113_vm4, %v1022_v29 }
  0xb1   : > { %891 = vst.msk [vmem:[#allocation5 + $0x30] sm:$0xff] %vm887_vm3, %v798_v28  ;;  %807 = vrot.lane.b32.xlu0 %v10413_v55, %s10099_s23  ;;  %v479_v55 = vld [vmem:[%s10343_s22 + $0x90] sm:$0xff] }
  0xb2   : > { %1833 = vrot.lane.b32.xlu1 %v10672_v26, %s10106_s15  ;;  %512 = vst.msk [vmem:[#allocation2 + $0x148] sm:$0xff] %vm388_vm0, %v479_v55 }
  0xb3   : > { %v1155_v35 = vpop.permute.xlu0 %1154 }
  0xb4   : > { %v1024_v33 = vpop.permute.xlu1 %1023  ;;  %1251 = vst.msk [vmem:[#allocation5] sm:$0xff] %vm1250_vm5, %v1155_v35 }
  0xb5   : > { %1117 = vst.msk [vmem:[#allocation5 + $0x30] sm:$0xff] %vm1113_vm4, %v1024_v33  ;;  %811 = vrot.lane.b32.xlu0 %v10425_v61, %s10099_s23 }
  0xb6   : > { %809 = vrot.lane.b32.xlu1 %v10423_v60, %s10099_s23 }
  0xb7   : > { %v1159_v37 = vpop.permute.xlu0 %1158 }
  0xb8   : > { %v1157_v36 = vpop.permute.xlu1 %1156  ;;  %1253 = vst.msk [vmem:[#allocation5 + $0x20] sm:$0xff] %vm1250_vm5, %v1159_v37 }
  0xb9   : > { %1252 = vst.msk [vmem:[#allocation5 + $0x10] sm:$0xff] %vm1250_vm5, %v1157_v36  ;;  %1033 = vrot.lane.b32.xlu0 %v10610_v49, %s10100_s24  ;;  %v10708_v43 = vld [vmem:[#allocation2 + $0x148] sm:$0xff]  ;;  %v967_v49 = vrot.slane %v10455_v9, 1 }
  0xba   : > { %813 = vrot.lane.b32.xlu1 %v10436_v2, %s10099_s23  ;;  %v698_v30 = vrot.slane %v10708_v43, 7 }
  0xbb   : > { %v1284_v60 = vpop.permute.xlu0 %1283  ;;  %v10752_v6 = vsel %vm15158_vm1, %v967_v49, %v968_v50 }
  0xbc   : > { %v1161_v38 = vpop.permute.xlu1 %1160  ;;  %1380 = vst.msk [vmem:[#allocation5] sm:$0xff] %vm1379_vm6, %v1284_v60  ;;  %v10716_v48 = vsel %vm15159_vm2, %v697_v46, %v698_v30  ;;  %v972_v60 = vrot.slane %v10511_v27, 1 }
  0xbd   : > { %1254 = vst.msk [vmem:[#allocation5 + $0x30] sm:$0xff] %vm1250_vm5, %v1161_v38  ;;  %1037 = vrot.lane.b32.xlu0 %v10663_v24, %s10100_s24 }
  0xbe   : > { %1035 = vrot.lane.b32.xlu1 %v10618_v63, %s10100_s24  ;;  %779 = vst.msk [vmem:[#allocation5 + $0x140] sm:$0xff] %vm388_vm0, %v10716_v48 }
  0xbf   : > { %v1288_v41 = vpop.permute.xlu0 %1287 }
  0xc0   : > { %v1286_v40 = vpop.permute.xlu1 %1285  ;;  %1382 = vst.msk [vmem:[#allocation5 + $0x20] sm:$0xff] %vm1379_vm6, %v1288_v41 }
  0xc1   : > { %1381 = vst.msk [vmem:[#allocation5 + $0x10] sm:$0xff] %vm1379_vm6, %v1286_v40  ;;  %1170 = vrot.lane.b32.xlu0 %v10460_v10, %s10101_s25  ;;  %v10718_v10 = vld [vmem:[#allocation2 + $0x150] sm:$0xff]  ;;  %v557_v40 = vld [vmem:[#allocation2 + $0xf8] sm:$0xff] }
  0xc2   : > { %1039 = vrot.lane.b32.xlu1 %v10672_v26, %s10100_s24  ;;  %v700_v53 = vrot.slane %v10718_v10, 7  ;;  %v975_v46 = vrot.slane %v557_v40, 1  ;;  %v486_v40 = vld [vmem:[%s10343_s22 + $0xc8] sm:$0xff] }
  0xc3   : > { %v1419_v47 = vpop.permute.xlu0 %1418  ;;  %519 = vst.msk [vmem:[#allocation2 + $0x1b0] sm:$0xff] %vm388_vm0, %v486_v40 }
  0xc4   : > { %v1290_v44 = vpop.permute.xlu1 %1289  ;;  %1515 = vst.msk [vmem:[#allocation5] sm:$0xff] %vm1514_vm7, %v1419_v47  ;;  %v10727_v58 = vsel %vm15159_vm2, %v698_v30, %v700_v53  ;;  %v10816_v47 = vsel %vm15158_vm1, %v972_v60, %v973_v39 }
  0xc5   : > { %1383 = vst.msk [vmem:[#allocation5 + $0x30] sm:$0xff] %vm1379_vm6, %v1290_v44  ;;  %1174 = vrot.lane.b32.xlu0 %v10476_v15, %s10101_s25 }
  0xc6   : > { %1172 = vrot.lane.b32.xlu1 %v10463_v11, %s10101_s25  ;;  %780 = vst.msk [vmem:[#allocation5 + $0x150] sm:$0xff] %vm388_vm0, %v10727_v58 }
  0xc7   : > { %v1423_v57 = vpop.permute.xlu0 %1422 }
  0xc8   : > { %v1421_v56 = vpop.permute.xlu1 %1420  ;;  %1517 = vst.msk [vmem:[#allocation5 + $0x20] sm:$0xff] %vm1514_vm7, %v1423_v57 }
  0xc9   : > { %1516 = vst.msk [vmem:[#allocation5 + $0x10] sm:$0xff] %vm1514_vm7, %v1421_v56  ;;  %1299 = vrot.lane.b32.xlu0 %v10425_v61, %s10102_s26  ;;  %v553_v61 = vld [vmem:[#allocation2 + $0xd8] sm:$0xff] }
  0xca   : > { %1176 = vrot.lane.b32.xlu1 %v10482_v17, %s10101_s25 }
  0xcb   : > { %v1556_v59 = vpop.permute.xlu0 %1555 }
  0xcc   : > { %v1425_v11 = vpop.permute.xlu1 %1424  ;;  %1652 = vst.msk [vmem:[#allocation5] sm:$0xff] %vm1651_vm8, %v1556_v59 }
  0xcd   : > { %1518 = vst.msk [vmem:[#allocation5 + $0x30] sm:$0xff] %vm1514_vm7, %v1425_v11  ;;  %1303 = vrot.lane.b32.xlu0 %v10455_v9, %s10102_s26  ;;  %v10826_v11 = vsel %vm15158_vm1, %v973_v39, %v975_v46  ;;  %v578_v46 = vld [vmem:[#allocation2 + $0x1a0] sm:$0xff] }
  0xce   : > { %1301 = vrot.lane.b32.xlu1 %v10436_v2, %s10102_s26  ;;  %v970_v2 = vrot.slane %v553_v61, 1 }
  0xcf   : > { %v1560_v63 = vpop.permute.xlu0 %1559 }
  0xd0   : > { %v1558_v62 = vpop.permute.xlu1 %1557  ;;  %1654 = vst.msk [vmem:[#allocation5 + $0x20] sm:$0xff] %vm1651_vm8, %v1560_v63  ;;  %v10763_v16 = vsel %vm15158_vm1, %v968_v50, %v970_v2 }
  0xd1   : > { %1653 = vst.msk [vmem:[#allocation5 + $0x10] sm:$0xff] %vm1651_vm8, %v1558_v62  ;;  %1434 = vrot.lane.b32.xlu0 %v10663_v24, %s10103_s27  ;;  %v703_v24 = vrot.slane %v10772_v21, 7 }
  0xd2   : > { %1305 = vrot.lane.b32.xlu1 %v10471_v14, %s10102_s26 }
  0xd3   : > { %v1685_v3 = vpop.permute.xlu0 %1684 }
  0xd4   : > { %v1562_v5 = vpop.permute.xlu1 %1561  ;;  %1781 = vst.msk [vmem:[#allocation5] sm:$0xff] %vm1780_vm9, %v1685_v3  ;;  %v574_v3 = vld [vmem:[#allocation2 + $0x180] sm:$0xff] }
  0xd5   : > { %1655 = vst.msk [vmem:[#allocation5 + $0x30] sm:$0xff] %vm1651_vm8, %v1562_v5  ;;  %1438 = vrot.lane.b32.xlu0 %v10752_v6, %s10103_s27 }
  0xd6   : > { %1436 = vrot.lane.b32.xlu1 %v10672_v26, %s10103_s27  ;;  %v10780_v26 = vsel %vm15159_vm2, %v702_v23, %v703_v24  ;;  %v10872_v23 = vld [vmem:[#allocation2 + $0x190] sm:$0xff] }
  0xd7   : > { %v1689_v19 = vpop.permute.xlu0 %1688  ;;  %781 = vst.msk [vmem:[#allocation5 + $0x160] sm:$0xff] %vm388_vm0, %v10780_v26 }
  0xd8   : > { %v1687_v18 = vpop.permute.xlu1 %1686  ;;  %1783 = vst.msk [vmem:[#allocation5 + $0x20] sm:$0xff] %vm1780_vm9, %v1689_v19 }
  0xd9   : > { %1782 = vst.msk [vmem:[#allocation5 + $0x10] sm:$0xff] %vm1780_vm9, %v1687_v18  ;;  %1571 = vrot.lane.b32.xlu0 %v10476_v15, %s10104_s28  ;;  %v10782_v15 = vld [vmem:[#allocation2 + $0x170] sm:$0xff]  ;;  %v707_v18 = vrot.slane %v574_v3, 7 }
  0xda   : > { %1440 = vrot.lane.b32.xlu1 %v10763_v16, %s10103_s27  ;;  %v705_v28 = vrot.slane %v10782_v15, 7 }
  0xdb   : > { %v1820_v25 = vpop.permute.xlu0 %1819 }
  0xdc   : > { %v1691_v22 = vpop.permute.xlu1 %1690  ;;  %1916 = vst.msk [vmem:[#allocation5] sm:$0xff] %vm1915_vm10, %v1820_v25  ;;  %v10791_v35 = vsel %vm15159_vm2, %v703_v24, %v705_v28 }
  0xdd   : > { %1784 = vst.msk [vmem:[#allocation5 + $0x30] sm:$0xff] %vm1780_vm9, %v1691_v22  ;;  %1575 = vrot.lane.b32.xlu0 %v10517_v31, %s10104_s28 }
  0xde   : > { %1573 = vrot.lane.b32.xlu1 %v10482_v17, %s10104_s28  ;;  %782 = vst.msk [vmem:[#allocation5 + $0x170] sm:$0xff] %vm388_vm0, %v10791_v35 }
  0xdf   : > { %v1824_v33 = vpop.permute.xlu0 %1823 }
  0xe0   : > { %v1822_v29 = vpop.permute.xlu1 %1821  ;;  %1918 = vst.msk [vmem:[#allocation5 + $0x20] sm:$0xff] %vm1915_vm10, %v1824_v33 }
  0xe1   : > { %1917 = vst.msk [vmem:[#allocation5 + $0x10] sm:$0xff] %vm1915_vm10, %v1822_v29  ;;  %1700 = vrot.lane.b32.xlu0 %v10455_v9, %s10105_s29 }
  0xe2   : > { %1577 = vrot.lane.b32.xlu1 %v10527_v34, %s10104_s28 }
  0xe3   : > { %v800_v36 = vpop.permute.xlu0 %799  ;;  %v1948_v37 = vld [vmem:[#allocation5] sm:$0xff] }
  0xe4   : > { %v1826_v17 = vpop.permute.xlu1 %1825  ;;  %892 = vst.msk [vmem:[#allocation5 + $0x40] sm:$0xff] %vm887_vm3, %v800_v36  ;;  %v978_v36 = vrot.slane %v10583_v52, 1 }
  0xe5   : > { %1919 = vst.msk [vmem:[#allocation5 + $0x30] sm:$0xff] %vm1915_vm10, %v1826_v17  ;;  %1704 = vrot.lane.b32.xlu0 %v10511_v27, %s10105_s29  ;;  %v977_v17 = vrot.slane %v10575_v45, 1 }
  0xe6   : > { %1702 = vrot.lane.b32.xlu1 %v10471_v14, %s10105_s29 }
  0xe7   : > { %v804_v41 = vpop.permute.xlu0 %803  ;;  %v1950_v44 = vld [vmem:[#allocation5 + $0x20] sm:$0xff]  ;;  %v10906_v60 = vsel %vm15158_vm1, %v977_v17, %v978_v36 }
  0xe8   : > { %v802_v55 = vpop.permute.xlu1 %801  ;;  %v1949_v38 = vld [vmem:[#allocation5 + $0x10] sm:$0xff]  ;;  %894 = vst.msk [vmem:[#allocation5 + $0x60] sm:$0xff] %vm887_vm3, %v804_v41 }
  0xe9   : > { %893 = vst.msk [vmem:[#allocation5 + $0x50] sm:$0xff] %vm887_vm3, %v802_v55  ;;  %v1980_v42 = vpack.c.bf16 %v1949_v38, %v1948_v37  ;;  %1835 = vrot.lane.b32.xlu0 %v10752_v6, %s10106_s15  ;;  %v485_v55 = vld [vmem:[%s10343_s22 + $0xc0] sm:$0xff] }
  0xea   : > { %1706 = vrot.lane.b32.xlu1 %v10519_v32, %s10105_s29  ;;  %518 = vst.msk [vmem:[#allocation2 + $0x1a8] sm:$0xff] %vm388_vm0, %v485_v55  ;;  %v488_v55 = vld [vmem:[%s10343_s22 + $0xd8] sm:$0xff] }
  0xeb   : > { %9950 = vmatprep.mubr.msk.bf16.mxu0 %vm2013_vm11, %v1980_v42  ;;  %v1026_v56 = vpop.permute.xlu0 %1025  ;;  %521 = vst.msk [vmem:[#allocation2 + $0x1d0] sm:$0xff] %vm388_vm0, %v488_v55  ;;  %v993_v55 = vrot.slane %v10782_v15, 1 }
  0xec   : > { %v806_v30 = vpop.permute.xlu1 %805  ;;  %v1951_v53 = vld [vmem:[#allocation5 + $0x30] sm:$0xff]  ;;  %1118 = vst.msk [vmem:[#allocation5 + $0x40] sm:$0xff] %vm1113_vm4, %v1026_v56 }
  0xed   : > { %895 = vst.msk [vmem:[#allocation5 + $0x70] sm:$0xff] %vm887_vm3, %v806_v30  ;;  %v1981_v57 = vpack.c.bf16 %v1951_v53, %v1950_v44  ;;  %1839 = vrot.lane.b32.xlu0 %v10816_v47, %s10106_s15  ;;  %v712_v53 = vrot.slane %v578_v46, 7 }
  0xee   : > { %1837 = vrot.lane.b32.xlu1 %v10763_v16, %s10106_s15 }
  0xef   : > { %9951 = vmatmul.mubr.msk.bf16.vlgmr.msra.gmra.mrb[0].mxu0 %vm2013_vm11, %v1981_v57  ;;  %v1030_v62 = vpop.permute.xlu0 %1029 }
  0xf0   : > { %v1028_v59 = vpop.permute.xlu1 %1027  ;;  %1120 = vst.msk [vmem:[#allocation5 + $0x60] sm:$0xff] %vm1113_vm4, %v1030_v62 }
  0xf1   : > { %1119 = vst.msk [vmem:[#allocation5 + $0x50] sm:$0xff] %vm1113_vm4, %v1028_v59  ;;  %815 = vrot.lane.b32.xlu0 %v10455_v9, %s10099_s23  ;;  %v483_v9 = vld [vmem:[%s10343_s22 + $0xb0] sm:$0xff]  ;;  %v10926_v30 = vld [vmem:[#allocation2 + $0x1a8] sm:$0xff] }
  0xf2   : > { %1841 = vrot.lane.b32.xlu1 %v10826_v11, %s10106_s15  ;;  %516 = vst.msk [vmem:[#allocation2 + $0x188] sm:$0xff] %vm388_vm0, %v483_v9  ;;  %v713_v56 = vrot.slane %v10926_v30, 7  ;;  %v10936_v59 = vld [vmem:[#allocation2 + $0x1b0] sm:$0xff] }
  0xf3   : > { %v1163_v50 = vpop.permute.xlu0 %1162 }
  0xf4   : > { %v1032_v49 = vpop.permute.xlu1 %1031  ;;  %1255 = vst.msk [vmem:[#allocation5 + $0x40] sm:$0xff] %vm1250_vm5, %v1163_v50 }
  0xf5   : > { %1121 = vst.msk [vmem:[#allocation5 + $0x70] sm:$0xff] %vm1113_vm4, %v1032_v49  ;;  %819 = vrot.lane.b32.xlu0 %v10511_v27, %s10099_s23 }
  0xf6   : > { %817 = vrot.lane.b32.xlu1 %v10471_v14, %s10099_s23 }
  0xf7   : > { %v1167_v63 = vpop.permute.xlu0 %1166 }
  0xf8   : > { %v1165_v61 = vpop.permute.xlu1 %1164  ;;  %1257 = vst.msk [vmem:[#allocation5 + $0x60] sm:$0xff] %vm1250_vm5, %v1167_v63 }
  0xf9   : > { %1256 = vst.msk [vmem:[#allocation5 + $0x50] sm:$0xff] %vm1250_vm5, %v1165_v61  ;;  %1041 = vrot.lane.b32.xlu0 %v10752_v6, %s10100_s24  ;;  %v10862_v7 = vld [vmem:[#allocation2 + $0x188] sm:$0xff] }
  0xfa   : > { %821 = vrot.lane.b32.xlu1 %v10519_v32, %s10099_s23  ;;  %v708_v19 = vrot.slane %v10862_v7, 7 }
  0xfb   : > { %v1292_v14 = vpop.permute.xlu0 %1291 }
  0xfc   : > { %v1169_v2 = vpop.permute.xlu1 %1168  ;;  %1384 = vst.msk [vmem:[#allocation5 + $0x40] sm:$0xff] %vm1379_vm6, %v1292_v14  ;;  %v10870_v22 = vsel %vm15159_vm2, %v707_v18, %v708_v19  ;;  %v982_v14 = vrot.slane %v10625_v4, 1 }
  0xfd   : > { %1258 = vst.msk [vmem:[#allocation5 + $0x70] sm:$0xff] %vm1250_vm5, %v1169_v2  ;;  %1045 = vrot.lane.b32.xlu0 %v10816_v47, %s10100_s24 }
  0xfe   : > { %1043 = vrot.lane.b32.xlu1 %v10763_v16, %s10100_s24  ;;  %783 = vst.msk [vmem:[#allocation5 + $0x180] sm:$0xff] %vm388_vm0, %v10870_v22 }
  0xff   : > { %v1296_v6 = vpop.permute.xlu0 %1295 }
 0x100   : > { %v1294_v5 = vpop.permute.xlu1 %1293  ;;  %1386 = vst.msk [vmem:[#allocation5 + $0x60] sm:$0xff] %vm1379_vm6, %v1296_v6 }
 0x101   : > { %1385 = vst.msk [vmem:[#allocation5 + $0x50] sm:$0xff] %vm1379_vm6, %v1294_v5  ;;  %1178 = vrot.lane.b32.xlu0 %v10517_v31, %s10101_s25  ;;  %v710_v31 = vrot.slane %v10872_v23, 7  ;;  %v565_v5 = vld [vmem:[#allocation2 + $0x138] sm:$0xff] }
 0x102   : > { %1047 = vrot.lane.b32.xlu1 %v10826_v11, %s10100_s24  ;;  %v985_v18 = vrot.slane %v565_v5, 1  ;;  %v490_v5 = vld [vmem:[%s10343_s22 + $0xe8] sm:$0xff] }
 0x103   : > { %v1427_v20 = vpop.permute.xlu0 %1426  ;;  %v10881_v28 = vsel %vm15159_vm2, %v708_v19, %v710_v31  ;;  %523 = vst.msk [vmem:[#allocation2 + $0x1f0] sm:$0xff] %vm388_vm0, %v490_v5 }
 0x104   : > { %v1298_v16 = vpop.permute.xlu1 %1297  ;;  %1519 = vst.msk [vmem:[#allocation5 + $0x40] sm:$0xff] %vm1514_vm7, %v1427_v20  ;;  %v10970_v20 = vsel %vm15158_vm1, %v982_v14, %v983_v1 }
 0x105   : > { %1387 = vst.msk [vmem:[#allocation5 + $0x70] sm:$0xff] %vm1379_vm6, %v1298_v16  ;;  %1182 = vrot.lane.b32.xlu0 %v10581_v51, %s10101_s25 }
 0x106   : > { %1180 = vrot.lane.b32.xlu1 %v10527_v34, %s10101_s25  ;;  %784 = vst.msk [vmem:[#allocation5 + $0x190] sm:$0xff] %vm388_vm0, %v10881_v28 }
 0x107   : > { %v1431_v25 = vpop.permute.xlu0 %1430 }
 0x108   : > { %v1429_v24 = vpop.permute.xlu1 %1428  ;;  %1521 = vst.msk [vmem:[#allocation5 + $0x60] sm:$0xff] %vm1514_vm7, %v1431_v25 }
 0x109   : > { %1520 = vst.msk [vmem:[#allocation5 + $0x50] sm:$0xff] %vm1514_vm7, %v1429_v24  ;;  %1307 = vrot.lane.b32.xlu0 %v10511_v27, %s10102_s26  ;;  %v561_v27 = vld [vmem:[#allocation2 + $0x118] sm:$0xff] }
 0x10a   : > { %1184 = vrot.lane.b32.xlu1 %v10591_v54, %s10101_s25 }
 0x10b   : > { %v1564_v29 = vpop.permute.xlu0 %1563 }
 0x10c   : > { %v1433_v34 = vpop.permute.xlu1 %1432  ;;  %1656 = vst.msk [vmem:[#allocation5 + $0x40] sm:$0xff] %vm1651_vm8, %v1564_v29 }
 0x10d   : > { %1522 = vst.msk [vmem:[#allocation5 + $0x70] sm:$0xff] %vm1514_vm7, %v1433_v34  ;;  %1311 = vrot.lane.b32.xlu0 %v10575_v45, %s10102_s26  ;;  %v10980_v34 = vsel %vm15158_vm1, %v983_v1, %v985_v18  ;;  %v586_v18 = vld [vmem:[#allocation2 + $0x1e0] sm:$0xff] }
 0x10e   : > { %1309 = vrot.lane.b32.xlu1 %v10519_v32, %s10102_s26  ;;  %v980_v32 = vrot.slane %v561_v27, 1 }
 0x10f   : > { %v1568_v37 = vpop.permute.xlu0 %1567 }
 0x110   : > { %v1566_v33 = vpop.permute.xlu1 %1565  ;;  %1658 = vst.msk [vmem:[#allocation5 + $0x60] sm:$0xff] %vm1651_vm8, %v1568_v37  ;;  %v10917_v41 = vsel %vm15158_vm1, %v978_v36, %v980_v32 }
 0x111   : > { %1657 = vst.msk [vmem:[#allocation5 + $0x50] sm:$0xff] %vm1651_vm8, %v1566_v33  ;;  %1442 = vrot.lane.b32.xlu0 %v10816_v47, %s10103_s27 }
 0x112   : > { %1313 = vrot.lane.b32.xlu1 %v10583_v52, %s10102_s26 }
 0x113   : > { %v1693_v39 = vpop.permute.xlu0 %1692 }
 0x114   : > { %v1570_v38 = vpop.permute.xlu1 %1569  ;;  %1785 = vst.msk [vmem:[#allocation5 + $0x40] sm:$0xff] %vm1780_vm9, %v1693_v39  ;;  %v582_v39 = vld [vmem:[#allocation2 + $0x1c0] sm:$0xff] }
 0x115   : > { %1659 = vst.msk [vmem:[#allocation5 + $0x70] sm:$0xff] %vm1651_vm8, %v1570_v38  ;;  %1446 = vrot.lane.b32.xlu0 %v10906_v60, %s10103_s27 }
 0x116   : > { %1444 = vrot.lane.b32.xlu1 %v10826_v11, %s10103_s27  ;;  %v10934_v11 = vsel %vm15159_vm2, %v712_v53, %v713_v56  ;;  %v11026_v53 = vld [vmem:[#allocation2 + $0x1d0] sm:$0xff] }
 0x117   : > { %v1697_v44 = vpop.permute.xlu0 %1696  ;;  %785 = vst.msk [vmem:[#allocation5 + $0x1a0] sm:$0xff] %vm388_vm0, %v10934_v11 }
 0x118   : > { %v1695_v42 = vpop.permute.xlu1 %1694  ;;  %1787 = vst.msk [vmem:[#allocation5 + $0x60] sm:$0xff] %vm1780_vm9, %v1697_v44 }
 0x119   : > { %1786 = vst.msk [vmem:[#allocation5 + $0x50] sm:$0xff] %vm1780_vm9, %v1695_v42  ;;  %1579 = vrot.lane.b32.xlu0 %v10581_v51, %s10104_s28  ;;  %v715_v51 = vrot.slane %v10936_v59, 7  ;;  %v717_v42 = vrot.slane %v582_v39, 7 }
 0x11a   : > { %1448 = vrot.lane.b32.xlu1 %v10917_v41, %s10103_s27 }
 0x11b   : > { %v1828_v57 = vpop.permute.xlu0 %1827  ;;  %v10945_v50 = vsel %vm15159_vm2, %v713_v56, %v715_v51 }
 0x11c   : > { %v1699_v47 = vpop.permute.xlu1 %1698  ;;  %1920 = vst.msk [vmem:[#allocation5 + $0x40] sm:$0xff] %vm1915_vm10, %v1828_v57 }
 0x11d   : > { %1788 = vst.msk [vmem:[#allocation5 + $0x70] sm:$0xff] %vm1780_vm9, %v1699_v47  ;;  %1583 = vrot.lane.b32.xlu0 %v10631_v8, %s10104_s28 }
 0x11e   : > { %1581 = vrot.lane.b32.xlu1 %v10591_v54, %s10104_s28  ;;  %786 = vst.msk [vmem:[#allocation5 + $0x1b0] sm:$0xff] %vm388_vm0, %v10945_v50 }
 0x11f   : > { %v1832_v49 = vpop.permute.xlu0 %1831 }
 0x120   : > { %v1830_v62 = vpop.permute.xlu1 %1829  ;;  %1922 = vst.msk [vmem:[#allocation5 + $0x60] sm:$0xff] %vm1915_vm10, %v1832_v49 }
 0x121   : > { %1921 = vst.msk [vmem:[#allocation5 + $0x50] sm:$0xff] %vm1915_vm10, %v1830_v62  ;;  %1708 = vrot.lane.b32.xlu0 %v10575_v45, %s10105_s29 }
 0x122   : > { %1585 = vrot.lane.b32.xlu1 %v10641_v13, %s10104_s28 }
 0x123   : > { %v808_v61 = vpop.permute.xlu0 %807  ;;  %v1952_v63 = vld [vmem:[#allocation5 + $0x40] sm:$0xff] }
 0x124   : > { %v1834_v54 = vpop.permute.xlu1 %1833  ;;  %896 = vst.msk [vmem:[#allocation5 + $0x80] sm:$0xff] %vm887_vm3, %v808_v61  ;;  %v988_v61 = vrot.slane %v10718_v10, 1 }
 0x125   : > { %1923 = vst.msk [vmem:[#allocation5 + $0x70] sm:$0xff] %vm1915_vm10, %v1834_v54  ;;  %1712 = vrot.lane.b32.xlu0 %v10625_v4, %s10105_s29  ;;  %v987_v54 = vrot.slane %v10708_v43, 1 }
 0x126   : > { %1710 = vrot.lane.b32.xlu1 %v10583_v52, %s10105_s29 }
 0x127   : > { %v812_v6 = vpop.permute.xlu0 %811  ;;  %v1954_v16 = vld [vmem:[#allocation5 + $0x60] sm:$0xff]  ;;  %v11264_v14 = vsel %vm15158_vm1, %v987_v54, %v988_v61 }
 0x128   : > { %v810_v9 = vpop.permute.xlu1 %809  ;;  %v1953_v2 = vld [vmem:[#allocation5 + $0x50] sm:$0xff]  ;;  %898 = vst.msk [vmem:[#allocation5 + $0xa0] sm:$0xff] %vm887_vm3, %v812_v6 }
 0x129   : > { %897 = vst.msk [vmem:[#allocation5 + $0x90] sm:$0xff] %vm887_vm3, %v810_v9  ;;  %v1982_v3 = vpack.c.bf16 %v1953_v2, %v1952_v63  ;;  %1843 = vrot.lane.b32.xlu0 %v10906_v60, %s10106_s15  ;;  %v489_v9 = vld [vmem:[%s10343_s22 + $0xe0] sm:$0xff] }
 0x12a   : > { %1714 = vrot.lane.b32.xlu1 %v10633_v12, %s10105_s29  ;;  %522 = vst.msk [vmem:[#allocation2 + $0x1e8] sm:$0xff] %vm388_vm0, %v489_v9  ;;  %v492_v9 = vld [vmem:[%s10343_s22 + $0xf8] sm:$0xff] }
 0x12b   : > { %9954 = vmatprep.mubr.msk.bf16.mxu0 %vm2013_vm11, %v1982_v3  ;;  %v1034_v24 = vpop.permute.xlu0 %1033  ;;  %525 = vst.msk [vmem:[#allocation2 + $0x210] sm:$0xff] %vm388_vm0, %v492_v9 }
 0x12c   : > { %v814_v19 = vpop.permute.xlu1 %813  ;;  %v1955_v31 = vld [vmem:[#allocation5 + $0x70] sm:$0xff]  ;;  %1122 = vst.msk [vmem:[#allocation5 + $0x80] sm:$0xff] %vm1113_vm4, %v1034_v24 }
 0x12d   : > { %899 = vst.msk [vmem:[#allocation5 + $0xb0] sm:$0xff] %vm887_vm3, %v814_v19  ;;  %v1983_v25 = vpack.c.bf16 %v1955_v31, %v1954_v16  ;;  %1847 = vrot.lane.b32.xlu0 %v10970_v20, %s10106_s15  ;;  %v722_v31 = vrot.slane %v586_v18, 7  ;;  %v997_v18 = vrot.slane %v10862_v7, 1 }
 0x12e   : > { %1845 = vrot.lane.b32.xlu1 %v10917_v41, %s10106_s15 }
 0x12f   : > { %9955 = vmatmul.mubr.msk.bf16.gmra.mrb[4].mxu0 %vm2013_vm11, %v1983_v25  ;;  %v1038_v33 = vpop.permute.xlu0 %1037 }
 0x130   : > { %v1036_v29 = vpop.permute.xlu1 %1035  ;;  %1124 = vst.msk [vmem:[#allocation5 + $0xa0] sm:$0xff] %vm1113_vm4, %v1038_v33 }
 0x131   : > { %1123 = vst.msk [vmem:[#allocation5 + $0x90] sm:$0xff] %vm1113_vm4, %v1036_v29  ;;  %823 = vrot.lane.b32.xlu0 %v10575_v45, %s10099_s23  ;;  %v487_v45 = vld [vmem:[%s10343_s22 + $0xd0] sm:$0xff]  ;;  %v11284_v19 = vld [vmem:[#allocation2 + $0x1e8] sm:$0xff] }
 0x132   : > { %1849 = vrot.lane.b32.xlu1 %v10980_v34, %s10106_s15  ;;  %520 = vst.msk [vmem:[#allocation2 + $0x1c8] sm:$0xff] %vm388_vm0, %v487_v45  ;;  %v723_v24 = vrot.slane %v11284_v19, 7  ;;  %v11294_v29 = vld [vmem:[#allocation2 + $0x1f0] sm:$0xff] }
 0x133   : > { %v1171_v36 = vpop.permute.xlu0 %1170 }
 0x134   : > { %v1040_v17 = vpop.permute.xlu1 %1039  ;;  %1259 = vst.msk [vmem:[#allocation5 + $0x80] sm:$0xff] %vm1250_vm5, %v1171_v36 }
 0x135   : > { %1125 = vst.msk [vmem:[#allocation5 + $0xb0] sm:$0xff] %vm1113_vm4, %v1040_v17  ;;  %827 = vrot.lane.b32.xlu0 %v10625_v4, %s10099_s23 }
 0x136   : > { %825 = vrot.lane.b32.xlu1 %v10583_v52, %s10099_s23 }
 0x137   : > { %v1175_v37 = vpop.permute.xlu0 %1174 }
 0x138   : > { %v1173_v27 = vpop.permute.xlu1 %1172  ;;  %1261 = vst.msk [vmem:[#allocation5 + $0xa0] sm:$0xff] %vm1250_vm5, %v1175_v37 }
 0x139   : > { %1260 = vst.msk [vmem:[#allocation5 + $0x90] sm:$0xff] %vm1250_vm5, %v1173_v27  ;;  %1049 = vrot.lane.b32.xlu0 %v10906_v60, %s10100_s24  ;;  %v11016_v40 = vld [vmem:[#allocation2 + $0x1c8] sm:$0xff] }
 0x13a   : > { %829 = vrot.lane.b32.xlu1 %v10633_v12, %s10099_s23  ;;  %v718_v44 = vrot.slane %v11016_v40, 7 }
 0x13b   : > { %v1300_v52 = vpop.permute.xlu0 %1299 }
 0x13c   : > { %v1177_v32 = vpop.permute.xlu1 %1176  ;;  %1388 = vst.msk [vmem:[#allocation5 + $0x80] sm:$0xff] %vm1379_vm6, %v1300_v52  ;;  %v11024_v47 = vsel %vm15159_vm2, %v717_v42, %v718_v44  ;;  %v992_v52 = vrot.slane %v10772_v21, 1 }
 0x13d   : > { %1262 = vst.msk [vmem:[#allocation5 + $0xb0] sm:$0xff] %vm1250_vm5, %v1177_v32  ;;  %1053 = vrot.lane.b32.xlu0 %v10970_v20, %s10100_s24 }
 0x13e   : > { %1051 = vrot.lane.b32.xlu1 %v10917_v41, %s10100_s24  ;;  %787 = vst.msk [vmem:[#allocation5 + $0x1c0] sm:$0xff] %vm388_vm0, %v11024_v47 }
 0x13f   : > { %v1304_v60 = vpop.permute.xlu0 %1303 }
 0x140   : > { %v1302_v38 = vpop.permute.xlu1 %1301  ;;  %1390 = vst.msk [vmem:[#allocation5 + $0xa0] sm:$0xff] %vm1379_vm6, %v1304_v60 }
 0x141   : > { %1389 = vst.msk [vmem:[#allocation5 + $0x90] sm:$0xff] %vm1379_vm6, %v1302_v38  ;;  %1186 = vrot.lane.b32.xlu0 %v10631_v8, %s10101_s25  ;;  %v720_v8 = vrot.slane %v11026_v53, 7  ;;  %v573_v38 = vld [vmem:[#allocation2 + $0x178] sm:$0xff] }
 0x142   : > { %1055 = vrot.lane.b32.xlu1 %v10980_v34, %s10100_s24  ;;  %v995_v42 = vrot.slane %v573_v38, 1 }
 0x143   : > { %v1435_v46 = vpop.permute.xlu0 %1434 }
 0x144   : > { %v1306_v41 = vpop.permute.xlu1 %1305  ;;  %1523 = vst.msk [vmem:[#allocation5 + $0x80] sm:$0xff] %vm1514_vm7, %v1435_v46  ;;  %v11328_v46 = vsel %vm15158_vm1, %v992_v52, %v993_v55 }
 0x145   : > { %1391 = vst.msk [vmem:[#allocation5 + $0xb0] sm:$0xff] %vm1379_vm6, %v1306_v41  ;;  %1190 = vrot.lane.b32.xlu0 %v10716_v48, %s10101_s25 }
 0x146   : > { %1188 = vrot.lane.b32.xlu1 %v10641_v13, %s10101_s25  ;;  %v11035_v13 = vsel %vm15159_vm2, %v718_v44, %v720_v8 }
 0x147   : > { %v1439_v57 = vpop.permute.xlu0 %1438  ;;  %788 = vst.msk [vmem:[#allocation5 + $0x1d0] sm:$0xff] %vm388_vm0, %v11035_v13 }
 0x148   : > { %v1437_v56 = vpop.permute.xlu1 %1436  ;;  %1525 = vst.msk [vmem:[#allocation5 + $0xa0] sm:$0xff] %vm1514_vm7, %v1439_v57 }
 0x149   : > { %1524 = vst.msk [vmem:[#allocation5 + $0x90] sm:$0xff] %vm1514_vm7, %v1437_v56  ;;  %1315 = vrot.lane.b32.xlu0 %v10625_v4, %s10102_s26  ;;  %v569_v4 = vld [vmem:[#allocation2 + $0x158] sm:$0xff] }
 0x14a   : > { %1192 = vrot.lane.b32.xlu1 %v10727_v58, %s10101_s25 }
 0x14b   : > { %v1572_v62 = vpop.permute.xlu0 %1571 }
 0x14c   : > { %v1441_v51 = vpop.permute.xlu1 %1440  ;;  %1660 = vst.msk [vmem:[#allocation5 + $0x80] sm:$0xff] %vm1651_vm8, %v1572_v62 }
 0x14d   : > { %1526 = vst.msk [vmem:[#allocation5 + $0xb0] sm:$0xff] %vm1514_vm7, %v1441_v51  ;;  %1319 = vrot.lane.b32.xlu0 %v10708_v43, %s10102_s26  ;;  %v11338_v51 = vsel %vm15158_vm1, %v993_v55, %v995_v42 }
 0x14e   : > { %1317 = vrot.lane.b32.xlu1 %v10633_v12, %s10102_s26  ;;  %v990_v12 = vrot.slane %v569_v4, 1 }
 0x14f   : > { %v1576_v63 = vpop.permute.xlu0 %1575 }
 0x150   : > { %v1574_v49 = vpop.permute.xlu1 %1573  ;;  %1662 = vst.msk [vmem:[#allocation5 + $0xa0] sm:$0xff] %vm1651_vm8, %v1576_v63  ;;  %v11275_v6 = vsel %vm15158_vm1, %v988_v61, %v990_v12 }
 0x151   : > { %1661 = vst.msk [vmem:[#allocation5 + $0x90] sm:$0xff] %vm1651_vm8, %v1574_v49  ;;  %1450 = vrot.lane.b32.xlu0 %v10970_v20, %s10103_s27 }
 0x152   : > { %1321 = vrot.lane.b32.xlu1 %v10718_v10, %s10102_s26 }
 0x153   : > { %v1701_v1 = vpop.permute.xlu0 %1700 }
 0x154   : > { %v1578_v2 = vpop.permute.xlu1 %1577  ;;  %1789 = vst.msk [vmem:[#allocation5 + $0x80] sm:$0xff] %vm1780_vm9, %v1701_v1 }
 0x155   : > { %1663 = vst.msk [vmem:[#allocation5 + $0xb0] sm:$0xff] %vm1651_vm8, %v1578_v2  ;;  %1454 = vrot.lane.b32.xlu0 %v11264_v14, %s10103_s27 }
 0x156   : > { %1452 = vrot.lane.b32.xlu1 %v10980_v34, %s10103_s27  ;;  %v11292_v34 = vsel %vm15159_vm2, %v722_v31, %v723_v24  ;;  %v577_v31 = vld [vmem:[#allocation2 + $0x198] sm:$0xff] }
 0x157   : > { %v1705_v16 = vpop.permute.xlu0 %1704  ;;  %789 = vst.msk [vmem:[#allocation5 + $0x1e0] sm:$0xff] %vm388_vm0, %v11292_v34 }
 0x158   : > { %v1703_v3 = vpop.permute.xlu1 %1702  ;;  %1791 = vst.msk [vmem:[#allocation5 + $0xa0] sm:$0xff] %vm1780_vm9, %v1705_v16 }
 0x159   : > { %1790 = vst.msk [vmem:[#allocation5 + $0x90] sm:$0xff] %vm1780_vm9, %v1703_v3  ;;  %1587 = vrot.lane.b32.xlu0 %v10716_v48, %s10104_s28  ;;  %v725_v48 = vrot.slane %v11294_v29, 7 }
 0x15a   : > { %1456 = vrot.lane.b32.xlu1 %v11275_v6, %s10103_s27 }
 0x15b   : > { %v1836_v25 = vpop.permute.xlu0 %1835  ;;  %v11303_v36 = vsel %vm15159_vm2, %v723_v24, %v725_v48 }
 0x15c   : > { %v1707_v20 = vpop.permute.xlu1 %1706  ;;  %1924 = vst.msk [vmem:[#allocation5 + $0x80] sm:$0xff] %vm1915_vm10, %v1836_v25 }
 0x15d   : > { %1792 = vst.msk [vmem:[#allocation5 + $0xb0] sm:$0xff] %vm1780_vm9, %v1707_v20  ;;  %1591 = vrot.lane.b32.xlu0 %v10780_v26, %s10104_s28  ;;  %v998_v20 = vrot.slane %v10872_v23, 1 }
 0x15e   : > { %1589 = vrot.lane.b32.xlu1 %v10727_v58, %s10104_s28  ;;  %790 = vst.msk [vmem:[#allocation5 + $0x1f0] sm:$0xff] %vm388_vm0, %v11303_v36 }
 0x15f   : > { %v1840_v17 = vpop.permute.xlu0 %1839  ;;  %v11401_v25 = vsel %vm15158_vm1, %v997_v18, %v998_v20 }
 0x160   : > { %v1838_v33 = vpop.permute.xlu1 %1837  ;;  %1926 = vst.msk [vmem:[#allocation5 + $0xa0] sm:$0xff] %vm1915_vm10, %v1840_v17 }
 0x161   : > { %1925 = vst.msk [vmem:[#allocation5 + $0x90] sm:$0xff] %vm1915_vm10, %v1838_v33  ;;  %1716 = vrot.lane.b32.xlu0 %v10708_v43, %s10105_s29 }
 0x162   : > { %1593 = vrot.lane.b32.xlu1 %v10791_v35, %s10104_s28 }
 0x163   : > { %v816_v27 = vpop.permute.xlu0 %815  ;;  %v1956_v37 = vld [vmem:[#allocation5 + $0x80] sm:$0xff] }
 0x164   : > { %v1842_v58 = vpop.permute.xlu1 %1841  ;;  %900 = vst.msk [vmem:[#allocation5 + $0xc0] sm:$0xff] %vm887_vm3, %v816_v27 }
 0x165   : > { %1927 = vst.msk [vmem:[#allocation5 + $0xb0] sm:$0xff] %vm1915_vm10, %v1842_v58  ;;  %1720 = vrot.lane.b32.xlu0 %v10772_v21, %s10105_s29 }
 0x166   : > { %1718 = vrot.lane.b32.xlu1 %v10718_v10, %s10105_s29 }
 0x167   : > { %v820_v60 = vpop.permute.xlu0 %819  ;;  %v1958_v41 = vld [vmem:[#allocation5 + $0xa0] sm:$0xff] }
 0x168   : > { %v818_v45 = vpop.permute.xlu1 %817  ;;  %v1957_v32 = vld [vmem:[#allocation5 + $0x90] sm:$0xff]  ;;  %902 = vst.msk [vmem:[#allocation5 + $0xe0] sm:$0xff] %vm887_vm3, %v820_v60  ;;  %v1002_v60 = vrot.slane %v10926_v30, 1 }
 0x169   : > { %901 = vst.msk [vmem:[#allocation5 + $0xd0] sm:$0xff] %vm887_vm3, %v818_v45  ;;  %v1984_v39 = vpack.c.bf16 %v1957_v32, %v1956_v37  ;;  %1851 = vrot.lane.b32.xlu0 %v11264_v14, %s10106_s15 }
 0x16a   : > { %1722 = vrot.lane.b32.xlu1 %v10782_v15, %s10105_s29 }
 0x16b   : > { %9958 = vmatprep.mubr.msk.bf16.mxu0 %vm2013_vm11, %v1984_v39  ;;  %v1042_v56 = vpop.permute.xlu0 %1041  ;;  %v1003_v39 = vrot.slane %v10936_v59, 1 }
 0x16c   : > { %v822_v44 = vpop.permute.xlu1 %821  ;;  %v1959_v8 = vld [vmem:[#allocation5 + $0xb0] sm:$0xff]  ;;  %1126 = vst.msk [vmem:[#allocation5 + $0xc0] sm:$0xff] %vm1113_vm4, %v1042_v56 }
 0x16d   : > { %903 = vst.msk [vmem:[#allocation5 + $0xf0] sm:$0xff] %vm887_vm3, %v822_v44  ;;  %v1985_v57 = vpack.c.bf16 %v1959_v8, %v1958_v41  ;;  %1855 = vrot.lane.b32.xlu0 %v11328_v46, %s10106_s15  ;;  %v581_v41 = vld [vmem:[#allocation2 + $0x1b8] sm:$0xff] }
 0x16e   : > { %1853 = vrot.lane.b32.xlu1 %v11275_v6, %s10106_s15  ;;  %v1005_v8 = vrot.slane %v581_v41, 1 }
 0x16f   : > { %9959 = vmatmul.mubr.msk.bf16.gmra.mrb[8].mxu0 %vm2013_vm11, %v1985_v57  ;;  %v1046_v49 = vpop.permute.xlu0 %1045  ;;  %v11446_v57 = vsel %vm15158_vm1, %v1002_v60, %v1003_v39 }
 0x170   : > { %v1044_v62 = vpop.permute.xlu1 %1043  ;;  %1128 = vst.msk [vmem:[#allocation5 + $0xe0] sm:$0xff] %vm1113_vm4, %v1046_v49 }
 0x171   : > { %1127 = vst.msk [vmem:[#allocation5 + $0xd0] sm:$0xff] %vm1113_vm4, %v1044_v62  ;;  %831 = vrot.lane.b32.xlu0 %v10708_v43, %s10099_s23  ;;  %v491_v43 = vld [vmem:[%s10343_s22 + $0xf0] sm:$0xff]  ;;  %s10110_s22 = smov 64  }
 0x172   : > { %1857 = vrot.lane.b32.xlu1 %v11338_v51, %s10106_s15  ;;  %524 = vst.msk [vmem:[#allocation2 + $0x208] sm:$0xff] %vm388_vm0, %v491_v43  ;;  %vm3287_vm0 = vcmask 654848  }
 0x173   : > { %v1179_v61 = vpop.permute.xlu0 %1178 }
 0x174   : > { %v1048_v54 = vpop.permute.xlu1 %1047  ;;  %1263 = vst.msk [vmem:[#allocation5 + $0xc0] sm:$0xff] %vm1250_vm5, %v1179_v61 }
 0x175   : > { %1129 = vst.msk [vmem:[#allocation5 + $0xf0] sm:$0xff] %vm1113_vm4, %v1048_v54  ;;  %835 = vrot.lane.b32.xlu0 %v10772_v21, %s10099_s23  ;;  %v11456_v54 = vsel %vm15158_vm1, %v1003_v39, %v1005_v8 }
 0x176   : > { %833 = vrot.lane.b32.xlu1 %v10718_v10, %s10099_s23 }
 0x177   : > { %v1183_v63 = vpop.permute.xlu0 %1182 }
 0x178   : > { %v1181_v4 = vpop.permute.xlu1 %1180  ;;  %1265 = vst.msk [vmem:[#allocation5 + $0xe0] sm:$0xff] %vm1250_vm5, %v1183_v63  ;;  %v2000_v63 = vlaneseq }
 0x179   : > { %1264 = vst.msk [vmem:[#allocation5 + $0xd0] sm:$0xff] %vm1250_vm5, %v1181_v4  ;;  %1057 = vrot.lane.b32.xlu0 %v11264_v14, %s10100_s24 }
 0x17a   : > { %837 = vrot.lane.b32.xlu1 %v10782_v15, %s10099_s23 }
 0x17b   : > { %v1308_v10 = vpop.permute.xlu0 %1307 }
 0x17c   : > { %v1185_v12 = vpop.permute.xlu1 %1184  ;;  %1392 = vst.msk [vmem:[#allocation5 + $0xc0] sm:$0xff] %vm1379_vm6, %v1308_v10  ;;  %v11470_v10 = vshrl.u32 %v2000_v63, 7 }
 0x17d   : > { %1266 = vst.msk [vmem:[#allocation5 + $0xf0] sm:$0xff] %vm1250_vm5, %v1185_v12  ;;  %1061 = vrot.lane.b32.xlu0 %v11328_v46, %s10100_s24 }
 0x17e   : > { %1059 = vrot.lane.b32.xlu1 %v11275_v6, %s10100_s24 }
 0x17f   : > { %v1312_v14 = vpop.permute.xlu0 %1311 }
 0x180   : > { %v1310_v2 = vpop.permute.xlu1 %1309  ;;  %1394 = vst.msk [vmem:[#allocation5 + $0xe0] sm:$0xff] %vm1379_vm6, %v1312_v14  ;;  %v1999_v14 = vld [vmem:[%s15146_s2] sm:$0x7] }
 0x181   : > { %1393 = vst.msk [vmem:[#allocation5 + $0xd0] sm:$0xff] %vm1379_vm6, %v1310_v2  ;;  %1194 = vrot.lane.b32.xlu0 %v10780_v26, %s10101_s25 }
 0x182   : > { %1063 = vrot.lane.b32.xlu1 %v11338_v51, %s10100_s24 }
 0x183   : > { %v1443_v5 = vpop.permute.xlu0 %1442 }
 0x184   : > { %v1314_v1 = vpop.permute.xlu1 %1313  ;;  %1527 = vst.msk [vmem:[#allocation5 + $0xc0] sm:$0xff] %vm1514_vm7, %v1443_v5 }
 0x185   : > { %1395 = vst.msk [vmem:[#allocation5 + $0xf0] sm:$0xff] %vm1379_vm6, %v1314_v1  ;;  %1198 = vrot.lane.b32.xlu0 %v10870_v22, %s10101_s25 }
 0x186   : > { %1196 = vrot.lane.b32.xlu1 %v10791_v35, %s10101_s25 }
 0x187   : > { %v1447_v3 = vpop.permute.xlu0 %1446 }
 0x188   : > { %v1445_v6 = vpop.permute.xlu1 %1444  ;;  %1529 = vst.msk [vmem:[#allocation5 + $0xe0] sm:$0xff] %vm1514_vm7, %v1447_v3 }
 0x189   : > { %1528 = vst.msk [vmem:[#allocation5 + $0xd0] sm:$0xff] %vm1514_vm7, %v1445_v6  ;;  %1323 = vrot.lane.b32.xlu0 %v10772_v21, %s10102_s26  ;;  %v11494_v6 = vsub.s32 1, %v11470_v10 }
 0x18a   : > { %1200 = vrot.lane.b32.xlu1 %v10881_v28, %s10101_s25 }
 0x18b   : > { %v1580_v16 = vpop.permute.xlu0 %1579 }
 0x18c   : > { %v1449_v26 = vpop.permute.xlu1 %1448  ;;  %1664 = vst.msk [vmem:[#allocation5 + $0xc0] sm:$0xff] %vm1651_vm8, %v1580_v16  ;;  %v11498_v16 = vsub.s32 2, %v11470_v10 }
 0x18d   : > { %1530 = vst.msk [vmem:[#allocation5 + $0xf0] sm:$0xff] %vm1514_vm7, %v1449_v26  ;;  %1327 = vrot.lane.b32.xlu0 %v10862_v7, %s10102_s26 }
 0x18e   : > { %1325 = vrot.lane.b32.xlu1 %v10782_v15, %s10102_s26  ;;  %v1000_v15 = vrot.slane %v577_v31, 1 }
 0x18f   : > { %v1584_v21 = vpop.permute.xlu0 %1583 }
 0x190   : > { %v1582_v35 = vpop.permute.xlu1 %1581  ;;  %1666 = vst.msk [vmem:[#allocation5 + $0xe0] sm:$0xff] %vm1651_vm8, %v1584_v21  ;;  %v11410_v33 = vsel %vm15158_vm1, %v998_v20, %v1000_v15  ;;  %v11505_v20 = vrot.slane %v1999_v14, %v11494_v6 }
 0x191   : > { %1665 = vst.msk [vmem:[#allocation5 + $0xd0] sm:$0xff] %vm1651_vm8, %v1582_v35  ;;  %1458 = vrot.lane.b32.xlu0 %v11328_v46, %s10103_s27 }
 0x192   : > { %1329 = vrot.lane.b32.xlu1 %v10872_v23, %s10102_s26 }
 0x193   : > { %v1709_v48 = vpop.permute.xlu0 %1708 }
 0x194   : > { %v1586_v24 = vpop.permute.xlu1 %1585  ;;  %1793 = vst.msk [vmem:[#allocation5 + $0xc0] sm:$0xff] %vm1780_vm9, %v1709_v48  ;;  %v11511_v48 = vrot.slane %v1999_v14, %v11498_v16 }
 0x195   : > { %1667 = vst.msk [vmem:[#allocation5 + $0xf0] sm:$0xff] %vm1651_vm8, %v1586_v24  ;;  %1462 = vrot.lane.b32.xlu0 %v11401_v25, %s10103_s27 }
 0x196   : > { %1460 = vrot.lane.b32.xlu1 %v11338_v51, %s10103_s27 }
 0x197   : > { %v1713_v58 = vpop.permute.xlu0 %1712 }
 0x198   : > { %v1711_v17 = vpop.permute.xlu1 %1710  ;;  %1795 = vst.msk [vmem:[#allocation5 + $0xe0] sm:$0xff] %vm1780_vm9, %v1713_v58 }
 0x199   : > { %1794 = vst.msk [vmem:[#allocation5 + $0xd0] sm:$0xff] %vm1780_vm9, %v1711_v17  ;;  %1595 = vrot.lane.b32.xlu0 %v10870_v22, %s10104_s28 }
 0x19a   : > { %1464 = vrot.lane.b32.xlu1 %v11410_v33, %s10103_s27 }
 0x19b   : > { %v1844_v37 = vpop.permute.xlu0 %1843 }
 0x19c   : > { %v1715_v27 = vpop.permute.xlu1 %1714  ;;  %1928 = vst.msk [vmem:[#allocation5 + $0xc0] sm:$0xff] %vm1915_vm10, %v1844_v37 }
 0x19d   : > { %1796 = vst.msk [vmem:[#allocation5 + $0xf0] sm:$0xff] %vm1780_vm9, %v1715_v27  ;;  %1599 = vrot.lane.b32.xlu0 %v10934_v11, %s10104_s28 }
 0x19e   : > { %1597 = vrot.lane.b32.xlu1 %v10881_v28, %s10104_s28 }
 0x19f   : > { %v1848_v32 = vpop.permute.xlu0 %1847 }
 0x1a0   : > { %v1846_v45 = vpop.permute.xlu1 %1845  ;;  %1930 = vst.msk [vmem:[#allocation5 + $0xe0] sm:$0xff] %vm1915_vm10, %v1848_v32 }
 0x1a1   : > { %1929 = vst.msk [vmem:[#allocation5 + $0xd0] sm:$0xff] %vm1915_vm10, %v1846_v45  ;;  %1724 = vrot.lane.b32.xlu0 %v10862_v7, %s10105_s29 }
 0x1a2   : > { %1601 = vrot.lane.b32.xlu1 %v10945_v50, %s10104_s28 }
 0x1a3   : > { %v824_v52 = vpop.permute.xlu0 %823  ;;  %v1960_v28 = vld [vmem:[#allocation5 + $0xc0] sm:$0xff] }
 0x1a4   : > { %v1850_v22 = vpop.permute.xlu1 %1849  ;;  %904 = vst.msk [vmem:[#allocation5 + $0x100] sm:$0xff] %vm887_vm3, %v824_v52 }
 0x1a5   : > { %1931 = vst.msk [vmem:[#allocation5 + $0xf0] sm:$0xff] %vm1915_vm10, %v1850_v22  ;;  %1728 = vrot.lane.b32.xlu0 %v10926_v30, %s10105_s29 }
 0x1a6   : > { %1726 = vrot.lane.b32.xlu1 %v10872_v23, %s10105_s29 }
 0x1a7   : > { %v828_v42 = vpop.permute.xlu0 %827  ;;  %v1962_v46 = vld [vmem:[#allocation5 + $0xe0] sm:$0xff] }
 0x1a8   : > { %v826_v55 = vpop.permute.xlu1 %825  ;;  %v1961_v38 = vld [vmem:[#allocation5 + $0xd0] sm:$0xff]  ;;  %906 = vst.msk [vmem:[#allocation5 + $0x120] sm:$0xff] %vm887_vm3, %v828_v42 }
 0x1a9   : > { %905 = vst.msk [vmem:[#allocation5 + $0x110] sm:$0xff] %vm887_vm3, %v826_v55  ;;  %v1986_v44 = vpack.c.bf16 %v1961_v38, %v1960_v28  ;;  %1859 = vrot.lane.b32.xlu0 %v11401_v25, %s10106_s15 }
 0x1aa   : > { %1730 = vrot.lane.b32.xlu1 %v10936_v59, %s10105_s29 }
 0x1ab   : > { %9962 = vmatprep.mubr.msk.bf16.mxu0 %vm2013_vm11, %v1986_v44  ;;  %v1050_v62 = vpop.permute.xlu0 %1049 }
 0x1ac   : > { %v830_v56 = vpop.permute.xlu1 %829  ;;  %v1963_v51 = vld [vmem:[#allocation5 + $0xf0] sm:$0xff]  ;;  %1130 = vst.msk [vmem:[#allocation5 + $0x100] sm:$0xff] %vm1113_vm4, %v1050_v62  ;;  %v585_v62 = vld [vmem:[#allocation2 + $0x1d8] sm:$0xff] }
 0x1ad   : > { %907 = vst.msk [vmem:[#allocation5 + $0x130] sm:$0xff] %vm887_vm3, %v830_v56  ;;  %v1987_v49 = vpack.c.bf16 %v1963_v51, %v1962_v46  ;;  %1863 = vrot.lane.b32.xlu0 %v11446_v57, %s10106_s15  ;;  %v2444_v46 = vld [vmem:[#allocation3 + $0x40] sm:$0xff]  ;;  %v1007_v56 = vrot.slane %v11016_v40, 1  ;;  %v1008_v51 = vrot.slane %v11026_v53, 1 }
 0x1ae   : > { %1861 = vrot.lane.b32.xlu1 %v11410_v33, %s10106_s15 }
 0x1af   : > { %9963 = vmatmul.mubr.msk.bf16.gmra.mrb[12].mxu0 %vm2013_vm11, %v1987_v49  ;;  %v1054_v4 = vpop.permute.xlu0 %1053  ;;  %v2447_v49 = vld [vmem:[#allocation3 + $0x58] sm:$0xff] }
 0x1b0   : > { %v1052_v61 = vpop.permute.xlu1 %1051  ;;  %1132 = vst.msk [vmem:[#allocation5 + $0x120] sm:$0xff] %vm1113_vm4, %v1054_v4  ;;  %v2566_v4 = vrot.slane %v2444_v46, 7 }
 0x1b1   : > { %1131 = vst.msk [vmem:[#allocation5 + $0x110] sm:$0xff] %vm1113_vm4, %v1052_v61  ;;  %839 = vrot.lane.b32.xlu0 %v10862_v7, %s10099_s23  ;;  %v11479_v7 = vsub.s32 0, %v11470_v10 }
 0x1b2   : > { %1865 = vrot.lane.b32.xlu1 %v11456_v54, %s10106_s15 }
 0x1b3   : > { %v1187_v12 = vpop.permute.xlu0 %1186  ;;  %v11491_v5 = vrot.slane %v1999_v14, %v11479_v7 }
 0x1b4   : > { %v1056_v43 = vpop.permute.xlu1 %1055  ;;  %1267 = vst.msk [vmem:[#allocation5 + $0x100] sm:$0xff] %vm1250_vm5, %v1187_v12  ;;  %v2858_v12 = vrot.slane %v2447_v49, 1 }
 0x1b5   : > { %1133 = vst.msk [vmem:[#allocation5 + $0x130] sm:$0xff] %vm1113_vm4, %v1056_v43  ;;  %843 = vrot.lane.b32.xlu0 %v10926_v30, %s10099_s23  ;;  %v1010_v43 = vrot.slane %v585_v62, 1 }
 0x1b6   : > { %841 = vrot.lane.b32.xlu1 %v10872_v23, %s10099_s23 }
 0x1b7   : > { %v1191_v2 = vpop.permute.xlu0 %1190 }
 0x1b8   : > { %v1189_v9 = vpop.permute.xlu1 %1188  ;;  %1269 = vst.msk [vmem:[#allocation5 + $0x120] sm:$0xff] %vm1250_vm5, %v1191_v2 }
 0x1b9   : > { %1268 = vst.msk [vmem:[#allocation5 + $0x110] sm:$0xff] %vm1250_vm5, %v1189_v9  ;;  %1065 = vrot.lane.b32.xlu0 %v11401_v25, %s10100_s24 }
 0x1ba   : > { %845 = vrot.lane.b32.xlu1 %v10936_v59, %s10099_s23 }
 0x1bb   : > { %v1316_v1 = vpop.permute.xlu0 %1315 }
 0x1bc   : > { %v1193_v23 = vpop.permute.xlu1 %1192  ;;  %1396 = vst.msk [vmem:[#allocation5 + $0x100] sm:$0xff] %vm1379_vm6, %v1316_v1  ;;  %v11561_v1 = vsel %vm15158_vm1, %v1007_v56, %v1008_v51 }
 0x1bd   : > { %1270 = vst.msk [vmem:[#allocation5 + $0x130] sm:$0xff] %vm1250_vm5, %v1193_v23  ;;  %1069 = vrot.lane.b32.xlu0 %v11446_v57, %s10100_s24 }
 0x1be   : > { %1067 = vrot.lane.b32.xlu1 %v11410_v33, %s10100_s24 }
 0x1bf   : > { %v1320_v26 = vpop.permute.xlu0 %1319 }
 0x1c0   : > { %v1318_v3 = vpop.permute.xlu1 %1317  ;;  %1398 = vst.msk [vmem:[#allocation5 + $0x120] sm:$0xff] %vm1379_vm6, %v1320_v26 }
 0x1c1   : > { %1397 = vst.msk [vmem:[#allocation5 + $0x110] sm:$0xff] %vm1379_vm6, %v1318_v3  ;;  %1202 = vrot.lane.b32.xlu0 %v10934_v11, %s10101_s25 }
 0x1c2   : > { %1071 = vrot.lane.b32.xlu1 %v11456_v54, %s10100_s24  ;;  %v9952_v35 = vpop.f32.mrb[0].mxu0 }
 0x1c3   : > { %v2108_v18 = vadd.f32 %v9952_v35, %v11491_v5  ;;  %v2099_v31 = vpop.f32.mrb[1].mxu0  ;;  %v1451_v17 = vpop.permute.xlu0 %1450 }
 0x1c4   : > { %v2100_v21 = vadd.f32 %v2099_v31, %v11491_v5  ;;  %v1322_v15 = vpop.permute.xlu1 %1321  ;;  %v9953_v24 = vpop.f32.mrb[2].mxu0  ;;  %1531 = vst.msk [vmem:[#allocation5 + $0x100] sm:$0xff] %vm1514_vm7, %v1451_v17 }
 0x1c5   : > { %v2228_v25 = vmax.f32 %v2108_v18, 0.0  ;;  %1399 = vst.msk [vmem:[#allocation5 + $0x130] sm:$0xff] %vm1379_vm6, %v1322_v15  ;;  %v2111_v33 = vadd.f32 %v9953_v24, %v11491_v5  ;;  %v2102_v58 = vpop.f32.mrb[3].mxu0  ;;  %1206 = vrot.lane.b32.xlu0 %v11024_v47, %s10101_s25 }
 0x1c6   : > { %v2226_v27 = vmax.f32 %v2100_v21, 0.0  ;;  %v2103_v11 = vadd.f32 %v2102_v58, %v11491_v5  ;;  %1204 = vrot.lane.b32.xlu1 %v10945_v50, %s10101_s25 }
 0x1c7   : > { %v2264_v37 = vmul.f32 %v11505_v20, %v2228_v25  ;;  %v2229_v45 = vmax.f32 %v2111_v33, 0.0  ;;  %v1455_v38 = vpop.permute.xlu0 %1454  ;;  %v11585_v25 = vsel %vm15158_vm1, %v1008_v51, %v1010_v43 }
 0x1c8   : > { %v2262_v32 = vmul.f32 %v11505_v20, %v2226_v27  ;;  %v2227_v22 = vmax.f32 %v2103_v11, 0.0  ;;  %v1453_v52 = vpop.permute.xlu1 %1452  ;;  %1533 = vst.msk [vmem:[#allocation5 + $0x120] sm:$0xff] %vm1514_vm7, %v1455_v38 }
 0x1c9   : > { %v2300_v28 = vadd.f32 %v11511_v48, %v2264_v37  ;;  %v2265_v55 = vmul.f32 %v11505_v20, %v2229_v45  ;;  %1532 = vst.msk [vmem:[#allocation5 + $0x110] sm:$0xff] %vm1514_vm7, %v1453_v52  ;;  %1331 = vrot.lane.b32.xlu0 %v10926_v30, %s10102_s26  ;;  %v2440_v30 = vld [vmem:[#allocation3 + $0x20] sm:$0xff] }
 0x1ca   : > { %v2298_v60 = vadd.f32 %v11511_v48, %v2262_v32  ;;  %v2263_v50 = vmul.f32 %v11505_v20, %v2227_v22  ;;  %1208 = vrot.lane.b32.xlu1 %v11035_v13, %s10101_s25 }
 0x1cb   : > { %2406 = vst.msk [vmem:[#allocation3 + $0x48] sm:$0xff] %vm2330_vm12, %v2300_v28  ;;  %v2301_v39 = vadd.f32 %v11511_v48, %v2265_v55  ;;  %v1588_v44 = vpop.permute.xlu0 %1587 }
 0x1cc   : > { %2404 = vst.msk [vmem:[#allocation3 + $0x28] sm:$0xff] %vm2330_vm12, %v2298_v60  ;;  %v2299_v41 = vadd.f32 %v11511_v48, %v2263_v50  ;;  %v1457_v42 = vpop.permute.xlu1 %1456 }
 0x1cd   : > { %2407 = vst.msk [vmem:[#allocation3 + $0x50] sm:$0xff] %vm2330_vm12, %v2301_v39  ;;  %1335 = vrot.lane.b32.xlu0 %v11016_v40, %s10102_s26  ;;  %v1012_v39 = vrot.slane %v11284_v19, 1 }
 0x1ce   : > { %1534 = vst.msk [vmem:[#allocation5 + $0x130] sm:$0xff] %vm1514_vm7, %v1457_v42  ;;  %1333 = vrot.lane.b32.xlu1 %v10936_v59, %s10102_s26  ;;  %v2561_v59 = vrot.slane %v2440_v30, 7 }
 0x1cf   : > { %2405 = vst.msk [vmem:[#allocation3 + $0x30] sm:$0xff] %vm2330_vm12, %v2299_v41  ;;  %v1592_v61 = vpop.permute.xlu0 %1591  ;;  %v1013_v41 = vrot.slane %v11294_v29, 1 }
 0x1d0   : > { %1668 = vst.msk [vmem:[#allocation5 + $0x100] sm:$0xff] %vm1651_vm8, %v1588_v44  ;;  %v1590_v8 = vpop.permute.xlu1 %1589  ;;  %1670 = vst.msk [vmem:[#allocation5 + $0x120] sm:$0xff] %vm1651_vm8, %v1592_v61 }
 0x1d1   : > { %1669 = vst.msk [vmem:[#allocation5 + $0x110] sm:$0xff] %vm1651_vm8, %v1590_v8  ;;  %1466 = vrot.lane.b32.xlu0 %v11446_v57, %s10103_s27  ;;  %v11644_v8 = vsel %vm15158_vm1, %v1012_v39, %v1013_v41 }
 0x1d2   : > { %v11548_v63 = vld [vmem:[#allocation3 + $0x48] sm:$0xff]  ;;  %1337 = vrot.lane.b32.xlu1 %v11026_v53, %s10102_s26 }
 0x1d3   : > { %v11555_v9 = vld [vmem:[#allocation3 + $0x28] sm:$0xff]  ;;  %v2567_v2 = vrot.slane %v11548_v63, 7  ;;  %v1717_v26 = vpop.permute.xlu0 %1716  ;;  %v2855_v35 = vrot.slane %v11548_v63, 1 }
 0x1d4   : > { %v11558_v23 = vld [vmem:[#allocation3 + $0x50] sm:$0xff]  ;;  %v1594_v14 = vpop.permute.xlu1 %1593  ;;  %v2562_v3 = vrot.slane %v11555_v9, 7  ;;  %1797 = vst.msk [vmem:[#allocation5 + $0x100] sm:$0xff] %vm1780_vm9, %v1717_v26 }
 0x1d5   : > { %1671 = vst.msk [vmem:[#allocation5 + $0x130] sm:$0xff] %vm1651_vm8, %v1594_v14  ;;  %v2856_v57 = vrot.slane %v11558_v23, 1  ;;  %v11570_v31 = vsel %vm15159_vm2, %v2566_v4, %v2567_v2  ;;  %v2569_v21 = vrot.slane %v11558_v23, 7  ;;  %1470 = vrot.lane.b32.xlu0 %v11561_v1, %s10103_s27 }
 0x1d6   : > { %v11567_v18 = vld [vmem:[#allocation3 + $0x30] sm:$0xff]  ;;  %1468 = vrot.lane.b32.xlu1 %v11456_v54, %s10103_s27  ;;  %v11577_v15 = vsel %vm15159_vm2, %v2561_v59, %v2562_v3  ;;  %2672 = vst.msk [vmem:[#allocation5 + $0x40] sm:$0xff] %vm2330_vm12, %v11570_v31  ;;  %v10085_v59 = vld [vmem:[#allocation2 + $0x1c8] sm:$0xff] }
 0x1d7   : > { %v2564_v24 = vrot.slane %v11567_v18, 7  ;;  %v11588_v33 = vsel %vm15158_vm1, %v2855_v35, %v2856_v57  ;;  %v11591_v17 = vsel %vm15158_vm1, %v2856_v57, %v2858_v12  ;;  %2670 = vst.msk [vmem:[#allocation5 + $0x20] sm:$0xff] %vm2330_vm12, %v11577_v15  ;;  %v11596_v54 = vsel %vm15159_vm2, %v2567_v2, %v2569_v21  ;;  %v1721_v11 = vpop.permute.xlu0 %1720  ;;  %v10086_v2 = vld [vmem:[#allocation2 + $0x1d0] sm:$0xff]  ;;  %v590_v57 = vld [vmem:[#allocation2 + $0x200] sm:$0xff]  ;;  %v11673_v21 = vld [vmem:[#allocation2 + $0x208] sm:$0xff] }
 0x1d8   : > { %v1719_v58 = vpop.permute.xlu1 %1718  ;;  %3759 = vst.msk [vmem:[#allocation5 + $0x8] sm:$0xff] %vm2330_vm12, %v11588_v33  ;;  %3760 = vst.msk [vmem:[#allocation5 + $0x18] sm:$0xff] %vm2330_vm12, %v11591_v17 }
 0x1d9   : > { %v11603_v27 = vsel %vm15159_vm2, %v2562_v3, %v2564_v24  ;;  %2673 = vst.msk [vmem:[#allocation5 + $0x50] sm:$0xff] %vm2330_vm12, %v11596_v54  ;;  %1603 = vrot.lane.b32.xlu0 %v11024_v47, %s10104_s28 }
 0x1da   : > { %1798 = vst.msk [vmem:[#allocation5 + $0x110] sm:$0xff] %vm1780_vm9, %v1719_v58  ;;  %1799 = vst.msk [vmem:[#allocation5 + $0x120] sm:$0xff] %vm1780_vm9, %v1721_v11  ;;  %1472 = vrot.lane.b32.xlu1 %v11585_v25, %s10103_s27  ;;  %v1149_v58 = vrot.slane %v590_v57, 7  ;;  %v1150_v11 = vrot.slane %v11673_v21, 7  ;;  %v2455_v57 = vld [vmem:[#allocation3 + $0x98] sm:$0xff] }
 0x1db   : > { %2671 = vst.msk [vmem:[#allocation5 + $0x30] sm:$0xff] %vm2330_vm12, %v11603_v27  ;;  %v1852_v45 = vpop.permute.xlu0 %1851 }
 0x1dc   : > { %v1723_v37 = vpop.permute.xlu1 %1722  ;;  %1932 = vst.msk [vmem:[#allocation5 + $0x100] sm:$0xff] %vm1915_vm10, %v1852_v45 }
 0x1dd   : > { %1800 = vst.msk [vmem:[#allocation5 + $0x130] sm:$0xff] %vm1780_vm9, %v1723_v37  ;;  %1607 = vrot.lane.b32.xlu0 %v11292_v34, %s10104_s28 }
 0x1de   : > { %1605 = vrot.lane.b32.xlu1 %v11035_v13, %s10104_s28 }
 0x1df   : > { %v3792_v32 = vld [vmem:[#allocation5 + $0x8] sm:$0xff]  ;;  %v3794_v22 = vld [vmem:[#allocation5 + $0x18] sm:$0xff]  ;;  %v1856_v55 = vpop.permute.xlu0 %1855 }
 0x1e0   : > { %v1854_v52 = vpop.permute.xlu1 %1853  ;;  %v3856_v28 = vpack.c.bf16 %v3794_v22, %v3792_v32  ;;  %1934 = vst.msk [vmem:[#allocation5 + $0x120] sm:$0xff] %vm1915_vm10, %v1856_v55 }
 0x1e1   : > { %1933 = vst.msk [vmem:[#allocation5 + $0x110] sm:$0xff] %vm1915_vm10, %v1854_v52  ;;  %1732 = vrot.lane.b32.xlu0 %v11016_v40, %s10105_s29  ;;  %v589_v40 = vld [vmem:[#allocation2 + $0x1f8] sm:$0xff] }
 0x1e2   : > { %1609 = vrot.lane.b32.xlu1 %v11303_v36, %s10104_s28  ;;  %9870 = vmatprep.mubr.msk.bf16.mxu1 %vm2330_vm12, %v3856_v28  ;;  %v1015_v46 = vrot.slane %v589_v40, 1 }
 0x1e3   : > { %v832_v13 = vpop.permute.xlu0 %831  ;;  %v1964_v38 = vld [vmem:[#allocation5 + $0x100] sm:$0xff] }
 0x1e4   : > { %v1858_v47 = vpop.permute.xlu1 %1857  ;;  %908 = vst.msk [vmem:[#allocation5 + $0x140] sm:$0xff] %vm887_vm3, %v832_v13  ;;  %v11654_v49 = vsel %vm15158_vm1, %v1013_v41, %v1015_v46 }
 0x1e5   : > { %1935 = vst.msk [vmem:[#allocation5 + $0x130] sm:$0xff] %vm1915_vm10, %v1858_v47  ;;  %1736 = vrot.lane.b32.xlu0 %v11284_v19, %s10105_s29  ;;  %v11693_v47 = vsel %vm15159_vm2, %v1149_v58, %v1150_v11  ;;  %v2451_v58 = vld [vmem:[#allocation3 + $0x78] sm:$0xff] }
 0x1e6   : > { %1734 = vrot.lane.b32.xlu1 %v11026_v53, %s10105_s29 }
 0x1e7   : > { %v836_v42 = vpop.permute.xlu0 %835  ;;  %v1966_v53 = vld [vmem:[#allocation5 + $0x120] sm:$0xff] }
 0x1e8   : > { %v834_v60 = vpop.permute.xlu1 %833  ;;  %v1965_v50 = vld [vmem:[#allocation5 + $0x110] sm:$0xff]  ;;  %910 = vst.msk [vmem:[#allocation5 + $0x160] sm:$0xff] %vm887_vm3, %v836_v42 }
 0x1e9   : > { %909 = vst.msk [vmem:[#allocation5 + $0x150] sm:$0xff] %vm887_vm3, %v834_v60  ;;  %v1988_v44 = vpack.c.bf16 %v1965_v50, %v1964_v38  ;;  %1867 = vrot.lane.b32.xlu0 %v11561_v1, %s10106_s15 }
 0x1ea   : > { %1738 = vrot.lane.b32.xlu1 %v11294_v29, %s10105_s29 }
 0x1eb   : > { %9966 = vmatprep.mubr.msk.bf16.mxu0 %vm2013_vm11, %v1988_v44  ;;  %v1058_v51 = vpop.permute.xlu0 %1057 }
 0x1ec   : > { %v838_v30 = vpop.permute.xlu1 %837  ;;  %v1967_v56 = vld [vmem:[#allocation5 + $0x130] sm:$0xff]  ;;  %1134 = vst.msk [vmem:[#allocation5 + $0x140] sm:$0xff] %vm1113_vm4, %v1058_v51 }
 0x1ed   : > { %911 = vst.msk [vmem:[#allocation5 + $0x170] sm:$0xff] %vm887_vm3, %v838_v30  ;;  %v1989_v62 = vpack.c.bf16 %v1967_v56, %v1966_v53  ;;  %1871 = vrot.lane.b32.xlu0 %v11644_v8, %s10106_s15 }
 0x1ee   : > { %1869 = vrot.lane.b32.xlu1 %v11585_v25, %s10106_s15 }
 0x1ef   : > { %9967 = vmatmul.mubr.msk.bf16.gmra.mrb[16].mxu0 %vm2013_vm11, %v1989_v62  ;;  %v1062_v4 = vpop.permute.xlu0 %1061 }
 0x1f0   : > { %v1060_v61 = vpop.permute.xlu1 %1059  ;;  %1136 = vst.msk [vmem:[#allocation5 + $0x160] sm:$0xff] %vm1113_vm4, %v1062_v4 }
 0x1f1   : > { %1135 = vst.msk [vmem:[#allocation5 + $0x150] sm:$0xff] %vm1113_vm4, %v1060_v61  ;;  %847 = vrot.lane.b32.xlu0 %v10085_v59, %s10099_s23 }
 0x1f2   : > { %1873 = vrot.lane.b32.xlu1 %v11654_v49, %s10106_s15 }
 0x1f3   : > { %v1195_v12 = vpop.permute.xlu0 %1194 }
 0x1f4   : > { %v1064_v43 = vpop.permute.xlu1 %1063  ;;  %1271 = vst.msk [vmem:[#allocation5 + $0x140] sm:$0xff] %vm1250_vm5, %v1195_v12  ;;  %v593_v12 = vld [vmem:[#allocation2 + $0x218] sm:$0xff] }
 0x1f5   : > { %1137 = vst.msk [vmem:[#allocation5 + $0x170] sm:$0xff] %vm1113_vm4, %v1064_v43  ;;  %851 = vrot.lane.b32.xlu0 %v11284_v19, %s10099_s23 }
 0x1f6   : > { %849 = vrot.lane.b32.xlu1 %v10086_v2, %s10099_s23  ;;  %v2452_v2 = vld [vmem:[#allocation3 + $0x80] sm:$0xff] }
 0x1f7   : > { %v1199_v3 = vpop.permute.xlu0 %1198 }
 0x1f8   : > { %v1197_v14 = vpop.permute.xlu1 %1196  ;;  %1273 = vst.msk [vmem:[#allocation5 + $0x160] sm:$0xff] %vm1250_vm5, %v1199_v3  ;;  %v1413_v3 = vrot.slane %v11673_v21, 1 }
 0x1f9   : > { %1272 = vst.msk [vmem:[#allocation5 + $0x150] sm:$0xff] %vm1250_vm5, %v1197_v14  ;;  %1073 = vrot.lane.b32.xlu0 %v11561_v1, %s10100_s24  ;;  %v11681_v1 = vld [vmem:[#allocation2 + $0x210] sm:$0xff] }
 0x1fa   : > { %853 = vrot.lane.b32.xlu1 %v11294_v29, %s10099_s23  ;;  %v1152_v22 = vrot.slane %v11681_v1, 7 }
 0x1fb   : > { %v1324_v35 = vpop.permute.xlu0 %1323 }
 0x1fc   : > { %v1201_v26 = vpop.permute.xlu1 %1200  ;;  %1400 = vst.msk [vmem:[#allocation5 + $0x140] sm:$0xff] %vm1379_vm6, %v1324_v35  ;;  %v11705_v42 = vsel %vm15159_vm2, %v1150_v11, %v1152_v22  ;;  %v1416_v35 = vrot.slane %v593_v12, 1  ;;  %v2576_v11 = vrot.slane %v2452_v2, 7 }
 0x1fd   : > { %1274 = vst.msk [vmem:[#allocation5 + $0x170] sm:$0xff] %vm1250_vm5, %v1201_v26  ;;  %1077 = vrot.lane.b32.xlu0 %v11644_v8, %s10100_s24  ;;  %v1414_v26 = vrot.slane %v11681_v1, 1 }
 0x1fe   : > { %1075 = vrot.lane.b32.xlu1 %v11585_v25, %s10100_s24 }
 0x1ff   : > { %v1328_v37 = vpop.permute.xlu0 %1327 }
 0x200   : > { %v1326_v24 = vpop.permute.xlu1 %1325  ;;  %1402 = vst.msk [vmem:[#allocation5 + $0x160] sm:$0xff] %vm1379_vm6, %v1328_v37 }
 0x201   : > { %1401 = vst.msk [vmem:[#allocation5 + $0x150] sm:$0xff] %vm1379_vm6, %v1326_v24  ;;  %1210 = vrot.lane.b32.xlu0 %v11292_v34, %s10101_s25 }
 0x202   : > { %1079 = vrot.lane.b32.xlu1 %v11654_v49, %s10100_s24  ;;  %v9956_v45 = vpop.f32.mrb[4].mxu0 }
 0x203   : > { %v2124_v25 = vadd.f32 %v9956_v45, %v11491_v5  ;;  %v2115_v32 = vpop.f32.mrb[5].mxu0  ;;  %v1459_v60 = vpop.permute.xlu0 %1458 }
 0x204   : > { %v2116_v52 = vadd.f32 %v2115_v32, %v11491_v5  ;;  %v1330_v28 = vpop.permute.xlu1 %1329  ;;  %v9957_v55 = vpop.f32.mrb[6].mxu0  ;;  %1535 = vst.msk [vmem:[#allocation5 + $0x140] sm:$0xff] %vm1514_vm7, %v1459_v60  ;;  %v2868_v32 = vrot.slane %v2455_v57, 1 }
 0x205   : > { %v2232_v13 = vmax.f32 %v2124_v25, 0.0  ;;  %1403 = vst.msk [vmem:[#allocation5 + $0x170] sm:$0xff] %vm1379_vm6, %v1330_v28  ;;  %v2127_v38 = vadd.f32 %v9957_v55, %v11491_v5  ;;  %v2118_v50 = vpop.f32.mrb[7].mxu0  ;;  %1214 = vrot.lane.b32.xlu0 %v11693_v47, %s10101_s25  ;;  %v11747_v28 = vsel %vm15158_vm1, %v1414_v26, %v1416_v35  ;;  %v594_v55 = vld [vmem:[#allocation2 + $0x220] sm:$0xff] }
 0x206   : > { %v2230_v39 = vmax.f32 %v2116_v52, 0.0  ;;  %v2119_v34 = vadd.f32 %v2118_v50, %v11491_v5  ;;  %1212 = vrot.lane.b32.xlu1 %v11303_v36, %s10101_s25  ;;  %v11744_v52 = vsel %vm15158_vm1, %v1413_v3, %v1414_v26  ;;  %v11753_v50 = vld [vmem:[#allocation2 + $0x228] sm:$0xff] }
 0x207   : > { %v2268_v41 = vmul.f32 %v11505_v20, %v2232_v13  ;;  %v2233_v40 = vmax.f32 %v2127_v38, 0.0  ;;  %v1463_v36 = vpop.permute.xlu0 %1462  ;;  %v2863_v38 = vrot.slane %v2451_v58, 1  ;;  %v11828_v58 = vld [vmem:[#allocation3 + $0x8] sm:$0xff] }
 0x208   : > { %v2266_v44 = vmul.f32 %v11505_v20, %v2230_v39  ;;  %v2231_v53 = vmax.f32 %v2119_v34, 0.0  ;;  %v1461_v46 = vpop.permute.xlu1 %1460  ;;  %1537 = vst.msk [vmem:[#allocation5 + $0x160] sm:$0xff] %vm1514_vm7, %v1463_v36  ;;  %v1550_v36 = vrot.slane %v594_v55, 7 }
 0x209   : > { %v2304_v30 = vadd.f32 %v11511_v48, %v2268_v41  ;;  %v2269_v56 = vmul.f32 %v11505_v20, %v2233_v40  ;;  %1536 = vst.msk [vmem:[#allocation5 + $0x150] sm:$0xff] %vm1514_vm7, %v1461_v46  ;;  %1339 = vrot.lane.b32.xlu0 %v11284_v19, %s10102_s26  ;;  %v2448_v19 = vld [vmem:[#allocation3 + $0x60] sm:$0xff] }
 0x20a   : > { %v2302_v51 = vadd.f32 %v11511_v48, %v2266_v44  ;;  %v2267_v62 = vmul.f32 %v11505_v20, %v2231_v53  ;;  %1216 = vrot.lane.b32.xlu1 %v11705_v42, %s10101_s25  ;;  %s10111_s25 = smov 80  }
 0x20b   : > { %2410 = vst.msk [vmem:[#allocation3 + $0x88] sm:$0xff] %vm2330_vm12, %v2304_v30  ;;  %v2305_v61 = vadd.f32 %v11511_v48, %v2269_v56  ;;  %v1596_v43 = vpop.permute.xlu0 %1595 }
 0x20c   : > { %2408 = vst.msk [vmem:[#allocation3 + $0x68] sm:$0xff] %vm2330_vm12, %v2302_v51  ;;  %v2303_v4 = vadd.f32 %v11511_v48, %v2267_v62  ;;  %v1465_v59 = vpop.permute.xlu1 %1464 }
 0x20d   : > { %2411 = vst.msk [vmem:[#allocation3 + $0x90] sm:$0xff] %vm2330_vm12, %v2305_v61  ;;  %1343 = vrot.lane.b32.xlu0 %v11673_v21, %s10102_s26 }
 0x20e   : > { %1538 = vst.msk [vmem:[#allocation5 + $0x170] sm:$0xff] %vm1514_vm7, %v1465_v59  ;;  %1341 = vrot.lane.b32.xlu1 %v11294_v29, %s10102_s26  ;;  %v2571_v29 = vrot.slane %v2448_v19, 7  ;;  %v11788_v59 = vld [vmem:[#allocation2 + $0x230] sm:$0xff] }
 0x20f   : > { %2409 = vst.msk [vmem:[#allocation3 + $0x70] sm:$0xff] %vm2330_vm12, %v2303_v4  ;;  %v1600_v24 = vpop.permute.xlu0 %1599  ;;  %v1551_v4 = vrot.slane %v11753_v50, 7 }
 0x210   : > { %1672 = vst.msk [vmem:[#allocation5 + $0x140] sm:$0xff] %vm1651_vm8, %v1596_v43  ;;  %v1598_v14 = vpop.permute.xlu1 %1597  ;;  %1674 = vst.msk [vmem:[#allocation5 + $0x160] sm:$0xff] %vm1651_vm8, %v1600_v24 }
 0x211   : > { %1673 = vst.msk [vmem:[#allocation5 + $0x150] sm:$0xff] %vm1651_vm8, %v1598_v14  ;;  %1474 = vrot.lane.b32.xlu0 %v11644_v8, %s10103_s27  ;;  %v1553_v14 = vrot.slane %v11788_v59, 7  ;;  %v1552_v26 = vsel %vm15159_vm2, %v1550_v36, %v1551_v4 }
 0x212   : > { %1345 = vrot.lane.b32.xlu1 %v11681_v1, %s10102_s26  ;;  %v11736_v37 = vld [vmem:[#allocation3 + $0x88] sm:$0xff]  ;;  %s10117_s26 = smov 127  }
 0x213   : > { %v11740_v45 = vld [vmem:[#allocation3 + $0x68] sm:$0xff]  ;;  %v2577_v25 = vrot.slane %v11736_v37, 7  ;;  %v1725_v8 = vpop.permute.xlu0 %1724  ;;  %v2865_v40 = vrot.slane %v11736_v37, 1  ;;  %v1554_v57 = vsel %vm15159_vm2, %v1551_v4, %v1553_v14 }
 0x214   : > { %v1602_v22 = vpop.permute.xlu1 %1601  ;;  %v2572_v13 = vrot.slane %v11740_v45, 7  ;;  %v11750_v60 = vld [vmem:[#allocation3 + $0x90] sm:$0xff]  ;;  %1801 = vst.msk [vmem:[#allocation5 + $0x140] sm:$0xff] %vm1780_vm9, %v1725_v8  ;;  %v2860_v30 = vrot.slane %v11740_v45, 1  ;;  %v10107_v8 = vmov 0  }
 0x215   : > { %1675 = vst.msk [vmem:[#allocation5 + $0x170] sm:$0xff] %vm1651_vm8, %v1602_v22  ;;  %v11758_v34 = vsel %vm15159_vm2, %v2576_v11, %v2577_v25  ;;  %v2579_v41 = vrot.slane %v11750_v60, 7  ;;  %v2866_v44 = vrot.slane %v11750_v60, 1  ;;  %1478 = vrot.lane.b32.xlu0 %v11744_v52, %s10103_s27  ;;  %v11830_v11 = vld [vmem:[#allocation3 + $0x10] sm:$0xff]  ;;  %4012 = vmatprep.subr.bf16.mxu1 %v10107_v8 }
 0x216   : > { %v11755_v39 = vld [vmem:[#allocation3 + $0x70] sm:$0xff]  ;;  %1476 = vrot.lane.b32.xlu1 %v11654_v49, %s10103_s27  ;;  %v11767_v53 = vsel %vm15159_vm2, %v2571_v29, %v2572_v13  ;;  %2676 = vst.msk [vmem:[#allocation5 + $0x80] sm:$0xff] %vm2330_vm12, %v11758_v34  ;;  %v2559_v29 = vrot.slane %v11830_v11, 7  ;;  %6733 = vmatprep.subr.bf16.mxu0 %v10107_v8 }
 0x217   : > { %v2574_v46 = vrot.slane %v11755_v39, 7  ;;  %v2861_v56 = vrot.slane %v11755_v39, 1  ;;  %2674 = vst.msk [vmem:[#allocation5 + $0x60] sm:$0xff] %vm2330_vm12, %v11767_v53  ;;  %v11779_v49 = vsel %vm15159_vm2, %v2577_v25, %v2579_v41  ;;  %v11782_v51 = vsel %vm15158_vm1, %v2865_v40, %v2866_v44  ;;  %v1729_v19 = vpop.permute.xlu0 %1728 }
 0x218   : > { %v11785_v62 = vsel %vm15158_vm1, %v2866_v44, %v2868_v32  ;;  %v1727_v61 = vpop.permute.xlu1 %1726  ;;  %2677 = vst.msk [vmem:[#allocation5 + $0x90] sm:$0xff] %vm2330_vm12, %v11779_v49  ;;  %3763 = vst.msk [vmem:[#allocation5 + $0x48] sm:$0xff] %vm2330_vm12, %v11782_v51  ;;  %v2436_v32 = vld [vmem:[#allocation3] sm:$0xff] }
 0x219   : > { %v11791_v43 = vsel %vm15159_vm2, %v2572_v13, %v2574_v46  ;;  %v11794_v12 = vsel %vm15158_vm1, %v2860_v30, %v2861_v56  ;;  %v11797_v2 = vsel %vm15158_vm1, %v2861_v56, %v2863_v38  ;;  %3764 = vst.msk [vmem:[#allocation5 + $0x58] sm:$0xff] %vm2330_vm12, %v11785_v62  ;;  %1611 = vrot.lane.b32.xlu0 %v11693_v47, %s10104_s28  ;;  %v2556_v55 = vrot.slane %v2436_v32, 7  ;;  %v597_v30 = vld [vmem:[#allocation2 + $0x238] sm:$0xff] }
 0x21a   : > { %1802 = vst.msk [vmem:[#allocation5 + $0x150] sm:$0xff] %vm1780_vm9, %v1727_v61  ;;  %1803 = vst.msk [vmem:[#allocation5 + $0x160] sm:$0xff] %vm1780_vm9, %v1729_v19  ;;  %1480 = vrot.lane.b32.xlu1 %v11747_v28, %s10103_s27  ;;  %v1814_v46 = vrot.slane %v11753_v50, 1  ;;  %v10033_v61 = vld [vmem:[%s15147_s3 + $0x8] sm:$0xff]   ;;  %v1817_v4 = vrot.slane %v597_v30, 1  ;;  %v2850_v30 = vrot.slane %v11555_v9, 1 }
 0x21b   : > { %2675 = vst.msk [vmem:[#allocation5 + $0x70] sm:$0xff] %vm2330_vm12, %v11791_v43  ;;  %3761 = vst.msk [vmem:[#allocation5 + $0x28] sm:$0xff] %vm2330_vm12, %v11794_v12  ;;  %v1860_v35 = vpop.permute.xlu0 %1859  ;;  %s10118_s27 = smov 126  }
 0x21c   : > { %3762 = vst.msk [vmem:[#allocation5 + $0x38] sm:$0xff] %vm2330_vm12, %v11797_v2  ;;  %v1731_v3 = vpop.permute.xlu1 %1730 }
 0x21d   : > { %1804 = vst.msk [vmem:[#allocation5 + $0x170] sm:$0xff] %vm1780_vm9, %v1731_v3  ;;  %1615 = vrot.lane.b32.xlu0 %v1552_v26, %s10104_s28 }
 0x21e   : > { %1936 = vst.msk [vmem:[#allocation5 + $0x140] sm:$0xff] %vm1915_vm10, %v1860_v35  ;;  %1613 = vrot.lane.b32.xlu1 %v11705_v42, %s10104_s28  ;;  %v2557_v42 = vrot.slane %v11828_v58, 7 }
 0x21f   : > { %v1864_v47 = vpop.permute.xlu0 %1863 }
 0x220   : > { %v1862_v24 = vpop.permute.xlu1 %1861  ;;  %1938 = vst.msk [vmem:[#allocation5 + $0x160] sm:$0xff] %vm1915_vm10, %v1864_v47  ;;  %v2558_v38 = vsel %vm15159_vm2, %v2556_v55, %v2557_v42  ;;  %v2560_v41 = vsel %vm15159_vm2, %v2557_v42, %v2559_v29  ;;  %v2846_v47 = vrot.slane %v11830_v11, 1  ;;  %v2439_v42 = vld [vmem:[#allocation3 + $0x18] sm:$0xff] }
 0x221   : > { %1937 = vst.msk [vmem:[#allocation5 + $0x150] sm:$0xff] %vm1915_vm10, %v1862_v24  ;;  %1740 = vrot.lane.b32.xlu0 %v11673_v21, %s10105_s29  ;;  %v10032_v21 = vld [vmem:[%s15147_s3] sm:$0xff]   ;;  %v2845_v24 = vrot.slane %v11828_v58, 1  ;;  %v10035_v29 = vld [vmem:[%s15147_s3 + $0x18] sm:$0xff]  }
 0x222   : > { %1617 = vrot.lane.b32.xlu1 %v1554_v57, %s10104_s28  ;;  %2668 = vst.msk [vmem:[#allocation5] sm:$0xff] %vm2330_vm12, %v2558_v38  ;;  %4013 = vmatpush1.bf16.msra.mxu1 %v10032_v21  ;;  %2669 = vst.msk [vmem:[#allocation5 + $0x10] sm:$0xff] %vm2330_vm12, %v2560_v41  ;;  %s10112_s28 = smov 96  }
 0x223   : > { %v840_v22 = vpop.permute.xlu0 %839  ;;  %4014 = vmatprep.subr.bf16.mxu1 %v10107_v8 }
 0x224   : > { %v1866_v25 = vpop.permute.xlu1 %1865  ;;  %912 = vst.msk [vmem:[#allocation5 + $0x180] sm:$0xff] %vm887_vm3, %v840_v22  ;;  %v2847_v22 = vsel %vm15158_vm1, %v2845_v24, %v2846_v47 }
 0x225   : > { %1939 = vst.msk [vmem:[#allocation5 + $0x170] sm:$0xff] %vm1915_vm10, %v1866_v25  ;;  %v1968_v13 = vld [vmem:[#allocation5 + $0x140] sm:$0xff]  ;;  %1744 = vrot.lane.b32.xlu0 %v11753_v50, %s10105_s29  ;;  %v2848_v25 = vrot.slane %v2439_v42, 1 }
 0x226   : > { %1742 = vrot.lane.b32.xlu1 %v11681_v1, %s10105_s29  ;;  %v1815_v1 = vrot.slane %v11788_v59, 1  ;;  %4015 = vmatpush1.bf16.msra.mxu1 %v10033_v61  ;;  %v10039_v61 = vld [vmem:[%s15147_s3 + $0x38] sm:$0xff]  }
 0x227   : > { %v844_v56 = vpop.permute.xlu0 %843  ;;  %v1970_v50 = vld [vmem:[#allocation5 + $0x160] sm:$0xff]  ;;  %4016 = vmatprep.subr.bf16.mxu1 %v10107_v8 }
 0x228   : > { %v842_v40 = vpop.permute.xlu1 %841  ;;  %v1969_v44 = vld [vmem:[#allocation5 + $0x150] sm:$0xff]  ;;  %914 = vst.msk [vmem:[#allocation5 + $0x1a0] sm:$0xff] %vm887_vm3, %v844_v56  ;;  %v1816_v14 = vsel %vm15158_vm1, %v1814_v46, %v1815_v1  ;;  %v1818_v35 = vsel %vm15158_vm1, %v1815_v1, %v1817_v4  ;;  %v2443_v46 = vld [vmem:[#allocation3 + $0x38] sm:$0xff]  ;;  %v10038_v1 = vld [vmem:[%s15147_s3 + $0x30] sm:$0xff]  }
 0x229   : > { %913 = vst.msk [vmem:[#allocation5 + $0x190] sm:$0xff] %vm887_vm3, %v842_v40  ;;  %v1990_v36 = vpack.c.bf16 %v1969_v44, %v1968_v13  ;;  %1875 = vrot.lane.b32.xlu0 %v11744_v52, %s10106_s15  ;;  %v10034_v52 = vld [vmem:[%s15147_s3 + $0x10] sm:$0xff]   ;;  %v10036_v13 = vld [vmem:[%s15147_s3 + $0x20] sm:$0xff]   ;;  %v2851_v44 = vrot.slane %v11567_v18, 1 }
 0x22a   : > { %1746 = vrot.lane.b32.xlu1 %v11788_v59, %s10105_s29  ;;  %4017 = vmatpush1.bf16.msra.mxu1 %v10034_v52  ;;  %s10113_s29 = smov 112  }
 0x22b   : > { %9970 = vmatprep.mubr.msk.bf16.mxu0 %vm2013_vm11, %v1990_v36  ;;  %v1066_v26 = vpop.permute.xlu0 %1065  ;;  %4018 = vmatprep.subr.bf16.mxu1 %v10107_v8  ;;  %v2853_v36 = vrot.slane %v2443_v46, 1 }
 0x22c   : > { %v846_v19 = vpop.permute.xlu1 %845  ;;  %v1971_v3 = vld [vmem:[#allocation5 + $0x170] sm:$0xff]  ;;  %1138 = vst.msk [vmem:[#allocation5 + $0x180] sm:$0xff] %vm1113_vm4, %v1066_v26 }
 0x22d   : > { %915 = vst.msk [vmem:[#allocation5 + $0x1b0] sm:$0xff] %vm887_vm3, %v846_v19  ;;  %v1991_v59 = vpack.c.bf16 %v1971_v3, %v1970_v50  ;;  %1879 = vrot.lane.b32.xlu0 %v1816_v14, %s10106_s15  ;;  %v11925_v50 = vsel %vm15158_vm1, %v2850_v30, %v2851_v44  ;;  %v11937_v24 = vsel %vm15158_vm1, %v2851_v44, %v2853_v36 }
 0x22e   : > { %1877 = vrot.lane.b32.xlu1 %v11747_v28, %s10106_s15  ;;  %4019 = vmatpush1.bf16.msra.mxu1 %v10035_v29 }
 0x22f   : > { %9971 = vmatmul.mubr.msk.bf16.gmra.mrb[20].mxu0 %vm2013_vm11, %v1991_v59  ;;  %v1070_v28 = vpop.permute.xlu0 %1069  ;;  %4020 = vmatprep.subr.bf16.mxu1 %v10107_v8 }
 0x230   : > { %v1068_v57 = vpop.permute.xlu1 %1067  ;;  %1140 = vst.msk [vmem:[#allocation5 + $0x1a0] sm:$0xff] %vm1113_vm4, %v1070_v28  ;;  %v10040_v28 = vld [vmem:[%s15147_s3 + $0x40] sm:$0xff]  }
 0x231   : > { %1139 = vst.msk [vmem:[#allocation5 + $0x190] sm:$0xff] %vm1113_vm4, %v1068_v57  ;;  %2700 = vrot.lane.b32.xlu0 %v11828_v58, %s10106_s15  ;;  %v2849_v58 = vsel %vm15158_vm1, %v2846_v47, %v2848_v25 }
 0x232   : > { %1881 = vrot.lane.b32.xlu1 %v1818_v35, %s10106_s15  ;;  %4021 = vmatpush1.bf16.msra.mxu1 %v10036_v13 }
 0x233   : > { %v1203_v55 = vpop.permute.xlu0 %1202  ;;  %4022 = vmatprep.subr.bf16.mxu1 %v10107_v8 }
 0x234   : > { %v1072_v32 = vpop.permute.xlu1 %1071  ;;  %1275 = vst.msk [vmem:[#allocation5 + $0x180] sm:$0xff] %vm1250_vm5, %v1203_v55 }
 0x235   : > { %1141 = vst.msk [vmem:[#allocation5 + $0x1b0] sm:$0xff] %vm1113_vm4, %v1072_v32  ;;  %2925 = vrot.lane.b32.xlu0 %v2847_v22, %s10108_s12 }
 0x236   : > { %2702 = vrot.lane.b32.xlu1 %v11830_v11, %s10106_s15  ;;  %v10037_v11 = vld [vmem:[%s15147_s3 + $0x28] sm:$0xff]  }
 0x237   : > { %v1207_v38 = vpop.permute.xlu0 %1206  ;;  %4023 = vmatpush1.bf16.msra.mxu1 %v10037_v11 }
 0x238   : > { %v1205_v21 = vpop.permute.xlu1 %1204  ;;  %1277 = vst.msk [vmem:[#allocation5 + $0x1a0] sm:$0xff] %vm1250_vm5, %v1207_v38  ;;  %4024 = vmatprep.subr.bf16.mxu1 %v10107_v8 }
 0x239   : > { %1276 = vst.msk [vmem:[#allocation5 + $0x190] sm:$0xff] %vm1250_vm5, %v1205_v21  ;;  %3062 = vrot.lane.b32.xlu0 %v11577_v15, %s10109_s16 }
 0x23a   : > { %2927 = vrot.lane.b32.xlu1 %v2849_v58, %s10108_s12 }
 0x23b   : > { %v1332_v40 = vpop.permute.xlu0 %1331  ;;  %4025 = vmatpush1.bf16.msra.mxu1 %v10038_v1  ;;  %v2460_v1 = vld [vmem:[#allocation3 + $0xc0] sm:$0xff] }
 0x23c   : > { %v1209_v41 = vpop.permute.xlu1 %1208  ;;  %1404 = vst.msk [vmem:[#allocation5 + $0x180] sm:$0xff] %vm1379_vm6, %v1332_v40  ;;  %4026 = vmatprep.subr.bf16.mxu1 %v10107_v8 }
 0x23d   : > { %1278 = vst.msk [vmem:[#allocation5 + $0x1b0] sm:$0xff] %vm1250_vm5, %v1209_v41  ;;  %3191 = vrot.lane.b32.xlu0 %v11555_v9, %s10110_s22 }
 0x23e   : > { %3064 = vrot.lane.b32.xlu1 %v11603_v27, %s10109_s16 }
 0x23f   : > { %v1336_v56 = vpop.permute.xlu0 %1335  ;;  %4027 = vmatpush1.bf16.msra.mxu1 %v10039_v61  ;;  %v2586_v61 = vrot.slane %v2460_v1, 7 }
 0x240   : > { %v1334_v15 = vpop.permute.xlu1 %1333  ;;  %1406 = vst.msk [vmem:[#allocation5 + $0x1a0] sm:$0xff] %vm1379_vm6, %v1336_v56  ;;  %4028 = vmatprep.subr.bf16.mxu1 %v10107_v8  ;;  %v2463_v56 = vld [vmem:[#allocation3 + $0xd8] sm:$0xff] }
 0x241   : > { %1405 = vst.msk [vmem:[#allocation5 + $0x190] sm:$0xff] %vm1379_vm6, %v1334_v15  ;;  %3326 = vrot.lane.b32.xlu0 %v11925_v50, %s10111_s25  ;;  %v2456_v15 = vld [vmem:[#allocation3 + $0xa0] sm:$0xff] }
 0x242   : > { %v9960_v27 = vpop.f32.mrb[8].mxu0  ;;  %3193 = vrot.lane.b32.xlu1 %v11567_v18, %s10110_s22 }
 0x243   : > { %v2140_v4 = vadd.f32 %v9960_v27, %v11491_v5  ;;  %v2131_v19 = vpop.f32.mrb[9].mxu0  ;;  %v1467_v35 = vpop.permute.xlu0 %1466  ;;  %4029 = vmatpush1.bf16.msra.mxu1 %v10040_v28  ;;  %v2459_v27 = vld [vmem:[#allocation3 + $0xb8] sm:$0xff] }
 0x244   : > { %v2132_v14 = vadd.f32 %v2131_v19, %v11491_v5  ;;  %v1338_v3 = vpop.permute.xlu1 %1337  ;;  %v9961_v26 = vpop.f32.mrb[10].mxu0  ;;  %1539 = vst.msk [vmem:[#allocation5 + $0x180] sm:$0xff] %vm1514_vm7, %v1467_v35 }
 0x245   : > { %v2236_v59 = vmax.f32 %v2140_v4, 0.0  ;;  %1407 = vst.msk [vmem:[#allocation5 + $0x1b0] sm:$0xff] %vm1379_vm6, %v1338_v3  ;;  %v2143_v52 = vadd.f32 %v9961_v26, %v11491_v5  ;;  %v2134_v57 = vpop.f32.mrb[11].mxu0  ;;  %3463 = vrot.lane.b32.xlu0 %v11570_v31, %s10112_s28  ;;  %v2581_v4 = vrot.slane %v2456_v15, 7  ;;  %v2878_v3 = vrot.slane %v2463_v56, 1 }
 0x246   : > { %v2234_v47 = vmax.f32 %v2132_v14, 0.0  ;;  %v2135_v42 = vadd.f32 %v2134_v57, %v11491_v5  ;;  %3328 = vrot.lane.b32.xlu1 %v11937_v24, %s10111_s25 }
 0x247   : > { %v2272_v29 = vmul.f32 %v11505_v20, %v2236_v59  ;;  %v2237_v25 = vmax.f32 %v2143_v52, 0.0  ;;  %v1471_v21 = vpop.permute.xlu0 %1470  ;;  %v2873_v52 = vrot.slane %v2459_v27, 1 }
 0x248   : > { %v2270_v32 = vmul.f32 %v11505_v20, %v2234_v47  ;;  %v2235_v22 = vmax.f32 %v2135_v42, 0.0  ;;  %v1469_v55 = vpop.permute.xlu1 %1468  ;;  %1541 = vst.msk [vmem:[#allocation5 + $0x1a0] sm:$0xff] %vm1514_vm7, %v1471_v21 }
 0x249   : > { %v2308_v13 = vadd.f32 %v11511_v48, %v2272_v29  ;;  %v2273_v58 = vmul.f32 %v11505_v20, %v2237_v25  ;;  %1540 = vst.msk [vmem:[#allocation5 + $0x190] sm:$0xff] %vm1514_vm7, %v1469_v55  ;;  %3592 = vrot.lane.b32.xlu0 %v11548_v63, %s10113_s29 }
 0x24a   : > { %v2306_v38 = vadd.f32 %v11511_v48, %v2270_v32  ;;  %v2271_v11 = vmul.f32 %v11505_v20, %v2235_v22  ;;  %3465 = vrot.lane.b32.xlu1 %v11596_v54, %s10112_s28 }
 0x24b   : > { %2414 = vst.msk [vmem:[#allocation3 + $0xc8] sm:$0xff] %vm2330_vm12, %v2308_v13  ;;  %v2309_v41 = vadd.f32 %v11511_v48, %v2273_v58  ;;  %v1604_v46 = vpop.permute.xlu0 %1603 }
 0x24c   : > { %2412 = vst.msk [vmem:[#allocation3 + $0xa8] sm:$0xff] %vm2330_vm12, %v2306_v38  ;;  %v2307_v40 = vadd.f32 %v11511_v48, %v2271_v11  ;;  %v1473_v44 = vpop.permute.xlu1 %1472 }
 0x24d   : > { %2415 = vst.msk [vmem:[#allocation3 + $0xd0] sm:$0xff] %vm2330_vm12, %v2309_v41  ;;  %2704 = vrot.lane.b32.xlu0 %v11555_v9, %s10106_s15 }
 0x24e   : > { %1542 = vst.msk [vmem:[#allocation5 + $0x1b0] sm:$0xff] %vm1514_vm7, %v1473_v44  ;;  %3594 = vrot.lane.b32.xlu1 %v11558_v23, %s10113_s29 }
 0x24f   : > { %2413 = vst.msk [vmem:[#allocation3 + $0xb0] sm:$0xff] %vm2330_vm12, %v2307_v40  ;;  %v1608_v36 = vpop.permute.xlu0 %1607 }
 0x250   : > { %1676 = vst.msk [vmem:[#allocation5 + $0x180] sm:$0xff] %vm1651_vm8, %v1604_v46  ;;  %v1606_v30 = vpop.permute.xlu1 %1605  ;;  %1678 = vst.msk [vmem:[#allocation5 + $0x1a0] sm:$0xff] %vm1651_vm8, %v1608_v36 }
 0x251   : > { %1677 = vst.msk [vmem:[#allocation5 + $0x190] sm:$0xff] %vm1651_vm8, %v1606_v30  ;;  %2929 = vrot.lane.b32.xlu0 %v11925_v50, %s10108_s12 }
 0x252   : > { %2706 = vrot.lane.b32.xlu1 %v11567_v18, %s10106_s15  ;;  %v11977_v19 = vld [vmem:[#allocation3 + $0xc8] sm:$0xff] }
 0x253   : > { %v11981_v9 = vld [vmem:[#allocation3 + $0xa8] sm:$0xff]  ;;  %v2587_v14 = vrot.slane %v11977_v19, 7  ;;  %v1733_v18 = vpop.permute.xlu0 %1732  ;;  %v2875_v42 = vrot.slane %v11977_v19, 1 }
 0x254   : > { %v1610_v26 = vpop.permute.xlu1 %1609  ;;  %v2582_v59 = vrot.slane %v11981_v9, 7  ;;  %v11985_v35 = vld [vmem:[#allocation3 + $0xd0] sm:$0xff]  ;;  %1805 = vst.msk [vmem:[#allocation5 + $0x180] sm:$0xff] %vm1780_vm9, %v1733_v18  ;;  %v2870_v32 = vrot.slane %v11981_v9, 1 }
 0x255   : > { %1679 = vst.msk [vmem:[#allocation5 + $0x1b0] sm:$0xff] %vm1651_vm8, %v1610_v26  ;;  %v11991_v47 = vsel %vm15159_vm2, %v2586_v61, %v2587_v14  ;;  %v2589_v50 = vrot.slane %v11985_v35, 7  ;;  %v2876_v28 = vrot.slane %v11985_v35, 1  ;;  %3066 = vrot.lane.b32.xlu0 %v11570_v31, %s10109_s16 }
 0x256   : > { %v11988_v57 = vld [vmem:[#allocation3 + $0xb0] sm:$0xff]  ;;  %2931 = vrot.lane.b32.xlu1 %v11937_v24, %s10108_s12  ;;  %v12000_v29 = vsel %vm15159_vm2, %v2581_v4, %v2582_v59  ;;  %2680 = vst.msk [vmem:[#allocation5 + $0xc0] sm:$0xff] %vm2330_vm12, %v11991_v47 }
 0x257   : > { %v2584_v25 = vrot.slane %v11988_v57, 7  ;;  %v2871_v22 = vrot.slane %v11988_v57, 1  ;;  %2678 = vst.msk [vmem:[#allocation5 + $0xa0] sm:$0xff] %vm2330_vm12, %v12000_v29  ;;  %v12012_v24 = vsel %vm15159_vm2, %v2587_v14, %v2589_v50  ;;  %v12015_v55 = vsel %vm15158_vm1, %v2875_v42, %v2876_v28  ;;  %v1737_v11 = vpop.permute.xlu0 %1736 }
 0x258   : > { %v12018_v13 = vsel %vm15158_vm1, %v2876_v28, %v2878_v3  ;;  %v1735_v58 = vpop.permute.xlu1 %1734  ;;  %2681 = vst.msk [vmem:[#allocation5 + $0xd0] sm:$0xff] %vm2330_vm12, %v12012_v24  ;;  %3767 = vst.msk [vmem:[#allocation5 + $0x88] sm:$0xff] %vm2330_vm12, %v12015_v55 }
 0x259   : > { %v12021_v21 = vsel %vm15159_vm2, %v2582_v59, %v2584_v25  ;;  %v12024_v38 = vsel %vm15158_vm1, %v2870_v32, %v2871_v22  ;;  %v12027_v31 = vsel %vm15158_vm1, %v2871_v22, %v2873_v52  ;;  %3768 = vst.msk [vmem:[#allocation5 + $0x98] sm:$0xff] %vm2330_vm12, %v12018_v13  ;;  %3195 = vrot.lane.b32.xlu0 %v11548_v63, %s10110_s22 }
 0x25a   : > { %1806 = vst.msk [vmem:[#allocation5 + $0x190] sm:$0xff] %vm1780_vm9, %v1735_v58  ;;  %1807 = vst.msk [vmem:[#allocation5 + $0x1a0] sm:$0xff] %vm1780_vm9, %v1737_v11  ;;  %3068 = vrot.lane.b32.xlu1 %v11596_v54, %s10109_s16 }
 0x25b   : > { %2679 = vst.msk [vmem:[#allocation5 + $0xb0] sm:$0xff] %vm2330_vm12, %v12021_v21  ;;  %3765 = vst.msk [vmem:[#allocation5 + $0x68] sm:$0xff] %vm2330_vm12, %v12024_v38  ;;  %v1868_v40 = vpop.permute.xlu0 %1867 }
 0x25c   : > { %3766 = vst.msk [vmem:[#allocation5 + $0x78] sm:$0xff] %vm2330_vm12, %v12027_v31  ;;  %v1739_v41 = vpop.permute.xlu1 %1738 }
 0x25d   : > { %1808 = vst.msk [vmem:[#allocation5 + $0x1b0] sm:$0xff] %vm1780_vm9, %v1739_v41  ;;  %3330 = vrot.lane.b32.xlu0 %v11588_v33, %s10111_s25 }
 0x25e   : > { %1940 = vst.msk [vmem:[#allocation5 + $0x180] sm:$0xff] %vm1915_vm10, %v1868_v40  ;;  %3197 = vrot.lane.b32.xlu1 %v11558_v23, %s10110_s22 }
 0x25f   : > { %v1872_v46 = vpop.permute.xlu0 %1871 }
 0x260   : > { %v1870_v44 = vpop.permute.xlu1 %1869  ;;  %1942 = vst.msk [vmem:[#allocation5 + $0x1a0] sm:$0xff] %vm1915_vm10, %v1872_v46 }
 0x261   : > { %1941 = vst.msk [vmem:[#allocation5 + $0x190] sm:$0xff] %vm1915_vm10, %v1870_v44  ;;  %3467 = vrot.lane.b32.xlu0 %v11767_v53, %s10112_s28 }
 0x262   : > { %3332 = vrot.lane.b32.xlu1 %v11591_v17, %s10111_s25 }
 0x263   : > { %v848_v1 = vpop.permute.xlu0 %847 }
 0x264   : > { %v1874_v54 = vpop.permute.xlu1 %1873  ;;  %916 = vst.msk [vmem:[#allocation5 + $0x1c0] sm:$0xff] %vm887_vm3, %v848_v1 }
 0x265   : > { %1943 = vst.msk [vmem:[#allocation5 + $0x1b0] sm:$0xff] %vm1915_vm10, %v1874_v54  ;;  %v1972_v15 = vld [vmem:[#allocation5 + $0x180] sm:$0xff]  ;;  %3596 = vrot.lane.b32.xlu0 %v11740_v45, %s10113_s29 }
 0x266   : > { %3469 = vrot.lane.b32.xlu1 %v11791_v43, %s10112_s28 }
 0x267   : > { %v852_v36 = vpop.permute.xlu0 %851  ;;  %v1974_v61 = vld [vmem:[#allocation5 + $0x1a0] sm:$0xff] }
 0x268   : > { %v850_v30 = vpop.permute.xlu1 %849  ;;  %v1973_v56 = vld [vmem:[#allocation5 + $0x190] sm:$0xff]  ;;  %918 = vst.msk [vmem:[#allocation5 + $0x1e0] sm:$0xff] %vm887_vm3, %v852_v36 }
 0x269   : > { %917 = vst.msk [vmem:[#allocation5 + $0x1d0] sm:$0xff] %vm887_vm3, %v850_v30  ;;  %v1992_v27 = vpack.c.bf16 %v1973_v56, %v1972_v15  ;;  %2708 = vrot.lane.b32.xlu0 %v11548_v63, %s10106_s15 }
 0x26a   : > { %3598 = vrot.lane.b32.xlu1 %v11755_v39, %s10113_s29 }
 0x26b   : > { %9974 = vmatprep.mubr.msk.bf16.mxu0 %vm2013_vm11, %v1992_v27  ;;  %v1074_v3 = vpop.permute.xlu0 %1073 }
 0x26c   : > { %v854_v4 = vpop.permute.xlu1 %853  ;;  %v1975_v14 = vld [vmem:[#allocation5 + $0x1b0] sm:$0xff]  ;;  %1142 = vst.msk [vmem:[#allocation5 + $0x1c0] sm:$0xff] %vm1113_vm4, %v1074_v3 }
 0x26d   : > { %919 = vst.msk [vmem:[#allocation5 + $0x1f0] sm:$0xff] %vm887_vm3, %v854_v4  ;;  %v1993_v26 = vpack.c.bf16 %v1975_v14, %v1974_v61  ;;  %2933 = vrot.lane.b32.xlu0 %v11588_v33, %s10108_s12  ;;  %vm3422_vm3 = vcmask 786048  }
 0x26e   : > { %2710 = vrot.lane.b32.xlu1 %v11558_v23, %s10106_s15 }
 0x26f   : > { %9975 = vmatmul.mubr.msk.bf16.gmra.mrb[24].mxu0 %vm2013_vm11, %v1993_v26  ;;  %v1078_v63 = vpop.permute.xlu0 %1077 }
 0x270   : > { %v1076_v59 = vpop.permute.xlu1 %1075  ;;  %1144 = vst.msk [vmem:[#allocation5 + $0x1e0] sm:$0xff] %vm1113_vm4, %v1078_v63 }
 0x271   : > { %1143 = vst.msk [vmem:[#allocation5 + $0x1d0] sm:$0xff] %vm1113_vm4, %v1076_v59  ;;  %3070 = vrot.lane.b32.xlu0 %v11767_v53, %s10109_s16 }
 0x272   : > { %2935 = vrot.lane.b32.xlu1 %v11591_v17, %s10108_s12 }
 0x273   : > { %v1211_v23 = vpop.permute.xlu0 %1210 }
 0x274   : > { %v1080_v52 = vpop.permute.xlu1 %1079  ;;  %1279 = vst.msk [vmem:[#allocation5 + $0x1c0] sm:$0xff] %vm1250_vm5, %v1211_v23  ;;  %v6273_v23 = vld [vmem:[#allocation4 + $0xe8] sm:$0xff] }
 0x275   : > { %1145 = vst.msk [vmem:[#allocation5 + $0x1f0] sm:$0xff] %vm1113_vm4, %v1080_v52  ;;  %3199 = vrot.lane.b32.xlu0 %v11740_v45, %s10110_s22  ;;  %v6272_v52 = vld [vmem:[#allocation4 + $0xe0] sm:$0xff]  ;;  %vm3559_vm4 = vcmask 917248  }
 0x276   : > { %3072 = vrot.lane.b32.xlu1 %v11791_v43, %s10109_s16 }
 0x277   : > { %v1215_v18 = vpop.permute.xlu0 %1214 }
 0x278   : > { %v1213_v33 = vpop.permute.xlu1 %1212  ;;  %1281 = vst.msk [vmem:[#allocation5 + $0x1e0] sm:$0xff] %vm1250_vm5, %v1215_v18  ;;  %v2464_v18 = vld [vmem:[#allocation3 + $0xe0] sm:$0xff] }
 0x279   : > { %1280 = vst.msk [vmem:[#allocation5 + $0x1d0] sm:$0xff] %vm1250_vm5, %v1213_v33  ;;  %3334 = vrot.lane.b32.xlu0 %v11794_v12, %s10111_s25  ;;  %v6602_v33 = vrot.slane %v6273_v23, 1 }
 0x27a   : > { %3201 = vrot.lane.b32.xlu1 %v11755_v39, %s10110_s22 }
 0x27b   : > { %v1340_v53 = vpop.permute.xlu0 %1339 }
 0x27c   : > { %v1217_v17 = vpop.permute.xlu1 %1216  ;;  %1408 = vst.msk [vmem:[#allocation5 + $0x1c0] sm:$0xff] %vm1379_vm6, %v1340_v53  ;;  %v12143_v53 = vld [vmem:[#allocation5 + $0x78] sm:$0xff] }
 0x27d   : > { %1282 = vst.msk [vmem:[#allocation5 + $0x1f0] sm:$0xff] %vm1250_vm5, %v1217_v17  ;;  %3471 = vrot.lane.b32.xlu0 %v11758_v34, %s10112_s28  ;;  %vm3688_vm5 = vcmask 1048448  }
 0x27e   : > { %3336 = vrot.lane.b32.xlu1 %v11797_v2, %s10111_s25 }
 0x27f   : > { %v1344_v50 = vpop.permute.xlu0 %1343 }
 0x280   : > { %v1342_v43 = vpop.permute.xlu1 %1341  ;;  %1410 = vst.msk [vmem:[#allocation5 + $0x1e0] sm:$0xff] %vm1379_vm6, %v1344_v50  ;;  %v2471_v50 = vld [vmem:[#allocation3 + $0x118] sm:$0xff] }
 0x281   : > { %1409 = vst.msk [vmem:[#allocation5 + $0x1d0] sm:$0xff] %vm1379_vm6, %v1342_v43  ;;  %3600 = vrot.lane.b32.xlu0 %v11736_v37, %s10113_s29 }
 0x282   : > { %v9964_v42 = vpop.f32.mrb[12].mxu0  ;;  %3473 = vrot.lane.b32.xlu1 %v11779_v49, %s10112_s28 }
 0x283   : > { %v2156_v28 = vadd.f32 %v9964_v42, %v11491_v5  ;;  %v2147_v25 = vpop.f32.mrb[13].mxu0  ;;  %v1475_v40 = vpop.permute.xlu0 %1474 }
 0x284   : > { %v2148_v32 = vadd.f32 %v2147_v25, %v11491_v5  ;;  %v1346_v22 = vpop.permute.xlu1 %1345  ;;  %v9965_v58 = vpop.f32.mrb[14].mxu0  ;;  %1543 = vst.msk [vmem:[#allocation5 + $0x1c0] sm:$0xff] %vm1514_vm7, %v1475_v40 }
 0x285   : > { %v2240_v11 = vmax.f32 %v2156_v28, 0.0  ;;  %1411 = vst.msk [vmem:[#allocation5 + $0x1f0] sm:$0xff] %vm1379_vm6, %v1346_v22  ;;  %v2159_v41 = vadd.f32 %v9965_v58, %v11491_v5  ;;  %v2150_v44 = vpop.f32.mrb[15].mxu0  ;;  %2712 = vrot.lane.b32.xlu0 %v11740_v45, %s10106_s15  ;;  %v2467_v28 = vld [vmem:[#allocation3 + $0xf8] sm:$0xff]  ;;  %v2888_v58 = vrot.slane %v2471_v50, 1  ;;  %vm4981_vm6 = vcmask 123904  }
 0x286   : > { %v2238_v46 = vmax.f32 %v2148_v32, 0.0  ;;  %v2151_v54 = vadd.f32 %v2150_v44, %v11491_v5  ;;  %3602 = vrot.lane.b32.xlu1 %v11750_v60, %s10113_s29  ;;  %v2883_v40 = vrot.slane %v2467_v28, 1 }
 0x287   : > { %v2276_v1 = vmul.f32 %v11505_v20, %v2240_v11  ;;  %v2241_v15 = vmax.f32 %v2159_v41, 0.0  ;;  %v1479_v4 = vpop.permute.xlu0 %1478 }
 0x288   : > { %v2274_v30 = vmul.f32 %v11505_v20, %v2238_v46  ;;  %v2239_v56 = vmax.f32 %v2151_v54, 0.0  ;;  %v1477_v36 = vpop.permute.xlu1 %1476  ;;  %1545 = vst.msk [vmem:[#allocation5 + $0x1e0] sm:$0xff] %vm1514_vm7, %v1479_v4 }
 0x289   : > { %v2312_v27 = vadd.f32 %v11511_v48, %v2276_v1  ;;  %v2277_v61 = vmul.f32 %v11505_v20, %v2241_v15  ;;  %1544 = vst.msk [vmem:[#allocation5 + $0x1d0] sm:$0xff] %vm1514_vm7, %v1477_v36  ;;  %2937 = vrot.lane.b32.xlu0 %v11794_v12, %s10108_s12  ;;  %v6601_v12 = vrot.slane %v6272_v52, 1 }
 0x28a   : > { %v2310_v14 = vadd.f32 %v11511_v48, %v2274_v30  ;;  %v2275_v3 = vmul.f32 %v11505_v20, %v2239_v56  ;;  %2714 = vrot.lane.b32.xlu1 %v11755_v39, %s10106_s15  ;;  %v2468_v39 = vld [vmem:[#allocation3 + $0x100] sm:$0xff] }
 0x28b   : > { %2418 = vst.msk [vmem:[#allocation3 + $0x108] sm:$0xff] %vm2330_vm12, %v2312_v27  ;;  %v2313_v45 = vadd.f32 %v11511_v48, %v2277_v61  ;;  %v1612_v63 = vpop.permute.xlu0 %1611  ;;  %v6603_v43 = vsel %vm15158_vm1, %v6601_v12, %v6602_v33  ;;  %v2596_v25 = vrot.slane %v2468_v39, 7 }
 0x28c   : > { %2416 = vst.msk [vmem:[#allocation3 + $0xe8] sm:$0xff] %vm2330_vm12, %v2310_v14  ;;  %v2311_v26 = vadd.f32 %v11511_v48, %v2275_v3  ;;  %v1481_v59 = vpop.permute.xlu1 %1480  ;;  %6619 = vst.msk [vmem:[#allocation5 + $0x78] sm:$0xff] %vm2330_vm12, %v6603_v43 }
 0x28d   : > { %2419 = vst.msk [vmem:[#allocation3 + $0x110] sm:$0xff] %vm2330_vm12, %v2313_v45  ;;  %3074 = vrot.lane.b32.xlu0 %v11758_v34, %s10109_s16  ;;  %v2591_v34 = vrot.slane %v2464_v18, 7 }
 0x28e   : > { %1546 = vst.msk [vmem:[#allocation5 + $0x1f0] sm:$0xff] %vm1514_vm7, %v1481_v59  ;;  %2939 = vrot.lane.b32.xlu1 %v11797_v2, %s10108_s12  ;;  %vm15156_vm7 = vcmask 1041409  }
 0x28f   : > { %2417 = vst.msk [vmem:[#allocation3 + $0xf0] sm:$0xff] %vm2330_vm12, %v2311_v26  ;;  %v1616_v42 = vpop.permute.xlu0 %1615 }
 0x290   : > { %1680 = vst.msk [vmem:[#allocation5 + $0x1c0] sm:$0xff] %vm1651_vm8, %v1612_v63  ;;  %v1614_v17 = vpop.permute.xlu1 %1613  ;;  %1682 = vst.msk [vmem:[#allocation5 + $0x1e0] sm:$0xff] %vm1651_vm8, %v1616_v42 }
 0x291   : > { %1681 = vst.msk [vmem:[#allocation5 + $0x1d0] sm:$0xff] %vm1651_vm8, %v1614_v17  ;;  %3203 = vrot.lane.b32.xlu0 %v11736_v37, %s10110_s22 }
 0x292   : > { %3076 = vrot.lane.b32.xlu1 %v11779_v49, %s10109_s16  ;;  %v12151_v2 = vld [vmem:[#allocation3 + $0x108] sm:$0xff] }
 0x293   : > { %v12155_v32 = vld [vmem:[#allocation3 + $0xe8] sm:$0xff]  ;;  %v2597_v22 = vrot.slane %v12151_v2, 7  ;;  %v1741_v49 = vpop.permute.xlu0 %1740  ;;  %v2885_v15 = vrot.slane %v12151_v2, 1 }
 0x294   : > { %v1618_v11 = vpop.permute.xlu1 %1617  ;;  %v2592_v41 = vrot.slane %v12155_v32, 7  ;;  %v12159_v44 = vld [vmem:[#allocation3 + $0x110] sm:$0xff]  ;;  %1809 = vst.msk [vmem:[#allocation5 + $0x1c0] sm:$0xff] %vm1780_vm9, %v1741_v49  ;;  %v2880_v27 = vrot.slane %v12155_v32, 1 }
 0x295   : > { %1683 = vst.msk [vmem:[#allocation5 + $0x1f0] sm:$0xff] %vm1651_vm8, %v1618_v11  ;;  %v12165_v54 = vsel %vm15159_vm2, %v2596_v25, %v2597_v22  ;;  %v2599_v1 = vrot.slane %v12159_v44, 7  ;;  %v2886_v30 = vrot.slane %v12159_v44, 1  ;;  %3338 = vrot.lane.b32.xlu0 %v11782_v51, %s10111_s25  ;;  %vm15157_vm8 = vcmask 1042434  }
 0x296   : > { %v12162_v46 = vld [vmem:[#allocation3 + $0xf0] sm:$0xff]  ;;  %3205 = vrot.lane.b32.xlu1 %v11750_v60, %s10110_s22  ;;  %v12174_v56 = vsel %vm15159_vm2, %v2591_v34, %v2592_v41  ;;  %2684 = vst.msk [vmem:[#allocation5 + $0x100] sm:$0xff] %vm2330_vm12, %v12165_v54 }
 0x297   : > { %v2594_v36 = vrot.slane %v12162_v46, 7  ;;  %v2881_v61 = vrot.slane %v12162_v46, 1  ;;  %2682 = vst.msk [vmem:[#allocation5 + $0xe0] sm:$0xff] %vm2330_vm12, %v12174_v56  ;;  %v12186_v4 = vsel %vm15159_vm2, %v2597_v22, %v2599_v1  ;;  %v12189_v14 = vsel %vm15158_vm1, %v2885_v15, %v2886_v30  ;;  %v1745_v52 = vpop.permute.xlu0 %1744 }
 0x298   : > { %v12192_v3 = vsel %vm15158_vm1, %v2886_v30, %v2888_v58  ;;  %v1743_v45 = vpop.permute.xlu1 %1742  ;;  %2685 = vst.msk [vmem:[#allocation5 + $0x110] sm:$0xff] %vm2330_vm12, %v12186_v4  ;;  %3771 = vst.msk [vmem:[#allocation5 + $0xc8] sm:$0xff] %vm2330_vm12, %v12189_v14 }
 0x299   : > { %v12195_v26 = vsel %vm15159_vm2, %v2592_v41, %v2594_v36  ;;  %v12198_v59 = vsel %vm15158_vm1, %v2880_v27, %v2881_v61  ;;  %v12201_v63 = vsel %vm15158_vm1, %v2881_v61, %v2883_v40  ;;  %3772 = vst.msk [vmem:[#allocation5 + $0xd8] sm:$0xff] %vm2330_vm12, %v12192_v3  ;;  %3475 = vrot.lane.b32.xlu0 %v12000_v29, %s10112_s28 }
 0x29a   : > { %1810 = vst.msk [vmem:[#allocation5 + $0x1d0] sm:$0xff] %vm1780_vm9, %v1743_v45  ;;  %1811 = vst.msk [vmem:[#allocation5 + $0x1e0] sm:$0xff] %vm1780_vm9, %v1745_v52  ;;  %3340 = vrot.lane.b32.xlu1 %v11785_v62, %s10111_s25 }
 0x29b   : > { %2683 = vst.msk [vmem:[#allocation5 + $0xf0] sm:$0xff] %vm2330_vm12, %v12195_v26  ;;  %3769 = vst.msk [vmem:[#allocation5 + $0xa8] sm:$0xff] %vm2330_vm12, %v12198_v59  ;;  %v1876_v39 = vpop.permute.xlu0 %1875 }
 0x29c   : > { %3770 = vst.msk [vmem:[#allocation5 + $0xb8] sm:$0xff] %vm2330_vm12, %v12201_v63  ;;  %v1747_v23 = vpop.permute.xlu1 %1746 }
 0x29d   : > { %1812 = vst.msk [vmem:[#allocation5 + $0x1f0] sm:$0xff] %vm1780_vm9, %v1747_v23  ;;  %3604 = vrot.lane.b32.xlu0 %v11981_v9, %s10113_s29  ;;  %vm6168_vm9 = vcmask 1043459  }
 0x29e   : > { %1944 = vst.msk [vmem:[#allocation5 + $0x1c0] sm:$0xff] %vm1915_vm10, %v1876_v39  ;;  %3477 = vrot.lane.b32.xlu1 %v12021_v21, %s10112_s28 }
 0x29f   : > { %v1880_v33 = vpop.permute.xlu0 %1879 }
 0x2a0   : > { %v1878_v12 = vpop.permute.xlu1 %1877  ;;  %1946 = vst.msk [vmem:[#allocation5 + $0x1e0] sm:$0xff] %vm1915_vm10, %v1880_v33 }
 0x2a1   : > { %1945 = vst.msk [vmem:[#allocation5 + $0x1d0] sm:$0xff] %vm1915_vm10, %v1878_v12  ;;  %2716 = vrot.lane.b32.xlu0 %v11736_v37, %s10106_s15 }
 0x2a2   : > { %3606 = vrot.lane.b32.xlu1 %v11988_v57, %s10113_s29 }
 0x2a3   : > { %v2701_v17 = vpop.permute.xlu0 %2700 }
 0x2a4   : > { %v1882_v18 = vpop.permute.xlu1 %1881  ;;  %2797 = vst.msk [vmem:[#allocation5] sm:$0xff] %vm2796_vm13, %v2701_v17  ;;  %v3796_v17 = vld [vmem:[#allocation5 + $0x28] sm:$0xff] }
 0x2a5   : > { %1947 = vst.msk [vmem:[#allocation5 + $0x1f0] sm:$0xff] %vm1915_vm10, %v1882_v18  ;;  %v1976_v43 = vld [vmem:[#allocation5 + $0x1c0] sm:$0xff]  ;;  %2941 = vrot.lane.b32.xlu0 %v11782_v51, %s10108_s12  ;;  %vm6170_vm10 = vcmask 1044484  }
 0x2a6   : > { %2718 = vrot.lane.b32.xlu1 %v11750_v60, %s10106_s15 }
 0x2a7   : > { %v2926_v37 = vpop.permute.xlu0 %2925  ;;  %v1978_v25 = vld [vmem:[#allocation5 + $0x1e0] sm:$0xff] }
 0x2a8   : > { %v2703_v50 = vpop.permute.xlu1 %2702  ;;  %v1977_v42 = vld [vmem:[#allocation5 + $0x1d0] sm:$0xff]  ;;  %3022 = vst.msk [vmem:[#allocation5] sm:$0xff] %vm3021_vm14, %v2926_v37 }
 0x2a9   : > { %2798 = vst.msk [vmem:[#allocation5 + $0x10] sm:$0xff] %vm2796_vm13, %v2703_v50  ;;  %v1994_v28 = vpack.c.bf16 %v1977_v42, %v1976_v43  ;;  %3078 = vrot.lane.b32.xlu0 %v12000_v29, %s10109_s16  ;;  %v3798_v43 = vld [vmem:[#allocation5 + $0x38] sm:$0xff] }
 0x2aa   : > { %2943 = vrot.lane.b32.xlu1 %v11785_v62, %s10108_s12 }
 0x2ab   : > { %9978 = vmatprep.mubr.msk.bf16.mxu0 %vm2013_vm11, %v1994_v28  ;;  %v3063_v34 = vpop.permute.xlu0 %3062 }
 0x2ac   : > { %v2928_v60 = vpop.permute.xlu1 %2927  ;;  %v1979_v51 = vld [vmem:[#allocation5 + $0x1f0] sm:$0xff]  ;;  %3159 = vst.msk [vmem:[#allocation5] sm:$0xff] %vm3158_vm15, %v3063_v34 }
 0x2ad   : > { %3023 = vst.msk [vmem:[#allocation5 + $0x10] sm:$0xff] %vm3021_vm14, %v2928_v60  ;;  %v1995_v22 = vpack.c.bf16 %v1979_v51, %v1978_v25  ;;  %3207 = vrot.lane.b32.xlu0 %v11981_v9, %s10110_s22 }
 0x2ae   : > { %3080 = vrot.lane.b32.xlu1 %v12021_v21, %s10109_s16 }
 0x2af   : > { %9979 = vmatmul.mubr.msk.bf16.gmra.mrb[28].mxu0 %vm2013_vm11, %v1995_v22  ;;  %v3192_v29 = vpop.permute.xlu0 %3191  ;;  %vm6172_vm11 = vcmask 1045509  }
 0x2b0   : > { %v3065_v62 = vpop.permute.xlu1 %3064  ;;  %3288 = vst.msk [vmem:[#allocation5] sm:$0xff] %vm3287_vm0, %v3192_v29 }
 0x2b1   : > { %3160 = vst.msk [vmem:[#allocation5 + $0x10] sm:$0xff] %vm3158_vm15, %v3065_v62  ;;  %3342 = vrot.lane.b32.xlu0 %v12024_v38, %s10111_s25  ;;  %v3858_v62 = vpack.c.bf16 %v3798_v43, %v3796_v17 }
 0x2b2   : > { %3209 = vrot.lane.b32.xlu1 %v11988_v57, %s10110_s22 }
 0x2b3   : > { %v3327_v58 = vpop.permute.xlu0 %3326 }
 0x2b4   : > { %v3194_v21 = vpop.permute.xlu1 %3193  ;;  %3423 = vst.msk [vmem:[#allocation5] sm:$0xff] %vm3422_vm3, %v3327_v58 }
 0x2b5   : > { %3289 = vst.msk [vmem:[#allocation5 + $0x10] sm:$0xff] %vm3287_vm0, %v3194_v21  ;;  %3479 = vrot.lane.b32.xlu0 %v11991_v47, %s10112_s28 }
 0x2b6   : > { %3344 = vrot.lane.b32.xlu1 %v12027_v31, %s10111_s25 }
 0x2b7   : > { %v3464_v41 = vpop.permute.xlu0 %3463 }
 0x2b8   : > { %v3329_v11 = vpop.permute.xlu1 %3328  ;;  %3560 = vst.msk [vmem:[#allocation5] sm:$0xff] %vm3559_vm4, %v3464_v41  ;;  %v2472_v41 = vld [vmem:[#allocation3 + $0x120] sm:$0xff] }
 0x2b9   : > { %3424 = vst.msk [vmem:[#allocation5 + $0x10] sm:$0xff] %vm3422_vm3, %v3329_v11  ;;  %3608 = vrot.lane.b32.xlu0 %v11977_v19, %s10113_s29  ;;  %v2476_v11 = vld [vmem:[#allocation3 + $0x140] sm:$0xff] }
 0x2ba   : > { %3481 = vrot.lane.b32.xlu1 %v12012_v24, %s10112_s28 }
 0x2bb   : > { %v3593_v49 = vpop.permute.xlu0 %3592 }
 0x2bc   : > { %v3466_v40 = vpop.permute.xlu1 %3465  ;;  %3689 = vst.msk [vmem:[#allocation5] sm:$0xff] %vm3688_vm5, %v3593_v49  ;;  %v2479_v49 = vld [vmem:[#allocation3 + $0x158] sm:$0xff] }
 0x2bd   : > { %3561 = vst.msk [vmem:[#allocation5 + $0x10] sm:$0xff] %vm3559_vm4, %v3466_v40  ;;  %2720 = vrot.lane.b32.xlu0 %v11981_v9, %s10106_s15 }
 0x2be   : > { %3610 = vrot.lane.b32.xlu1 %v11985_v35, %s10113_s29 }
 0x2bf   : > { %v2705_v15 = vpop.permute.xlu0 %2704 }
 0x2c0   : > { %v3595_v1 = vpop.permute.xlu1 %3594  ;;  %2799 = vst.msk [vmem:[#allocation5 + $0x20] sm:$0xff] %vm2796_vm13, %v2705_v15  ;;  %v2475_v15 = vld [vmem:[#allocation3 + $0x138] sm:$0xff] }
 0x2c1   : > { %3690 = vst.msk [vmem:[#allocation5 + $0x10] sm:$0xff] %vm3688_vm5, %v3595_v1  ;;  %2945 = vrot.lane.b32.xlu0 %v12024_v38, %s10108_s12 }
 0x2c2   : > { %v9968_v30 = vpop.f32.mrb[16].mxu0  ;;  %2722 = vrot.lane.b32.xlu1 %v11988_v57, %s10106_s15 }
 0x2c3   : > { %v2172_v36 = vadd.f32 %v9968_v30, %v11491_v5  ;;  %v2163_v27 = vpop.f32.mrb[17].mxu0  ;;  %v2930_v12 = vpop.permute.xlu0 %2929  ;;  %v3791_v28 = vld [vmem:[#allocation5] sm:$0xff]  ;;  %v2606_v30 = vrot.slane %v2476_v11, 7  ;;  %v3802_v11 = vld [vmem:[#allocation5 + $0x58] sm:$0xff] }
 0x2c4   : > { %v2164_v61 = vadd.f32 %v2163_v27, %v11491_v5  ;;  %v9969_v45 = vpop.f32.mrb[18].mxu0  ;;  %v2707_v9 = vpop.permute.xlu1 %2706  ;;  %3024 = vst.msk [vmem:[#allocation5 + $0x20] sm:$0xff] %vm3021_vm14, %v2930_v12 }
 0x2c5   : > { %v2244_v52 = vmax.f32 %v2172_v36, 0.0  ;;  %v2175_v23 = vadd.f32 %v9969_v45, %v11491_v5  ;;  %2800 = vst.msk [vmem:[#allocation5 + $0x30] sm:$0xff] %vm2796_vm13, %v2707_v9  ;;  %v2166_v39 = vpop.f32.mrb[19].mxu0  ;;  %3082 = vrot.lane.b32.xlu0 %v11991_v47, %s10109_s16  ;;  %v2601_v36 = vrot.slane %v2472_v41, 7  ;;  %v2898_v9 = vrot.slane %v2479_v49, 1 }
 0x2c6   : > { %v2242_v33 = vmax.f32 %v2164_v61, 0.0  ;;  %v2167_v57 = vadd.f32 %v2166_v39, %v11491_v5  ;;  %2947 = vrot.lane.b32.xlu1 %v12027_v31, %s10108_s12  ;;  %v2893_v39 = vrot.slane %v2475_v15, 1 }
 0x2c7   : > { %v2280_v38 = vmul.f32 %v11505_v20, %v2244_v52  ;;  %v2245_v18 = vmax.f32 %v2175_v23, 0.0  ;;  %v3067_v31 = vpop.permute.xlu0 %3066 }
 0x2c8   : > { %v2278_v50 = vmul.f32 %v11505_v20, %v2242_v33  ;;  %v2243_v42 = vmax.f32 %v2167_v57, 0.0  ;;  %v2932_v37 = vpop.permute.xlu1 %2931  ;;  %v3793_v25 = vld [vmem:[#allocation5 + $0x10] sm:$0xff]  ;;  %3161 = vst.msk [vmem:[#allocation5 + $0x20] sm:$0xff] %vm3158_vm15, %v3067_v31 }
 0x2c9   : > { %v2316_v60 = vadd.f32 %v11511_v48, %v2280_v38  ;;  %v2281_v51 = vmul.f32 %v11505_v20, %v2245_v18  ;;  %3025 = vst.msk [vmem:[#allocation5 + $0x30] sm:$0xff] %vm3021_vm14, %v2932_v37  ;;  %v3855_v34 = vpack.c.bf16 %v3793_v25, %v3791_v28  ;;  %3211 = vrot.lane.b32.xlu0 %v11977_v19, %s10110_s22 }
 0x2ca   : > { %v2314_v22 = vadd.f32 %v11511_v48, %v2278_v50  ;;  %v2279_v47 = vmul.f32 %v11505_v20, %v2243_v42  ;;  %3084 = vrot.lane.b32.xlu1 %v12012_v24, %s10109_s16 }
 0x2cb   : > { %2422 = vst.msk [vmem:[#allocation3 + $0x148] sm:$0xff] %vm2330_vm12, %v2316_v60  ;;  %v2317_v29 = vadd.f32 %v11511_v48, %v2281_v51  ;;  %4045 = vmatmul.mubr.bf16.vlgmr.msra.gmra.mrb[0].mxu1 %v3855_v34  ;;  %v3196_v24 = vpop.permute.xlu0 %3195 }
 0x2cc   : > { %2420 = vst.msk [vmem:[#allocation3 + $0x128] sm:$0xff] %vm2330_vm12, %v2314_v22  ;;  %v2315_v21 = vadd.f32 %v11511_v48, %v2279_v47  ;;  %v3069_v58 = vpop.permute.xlu1 %3068  ;;  %9871 = vmatprep.mubr.msk.bf16.mxu1 %vm2330_vm12, %v3858_v62 }
 0x2cd   : > { %2423 = vst.msk [vmem:[#allocation3 + $0x150] sm:$0xff] %vm2330_vm12, %v2317_v29  ;;  %3346 = vrot.lane.b32.xlu0 %v12015_v55, %s10111_s25 }
 0x2ce   : > { %3162 = vst.msk [vmem:[#allocation5 + $0x30] sm:$0xff] %vm3158_vm15, %v3069_v58  ;;  %3213 = vrot.lane.b32.xlu1 %v11985_v35, %s10110_s22 }
 0x2cf   : > { %2421 = vst.msk [vmem:[#allocation3 + $0x130] sm:$0xff] %vm2330_vm12, %v2315_v21  ;;  %v3331_v1 = vpop.permute.xlu0 %3330 }
 0x2d0   : > { %3290 = vst.msk [vmem:[#allocation5 + $0x20] sm:$0xff] %vm3287_vm0, %v3196_v24  ;;  %v3198_v40 = vpop.permute.xlu1 %3197 }
 0x2d1   : > { %3291 = vst.msk [vmem:[#allocation5 + $0x30] sm:$0xff] %vm3287_vm0, %v3198_v40  ;;  %3483 = vrot.lane.b32.xlu0 %v12174_v56, %s10112_s28 }
 0x2d2   : > { %3425 = vst.msk [vmem:[#allocation5 + $0x20] sm:$0xff] %vm3422_vm3, %v3331_v1  ;;  %3348 = vrot.lane.b32.xlu1 %v12018_v13, %s10111_s25  ;;  %v12322_v27 = vld [vmem:[#allocation3 + $0x148] sm:$0xff] }
 0x2d3   : > { %v12326_v61 = vld [vmem:[#allocation3 + $0x128] sm:$0xff]  ;;  %v2607_v45 = vrot.slane %v12322_v27, 7  ;;  %v3468_v33 = vpop.permute.xlu0 %3467  ;;  %v2895_v17 = vrot.slane %v12322_v27, 1 }
 0x2d4   : > { %v3333_v52 = vpop.permute.xlu1 %3332  ;;  %v2602_v23 = vrot.slane %v12326_v61, 7  ;;  %v12330_v12 = vld [vmem:[#allocation3 + $0x150] sm:$0xff]  ;;  %3562 = vst.msk [vmem:[#allocation5 + $0x20] sm:$0xff] %vm3559_vm4, %v3468_v33  ;;  %v2890_v37 = vrot.slane %v12326_v61, 1 }
 0x2d5   : > { %3426 = vst.msk [vmem:[#allocation5 + $0x30] sm:$0xff] %vm3422_vm3, %v3333_v52  ;;  %v12336_v38 = vsel %vm15159_vm2, %v2606_v30, %v2607_v45  ;;  %v2609_v18 = vrot.slane %v12330_v12, 7  ;;  %v2896_v43 = vrot.slane %v12330_v12, 1  ;;  %3612 = vrot.lane.b32.xlu0 %v12155_v32, %s10113_s29 }
 0x2d6   : > { %v12333_v57 = vld [vmem:[#allocation3 + $0x130] sm:$0xff]  ;;  %3485 = vrot.lane.b32.xlu1 %v12195_v26, %s10112_s28  ;;  %v12345_v50 = vsel %vm15159_vm2, %v2601_v36, %v2602_v23  ;;  %2688 = vst.msk [vmem:[#allocation5 + $0x140] sm:$0xff] %vm2330_vm12, %v12336_v38 }
 0x2d7   : > { %v2604_v42 = vrot.slane %v12333_v57, 7  ;;  %v2891_v28 = vrot.slane %v12333_v57, 1  ;;  %2686 = vst.msk [vmem:[#allocation5 + $0x120] sm:$0xff] %vm2330_vm12, %v12345_v50  ;;  %v12357_v25 = vsel %vm15159_vm2, %v2607_v45, %v2609_v18  ;;  %v12360_v60 = vsel %vm15158_vm1, %v2895_v17, %v2896_v43  ;;  %v3597_v62 = vpop.permute.xlu0 %3596 }
 0x2d8   : > { %v12363_v51 = vsel %vm15158_vm1, %v2896_v43, %v2898_v9  ;;  %v3470_v31 = vpop.permute.xlu1 %3469  ;;  %2689 = vst.msk [vmem:[#allocation5 + $0x150] sm:$0xff] %vm2330_vm12, %v12357_v25  ;;  %3775 = vst.msk [vmem:[#allocation5 + $0x108] sm:$0xff] %vm2330_vm12, %v12360_v60 }
 0x2d9   : > { %v12366_v34 = vsel %vm15159_vm2, %v2602_v23, %v2604_v42  ;;  %v12369_v22 = vsel %vm15158_vm1, %v2890_v37, %v2891_v28  ;;  %v12372_v47 = vsel %vm15158_vm1, %v2891_v28, %v2893_v39  ;;  %3776 = vst.msk [vmem:[#allocation5 + $0x118] sm:$0xff] %vm2330_vm12, %v12363_v51  ;;  %2724 = vrot.lane.b32.xlu0 %v11977_v19, %s10106_s15  ;;  %v3800_v19 = vld [vmem:[#allocation5 + $0x48] sm:$0xff] }
 0x2da   : > { %3563 = vst.msk [vmem:[#allocation5 + $0x30] sm:$0xff] %vm3559_vm4, %v3470_v31  ;;  %3614 = vrot.lane.b32.xlu1 %v12162_v46, %s10113_s29  ;;  %v3860_v1 = vpack.c.bf16 %v3802_v11, %v3800_v19 }
 0x2db   : > { %2687 = vst.msk [vmem:[#allocation5 + $0x130] sm:$0xff] %vm2330_vm12, %v12366_v34  ;;  %3773 = vst.msk [vmem:[#allocation5 + $0xe8] sm:$0xff] %vm2330_vm12, %v12369_v22  ;;  %v2709_v21 = vpop.permute.xlu0 %2708 }
 0x2dc   : > { %3774 = vst.msk [vmem:[#allocation5 + $0xf8] sm:$0xff] %vm2330_vm12, %v12372_v47  ;;  %v3599_v29 = vpop.permute.xlu1 %3598 }
 0x2dd   : > { %3691 = vst.msk [vmem:[#allocation5 + $0x20] sm:$0xff] %vm3688_vm5, %v3597_v62  ;;  %3692 = vst.msk [vmem:[#allocation5 + $0x30] sm:$0xff] %vm3688_vm5, %v3599_v29  ;;  %2949 = vrot.lane.b32.xlu0 %v12015_v55, %s10108_s12 }
 0x2de   : > { %2801 = vst.msk [vmem:[#allocation5 + $0x40] sm:$0xff] %vm2796_vm13, %v2709_v21  ;;  %2726 = vrot.lane.b32.xlu1 %v11985_v35, %s10106_s15 }
 0x2df   : > { %v2934_v24 = vpop.permute.xlu0 %2933 }
 0x2e0   : > { %v2711_v58 = vpop.permute.xlu1 %2710  ;;  %3026 = vst.msk [vmem:[#allocation5 + $0x40] sm:$0xff] %vm3021_vm14, %v2934_v24 }
 0x2e1   : > { %2802 = vst.msk [vmem:[#allocation5 + $0x50] sm:$0xff] %vm2796_vm13, %v2711_v58  ;;  %3086 = vrot.lane.b32.xlu0 %v12174_v56, %s10109_s16 }
 0x2e2   : > { %2951 = vrot.lane.b32.xlu1 %v12018_v13, %s10108_s12 }
 0x2e3   : > { %v3071_v55 = vpop.permute.xlu0 %3070 }
 0x2e4   : > { %v2936_v41 = vpop.permute.xlu1 %2935  ;;  %v3795_v40 = vld [vmem:[#allocation5 + $0x20] sm:$0xff]  ;;  %v3797_v35 = vld [vmem:[#allocation5 + $0x30] sm:$0xff]  ;;  %3163 = vst.msk [vmem:[#allocation5 + $0x40] sm:$0xff] %vm3158_vm15, %v3071_v55 }
 0x2e5   : > { %3027 = vst.msk [vmem:[#allocation5 + $0x50] sm:$0xff] %vm3021_vm14, %v2936_v41  ;;  %v3857_v49 = vpack.c.bf16 %v3797_v35, %v3795_v40  ;;  %3215 = vrot.lane.b32.xlu0 %v12155_v32, %s10110_s22 }
 0x2e6   : > { %3088 = vrot.lane.b32.xlu1 %v12195_v26, %s10109_s16 }
 0x2e7   : > { %4053 = vmatmul.mubr.bf16.gmra.mrb[4].mxu1 %v3857_v49  ;;  %v3200_v56 = vpop.permute.xlu0 %3199 }
 0x2e8   : > { %v3073_v13 = vpop.permute.xlu1 %3072  ;;  %9872 = vmatprep.mubr.msk.bf16.mxu1 %vm2330_vm12, %v3860_v1  ;;  %3292 = vst.msk [vmem:[#allocation5 + $0x40] sm:$0xff] %vm3287_vm0, %v3200_v56 }
 0x2e9   : > { %3164 = vst.msk [vmem:[#allocation5 + $0x50] sm:$0xff] %vm3158_vm15, %v3073_v13  ;;  %3350 = vrot.lane.b32.xlu0 %v12198_v59, %s10111_s25 }
 0x2ea   : > { %3217 = vrot.lane.b32.xlu1 %v12162_v46, %s10110_s22 }
 0x2eb   : > { %v3335_v15 = vpop.permute.xlu0 %3334 }
 0x2ec   : > { %v3202_v26 = vpop.permute.xlu1 %3201  ;;  %3427 = vst.msk [vmem:[#allocation5 + $0x40] sm:$0xff] %vm3422_vm3, %v3335_v15 }
 0x2ed   : > { %3293 = vst.msk [vmem:[#allocation5 + $0x50] sm:$0xff] %vm3287_vm0, %v3202_v26  ;;  %3487 = vrot.lane.b32.xlu0 %v12165_v54, %s10112_s28 }
 0x2ee   : > { %3352 = vrot.lane.b32.xlu1 %v12201_v63, %s10111_s25 }
 0x2ef   : > { %v3472_v36 = vpop.permute.xlu0 %3471 }
 0x2f0   : > { %v3337_v30 = vpop.permute.xlu1 %3336  ;;  %3564 = vst.msk [vmem:[#allocation5 + $0x40] sm:$0xff] %vm3559_vm4, %v3472_v36 }
 0x2f1   : > { %3428 = vst.msk [vmem:[#allocation5 + $0x50] sm:$0xff] %vm3422_vm3, %v3337_v30  ;;  %3616 = vrot.lane.b32.xlu0 %v12151_v2, %s10113_s29 }
 0x2f2   : > { %3489 = vrot.lane.b32.xlu1 %v12186_v4, %s10112_s28 }
 0x2f3   : > { %v3601_v9 = vpop.permute.xlu0 %3600 }
 0x2f4   : > { %v3474_v45 = vpop.permute.xlu1 %3473  ;;  %3693 = vst.msk [vmem:[#allocation5 + $0x40] sm:$0xff] %vm3688_vm5, %v3601_v9  ;;  %v2480_v9 = vld [vmem:[#allocation3 + $0x160] sm:$0xff] }
 0x2f5   : > { %3565 = vst.msk [vmem:[#allocation5 + $0x50] sm:$0xff] %vm3559_vm4, %v3474_v45  ;;  %2728 = vrot.lane.b32.xlu0 %v12155_v32, %s10106_s15  ;;  %v3804_v32 = vld [vmem:[#allocation5 + $0x68] sm:$0xff]  ;;  %v2484_v45 = vld [vmem:[#allocation3 + $0x180] sm:$0xff] }
 0x2f6   : > { %3618 = vrot.lane.b32.xlu1 %v12159_v44, %s10113_s29  ;;  %v3862_v37 = vpack.c.bf16 %v12143_v53, %v3804_v32  ;;  %v2616_v32 = vrot.slane %v2484_v45, 7 }
 0x2f7   : > { %v2713_v23 = vpop.permute.xlu0 %2712 }
 0x2f8   : > { %v3603_v52 = vpop.permute.xlu1 %3602  ;;  %2803 = vst.msk [vmem:[#allocation5 + $0x60] sm:$0xff] %vm2796_vm13, %v2713_v23  ;;  %v2487_v23 = vld [vmem:[#allocation3 + $0x198] sm:$0xff] }
 0x2f9   : > { %3694 = vst.msk [vmem:[#allocation5 + $0x50] sm:$0xff] %vm3688_vm5, %v3603_v52  ;;  %2953 = vrot.lane.b32.xlu0 %v12198_v59, %s10108_s12 }
 0x2fa   : > { %2730 = vrot.lane.b32.xlu1 %v12162_v46, %s10106_s15 }
 0x2fb   : > { %v2938_v33 = vpop.permute.xlu0 %2937  ;;  %v3799_v17 = vld [vmem:[#allocation5 + $0x40] sm:$0xff] }
 0x2fc   : > { %v2715_v39 = vpop.permute.xlu1 %2714  ;;  %3028 = vst.msk [vmem:[#allocation5 + $0x60] sm:$0xff] %vm3021_vm14, %v2938_v33  ;;  %v2483_v33 = vld [vmem:[#allocation3 + $0x178] sm:$0xff] }
 0x2fd   : > { %2804 = vst.msk [vmem:[#allocation5 + $0x70] sm:$0xff] %vm2796_vm13, %v2715_v39  ;;  %3090 = vrot.lane.b32.xlu0 %v12165_v54, %s10109_s16 }
 0x2fe   : > { %2955 = vrot.lane.b32.xlu1 %v12201_v63, %s10108_s12 }
 0x2ff   : > { %v3075_v46 = vpop.permute.xlu0 %3074 }
 0x300   : > { %v2940_v18 = vpop.permute.xlu1 %2939  ;;  %v3801_v43 = vld [vmem:[#allocation5 + $0x50] sm:$0xff]  ;;  %3165 = vst.msk [vmem:[#allocation5 + $0x60] sm:$0xff] %vm3158_vm15, %v3075_v46 }
 0x301   : > { %3029 = vst.msk [vmem:[#allocation5 + $0x70] sm:$0xff] %vm3021_vm14, %v2940_v18  ;;  %v3859_v59 = vpack.c.bf16 %v3801_v43, %v3799_v17  ;;  %3219 = vrot.lane.b32.xlu0 %v12151_v2, %s10110_s22  ;;  %v2611_v18 = vrot.slane %v2480_v9, 7 }
 0x302   : > { %v9972_v42 = vpop.f32.mrb[20].mxu0  ;;  %3092 = vrot.lane.b32.xlu1 %v12186_v4, %s10109_s16 }
 0x303   : > { %v2188_v63 = vadd.f32 %v9972_v42, %v11491_v5  ;;  %v2179_v28 = vpop.f32.mrb[21].mxu0  ;;  %4061 = vmatmul.mubr.bf16.gmra.mrb[8].mxu1 %v3859_v59  ;;  %v3204_v53 = vpop.permute.xlu0 %3203  ;;  %v2908_v59 = vrot.slane %v2487_v23, 1 }
 0x304   : > { %v2180_v54 = vadd.f32 %v2179_v28, %v11491_v5  ;;  %v9973_v31 = vpop.f32.mrb[22].mxu0  ;;  %v3077_v62 = vpop.permute.xlu1 %3076  ;;  %9873 = vmatprep.mubr.msk.bf16.mxu1 %vm2330_vm12, %v3862_v37  ;;  %3294 = vst.msk [vmem:[#allocation5 + $0x60] sm:$0xff] %vm3287_vm0, %v3204_v53 }
 0x305   : > { %v2248_v29 = vmax.f32 %v2188_v63, 0.0  ;;  %v2191_v21 = vadd.f32 %v9973_v31, %v11491_v5  ;;  %3166 = vst.msk [vmem:[#allocation5 + $0x70] sm:$0xff] %vm3158_vm15, %v3077_v62  ;;  %v2182_v4 = vpop.f32.mrb[23].mxu0  ;;  %3354 = vrot.lane.b32.xlu0 %v12189_v14, %s10111_s25  ;;  %v2903_v63 = vrot.slane %v2483_v33, 1 }
 0x306   : > { %v2246_v58 = vmax.f32 %v2180_v54, 0.0  ;;  %v2183_v24 = vadd.f32 %v2182_v4, %v11491_v5  ;;  %3221 = vrot.lane.b32.xlu1 %v12159_v44, %s10110_s22 }
 0x307   : > { %v2284_v19 = vmul.f32 %v11505_v20, %v2248_v29  ;;  %v2249_v11 = vmax.f32 %v2191_v21, 0.0  ;;  %v3339_v1 = vpop.permute.xlu0 %3338 }
 0x308   : > { %v2282_v41 = vmul.f32 %v11505_v20, %v2246_v58  ;;  %v2247_v40 = vmax.f32 %v2183_v24, 0.0  ;;  %v3206_v35 = vpop.permute.xlu1 %3205  ;;  %3429 = vst.msk [vmem:[#allocation5 + $0x60] sm:$0xff] %vm3422_vm3, %v3339_v1  ;;  %v3810_v1 = vld [vmem:[#allocation5 + $0x98] sm:$0xff] }
 0x309   : > { %v2320_v55 = vadd.f32 %v11511_v48, %v2284_v19  ;;  %v2285_v49 = vmul.f32 %v11505_v20, %v2249_v11  ;;  %3295 = vst.msk [vmem:[#allocation5 + $0x70] sm:$0xff] %vm3287_vm0, %v3206_v35  ;;  %3491 = vrot.lane.b32.xlu0 %v12345_v50, %s10112_s28 }
 0x30a   : > { %v2318_v13 = vadd.f32 %v11511_v48, %v2282_v41  ;;  %v2283_v56 = vmul.f32 %v11505_v20, %v2247_v40  ;;  %3356 = vrot.lane.b32.xlu1 %v12192_v3, %s10111_s25 }
 0x30b   : > { %2426 = vst.msk [vmem:[#allocation3 + $0x188] sm:$0xff] %vm2330_vm12, %v2320_v55  ;;  %v2321_v26 = vadd.f32 %v11511_v48, %v2285_v49  ;;  %v3476_v36 = vpop.permute.xlu0 %3475  ;;  %v3808_v49 = vld [vmem:[#allocation5 + $0x88] sm:$0xff] }
 0x30c   : > { %2424 = vst.msk [vmem:[#allocation3 + $0x168] sm:$0xff] %vm2330_vm12, %v2318_v13  ;;  %v2319_v15 = vadd.f32 %v11511_v48, %v2283_v56  ;;  %v3341_v30 = vpop.permute.xlu1 %3340 }
 0x30d   : > { %2427 = vst.msk [vmem:[#allocation3 + $0x190] sm:$0xff] %vm2330_vm12, %v2321_v26  ;;  %3620 = vrot.lane.b32.xlu0 %v12326_v61, %s10113_s29 }
 0x30e   : > { %3430 = vst.msk [vmem:[#allocation5 + $0x70] sm:$0xff] %vm3422_vm3, %v3341_v30  ;;  %3493 = vrot.lane.b32.xlu1 %v12366_v34, %s10112_s28 }
 0x30f   : > { %2425 = vst.msk [vmem:[#allocation3 + $0x170] sm:$0xff] %vm2330_vm12, %v2319_v15  ;;  %v3605_v39 = vpop.permute.xlu0 %3604 }
 0x310   : > { %3566 = vst.msk [vmem:[#allocation5 + $0x60] sm:$0xff] %vm3559_vm4, %v3476_v36  ;;  %v3478_v52 = vpop.permute.xlu1 %3477  ;;  %v3864_v36 = vpack.c.bf16 %v3810_v1, %v3808_v49 }
 0x311   : > { %3567 = vst.msk [vmem:[#allocation5 + $0x70] sm:$0xff] %vm3559_vm4, %v3478_v52  ;;  %2732 = vrot.lane.b32.xlu0 %v12151_v2, %s10106_s15 }
 0x312   : > { %3695 = vst.msk [vmem:[#allocation5 + $0x60] sm:$0xff] %vm3688_vm5, %v3605_v39  ;;  %3622 = vrot.lane.b32.xlu1 %v12333_v57, %s10113_s29  ;;  %v12493_v17 = vld [vmem:[#allocation3 + $0x188] sm:$0xff] }
 0x313   : > { %v12497_v43 = vld [vmem:[#allocation3 + $0x168] sm:$0xff]  ;;  %v2617_v46 = vrot.slane %v12493_v17, 7  ;;  %v2717_v54 = vpop.permute.xlu0 %2716  ;;  %v2905_v29 = vrot.slane %v12493_v17, 1 }
 0x314   : > { %v3607_v42 = vpop.permute.xlu1 %3606  ;;  %v2612_v37 = vrot.slane %v12497_v43, 7  ;;  %v12501_v28 = vld [vmem:[#allocation3 + $0x190] sm:$0xff]  ;;  %2805 = vst.msk [vmem:[#allocation5 + $0x80] sm:$0xff] %vm2796_vm13, %v2717_v54  ;;  %v2900_v58 = vrot.slane %v12497_v43, 1 }
 0x315   : > { %3696 = vst.msk [vmem:[#allocation5 + $0x70] sm:$0xff] %vm3688_vm5, %v3607_v42  ;;  %v12507_v62 = vsel %vm15159_vm2, %v2616_v32, %v2617_v46  ;;  %v2619_v2 = vrot.slane %v12501_v28, 7  ;;  %v2906_v21 = vrot.slane %v12501_v28, 1  ;;  %2957 = vrot.lane.b32.xlu0 %v12189_v14, %s10108_s12 }
 0x316   : > { %v12504_v31 = vld [vmem:[#allocation3 + $0x170] sm:$0xff]  ;;  %2734 = vrot.lane.b32.xlu1 %v12159_v44, %s10106_s15  ;;  %v12516_v4 = vsel %vm15159_vm2, %v2611_v18, %v2612_v37  ;;  %2692 = vst.msk [vmem:[#allocation5 + $0x180] sm:$0xff] %vm2330_vm12, %v12507_v62 }
 0x317   : > { %v2614_v53 = vrot.slane %v12504_v31, 7  ;;  %v2901_v24 = vrot.slane %v12504_v31, 1  ;;  %2690 = vst.msk [vmem:[#allocation5 + $0x160] sm:$0xff] %vm2330_vm12, %v12516_v4  ;;  %v12528_v44 = vsel %vm15159_vm2, %v2617_v46, %v2619_v2  ;;  %v12531_v19 = vsel %vm15158_vm1, %v2905_v29, %v2906_v21  ;;  %v2942_v55 = vpop.permute.xlu0 %2941 }
 0x318   : > { %v12534_v11 = vsel %vm15158_vm1, %v2906_v21, %v2908_v59  ;;  %v2719_v41 = vpop.permute.xlu1 %2718  ;;  %2693 = vst.msk [vmem:[#allocation5 + $0x190] sm:$0xff] %vm2330_vm12, %v12528_v44  ;;  %3779 = vst.msk [vmem:[#allocation5 + $0x148] sm:$0xff] %vm2330_vm12, %v12531_v19  ;;  %v3814_v59 = vld [vmem:[#allocation5 + $0xb8] sm:$0xff] }
 0x319   : > { %v12537_v40 = vsel %vm15159_vm2, %v2612_v37, %v2614_v53  ;;  %v12540_v35 = vsel %vm15158_vm1, %v2900_v58, %v2901_v24  ;;  %v12543_v14 = vsel %vm15158_vm1, %v2901_v24, %v2903_v63  ;;  %3780 = vst.msk [vmem:[#allocation5 + $0x158] sm:$0xff] %vm2330_vm12, %v12534_v11  ;;  %3094 = vrot.lane.b32.xlu0 %v12345_v50, %s10109_s16  ;;  %v3803_v56 = vld [vmem:[#allocation5 + $0x60] sm:$0xff] }
 0x31a   : > { %2806 = vst.msk [vmem:[#allocation5 + $0x90] sm:$0xff] %vm2796_vm13, %v2719_v41  ;;  %2959 = vrot.lane.b32.xlu1 %v12192_v3, %s10108_s12 }
 0x31b   : > { %2691 = vst.msk [vmem:[#allocation5 + $0x170] sm:$0xff] %vm2330_vm12, %v12537_v40  ;;  %3777 = vst.msk [vmem:[#allocation5 + $0x128] sm:$0xff] %vm2330_vm12, %v12540_v35  ;;  %v3079_v15 = vpop.permute.xlu0 %3078 }
 0x31c   : > { %3778 = vst.msk [vmem:[#allocation5 + $0x138] sm:$0xff] %vm2330_vm12, %v12543_v14  ;;  %v2944_v13 = vpop.permute.xlu1 %2943  ;;  %v3805_v26 = vld [vmem:[#allocation5 + $0x70] sm:$0xff] }
 0x31d   : > { %3030 = vst.msk [vmem:[#allocation5 + $0x80] sm:$0xff] %vm3021_vm14, %v2942_v55  ;;  %3031 = vst.msk [vmem:[#allocation5 + $0x90] sm:$0xff] %vm3021_vm14, %v2944_v13  ;;  %v3861_v30 = vpack.c.bf16 %v3805_v26, %v3803_v56  ;;  %3223 = vrot.lane.b32.xlu0 %v12326_v61, %s10110_s22 }
 0x31e   : > { %3167 = vst.msk [vmem:[#allocation5 + $0x80] sm:$0xff] %vm3158_vm15, %v3079_v15  ;;  %3096 = vrot.lane.b32.xlu1 %v12366_v34, %s10109_s16 }
 0x31f   : > { %4069 = vmatmul.mubr.bf16.gmra.mrb[12].mxu1 %v3861_v30  ;;  %v3208_v50 = vpop.permute.xlu0 %3207 }
 0x320   : > { %v3081_v3 = vpop.permute.xlu1 %3080  ;;  %9874 = vmatprep.mubr.msk.bf16.mxu1 %vm2330_vm12, %v3864_v36  ;;  %3296 = vst.msk [vmem:[#allocation5 + $0x80] sm:$0xff] %vm3287_vm0, %v3208_v50 }
 0x321   : > { %3168 = vst.msk [vmem:[#allocation5 + $0x90] sm:$0xff] %vm3158_vm15, %v3081_v3  ;;  %3358 = vrot.lane.b32.xlu0 %v12369_v22, %s10111_s25 }
 0x322   : > { %3225 = vrot.lane.b32.xlu1 %v12333_v57, %s10110_s22 }
 0x323   : > { %v3343_v45 = vpop.permute.xlu0 %3342 }
 0x324   : > { %v3210_v34 = vpop.permute.xlu1 %3209  ;;  %3431 = vst.msk [vmem:[#allocation5 + $0x80] sm:$0xff] %vm3422_vm3, %v3343_v45 }
 0x325   : > { %3297 = vst.msk [vmem:[#allocation5 + $0x90] sm:$0xff] %vm3287_vm0, %v3210_v34  ;;  %3495 = vrot.lane.b32.xlu0 %v12336_v38, %s10112_s28 }
 0x326   : > { %3360 = vrot.lane.b32.xlu1 %v12372_v47, %s10111_s25 }
 0x327   : > { %v3480_v52 = vpop.permute.xlu0 %3479 }
 0x328   : > { %v3345_v9 = vpop.permute.xlu1 %3344  ;;  %3568 = vst.msk [vmem:[#allocation5 + $0x80] sm:$0xff] %vm3559_vm4, %v3480_v52 }
 0x329   : > { %3432 = vst.msk [vmem:[#allocation5 + $0x90] sm:$0xff] %vm3422_vm3, %v3345_v9  ;;  %3624 = vrot.lane.b32.xlu0 %v12322_v27, %s10113_s29 }
 0x32a   : > { %3497 = vrot.lane.b32.xlu1 %v12357_v25, %s10112_s28 }
 0x32b   : > { %v3609_v39 = vpop.permute.xlu0 %3608 }
 0x32c   : > { %v3482_v23 = vpop.permute.xlu1 %3481  ;;  %3697 = vst.msk [vmem:[#allocation5 + $0x80] sm:$0xff] %vm3688_vm5, %v3609_v39 }
 0x32d   : > { %3569 = vst.msk [vmem:[#allocation5 + $0x90] sm:$0xff] %vm3559_vm4, %v3482_v23  ;;  %2736 = vrot.lane.b32.xlu0 %v12326_v61, %s10106_s15  ;;  %v3812_v61 = vld [vmem:[#allocation5 + $0xa8] sm:$0xff] }
 0x32e   : > { %3626 = vrot.lane.b32.xlu1 %v12330_v12, %s10113_s29  ;;  %v3866_v54 = vpack.c.bf16 %v3814_v59, %v3812_v61  ;;  %v2495_v59 = vld [vmem:[#allocation3 + $0x1d8] sm:$0xff] }
 0x32f   : > { %v2721_v32 = vpop.permute.xlu0 %2720 }
 0x330   : > { %v3611_v33 = vpop.permute.xlu1 %3610  ;;  %2807 = vst.msk [vmem:[#allocation5 + $0xa0] sm:$0xff] %vm2796_vm13, %v2721_v32 }
 0x331   : > { %3698 = vst.msk [vmem:[#allocation5 + $0x90] sm:$0xff] %vm3688_vm5, %v3611_v33  ;;  %2961 = vrot.lane.b32.xlu0 %v12369_v22, %s10108_s12 }
 0x332   : > { %2738 = vrot.lane.b32.xlu1 %v12333_v57, %s10106_s15 }
 0x333   : > { %v2946_v46 = vpop.permute.xlu0 %2945  ;;  %v3807_v37 = vld [vmem:[#allocation5 + $0x80] sm:$0xff] }
 0x334   : > { %v2723_v18 = vpop.permute.xlu1 %2722  ;;  %3032 = vst.msk [vmem:[#allocation5 + $0xa0] sm:$0xff] %vm3021_vm14, %v2946_v46  ;;  %v2492_v46 = vld [vmem:[#allocation3 + $0x1c0] sm:$0xff] }
 0x335   : > { %2808 = vst.msk [vmem:[#allocation5 + $0xb0] sm:$0xff] %vm2796_vm13, %v2723_v18  ;;  %3098 = vrot.lane.b32.xlu0 %v12336_v38, %s10109_s16 }
 0x336   : > { %2963 = vrot.lane.b32.xlu1 %v12372_v47, %s10108_s12 }
 0x337   : > { %v3083_v22 = vpop.permute.xlu0 %3082 }
 0x338   : > { %v2948_v42 = vpop.permute.xlu1 %2947  ;;  %v3809_v57 = vld [vmem:[#allocation5 + $0x90] sm:$0xff]  ;;  %3169 = vst.msk [vmem:[#allocation5 + $0xa0] sm:$0xff] %vm3158_vm15, %v3083_v22  ;;  %v2491_v22 = vld [vmem:[#allocation3 + $0x1b8] sm:$0xff] }
 0x339   : > { %3033 = vst.msk [vmem:[#allocation5 + $0xb0] sm:$0xff] %vm3021_vm14, %v2948_v42  ;;  %v3863_v63 = vpack.c.bf16 %v3809_v57, %v3807_v37  ;;  %3227 = vrot.lane.b32.xlu0 %v12322_v27, %s10110_s22  ;;  %v3816_v37 = vld [vmem:[#allocation5 + $0xc8] sm:$0xff]  ;;  %v3818_v57 = vld [vmem:[#allocation5 + $0xd8] sm:$0xff] }
 0x33a   : > { %3100 = vrot.lane.b32.xlu1 %v12357_v25, %s10109_s16 }
 0x33b   : > { %4077 = vmatmul.mubr.bf16.gmra.mrb[16].mxu1 %v3863_v63  ;;  %v3212_v47 = vpop.permute.xlu0 %3211  ;;  %v2626_v63 = vrot.slane %v2492_v46, 7 }
 0x33c   : > { %v3085_v38 = vpop.permute.xlu1 %3084  ;;  %9875 = vmatprep.mubr.msk.bf16.mxu1 %vm2330_vm12, %v3866_v54  ;;  %3298 = vst.msk [vmem:[#allocation5 + $0xa0] sm:$0xff] %vm3287_vm0, %v3212_v47  ;;  %v2918_v47 = vrot.slane %v2495_v59, 1 }
 0x33d   : > { %3170 = vst.msk [vmem:[#allocation5 + $0xb0] sm:$0xff] %vm3158_vm15, %v3085_v38  ;;  %3362 = vrot.lane.b32.xlu0 %v12360_v60, %s10111_s25 }
 0x33e   : > { %3229 = vrot.lane.b32.xlu1 %v12330_v12, %s10110_s22 }
 0x33f   : > { %v3347_v2 = vpop.permute.xlu0 %3346 }
 0x340   : > { %v3214_v25 = vpop.permute.xlu1 %3213  ;;  %3433 = vst.msk [vmem:[#allocation5 + $0xa0] sm:$0xff] %vm3422_vm3, %v3347_v2 }
 0x341   : > { %3299 = vst.msk [vmem:[#allocation5 + $0xb0] sm:$0xff] %vm3287_vm0, %v3214_v25  ;;  %3499 = vrot.lane.b32.xlu0 %v12516_v4, %s10112_s28 }
 0x342   : > { %v9976_v29 = vpop.f32.mrb[24].mxu0  ;;  %3364 = vrot.lane.b32.xlu1 %v12363_v51, %s10111_s25 }
 0x343   : > { %v2204_v21 = vadd.f32 %v9976_v29, %v11491_v5  ;;  %v2195_v53 = vpop.f32.mrb[25].mxu0  ;;  %v3484_v13 = vpop.permute.xlu0 %3483 }
 0x344   : > { %v2196_v58 = vadd.f32 %v2195_v53, %v11491_v5  ;;  %v9977_v24 = vpop.f32.mrb[26].mxu0  ;;  %v3349_v41 = vpop.permute.xlu1 %3348  ;;  %3570 = vst.msk [vmem:[#allocation5 + $0xa0] sm:$0xff] %vm3559_vm4, %v3484_v13 }
 0x345   : > { %v2252_v55 = vmax.f32 %v2204_v21, 0.0  ;;  %v2207_v49 = vadd.f32 %v9977_v24, %v11491_v5  ;;  %3434 = vst.msk [vmem:[#allocation5 + $0xb0] sm:$0xff] %vm3422_vm3, %v3349_v41  ;;  %v2198_v1 = vpop.f32.mrb[27].mxu0  ;;  %3628 = vrot.lane.b32.xlu0 %v12497_v43, %s10113_s29  ;;  %v3868_v21 = vpack.c.bf16 %v3818_v57, %v3816_v37  ;;  %v3822_v37 = vld [vmem:[#allocation5 + $0xf8] sm:$0xff] }
 0x346   : > { %v2250_v56 = vmax.f32 %v2196_v58, 0.0  ;;  %v2199_v26 = vadd.f32 %v2198_v1, %v11491_v5  ;;  %3501 = vrot.lane.b32.xlu1 %v12537_v40, %s10112_s28  ;;  %v2913_v58 = vrot.slane %v2491_v22, 1 }
 0x347   : > { %v2288_v15 = vmul.f32 %v11505_v20, %v2252_v55  ;;  %v2253_v30 = vmax.f32 %v2207_v49, 0.0  ;;  %v3613_v9 = vpop.permute.xlu0 %3612 }
 0x348   : > { %v2286_v36 = vmul.f32 %v11505_v20, %v2250_v56  ;;  %v2251_v3 = vmax.f32 %v2199_v26, 0.0  ;;  %v3486_v50 = vpop.permute.xlu1 %3485  ;;  %3699 = vst.msk [vmem:[#allocation5 + $0xa0] sm:$0xff] %vm3688_vm5, %v3613_v9 }
 0x349   : > { %v2324_v34 = vadd.f32 %v11511_v48, %v2288_v15  ;;  %v2289_v45 = vmul.f32 %v11505_v20, %v2253_v30  ;;  %3571 = vst.msk [vmem:[#allocation5 + $0xb0] sm:$0xff] %vm3559_vm4, %v3486_v50  ;;  %2740 = vrot.lane.b32.xlu0 %v12322_v27, %s10106_s15  ;;  %v2488_v27 = vld [vmem:[#allocation3 + $0x1a0] sm:$0xff] }
 0x34a   : > { %v2322_v52 = vadd.f32 %v11511_v48, %v2286_v36  ;;  %v2287_v23 = vmul.f32 %v11505_v20, %v2251_v3  ;;  %3630 = vrot.lane.b32.xlu1 %v12504_v31, %s10113_s29 }
 0x34b   : > { %2430 = vst.msk [vmem:[#allocation3 + $0x1c8] sm:$0xff] %vm2330_vm12, %v2324_v34  ;;  %v2325_v39 = vadd.f32 %v11511_v48, %v2289_v45  ;;  %v2725_v18 = vpop.permute.xlu0 %2724 }
 0x34c   : > { %2428 = vst.msk [vmem:[#allocation3 + $0x1a8] sm:$0xff] %vm2330_vm12, %v2322_v52  ;;  %v2323_v33 = vadd.f32 %v11511_v48, %v2287_v23  ;;  %v3615_v32 = vpop.permute.xlu1 %3614 }
 0x34d   : > { %2431 = vst.msk [vmem:[#allocation3 + $0x1d0] sm:$0xff] %vm2330_vm12, %v2325_v39  ;;  %2965 = vrot.lane.b32.xlu0 %v12360_v60, %s10108_s12 }
 0x34e   : > { %3700 = vst.msk [vmem:[#allocation5 + $0xb0] sm:$0xff] %vm3688_vm5, %v3615_v32  ;;  %2742 = vrot.lane.b32.xlu1 %v12330_v12, %s10106_s15  ;;  %v2621_v12 = vrot.slane %v2488_v27, 7 }
 0x34f   : > { %2429 = vst.msk [vmem:[#allocation3 + $0x1b0] sm:$0xff] %vm2330_vm12, %v2323_v33  ;;  %v2950_v42 = vpop.permute.xlu0 %2949  ;;  %v3811_v2 = vld [vmem:[#allocation5 + $0xa0] sm:$0xff] }
 0x350   : > { %2809 = vst.msk [vmem:[#allocation5 + $0xc0] sm:$0xff] %vm2796_vm13, %v2725_v18  ;;  %v2727_v61 = vpop.permute.xlu1 %2726 }
 0x351   : > { %2810 = vst.msk [vmem:[#allocation5 + $0xd0] sm:$0xff] %vm2796_vm13, %v2727_v61  ;;  %3102 = vrot.lane.b32.xlu0 %v12516_v4, %s10109_s16 }
 0x352   : > { %3034 = vst.msk [vmem:[#allocation5 + $0xc0] sm:$0xff] %vm3021_vm14, %v2950_v42  ;;  %2967 = vrot.lane.b32.xlu1 %v12363_v51, %s10108_s12  ;;  %v12663_v54 = vld [vmem:[#allocation3 + $0x1c8] sm:$0xff] }
 0x353   : > { %v12667_v60 = vld [vmem:[#allocation3 + $0x1a8] sm:$0xff]  ;;  %v2627_v38 = vrot.slane %v12663_v54, 7  ;;  %v2915_v51 = vrot.slane %v12663_v54, 1  ;;  %v3087_v41 = vpop.permute.xlu0 %3086 }
 0x354   : > { %v2952_v25 = vpop.permute.xlu1 %2951  ;;  %v2622_v53 = vrot.slane %v12667_v60, 7  ;;  %v12671_v24 = vld [vmem:[#allocation3 + $0x1d0] sm:$0xff]  ;;  %3171 = vst.msk [vmem:[#allocation5 + $0xc0] sm:$0xff] %vm3158_vm15, %v3087_v41  ;;  %v2910_v15 = vrot.slane %v12667_v60, 1 }
 0x355   : > { %v3813_v29 = vld [vmem:[#allocation5 + $0xb0] sm:$0xff]  ;;  %3035 = vst.msk [vmem:[#allocation5 + $0xd0] sm:$0xff] %vm3021_vm14, %v2952_v25  ;;  %v12678_v49 = vsel %vm15159_vm2, %v2626_v63, %v2627_v38  ;;  %v2629_v1 = vrot.slane %v12671_v24, 7  ;;  %v2916_v13 = vrot.slane %v12671_v24, 1  ;;  %3231 = vrot.lane.b32.xlu0 %v12497_v43, %s10110_s22  ;;  %v2507_v25 = vld [vmem:[#allocation3 + $0x238] sm:$0xff] }
 0x356   : > { %v3865_v4 = vpack.c.bf16 %v3813_v29, %v3811_v2  ;;  %v12675_v55 = vld [vmem:[#allocation3 + $0x1b0] sm:$0xff]  ;;  %3104 = vrot.lane.b32.xlu1 %v12537_v40, %s10109_s16  ;;  %v12686_v56 = vsel %vm15159_vm2, %v2621_v12, %v2622_v53  ;;  %2696 = vst.msk [vmem:[#allocation5 + $0x1c0] sm:$0xff] %vm2330_vm12, %v12678_v49  ;;  %v3725_v29 = vrot.slane %v2507_v25, 1 }
 0x357   : > { %v2624_v26 = vrot.slane %v12675_v55, 7  ;;  %v2911_v30 = vrot.slane %v12675_v55, 1  ;;  %2694 = vst.msk [vmem:[#allocation5 + $0x1a0] sm:$0xff] %vm2330_vm12, %v12686_v56  ;;  %v12698_v40 = vsel %vm15159_vm2, %v2627_v38, %v2629_v1  ;;  %v12701_v36 = vsel %vm15158_vm1, %v2915_v51, %v2916_v13  ;;  %v3216_v52 = vpop.permute.xlu0 %3215  ;;  %v12772_v38 = vld [vmem:[#allocation3 + $0x228] sm:$0xff] }
 0x358   : > { %4085 = vmatmul.mubr.bf16.gmra.mrb[20].mxu1 %v3865_v4  ;;  %v12704_v3 = vsel %vm15158_vm1, %v2916_v13, %v2918_v47  ;;  %v3089_v50 = vpop.permute.xlu1 %3088  ;;  %2697 = vst.msk [vmem:[#allocation5 + $0x1d0] sm:$0xff] %vm2330_vm12, %v12698_v40  ;;  %3783 = vst.msk [vmem:[#allocation5 + $0x188] sm:$0xff] %vm2330_vm12, %v12701_v36  ;;  %v2506_v47 = vld [vmem:[#allocation3 + $0x230] sm:$0xff] }
 0x359   : > { %9876 = vmatprep.mubr.msk.bf16.mxu1 %vm2330_vm12, %v3868_v21  ;;  %v12708_v34 = vsel %vm15159_vm2, %v2622_v53, %v2624_v26  ;;  %v12711_v45 = vsel %vm15158_vm1, %v2910_v15, %v2911_v30  ;;  %v12714_v9 = vsel %vm15158_vm1, %v2911_v30, %v2913_v58  ;;  %3784 = vst.msk [vmem:[#allocation5 + $0x198] sm:$0xff] %vm2330_vm12, %v12704_v3  ;;  %v3723_v2 = vrot.slane %v2506_v47, 1 }
 0x35a   : > { %3172 = vst.msk [vmem:[#allocation5 + $0xd0] sm:$0xff] %vm3158_vm15, %v3089_v50  ;;  %3233 = vrot.lane.b32.xlu1 %v12504_v31, %s10110_s22  ;;  %3366 = vrot.lane.b32.xlu0 %v12540_v35, %s10111_s25 }
 0x35b   : > { %2695 = vst.msk [vmem:[#allocation5 + $0x1b0] sm:$0xff] %vm2330_vm12, %v12708_v34  ;;  %3781 = vst.msk [vmem:[#allocation5 + $0x168] sm:$0xff] %vm2330_vm12, %v12711_v45  ;;  %v3351_v39 = vpop.permute.xlu0 %3350  ;;  %v3726_v51 = vsel %vm15158_vm1, %v3723_v2, %v3725_v29 }
 0x35c   : > { %3782 = vst.msk [vmem:[#allocation5 + $0x178] sm:$0xff] %vm2330_vm12, %v12714_v9  ;;  %v3218_v23 = vpop.permute.xlu1 %3217  ;;  %3790 = vst.msk [vmem:[#allocation5 + $0x1f8] sm:$0xff] %vm2330_vm12, %v3726_v51 }
 0x35d   : > { %3300 = vst.msk [vmem:[#allocation5 + $0xc0] sm:$0xff] %vm3287_vm0, %v3216_v52  ;;  %3301 = vst.msk [vmem:[#allocation5 + $0xd0] sm:$0xff] %vm3287_vm0, %v3218_v23 }
 0x35e   : > { %3435 = vst.msk [vmem:[#allocation5 + $0xc0] sm:$0xff] %vm3422_vm3, %v3351_v39  ;;  %3368 = vrot.lane.b32.xlu1 %v12543_v14, %s10111_s25  ;;  %3503 = vrot.lane.b32.xlu0 %v12507_v62, %s10112_s28 }
 0x35f   : > { %v3488_v32 = vpop.permute.xlu0 %3487 }
 0x360   : > { %v3353_v33 = vpop.permute.xlu1 %3352  ;;  %3572 = vst.msk [vmem:[#allocation5 + $0xc0] sm:$0xff] %vm3559_vm4, %v3488_v32 }
 0x361   : > { %3436 = vst.msk [vmem:[#allocation5 + $0xd0] sm:$0xff] %vm3422_vm3, %v3353_v33 }
 0x362   : > { %3505 = vrot.lane.b32.xlu1 %v12528_v44, %s10112_s28  ;;  %3632 = vrot.lane.b32.xlu0 %v12493_v17, %s10113_s29 }
 0x363   : > { %v3617_v46 = vpop.permute.xlu0 %3616 }
 0x364   : > { %v3490_v18 = vpop.permute.xlu1 %3489  ;;  %3701 = vst.msk [vmem:[#allocation5 + $0xc0] sm:$0xff] %vm3688_vm5, %v3617_v46 }
 0x365   : > { %3573 = vst.msk [vmem:[#allocation5 + $0xd0] sm:$0xff] %vm3559_vm4, %v3490_v18 }
 0x366   : > { %3634 = vrot.lane.b32.xlu1 %v12501_v28, %s10113_s29  ;;  %2744 = vrot.lane.b32.xlu0 %v12497_v43, %s10106_s15  ;;  %v3820_v43 = vld [vmem:[#allocation5 + $0xe8] sm:$0xff] }
 0x367   : > { %v2729_v61 = vpop.permute.xlu0 %2728  ;;  %v3870_v12 = vpack.c.bf16 %v3822_v37, %v3820_v43 }
 0x368   : > { %v3619_v27 = vpop.permute.xlu1 %3618  ;;  %2811 = vst.msk [vmem:[#allocation5 + $0xe0] sm:$0xff] %vm2796_vm13, %v2729_v61 }
 0x369   : > { %3702 = vst.msk [vmem:[#allocation5 + $0xd0] sm:$0xff] %vm3688_vm5, %v3619_v27 }
 0x36a   : > { %2746 = vrot.lane.b32.xlu1 %v12504_v31, %s10106_s15  ;;  %2969 = vrot.lane.b32.xlu0 %v12540_v35, %s10108_s12 }
 0x36b   : > { %v2954_v42 = vpop.permute.xlu0 %2953  ;;  %v3815_v22 = vld [vmem:[#allocation5 + $0xc0] sm:$0xff] }
 0x36c   : > { %v2731_v59 = vpop.permute.xlu1 %2730  ;;  %3036 = vst.msk [vmem:[#allocation5 + $0xe0] sm:$0xff] %vm3021_vm14, %v2954_v42 }
 0x36d   : > { %2812 = vst.msk [vmem:[#allocation5 + $0xf0] sm:$0xff] %vm2796_vm13, %v2731_v59 }
 0x36e   : > { %2971 = vrot.lane.b32.xlu1 %v12543_v14, %s10108_s12  ;;  %3106 = vrot.lane.b32.xlu0 %v12507_v62, %s10109_s16 }
 0x36f   : > { %v3091_v35 = vpop.permute.xlu0 %3090 }
 0x370   : > { %v2956_v57 = vpop.permute.xlu1 %2955  ;;  %v3817_v31 = vld [vmem:[#allocation5 + $0xd0] sm:$0xff]  ;;  %3173 = vst.msk [vmem:[#allocation5 + $0xe0] sm:$0xff] %vm3158_vm15, %v3091_v35  ;;  %v3826_v35 = vld [vmem:[#allocation5 + $0x118] sm:$0xff] }
 0x371   : > { %3037 = vst.msk [vmem:[#allocation5 + $0xf0] sm:$0xff] %vm3021_vm14, %v2956_v57  ;;  %v3867_v63 = vpack.c.bf16 %v3817_v31, %v3815_v22  ;;  %v3824_v31 = vld [vmem:[#allocation5 + $0x108] sm:$0xff] }
 0x372   : > { %3108 = vrot.lane.b32.xlu1 %v12528_v44, %s10109_s16  ;;  %3235 = vrot.lane.b32.xlu0 %v12493_v17, %s10110_s22  ;;  %v3722_v44 = vrot.slane %v12772_v38, 1 }
 0x373   : > { %4093 = vmatmul.mubr.bf16.gmra.mrb[24].mxu1 %v3867_v63  ;;  %v3220_v14 = vpop.permute.xlu0 %3219 }
 0x374   : > { %v3093_v62 = vpop.permute.xlu1 %3092  ;;  %9877 = vmatprep.mubr.msk.bf16.mxu1 %vm2330_vm12, %v3870_v12  ;;  %3302 = vst.msk [vmem:[#allocation5 + $0xe0] sm:$0xff] %vm3287_vm0, %v3220_v14  ;;  %v3724_v53 = vsel %vm15158_vm1, %v3722_v44, %v3723_v2  ;;  %v2503_v44 = vld [vmem:[#allocation3 + $0x218] sm:$0xff] }
 0x375   : > { %3174 = vst.msk [vmem:[#allocation5 + $0xf0] sm:$0xff] %vm3158_vm15, %v3093_v62  ;;  %v2499_v2 = vld [vmem:[#allocation3 + $0x1f8] sm:$0xff] }
 0x376   : > { %3237 = vrot.lane.b32.xlu1 %v12501_v28, %s10110_s22  ;;  %3370 = vrot.lane.b32.xlu0 %v12531_v19, %s10111_s25  ;;  %3789 = vst.msk [vmem:[#allocation5 + $0x1e8] sm:$0xff] %vm2330_vm12, %v3724_v53  ;;  %v3324_v53 = vrot.slane %v2503_v44, 1 }
 0x377   : > { %v3355_v58 = vpop.permute.xlu0 %3354 }
 0x378   : > { %v3222_v21 = vpop.permute.xlu1 %3221  ;;  %3437 = vst.msk [vmem:[#allocation5 + $0xe0] sm:$0xff] %vm3422_vm3, %v3355_v58 }
 0x379   : > { %3303 = vst.msk [vmem:[#allocation5 + $0xf0] sm:$0xff] %vm3287_vm0, %v3222_v21 }
 0x37a   : > { %3372 = vrot.lane.b32.xlu1 %v12534_v11, %s10111_s25  ;;  %3507 = vrot.lane.b32.xlu0 %v12686_v56, %s10112_s28 }
 0x37b   : > { %v3492_v4 = vpop.permute.xlu0 %3491 }
 0x37c   : > { %v3357_v41 = vpop.permute.xlu1 %3356  ;;  %3574 = vst.msk [vmem:[#allocation5 + $0xe0] sm:$0xff] %vm3559_vm4, %v3492_v4 }
 0x37d   : > { %3438 = vst.msk [vmem:[#allocation5 + $0xf0] sm:$0xff] %vm3422_vm3, %v3357_v41  ;;  %v2923_v41 = vrot.slane %v2499_v2, 1 }
 0x37e   : > { %3509 = vrot.lane.b32.xlu1 %v12708_v34, %s10112_s28  ;;  %3636 = vrot.lane.b32.xlu0 %v12667_v60, %s10113_s29 }
 0x37f   : > { %v3621_v13 = vpop.permute.xlu0 %3620 }
 0x380   : > { %v3494_v1 = vpop.permute.xlu1 %3493  ;;  %3703 = vst.msk [vmem:[#allocation5 + $0xe0] sm:$0xff] %vm3688_vm5, %v3621_v13 }
 0x381   : > { %3575 = vst.msk [vmem:[#allocation5 + $0xf0] sm:$0xff] %vm3559_vm4, %v3494_v1 }
 0x382   : > { %v9980_v26 = vpop.f32.mrb[28].mxu0  ;;  %3638 = vrot.lane.b32.xlu1 %v12675_v55, %s10113_s29  ;;  %2748 = vrot.lane.b32.xlu0 %v12493_v17, %s10106_s15 }
 0x383   : > { %v2220_v15 = vadd.f32 %v9980_v26, %v11491_v5  ;;  %v2211_v30 = vpop.f32.mrb[29].mxu0  ;;  %v2733_v18 = vpop.permute.xlu0 %2732 }
 0x384   : > { %v2212_v50 = vadd.f32 %v2211_v30, %v11491_v5  ;;  %v9981_v52 = vpop.f32.mrb[30].mxu0  ;;  %v3623_v23 = vpop.permute.xlu1 %3622  ;;  %2813 = vst.msk [vmem:[#allocation5 + $0x100] sm:$0xff] %vm2796_vm13, %v2733_v18  ;;  %v3905_v18 = vld [vmem:[%s15148_s4] sm:$0x7] }
 0x385   : > { %v2256_v39 = vmax.f32 %v2220_v15, 0.0  ;;  %v2223_v33 = vadd.f32 %v9981_v52, %v11491_v5  ;;  %3704 = vst.msk [vmem:[#allocation5 + $0xf0] sm:$0xff] %vm3688_vm5, %v3623_v23  ;;  %v2214_v32 = vpop.f32.mrb[31].mxu0 }
 0x386   : > { %v2254_v46 = vmax.f32 %v2212_v50, 0.0  ;;  %v2215_v27 = vadd.f32 %v2214_v32, %v11491_v5  ;;  %2750 = vrot.lane.b32.xlu1 %v12501_v28, %s10106_s15  ;;  %2973 = vrot.lane.b32.xlu0 %v12531_v19, %s10108_s12 }
 0x387   : > { %v2292_v17 = vmul.f32 %v11505_v20, %v2256_v39  ;;  %v2257_v61 = vmax.f32 %v2223_v33, 0.0  ;;  %v2958_v5 = vpop.permute.xlu0 %2957 }
 0x388   : > { %v2290_v59 = vmul.f32 %v11505_v20, %v2254_v46  ;;  %v2255_v42 = vmax.f32 %v2215_v27, 0.0  ;;  %v2735_v43 = vpop.permute.xlu1 %2734  ;;  %3038 = vst.msk [vmem:[#allocation5 + $0x100] sm:$0xff] %vm3021_vm14, %v2958_v5 }
 0x389   : > { %v2328_v37 = vadd.f32 %v11511_v48, %v2292_v17  ;;  %v2293_v57 = vmul.f32 %v11505_v20, %v2257_v61  ;;  %2814 = vst.msk [vmem:[#allocation5 + $0x110] sm:$0xff] %vm2796_vm13, %v2735_v43  ;;  %v12903_v43 = vrot.slane %v3905_v18, %v11479_v7 }
 0x38a   : > { %v2326_v22 = vadd.f32 %v11511_v48, %v2290_v59  ;;  %v2291_v28 = vmul.f32 %v11505_v20, %v2255_v42  ;;  %2975 = vrot.lane.b32.xlu1 %v12534_v11, %s10108_s12  ;;  %3110 = vrot.lane.b32.xlu0 %v12686_v56, %s10109_s16  ;;  %v3819_v20 = vld [vmem:[#allocation5 + $0xe0] sm:$0xff]  ;;  %v3872_v56 = vpack.c.bf16 %v3826_v35, %v3824_v31  ;;  %v10114_v59 = vmov 1983009808  }
 0x38b   : > { %2434 = vst.msk [vmem:[#allocation3 + $0x208] sm:$0xff] %vm2330_vm12, %v2328_v37  ;;  %v2329_v19 = vadd.f32 %v11511_v48, %v2293_v57  ;;  %v3095_v11 = vpop.permute.xlu0 %3094  ;;  %v4311_v42 = vunpack.c.l.s4 %v10114_v59 }
 0x38c   : > { %2432 = vst.msk [vmem:[#allocation3 + $0x1e8] sm:$0xff] %vm2330_vm12, %v2326_v22  ;;  %v2327_v63 = vadd.f32 %v11511_v48, %v2291_v28  ;;  %v2960_v12 = vpop.permute.xlu1 %2959  ;;  %v3821_v62 = vld [vmem:[#allocation5 + $0xf0] sm:$0xff] }
 0x38d   : > { %2435 = vst.msk [vmem:[#allocation3 + $0x210] sm:$0xff] %vm2330_vm12, %v2329_v19  ;;  %v3869_v14 = vpack.c.bf16 %v3821_v62, %v3819_v20  ;;  %v2496_v48 = vld [vmem:[#allocation3 + $0x1e0] sm:$0xff]  ;;  %v4312_v22 = vunpack.c.0.s8 %v4311_v42  ;;  %v12911_v19 = vrot.slane %v3905_v18, %v11494_v6  ;;  %v12916_v20 = vrot.slane %v3905_v18, %v11498_v16 }
 0x38e   : > { %3039 = vst.msk [vmem:[#allocation5 + $0x110] sm:$0xff] %vm3021_vm14, %v2960_v12  ;;  %3112 = vrot.lane.b32.xlu1 %v12708_v34, %s10109_s16  ;;  %3239 = vrot.lane.b32.xlu0 %v12667_v60, %s10110_s22  ;;  %v2631_v34 = vrot.slane %v2496_v48, 7 }
 0x38f   : > { %2433 = vst.msk [vmem:[#allocation3 + $0x1f0] sm:$0xff] %vm2330_vm12, %v2327_v63  ;;  %4101 = vmatmul.mubr.bf16.gmra.mrb[28].mxu1 %v3869_v14  ;;  %v3224_v25 = vpop.permute.xlu0 %3223 }
 0x390   : > { %3175 = vst.msk [vmem:[#allocation5 + $0x100] sm:$0xff] %vm3158_vm15, %v3095_v11  ;;  %v3097_v47 = vpop.permute.xlu1 %3096  ;;  %9878 = vmatprep.mubr.msk.bf16.mxu1 %vm2330_vm12, %v3872_v56  ;;  %v12924_v56 = vsub.s32 %v4312_v22, %v11470_v10 }
 0x391   : > { %3176 = vst.msk [vmem:[#allocation5 + $0x110] sm:$0xff] %vm3158_vm15, %v3097_v47 }
 0x392   : > { %3304 = vst.msk [vmem:[#allocation5 + $0x100] sm:$0xff] %vm3287_vm0, %v3224_v25  ;;  %3241 = vrot.lane.b32.xlu1 %v12675_v55, %s10110_s22  ;;  %v12841_v29 = vld [vmem:[#allocation3 + $0x208] sm:$0xff]  ;;  %3374 = vrot.lane.b32.xlu0 %v12711_v45, %s10111_s25 }
 0x393   : > { %v12845_v21 = vld [vmem:[#allocation3 + $0x1e8] sm:$0xff]  ;;  %v3359_v1 = vpop.permute.xlu0 %3358  ;;  %v3321_v26 = vrot.slane %v12841_v29, 1 }
 0x394   : > { %v3226_v58 = vpop.permute.xlu1 %3225  ;;  %v2632_v51 = vrot.slane %v12845_v21, 7  ;;  %v12848_v4 = vld [vmem:[#allocation3 + $0x210] sm:$0xff]  ;;  %3439 = vst.msk [vmem:[#allocation5 + $0x100] sm:$0xff] %vm3422_vm3, %v3359_v1  ;;  %v2920_v52 = vrot.slane %v12845_v21, 1 }
 0x395   : > { %3305 = vst.msk [vmem:[#allocation5 + $0x110] sm:$0xff] %vm3287_vm0, %v3226_v58  ;;  %v3322_v15 = vrot.slane %v12848_v4, 1  ;;  %v3830_v58 = vld [vmem:[#allocation5 + $0x138] sm:$0xff] }
 0x396   : > { %v12851_v13 = vld [vmem:[#allocation3 + $0x1f0] sm:$0xff]  ;;  %3376 = vrot.lane.b32.xlu1 %v12714_v9, %s10111_s25  ;;  %v12859_v30 = vsel %vm15159_vm2, %v2631_v34, %v2632_v51  ;;  %3511 = vrot.lane.b32.xlu0 %v12678_v49, %s10112_s28 }
 0x397   : > { %v2634_v50 = vrot.slane %v12851_v13, 7  ;;  %v2921_v23 = vrot.slane %v12851_v13, 1  ;;  %2698 = vst.msk [vmem:[#allocation5 + $0x1e0] sm:$0xff] %vm2330_vm12, %v12859_v30  ;;  %v12869_v39 = vsel %vm15158_vm1, %v3321_v26, %v3322_v15  ;;  %v12872_v33 = vsel %vm15158_vm1, %v3322_v15, %v3324_v53  ;;  %v3496_v61 = vpop.permute.xlu0 %3495 }
 0x398   : > { %v3361_v32 = vpop.permute.xlu1 %3360  ;;  %3787 = vst.msk [vmem:[#allocation5 + $0x1c8] sm:$0xff] %vm2330_vm12, %v12869_v39  ;;  %3788 = vst.msk [vmem:[#allocation5 + $0x1d8] sm:$0xff] %vm2330_vm12, %v12872_v33 }
 0x399   : > { %v12878_v46 = vsel %vm15159_vm2, %v2632_v51, %v2634_v50  ;;  %v12881_v27 = vsel %vm15158_vm1, %v2920_v52, %v2921_v23  ;;  %v12884_v17 = vsel %vm15158_vm1, %v2921_v23, %v2923_v41  ;;  %3440 = vst.msk [vmem:[#allocation5 + $0x110] sm:$0xff] %vm3422_vm3, %v3361_v32 }
 0x39a   : > { %2699 = vst.msk [vmem:[#allocation5 + $0x1f0] sm:$0xff] %vm2330_vm12, %v12878_v46  ;;  %3785 = vst.msk [vmem:[#allocation5 + $0x1a8] sm:$0xff] %vm2330_vm12, %v12881_v27  ;;  %3513 = vrot.lane.b32.xlu1 %v12698_v40, %s10112_s28  ;;  %3640 = vrot.lane.b32.xlu0 %v12663_v54, %s10113_s29 }
 0x39b   : > { %3786 = vst.msk [vmem:[#allocation5 + $0x1b8] sm:$0xff] %vm2330_vm12, %v12884_v17  ;;  %v3625_v57 = vpop.permute.xlu0 %3624 }
 0x39c   : > { %3576 = vst.msk [vmem:[#allocation5 + $0x100] sm:$0xff] %vm3559_vm4, %v3496_v61  ;;  %v3498_v37 = vpop.permute.xlu1 %3497 }
 0x39d   : > { %3577 = vst.msk [vmem:[#allocation5 + $0x110] sm:$0xff] %vm3559_vm4, %v3498_v37 }
 0x39e   : > { %3705 = vst.msk [vmem:[#allocation5 + $0x100] sm:$0xff] %vm3688_vm5, %v3625_v57  ;;  %3642 = vrot.lane.b32.xlu1 %v12671_v24, %s10113_s29  ;;  %v4046_v5 = vpop.f32.mrb[0].mxu1  ;;  %2752 = vrot.lane.b32.xlu0 %v12667_v60, %s10106_s15 }
 0x39f   : > { %v4047_v28 = vadd.f32 %v4046_v5, %v12903_v43  ;;  %v4048_v31 = vpop.f32.mrb[1].mxu1  ;;  %v2737_v14 = vpop.permute.xlu0 %2736 }
 0x3a0   : > { %v3627_v35 = vpop.permute.xlu1 %3626  ;;  %v4049_v63 = vpop.f32.mrb[2].mxu1  ;;  %2815 = vst.msk [vmem:[#allocation5 + $0x120] sm:$0xff] %vm2796_vm13, %v2737_v14 }
 0x3a1   : > { %v4173_v12 = vmax.f32 %v4047_v28, 0.0  ;;  %3706 = vst.msk [vmem:[#allocation5 + $0x110] sm:$0xff] %vm3688_vm5, %v3627_v35  ;;  %v4050_v62 = vadd.f32 %v4049_v63, %v12903_v43  ;;  %v4051_v11 = vpop.f32.mrb[3].mxu1 }
 0x3a2   : > { %2754 = vrot.lane.b32.xlu1 %v12675_v55, %s10106_s15  ;;  %2977 = vrot.lane.b32.xlu0 %v12711_v45, %s10108_s12  ;;  %v3828_v45 = vld [vmem:[#allocation5 + $0x128] sm:$0xff] }
 0x3a3   : > { %v4209_v60 = vmul.f32 %v12911_v19, %v4173_v12  ;;  %v4174_v48 = vmax.f32 %v4050_v62, 0.0  ;;  %v2962_v2 = vpop.permute.xlu0 %2961  ;;  %v3874_v18 = vpack.c.bf16 %v3830_v58, %v3828_v45 }
 0x3a4   : > { %v2739_v47 = vpop.permute.xlu1 %2738  ;;  %3040 = vst.msk [vmem:[#allocation5 + $0x120] sm:$0xff] %vm3021_vm14, %v2962_v2 }
 0x3a5   : > { %v4245_v44 = vadd.f32 %v12916_v20, %v4209_v60  ;;  %v4210_v25 = vmul.f32 %v12911_v19, %v4174_v48  ;;  %2816 = vst.msk [vmem:[#allocation5 + $0x130] sm:$0xff] %vm2796_vm13, %v2739_v47  ;;  %v3823_v52 = vld [vmem:[#allocation5 + $0x100] sm:$0xff] }
 0x3a6   : > { %2979 = vrot.lane.b32.xlu1 %v12714_v9, %s10108_s12  ;;  %3114 = vrot.lane.b32.xlu0 %v12678_v49, %s10109_s16 }
 0x3a7   : > { %v4309_v55 = vcombine.high %v4245_v44, %v4245_v44  ;;  %v4316_v34 = vrot.slane %v4245_v44, %v12924_v56  ;;  %v4246_v53 = vadd.f32 %v12916_v20, %v4210_v25  ;;  %v3099_v9 = vpop.permute.xlu0 %3098 }
 0x3a8   : > { %v2964_v51 = vpop.permute.xlu1 %2963  ;;  %v3825_v41 = vld [vmem:[#allocation5 + $0x110] sm:$0xff]  ;;  %3177 = vst.msk [vmem:[#allocation5 + $0x120] sm:$0xff] %vm3158_vm15, %v3099_v9 }
 0x3a9   : > { %v4323_v1 = vrot.slane %v4309_v55, %v12924_v56  ;;  %v4324_v26 = vcombine.high %v4316_v34, %v4316_v34  ;;  %v4982_v15 = vsel %vm4981_vm6, %v4316_v34, -inf  ;;  %v4326_v50 = vcombine.high %v4246_v53, %v4246_v53  ;;  %3041 = vst.msk [vmem:[#allocation5 + $0x130] sm:$0xff] %vm3021_vm14, %v2964_v51 }
 0x3aa   : > { %v4983_v23 = vrot.slane %v4982_v15, 4  ;;  %v4333_v32 = vrot.slane %v4246_v53, %v12924_v56  ;;  %3116 = vrot.lane.b32.xlu1 %v12698_v40, %s10109_s16  ;;  %v3871_v49 = vpack.c.bf16 %v3825_v41, %v3823_v52  ;;  %3243 = vrot.lane.b32.xlu0 %v12663_v54, %s10110_s22 }
 0x3ab   : > { %v4325_v61 = vcombine.high %v4323_v1, %v4323_v1  ;;  %v4989_v59 = vsel %vm4981_vm6, %v4324_v26, -inf  ;;  %v4996_v42 = vsel %vm4981_vm6, %v4323_v1, -inf  ;;  %v4340_v37 = vrot.slane %v4326_v50, %v12924_v56  ;;  %v3228_v12 = vpop.permute.xlu0 %3227 }
 0x3ac   : > { %v4990_v57 = vrot.slane %v4989_v59, 4  ;;  %v4997_v5 = vrot.slane %v4996_v42, 4  ;;  %v4341_v22 = vcombine.high %v4333_v32, %v4333_v32  ;;  %4109 = vmatmul.mubr.bf16.gmra.mrb[32].mxu1 %v3871_v49  ;;  %v3101_v28 = vpop.permute.xlu1 %3100  ;;  %v5010_v35 = vsel %vm4981_vm6, %v4333_v32, -inf  ;;  %3306 = vst.msk [vmem:[#allocation5 + $0x120] sm:$0xff] %vm3287_vm0, %v3228_v12  ;;  %v2500_v12 = vld [vmem:[#allocation3 + $0x200] sm:$0xff] }
 0x3ad   : > { %v5003_v31 = vsel %vm4981_vm6, %v4325_v61, -inf  ;;  %v4342_v40 = vcombine.high %v4340_v37, %v4340_v37  ;;  %v5024_v63 = vsel %vm4981_vm6, %v4340_v37, -inf  ;;  %3178 = vst.msk [vmem:[#allocation5 + $0x130] sm:$0xff] %vm3158_vm15, %v3101_v28  ;;  %9879 = vmatprep.mubr.msk.bf16.mxu1 %vm2330_vm12, %v3874_v18  ;;  %v4984_v62 = vmax.f32 %v4982_v15, %v4983_v23 }
 0x3ae   : > { %v4991_v11 = vmax.f32 %v4989_v59, %v4990_v57  ;;  %v4998_v14 = vmax.f32 %v4996_v42, %v4997_v5  ;;  %v5004_v60 = vrot.slane %v5003_v31, 4  ;;  %3245 = vrot.lane.b32.xlu1 %v12671_v24, %s10110_s22  ;;  %v5011_v48 = vrot.slane %v5010_v35, 4  ;;  %3378 = vrot.lane.b32.xlu0 %v12701_v36, %s10111_s25 }
 0x3af   : > { %v5017_v47 = vsel %vm4981_vm6, %v4341_v22, -inf  ;;  %v5025_v44 = vrot.slane %v5024_v63, 4  ;;  %v5031_v25 = vsel %vm4981_vm6, %v4342_v40, -inf  ;;  %v3363_v51 = vpop.permute.xlu0 %3362  ;;  %v4985_v41 = vrot.slane %v4984_v62, 2 }
 0x3b0   : > { %v5005_v2 = vmax.f32 %v5003_v31, %v5004_v60  ;;  %v3230_v55 = vpop.permute.xlu1 %3229  ;;  %v5012_v34 = vmax.f32 %v5010_v35, %v5011_v48  ;;  %v5018_v53 = vrot.slane %v5017_v47, 4  ;;  %v5032_v58 = vrot.slane %v5031_v25, 4  ;;  %3441 = vst.msk [vmem:[#allocation5 + $0x120] sm:$0xff] %vm3422_vm3, %v3363_v51 }
 0x3b1   : > { %v5026_v45 = vmax.f32 %v5024_v63, %v5025_v44  ;;  %3307 = vst.msk [vmem:[#allocation5 + $0x130] sm:$0xff] %vm3287_vm0, %v3230_v55  ;;  %v4992_v1 = vrot.slane %v4991_v11, 2  ;;  %v4999_v26 = vrot.slane %v4998_v14, 2  ;;  %v4986_v18 = vmax.f32 %v4984_v62, %v4985_v41 }
 0x3b2   : > { %3380 = vrot.lane.b32.xlu1 %v12704_v3, %s10111_s25  ;;  %v5006_v15 = vrot.slane %v5005_v2, 2  ;;  %v5019_v50 = vmax.f32 %v5017_v47, %v5018_v53  ;;  %3515 = vrot.lane.b32.xlu0 %v12859_v30, %s10112_s28  ;;  %v5013_v9 = vrot.slane %v5012_v34, 2  ;;  %v5033_v52 = vmax.f32 %v5031_v25, %v5032_v58 }
 0x3b3   : > { %v5027_v32 = vrot.slane %v5026_v45, 2  ;;  %v3500_v49 = vpop.permute.xlu0 %3499  ;;  %v4993_v59 = vmax.f32 %v4991_v11, %v4992_v1  ;;  %v5000_v42 = vmax.f32 %v4998_v14, %v4999_v26  ;;  %v4987_v40 = vrot.slane %v4986_v18, 1  ;;  %v3832_v26 = vld [vmem:[#allocation5 + $0x148] sm:$0xff] }
 0x3b4   : > { %v3365_v23 = vpop.permute.xlu1 %3364  ;;  %v5020_v61 = vrot.slane %v5019_v50, 2  ;;  %3578 = vst.msk [vmem:[#allocation5 + $0x120] sm:$0xff] %vm3559_vm4, %v3500_v49  ;;  %v5007_v37 = vmax.f32 %v5005_v2, %v5006_v15  ;;  %v5014_v57 = vmax.f32 %v5012_v34, %v5013_v9  ;;  %v5034_v5 = vrot.slane %v5033_v52, 2  ;;  %v3834_v15 = vld [vmem:[#allocation5 + $0x158] sm:$0xff] }
 0x3b5   : > { %3442 = vst.msk [vmem:[#allocation5 + $0x130] sm:$0xff] %vm3422_vm3, %v3365_v23  ;;  %v5028_v28 = vmax.f32 %v5026_v45, %v5027_v32  ;;  %v4994_v62 = vrot.slane %v4993_v59, 1  ;;  %v5001_v11 = vrot.slane %v5000_v42, 1  ;;  %v3057_v58 = vrot.slane %v2500_v12, 7 }
 0x3b6   : > { %3517 = vrot.lane.b32.xlu1 %v12878_v46, %s10112_s28  ;;  %3644 = vrot.lane.b32.xlu0 %v12845_v21, %s10113_s29  ;;  %v5021_v35 = vmax.f32 %v5019_v50, %v5020_v61  ;;  %v5008_v14 = vrot.slane %v5007_v37, 1  ;;  %v5015_v48 = vrot.slane %v5014_v57, 1  ;;  %v5035_v47 = vmax.f32 %v5033_v52, %v5034_v5 }
 0x3b7   : > { %v3629_v31 = vpop.permute.xlu0 %3628  ;;  %v5029_v55 = vrot.slane %v5028_v28, 1  ;;  %v3058_v51 = vrot.slane %v12841_v29, 7  ;;  %v4988_v41 = vmax.f32 %v4986_v18, %v4987_v40  ;;  %v3060_v50 = vrot.slane %v12848_v4, 7 }
 0x3b8   : > { %v3502_v22 = vpop.permute.xlu1 %3501  ;;  %3707 = vst.msk [vmem:[#allocation5 + $0x120] sm:$0xff] %vm3688_vm5, %v3629_v31  ;;  %v5022_v1 = vrot.slane %v5021_v35, 1  ;;  %v4995_v9 = vmax.f32 %v4993_v59, %v4994_v62  ;;  %v5002_v52 = vmax.f32 %v5000_v42, %v5001_v11  ;;  %v5009_v23 = vmax.f32 %v5007_v37, %v5008_v14 }
 0x3b9   : > { %3579 = vst.msk [vmem:[#allocation5 + $0x130] sm:$0xff] %vm3559_vm4, %v3502_v22  ;;  %v5016_v49 = vmax.f32 %v5014_v57, %v5015_v48  ;;  %v5036_v18 = vrot.slane %v5035_v47, 1  ;;  %v5030_v22 = vmax.f32 %v5028_v28, %v5029_v55  ;;  %v3876_v40 = vpack.c.bf16 %v3834_v15, %v3832_v26 }
 0x3ba   : > { %3646 = vrot.lane.b32.xlu1 %v12851_v13, %s10113_s29  ;;  %v4054_v63 = vpop.f32.mrb[4].mxu1  ;;  %2756 = vrot.lane.b32.xlu0 %v12663_v54, %s10106_s15  ;;  %v12995_v59 = vsel %vm15159_vm2, %v3057_v58, %v3058_v51  ;;  %v12998_v42 = vsel %vm2330_vm12, %v4988_v41, -inf  ;;  %v5023_v37 = vmax.f32 %v5021_v35, %v5022_v1  ;;  %v13005_v57 = vsel %vm15159_vm2, %v3058_v51, %v3060_v50 }
 0x3bb   : > { %v4056_v60 = vpop.f32.mrb[5].mxu1  ;;  %v4055_v44 = vadd.f32 %v4054_v63, %v12903_v43  ;;  %v2741_v53 = vpop.permute.xlu0 %2740  ;;  %v13008_v28 = vsel %vm2330_vm12, %v4995_v9, -inf  ;;  %v13011_v63 = vsel %vm2330_vm12, %v5002_v52, -inf  ;;  %v13014_v12 = vsel %vm2330_vm12, %v5009_v23, -inf }
 0x3bc   : > { %v3631_v25 = vpop.permute.xlu1 %3630  ;;  %v4057_v2 = vpop.f32.mrb[6].mxu1  ;;  %2817 = vst.msk [vmem:[#allocation5 + $0x140] sm:$0xff] %vm2796_vm13, %v2741_v53  ;;  %v13019_v62 = vmax.f32 %v5035_v47, %v5036_v18 }
 0x3bd   : > { %3708 = vst.msk [vmem:[#allocation5 + $0x130] sm:$0xff] %vm3688_vm5, %v3631_v25  ;;  %v4058_v34 = vadd.f32 %v4057_v2, %v12903_v43  ;;  %v4059_v45 = vpop.f32.mrb[7].mxu1  ;;  %v4175_v54 = vmax.f32 %v4055_v44, 0.0  ;;  %v13026_v25 = vsel %vm2330_vm12, %v5030_v22, -inf }
 0x3be   : > { %2758 = vrot.lane.b32.xlu1 %v12671_v24, %s10106_s15  ;;  %2981 = vrot.lane.b32.xlu0 %v12701_v36, %s10108_s12 }
 0x3bf   : > { %v4176_v32 = vmax.f32 %v4058_v34, 0.0  ;;  %v4211_v61 = vmul.f32 %v12911_v19, %v4175_v54  ;;  %v2966_v24 = vpop.permute.xlu0 %2965  ;;  %v3827_v48 = vld [vmem:[#allocation5 + $0x120] sm:$0xff]  ;;  %v13031_v34 = vsel %vm2330_vm12, %v5023_v37, -inf }
 0x3c0   : > { %v2743_v5 = vpop.permute.xlu1 %2742  ;;  %3042 = vst.msk [vmem:[#allocation5 + $0x140] sm:$0xff] %vm3021_vm14, %v2966_v24 }
 0x3c1   : > { %v4212_v31 = vmul.f32 %v12911_v19, %v4176_v32  ;;  %2818 = vst.msk [vmem:[#allocation5 + $0x150] sm:$0xff] %vm2796_vm13, %v2743_v5  ;;  %v4247_v36 = vadd.f32 %v12916_v20, %v4211_v61 }
 0x3c2   : > { %2983 = vrot.lane.b32.xlu1 %v12704_v3, %s10108_s12  ;;  %3118 = vrot.lane.b32.xlu0 %v12859_v30, %s10109_s16  ;;  %v13022_v3 = vsel %vm2330_vm12, %v5016_v49, -inf }
 0x3c3   : > { %v4248_v35 = vadd.f32 %v12916_v20, %v4212_v31  ;;  %v4343_v11 = vcombine.high %v4247_v36, %v4247_v36  ;;  %v4350_v14 = vrot.slane %v4247_v36, %v12924_v56  ;;  %v3103_v30 = vpop.permute.xlu0 %3102 }
 0x3c4   : > { %v2968_v60 = vpop.permute.xlu1 %2967  ;;  %v3829_v44 = vld [vmem:[#allocation5 + $0x130] sm:$0xff]  ;;  %3179 = vst.msk [vmem:[#allocation5 + $0x140] sm:$0xff] %vm3158_vm15, %v3103_v30 }
 0x3c5   : > { %v4360_v2 = vcombine.high %v4248_v35, %v4248_v35  ;;  %v4367_v55 = vrot.slane %v4248_v35, %v12924_v56  ;;  %3043 = vst.msk [vmem:[#allocation5 + $0x150] sm:$0xff] %vm3021_vm14, %v2968_v60  ;;  %v3873_v47 = vpack.c.bf16 %v3829_v44, %v3827_v48  ;;  %v4357_v53 = vrot.slane %v4343_v11, %v12924_v56 }
 0x3c6   : > { %v4358_v45 = vcombine.high %v4350_v14, %v4350_v14  ;;  %v5038_v58 = vsel %vm4981_vm6, %v4350_v14, -inf  ;;  %3120 = vrot.lane.b32.xlu1 %v12878_v46, %s10109_s16  ;;  %3247 = vrot.lane.b32.xlu0 %v12845_v21, %s10110_s22 }
 0x3c7   : > { %v5039_v51 = vrot.slane %v5038_v58, 4  ;;  %v4374_v41 = vrot.slane %v4360_v2, %v12924_v56  ;;  %v4375_v1 = vcombine.high %v4367_v55, %v4367_v55  ;;  %v5066_v54 = vsel %vm4981_vm6, %v4367_v55, -inf  ;;  %4117 = vmatmul.mubr.bf16.gmra.mrb[36].mxu1 %v3873_v47  ;;  %v3232_v18 = vpop.permute.xlu0 %3231 }
 0x3c8   : > { %v4359_v26 = vcombine.high %v4357_v53, %v4357_v53  ;;  %v5045_v15 = vsel %vm4981_vm6, %v4358_v45, -inf  ;;  %v5052_v50 = vsel %vm4981_vm6, %v4357_v53, -inf  ;;  %v5067_v9 = vrot.slane %v5066_v54, 4  ;;  %v3105_v52 = vpop.permute.xlu1 %3104  ;;  %9880 = vmatprep.mubr.msk.bf16.mxu1 %vm2330_vm12, %v3876_v40  ;;  %3308 = vst.msk [vmem:[#allocation5 + $0x140] sm:$0xff] %vm3287_vm0, %v3232_v18 }
 0x3c9   : > { %v5040_v46 = vmax.f32 %v5038_v58, %v5039_v51  ;;  %v5046_v23 = vrot.slane %v5045_v15, 4  ;;  %v5053_v32 = vrot.slane %v5052_v50, 4  ;;  %v4376_v49 = vcombine.high %v4374_v41, %v4374_v41  ;;  %3180 = vst.msk [vmem:[#allocation5 + $0x150] sm:$0xff] %vm3158_vm15, %v3105_v52 }
 0x3ca   : > { %v5059_v61 = vsel %vm4981_vm6, %v4359_v26, -inf  ;;  %v5068_v5 = vmax.f32 %v5066_v54, %v5067_v9  ;;  %v5073_v22 = vsel %vm4981_vm6, %v4375_v1, -inf  ;;  %v5080_v31 = vsel %vm4981_vm6, %v4374_v41, -inf  ;;  %3249 = vrot.lane.b32.xlu1 %v12851_v13, %s10110_s22  ;;  %3382 = vrot.lane.b32.xlu0 %v12881_v27, %s10111_s25 }
 0x3cb   : > { %v5041_v24 = vrot.slane %v5040_v46, 2  ;;  %v5047_v40 = vmax.f32 %v5045_v15, %v5046_v23  ;;  %v5054_v37 = vmax.f32 %v5052_v50, %v5053_v32  ;;  %v5060_v36 = vrot.slane %v5059_v61, 4 }
 0x3cc   : > { %v5069_v35 = vrot.slane %v5068_v5, 2  ;;  %v5074_v11 = vrot.slane %v5073_v22, 4  ;;  %v5081_v14 = vrot.slane %v5080_v31, 4  ;;  %v5087_v60 = vsel %vm4981_vm6, %v4376_v49, -inf  ;;  %v3234_v48 = vpop.permute.xlu1 %3233  ;;  %v3367_v47 = vpop.permute.xlu0 %3366 }
 0x3cd   : > { %v5042_v44 = vmax.f32 %v5040_v46, %v5041_v24  ;;  %v5048_v2 = vrot.slane %v5047_v40, 2  ;;  %v5055_v55 = vrot.slane %v5054_v37, 2  ;;  %v5061_v30 = vmax.f32 %v5059_v61, %v5060_v36  ;;  %3309 = vst.msk [vmem:[#allocation5 + $0x150] sm:$0xff] %vm3287_vm0, %v3234_v48 }
 0x3ce   : > { %v5070_v53 = vmax.f32 %v5068_v5, %v5069_v35  ;;  %v5075_v45 = vmax.f32 %v5073_v22, %v5074_v11  ;;  %v5082_v58 = vmax.f32 %v5080_v31, %v5081_v14  ;;  %v5088_v51 = vrot.slane %v5087_v60, 4  ;;  %3443 = vst.msk [vmem:[#allocation5 + $0x140] sm:$0xff] %vm3422_vm3, %v3367_v47  ;;  %3384 = vrot.lane.b32.xlu1 %v12884_v17, %s10111_s25 }
 0x3cf   : > { %v5043_v41 = vrot.slane %v5042_v44, 1  ;;  %v5049_v1 = vmax.f32 %v5047_v40, %v5048_v2  ;;  %v5056_v54 = vmax.f32 %v5054_v37, %v5055_v55  ;;  %v5062_v26 = vrot.slane %v5061_v30, 2  ;;  %3519 = vrot.lane.b32.xlu0 %v12995_v59, %s10112_s28 }
 0x3d0   : > { %v5071_v15 = vrot.slane %v5070_v53, 1  ;;  %v5076_v50 = vrot.slane %v5075_v45, 2  ;;  %v5083_v9 = vrot.slane %v5082_v58, 2  ;;  %v5089_v52 = vmax.f32 %v5087_v60, %v5088_v51  ;;  %v3369_v46 = vpop.permute.xlu1 %3368  ;;  %v3504_v61 = vpop.permute.xlu0 %3503 }
 0x3d1   : > { %v5044_v23 = vmax.f32 %v5042_v44, %v5043_v41  ;;  %v5050_v32 = vrot.slane %v5049_v1, 1  ;;  %v5057_v49 = vrot.slane %v5056_v54, 1  ;;  %v5063_v18 = vmax.f32 %v5061_v30, %v5062_v26  ;;  %3444 = vst.msk [vmem:[#allocation5 + $0x150] sm:$0xff] %vm3422_vm3, %v3369_v46 }
 0x3d2   : > { %v5072_v5 = vmax.f32 %v5070_v53, %v5071_v15  ;;  %v5077_v22 = vmax.f32 %v5075_v45, %v5076_v50  ;;  %v5084_v31 = vmax.f32 %v5082_v58, %v5083_v9  ;;  %v5090_v24 = vrot.slane %v5089_v52, 2  ;;  %3580 = vst.msk [vmem:[#allocation5 + $0x140] sm:$0xff] %vm3559_vm4, %v3504_v61  ;;  %3521 = vrot.lane.b32.xlu1 %v13005_v57, %s10112_s28 }
 0x3d3   : > { %v5051_v40 = vmax.f32 %v5049_v1, %v5050_v32  ;;  %v5058_v37 = vmax.f32 %v5056_v54, %v5057_v49  ;;  %v5064_v36 = vrot.slane %v5063_v18, 1  ;;  %v5879_v35 = vsel %vm2330_vm12, %v5044_v23, -inf  ;;  %3648 = vrot.lane.b32.xlu0 %v12841_v29, %s10113_s29 }
 0x3d4   : > { %v5880_v11 = vmax.f32 %v12998_v42, %v5879_v35  ;;  %v5078_v14 = vrot.slane %v5077_v22, 1  ;;  %v5085_v60 = vrot.slane %v5084_v31, 1  ;;  %v5091_v48 = vmax.f32 %v5089_v52, %v5090_v24  ;;  %v3506_v44 = vpop.permute.xlu1 %3505  ;;  %v3633_v53 = vpop.permute.xlu0 %3632 }
 0x3d5   : > { %v5065_v2 = vmax.f32 %v5063_v18, %v5064_v36  ;;  %v5882_v55 = vsel %vm2330_vm12, %v5051_v40, -inf  ;;  %v5885_v30 = vsel %vm2330_vm12, %v5058_v37, -inf  ;;  %v5891_v47 = vsel %vm2330_vm12, %v5072_v5, -inf  ;;  %3581 = vst.msk [vmem:[#allocation5 + $0x150] sm:$0xff] %vm3559_vm4, %v3506_v44  ;;  %v3838_v44 = vld [vmem:[#allocation5 + $0x178] sm:$0xff] }
 0x3d6   : > { %v5883_v45 = vmax.f32 %v13008_v28, %v5882_v55  ;;  %v5886_v58 = vmax.f32 %v13011_v63, %v5885_v30  ;;  %v5079_v51 = vmax.f32 %v5077_v22, %v5078_v14  ;;  %v5086_v42 = vmax.f32 %v5084_v31, %v5085_v60  ;;  %3709 = vst.msk [vmem:[#allocation5 + $0x140] sm:$0xff] %vm3688_vm5, %v3633_v53  ;;  %v4062_v41 = vpop.f32.mrb[8].mxu1 }
 0x3d7   : > { %3650 = vrot.lane.b32.xlu1 %v12848_v4, %s10113_s29  ;;  %v5888_v1 = vsel %vm2330_vm12, %v5065_v2, -inf  ;;  %v5092_v54 = vrot.slane %v5091_v48, 1  ;;  %v5892_v26 = vmax.f32 %v13022_v3, %v5891_v47  ;;  %v4063_v15 = vadd.f32 %v4062_v41, %v12903_v43  ;;  %2760 = vrot.lane.b32.xlu0 %v12845_v21, %s10106_s15  ;;  %v4064_v28 = vpop.f32.mrb[9].mxu1 }
 0x3d8   : > { %v5889_v63 = vmax.f32 %v13014_v12, %v5888_v1  ;;  %v6165_v50 = vsel %vm15156_vm7, %v5883_v45, %v5880_v11  ;;  %v5894_v9 = vsel %vm2330_vm12, %v5079_v51, -inf  ;;  %v5897_v52 = vsel %vm2330_vm12, %v5086_v42, -inf  ;;  %v3635_v46 = vpop.permute.xlu1 %3634  ;;  %v4065_v23 = vpop.f32.mrb[10].mxu1  ;;  %v2504_v11 = vld [vmem:[#allocation3 + $0x220] sm:$0xff] }
 0x3d9   : > { %v6167_v32 = vsel %vm15157_vm8, %v5886_v58, %v6165_v50  ;;  %v5093_v49 = vmax.f32 %v5091_v48, %v5092_v54  ;;  %v5895_v3 = vmax.f32 %v13031_v34, %v5894_v9  ;;  %v5898_v18 = vmax.f32 %v13026_v25, %v5897_v52  ;;  %3710 = vst.msk [vmem:[#allocation5 + $0x150] sm:$0xff] %vm3688_vm5, %v3635_v46  ;;  %v2745_v21 = vpop.permute.xlu0 %2744  ;;  %v4067_v61 = vpop.f32.mrb[11].mxu1 }
 0x3da   : > { %v6169_v12 = vsel %vm6168_vm9, %v5889_v63, %v6167_v32  ;;  %vm6174_vm7 = vcmask 1046534   ;;  %v4177_v5 = vmax.f32 %v4063_v15, 0.0  ;;  %v4066_v22 = vadd.f32 %v4065_v23, %v12903_v43  ;;  %2819 = vst.msk [vmem:[#allocation5 + $0x160] sm:$0xff] %vm2796_vm13, %v2745_v21 }
 0x3db   : > { %2762 = vrot.lane.b32.xlu1 %v12851_v13, %s10106_s15  ;;  %v5899_v34 = vsel %vm2330_vm12, %v13019_v62, -inf  ;;  %v5900_v25 = vsel %vm2330_vm12, %v5093_v49, -inf  ;;  %v6171_v31 = vsel %vm6170_vm10, %v5892_v26, %v6169_v12  ;;  %vm6176_vm8 = vcmask 1047559   ;;  %2985 = vrot.lane.b32.xlu0 %v12881_v27, %s10108_s12  ;;  %v3836_v27 = vld [vmem:[#allocation5 + $0x168] sm:$0xff] }
 0x3dc   : > { %v5901_v24 = vmax.f32 %v5899_v34, %v5900_v25  ;;  %v6173_v40 = vsel %vm6172_vm11, %v5895_v3, %v6171_v31  ;;  %v4213_v37 = vmul.f32 %v12911_v19, %v4177_v5  ;;  %v4178_v36 = vmax.f32 %v4066_v22, 0.0  ;;  %v2747_v35 = vpop.permute.xlu1 %2746  ;;  %v10087_v25 = vld [vmem:[#allocation3 + $0x230] sm:$0xff] }
 0x3dd   : > { %v6175_v13 = vsel %vm6174_vm7, %v5898_v18, %v6173_v40  ;;  %2820 = vst.msk [vmem:[#allocation5 + $0x170] sm:$0xff] %vm2796_vm13, %v2747_v35  ;;  %v2970_v62 = vpop.permute.xlu0 %2969  ;;  %v3458_v2 = vrot.slane %v2504_v11, 7  ;;  %v3459_v55 = vrot.slane %v12772_v38, 7  ;;  %v3831_v58 = vld [vmem:[#allocation5 + $0x140] sm:$0xff]  ;;  %v3878_v41 = vpack.c.bf16 %v3838_v44, %v3836_v27 }
 0x3de   : > { %v6177_v14 = vsel %vm6176_vm8, %v5901_v24, %v6175_v13  ;;  %v4249_v60 = vadd.f32 %v12916_v20, %v4213_v37  ;;  %v4214_v48 = vmul.f32 %v12911_v19, %v4178_v36  ;;  %3044 = vst.msk [vmem:[#allocation5 + $0x160] sm:$0xff] %vm3021_vm14, %v2970_v62  ;;  %v3461_v31 = vrot.slane %v10087_v25, 7 }
 0x3df   : > { %2987 = vrot.lane.b32.xlu1 %v12884_v17, %s10108_s12  ;;  %6236 = vst.msk [vmem:[#allocation4 + $0x20] sm:$0xff] %vm2330_vm12, %v6177_v14  ;;  %3122 = vrot.lane.b32.xlu0 %v12995_v59, %s10109_s16  ;;  %v3460_v63 = vsel %vm15159_vm2, %v3458_v2, %v3459_v55 }
 0x3e0   : > { %v4377_v30 = vcombine.high %v4249_v60, %v4249_v60  ;;  %v4384_v47 = vrot.slane %v4249_v60, %v12924_v56  ;;  %v4250_v53 = vadd.f32 %v12916_v20, %v4214_v48  ;;  %v2972_v45 = vpop.permute.xlu1 %2971  ;;  %v3833_v51 = vld [vmem:[#allocation5 + $0x150] sm:$0xff] }
 0x3e1   : > { %3045 = vst.msk [vmem:[#allocation5 + $0x170] sm:$0xff] %vm3021_vm14, %v2972_v45  ;;  %v3107_v17 = vpop.permute.xlu0 %3106  ;;  %v3875_v42 = vpack.c.bf16 %v3833_v51, %v3831_v58 }
 0x3e2   : > { %v4391_v1 = vrot.slane %v4377_v30, %v12924_v56  ;;  %v4392_v54 = vcombine.high %v4384_v47, %v4384_v47  ;;  %v5094_v59 = vsel %vm4981_vm6, %v4384_v47, -inf  ;;  %v4394_v26 = vcombine.high %v4250_v53, %v4250_v53  ;;  %3181 = vst.msk [vmem:[#allocation5 + $0x160] sm:$0xff] %vm3158_vm15, %v3107_v17  ;;  %v6246_v47 = vld [vmem:[#allocation4 + $0x10] sm:$0xff] }
 0x3e3   : > { %3124 = vrot.lane.b32.xlu1 %v13005_v57, %s10109_s16  ;;  %v5095_v15 = vrot.slane %v5094_v59, 4  ;;  %v4401_v28 = vrot.slane %v4250_v53, %v12924_v56  ;;  %3251 = vrot.lane.b32.xlu0 %v12841_v29, %s10110_s22  ;;  %v3462_v30 = vsel %vm15159_vm2, %v3459_v55, %v3461_v31  ;;  %v6371_v55 = vrot.slane %v6246_v47, 1 }
 0x3e4   : > { %4125 = vmatmul.mubr.bf16.gmra.mrb[40].mxu1 %v3875_v42  ;;  %v4393_v50 = vcombine.high %v4391_v1, %v4391_v1  ;;  %v5101_v9 = vsel %vm4981_vm6, %v4392_v54, -inf  ;;  %v5108_v52 = vsel %vm4981_vm6, %v4391_v1, -inf  ;;  %v4408_v46 = vrot.slane %v4394_v26, %v12924_v56  ;;  %v3109_v23 = vpop.permute.xlu1 %3108  ;;  %v6247_v42 = vld [vmem:[#allocation4 + $0x18] sm:$0xff]  ;;  %v13161_v26 = vld [vmem:[#allocation4 + $0x28] sm:$0xff] }
 0x3e5   : > { %9881 = vmatprep.mubr.msk.bf16.mxu1 %vm2330_vm12, %v3878_v41  ;;  %v5096_v57 = vmax.f32 %v5094_v59, %v5095_v15  ;;  %v5102_v32 = vrot.slane %v5101_v9, 4  ;;  %v5109_v49 = vrot.slane %v5108_v52, 4  ;;  %v4409_v3 = vcombine.high %v4401_v28, %v4401_v28  ;;  %3182 = vst.msk [vmem:[#allocation5 + $0x170] sm:$0xff] %vm3158_vm15, %v3109_v23  ;;  %v3236_v29 = vpop.permute.xlu0 %3235 }
 0x3e6   : > { %v5115_v18 = vsel %vm4981_vm6, %v4393_v50, -inf  ;;  %v4410_v21 = vcombine.high %v4408_v46, %v4408_v46  ;;  %v5122_v61 = vsel %vm4981_vm6, %v4401_v28, -inf  ;;  %v5136_v12 = vsel %vm4981_vm6, %v4408_v46, -inf  ;;  %3310 = vst.msk [vmem:[#allocation5 + $0x160] sm:$0xff] %vm3287_vm0, %v3236_v29  ;;  %v13159_v38 = vld [vmem:[#allocation4 + $0x20] sm:$0xff]  ;;  %v10088_v28 = vld [vmem:[#allocation3 + $0x228] sm:$0xff] }
 0x3e7   : > { %3253 = vrot.lane.b32.xlu1 %v12848_v4, %s10110_s22  ;;  %v5103_v5 = vmax.f32 %v5101_v9, %v5102_v32  ;;  %v5110_v22 = vmax.f32 %v5108_v52, %v5109_v49  ;;  %v5116_v34 = vrot.slane %v5115_v18, 4  ;;  %3386 = vrot.lane.b32.xlu0 %v12869_v39, %s10111_s25  ;;  %v5123_v24 = vrot.slane %v5122_v61, 4  ;;  %v13149_v39 = vld [vmem:[#allocation4 + $0x8] sm:$0xff] }
 0x3e8   : > { %v5129_v40 = vsel %vm4981_vm6, %v4409_v3, -inf  ;;  %v5137_v37 = vrot.slane %v5136_v12, 4  ;;  %v5143_v36 = vsel %vm4981_vm6, %v4410_v21, -inf  ;;  %v3238_v35 = vpop.permute.xlu1 %3237  ;;  %v5097_v11 = vrot.slane %v5096_v57, 2 }
 0x3e9   : > { %v5104_v13 = vrot.slane %v5103_v5, 2  ;;  %v5117_v62 = vmax.f32 %v5115_v18, %v5116_v34  ;;  %3311 = vst.msk [vmem:[#allocation5 + $0x170] sm:$0xff] %vm3287_vm0, %v3238_v35  ;;  %v3371_v4 = vpop.permute.xlu0 %3370  ;;  %v5124_v14 = vmax.f32 %v5122_v61, %v5123_v24  ;;  %v5130_v60 = vrot.slane %v5129_v40, 4 }
 0x3ea   : > { %v5138_v48 = vmax.f32 %v5136_v12, %v5137_v37  ;;  %v5144_v27 = vrot.slane %v5143_v36, 4  ;;  %3445 = vst.msk [vmem:[#allocation5 + $0x160] sm:$0xff] %vm3422_vm3, %v3371_v4  ;;  %v5111_v44 = vrot.slane %v5110_v22, 2  ;;  %v6370_v41 = vrot.slane %v13149_v39, 1 }
 0x3eb   : > { %3388 = vrot.lane.b32.xlu1 %v12872_v33, %s10111_s25  ;;  %v5118_v2 = vrot.slane %v5117_v62, 2  ;;  %3523 = vrot.lane.b32.xlu0 %v3460_v63, %s10112_s28  ;;  %v5125_v53 = vrot.slane %v5124_v14, 2  ;;  %v5131_v45 = vmax.f32 %v5129_v40, %v5130_v60  ;;  %v5098_v1 = vmax.f32 %v5096_v57, %v5097_v11  ;;  %v6244_v11 = vld [vmem:[#allocation4] sm:$0xff] }
 0x3ec   : > { %v5139_v58 = vrot.slane %v5138_v48, 2  ;;  %v5145_v51 = vmax.f32 %v5143_v36, %v5144_v27  ;;  %v3373_v17 = vpop.permute.xlu1 %3372  ;;  %v5105_v54 = vmax.f32 %v5103_v5, %v5104_v13  ;;  %v5112_v15 = vmax.f32 %v5110_v22, %v5111_v44 }
 0x3ed   : > { %3446 = vst.msk [vmem:[#allocation5 + $0x170] sm:$0xff] %vm3422_vm3, %v3373_v17  ;;  %v3508_v33 = vpop.permute.xlu0 %3507  ;;  %v5132_v59 = vrot.slane %v5131_v45, 2  ;;  %v6293_v63 = vrot.slane %v6247_v42, 7  ;;  %v5119_v50 = vmax.f32 %v5117_v62, %v5118_v2  ;;  %v5126_v9 = vmax.f32 %v5124_v14, %v5125_v53  ;;  %v3840_v53 = vld [vmem:[#allocation5 + $0x188] sm:$0xff] }
 0x3ee   : > { %3582 = vst.msk [vmem:[#allocation5 + $0x160] sm:$0xff] %vm3559_vm4, %v3508_v33  ;;  %v5140_v52 = vmax.f32 %v5138_v48, %v5139_v58  ;;  %v5146_v46 = vrot.slane %v5145_v51, 2  ;;  %v6294_v32 = vrot.slane %v13159_v38, 7  ;;  %v6374_v49 = vrot.slane %v13161_v26, 1 }
 0x3ef   : > { %3525 = vrot.lane.b32.xlu1 %v3462_v30, %s10112_s28  ;;  %3652 = vrot.lane.b32.xlu0 %v10088_v28, %s10113_s29  ;;  %v5099_v3 = vrot.slane %v5098_v1, 1  ;;  %v5106_v29 = vrot.slane %v5105_v54, 1  ;;  %v5133_v18 = vmax.f32 %v5131_v45, %v5132_v59  ;;  %v6372_v61 = vsel %vm15158_vm1, %v6370_v41, %v6371_v55  ;;  %v3842_v45 = vld [vmem:[#allocation5 + $0x198] sm:$0xff] }
 0x3f0   : > { %v3510_v23 = vpop.permute.xlu1 %3509  ;;  %v5113_v12 = vrot.slane %v5112_v15, 1  ;;  %v6291_v22 = vrot.slane %v13149_v39, 7  ;;  %v6295_v31 = vsel %vm15159_vm2, %v6293_v63, %v6294_v32  ;;  %v5120_v24 = vrot.slane %v5119_v50, 1 }
 0x3f1   : > { %3583 = vst.msk [vmem:[#allocation5 + $0x170] sm:$0xff] %vm3559_vm4, %v3510_v23  ;;  %v3637_v57 = vpop.permute.xlu0 %3636  ;;  %v5127_v40 = vrot.slane %v5126_v9, 1  ;;  %v5141_v37 = vrot.slane %v5140_v52, 1  ;;  %v5147_v36 = vmax.f32 %v5145_v51, %v5146_v46  ;;  %v6373_v60 = vrot.slane %v13159_v38, 1 }
 0x3f2   : > { %3711 = vst.msk [vmem:[#allocation5 + $0x160] sm:$0xff] %vm3688_vm5, %v3637_v57  ;;  %v4070_v21 = vpop.f32.mrb[12].mxu1  ;;  %v6290_v48 = vrot.slane %v6244_v11, 7  ;;  %v5100_v27 = vmax.f32 %v5098_v1, %v5099_v3  ;;  %v5134_v44 = vrot.slane %v5133_v18, 1  ;;  %v5114_v2 = vmax.f32 %v5112_v15, %v5113_v12 }
 0x3f3   : > { %3654 = vrot.lane.b32.xlu1 %v10087_v25, %s10113_s29  ;;  %v4071_v5 = vadd.f32 %v4070_v21, %v12903_v43  ;;  %6330 = vrot.lane.b32.xlu0 %v13149_v39, %s10106_s15  ;;  %v4072_v34 = vpop.f32.mrb[13].mxu1  ;;  %6323 = vst.msk [vmem:[#allocation5 + $0x10] sm:$0xff] %vm2330_vm12, %v6295_v31  ;;  %v5107_v39 = vmax.f32 %v5105_v54, %v5106_v29  ;;  %v5148_v33 = vrot.slane %v5147_v36, 1 }
 0x3f4   : > { %v3639_v35 = vpop.permute.xlu1 %3638  ;;  %v4073_v25 = vpop.f32.mrb[14].mxu1  ;;  %v6292_v58 = vsel %vm15159_vm2, %v6290_v48, %v6291_v22  ;;  %v5121_v51 = vmax.f32 %v5119_v50, %v5120_v24  ;;  %v5128_v17 = vmax.f32 %v5126_v9, %v5127_v40  ;;  %v5142_v42 = vmax.f32 %v5140_v52, %v5141_v37 }
 0x3f5   : > { %v4179_v13 = vmax.f32 %v4071_v5, 0.0  ;;  %3712 = vst.msk [vmem:[#allocation5 + $0x170] sm:$0xff] %vm3688_vm5, %v3639_v35  ;;  %v4074_v62 = vadd.f32 %v4073_v25, %v12903_v43  ;;  %v2749_v4 = vpop.permute.xlu0 %2748  ;;  %v4075_v14 = vpop.f32.mrb[15].mxu1  ;;  %v6375_v55 = vsel %vm15158_vm1, %v6373_v60, %v6374_v49  ;;  %v13191_v26 = vsel %vm2330_vm12, %v5100_v27, -inf }
 0x3f6   : > { %2821 = vst.msk [vmem:[#allocation5 + $0x180] sm:$0xff] %vm2796_vm13, %v2749_v4  ;;  %v13194_v15 = vsel %vm2330_vm12, %v5107_v39, -inf  ;;  %v5135_v28 = vmax.f32 %v5133_v18, %v5134_v44  ;;  %v3880_v63 = vpack.c.bf16 %v3842_v45, %v3840_v53  ;;  %v13199_v50 = vsel %vm2330_vm12, %v5114_v2, -inf }
 0x3f7   : > { %6332 = vrot.lane.b32.xlu1 %v13159_v38, %s10106_s15  ;;  %v4215_v30 = vmul.f32 %v12911_v19, %v4179_v13  ;;  %v4180_v47 = vmax.f32 %v4074_v62, 0.0  ;;  %6394 = vrot.lane.b32.xlu0 %v6372_v61, %s10108_s12  ;;  %6322 = vst.msk [vmem:[#allocation5] sm:$0xff] %vm2330_vm12, %v6292_v58  ;;  %v13205_v23 = vsel %vm2330_vm12, %v5121_v51, -inf  ;;  %v13207_v57 = vmax.f32 %v5147_v36, %v5148_v33 }
 0x3f8   : > { %v2751_v41 = vpop.permute.xlu1 %2750  ;;  %v13210_v32 = vsel %vm2330_vm12, %v5128_v17, -inf  ;;  %v13213_v49 = vsel %vm2330_vm12, %v5142_v42, -inf  ;;  %v13219_v34 = vsel %vm2330_vm12, %v5135_v28, -inf  ;;  %vm15176_vm1 = vcmask 1041409  }
 0x3f9   : > { %v4251_v1 = vadd.f32 %v12916_v20, %v4215_v30  ;;  %v4216_v54 = vmul.f32 %v12911_v19, %v4180_v47  ;;  %2822 = vst.msk [vmem:[#allocation5 + $0x190] sm:$0xff] %vm2796_vm13, %v2751_v41  ;;  %v2974_v59 = vpop.permute.xlu0 %2973  ;;  %v3835_v22 = vld [vmem:[#allocation5 + $0x160] sm:$0xff]  ;;  %vm15177_vm2 = vcmask 1042434  }
 0x3fa   : > { %3046 = vst.msk [vmem:[#allocation5 + $0x180] sm:$0xff] %vm3021_vm14, %v2974_v59 }
 0x3fb   : > { %6396 = vrot.lane.b32.xlu1 %v6375_v55, %s10108_s12  ;;  %v4411_v9 = vcombine.high %v4251_v1, %v4251_v1  ;;  %v4418_v52 = vrot.slane %v4251_v1, %v12924_v56  ;;  %v4252_v46 = vadd.f32 %v12916_v20, %v4216_v54  ;;  %6431 = vrot.lane.b32.xlu0 %v6295_v31, %s10109_s16 }
 0x3fc   : > { %v2976_v3 = vpop.permute.xlu1 %2975  ;;  %v3837_v29 = vld [vmem:[#allocation5 + $0x170] sm:$0xff] }
 0x3fd   : > { %v4425_v18 = vrot.slane %v4411_v9, %v12924_v56  ;;  %v4426_v21 = vcombine.high %v4418_v52, %v4418_v52  ;;  %v5150_v61 = vsel %vm4981_vm6, %v4418_v52, -inf  ;;  %v4428_v12 = vcombine.high %v4252_v46, %v4252_v46  ;;  %3047 = vst.msk [vmem:[#allocation5 + $0x190] sm:$0xff] %vm3021_vm14, %v2976_v3  ;;  %v3111_v5 = vpop.permute.xlu0 %3110 }
 0x3fe   : > { %v5151_v31 = vrot.slane %v5150_v61, 4  ;;  %v4435_v24 = vrot.slane %v4252_v46, %v12924_v56  ;;  %3183 = vst.msk [vmem:[#allocation5 + $0x180] sm:$0xff] %vm3158_vm15, %v3111_v5  ;;  %v3877_v40 = vpack.c.bf16 %v3837_v29, %v3835_v22 }
 0x3ff   : > { %v4427_v37 = vcombine.high %v4425_v18, %v4425_v18  ;;  %v5157_v36 = vsel %vm4981_vm6, %v4426_v21, -inf  ;;  %v5164_v35 = vsel %vm4981_vm6, %v4425_v18, -inf  ;;  %v4442_v25 = vrot.slane %v4428_v12, %v12924_v56  ;;  %6463 = vrot.lane.b32.xlu0 %v13159_v38, %s10110_s22 }
 0x400   : > { %v5152_v11 = vmax.f32 %v5150_v61, %v5151_v31  ;;  %v5158_v13 = vrot.slane %v5157_v36, 4  ;;  %v5165_v62 = vrot.slane %v5164_v35, 4  ;;  %v4443_v4 = vcombine.high %v4435_v24, %v4435_v24  ;;  %4133 = vmatmul.mubr.bf16.gmra.mrb[44].mxu1 %v3877_v40  ;;  %v3113_v14 = vpop.permute.xlu1 %3112 }
 0x401   : > { %v5171_v60 = vsel %vm4981_vm6, %v4427_v37, -inf  ;;  %v4444_v48 = vcombine.high %v4442_v25, %v4442_v25  ;;  %v5178_v27 = vsel %vm4981_vm6, %v4435_v24, -inf  ;;  %v5192_v39 = vsel %vm4981_vm6, %v4442_v25, -inf  ;;  %3184 = vst.msk [vmem:[#allocation5 + $0x190] sm:$0xff] %vm3158_vm15, %v3113_v14  ;;  %9882 = vmatprep.mubr.msk.bf16.mxu1 %vm2330_vm12, %v3880_v63  ;;  %v3240_v44 = vpop.permute.xlu0 %3239 }
 0x402   : > { %v5153_v2 = vrot.slane %v5152_v11, 2  ;;  %v5159_v38 = vmax.f32 %v5157_v36, %v5158_v13  ;;  %v5166_v30 = vmax.f32 %v5164_v35, %v5165_v62  ;;  %v5172_v47 = vrot.slane %v5171_v60, 4  ;;  %3312 = vst.msk [vmem:[#allocation5 + $0x180] sm:$0xff] %vm3287_vm0, %v3240_v44 }
 0x403   : > { %v5179_v53 = vrot.slane %v5178_v27, 4  ;;  %v5185_v45 = vsel %vm4981_vm6, %v4443_v4, -inf  ;;  %v5193_v58 = vrot.slane %v5192_v39, 4  ;;  %v5199_v51 = vsel %vm4981_vm6, %v4444_v48, -inf  ;;  %6499 = vrot.lane.b32.xlu0 %v6375_v55, %s10111_s25 }
 0x404   : > { %v5154_v17 = vmax.f32 %v5152_v11, %v5153_v2  ;;  %v5160_v42 = vrot.slane %v5159_v38, 2  ;;  %v5167_v33 = vrot.slane %v5166_v30, 2  ;;  %v5173_v41 = vmax.f32 %v5171_v60, %v5172_v47  ;;  %v3242_v1 = vpop.permute.xlu1 %3241 }
 0x405   : > { %v5180_v54 = vmax.f32 %v5178_v27, %v5179_v53  ;;  %v5186_v59 = vrot.slane %v5185_v45, 4  ;;  %v5194_v28 = vmax.f32 %v5192_v39, %v5193_v58  ;;  %v5200_v63 = vrot.slane %v5199_v51, 4  ;;  %3313 = vst.msk [vmem:[#allocation5 + $0x190] sm:$0xff] %vm3287_vm0, %v3242_v1  ;;  %v3375_v9 = vpop.permute.xlu0 %3374 }
 0x406   : > { %v5155_v52 = vrot.slane %v5154_v17, 1  ;;  %v5161_v46 = vmax.f32 %v5159_v38, %v5160_v42  ;;  %v5168_v3 = vmax.f32 %v5166_v30, %v5167_v33  ;;  %v5174_v29 = vrot.slane %v5173_v41, 2  ;;  %3447 = vst.msk [vmem:[#allocation5 + $0x180] sm:$0xff] %vm3422_vm3, %v3375_v9 }
 0x407   : > { %v5181_v18 = vrot.slane %v5180_v54, 2  ;;  %v5187_v55 = vmax.f32 %v5185_v45, %v5186_v59  ;;  %v5195_v21 = vrot.slane %v5194_v28, 2  ;;  %v5201_v61 = vmax.f32 %v5199_v51, %v5200_v63 }
 0x408   : > { %v5156_v12 = vmax.f32 %v5154_v17, %v5155_v52  ;;  %v5162_v5 = vrot.slane %v5161_v46, 1  ;;  %v5169_v22 = vrot.slane %v5168_v3, 1  ;;  %v5175_v31 = vmax.f32 %v5173_v41, %v5174_v29  ;;  %v3377_v24 = vpop.permute.xlu1 %3376 }
 0x409   : > { %v5182_v40 = vmax.f32 %v5180_v54, %v5181_v18  ;;  %v5188_v37 = vrot.slane %v5187_v55, 2  ;;  %v5196_v36 = vmax.f32 %v5194_v28, %v5195_v21  ;;  %v5202_v35 = vrot.slane %v5201_v61, 2  ;;  %3448 = vst.msk [vmem:[#allocation5 + $0x190] sm:$0xff] %vm3422_vm3, %v3377_v24  ;;  %v3512_v25 = vpop.permute.xlu0 %3511 }
 0x40a   : > { %v5163_v11 = vmax.f32 %v5161_v46, %v5162_v5  ;;  %v5170_v13 = vmax.f32 %v5168_v3, %v5169_v22  ;;  %v5176_v62 = vrot.slane %v5175_v31, 1  ;;  %v5903_v4 = vsel %vm2330_vm12, %v5156_v12, -inf  ;;  %3584 = vst.msk [vmem:[#allocation5 + $0x180] sm:$0xff] %vm3559_vm4, %v3512_v25 }
 0x40b   : > { %v5904_v14 = vmax.f32 %v13191_v26, %v5903_v4  ;;  %v5183_v60 = vrot.slane %v5182_v40, 1  ;;  %v5189_v48 = vmax.f32 %v5187_v55, %v5188_v37  ;;  %v5197_v27 = vrot.slane %v5196_v36, 1 }
 0x40c   : > { %v5177_v39 = vmax.f32 %v5175_v31, %v5176_v62  ;;  %v5906_v44 = vsel %vm2330_vm12, %v5163_v11, -inf  ;;  %v5909_v2 = vsel %vm2330_vm12, %v5170_v13, -inf  ;;  %v5203_v38 = vmax.f32 %v5201_v61, %v5202_v35  ;;  %v3514_v30 = vpop.permute.xlu1 %3513  ;;  %v3844_v13 = vld [vmem:[#allocation5 + $0x1a8] sm:$0xff]  ;;  %v3846_v62 = vld [vmem:[#allocation5 + $0x1b8] sm:$0xff] }
 0x40d   : > { %v5907_v47 = vmax.f32 %v13194_v15, %v5906_v44  ;;  %v5910_v53 = vmax.f32 %v13199_v50, %v5909_v2  ;;  %v5184_v45 = vmax.f32 %v5182_v40, %v5183_v60  ;;  %v5190_v58 = vrot.slane %v5189_v48, 1  ;;  %3585 = vst.msk [vmem:[#allocation5 + $0x190] sm:$0xff] %vm3559_vm4, %v3514_v30  ;;  %v3641_v51 = vpop.permute.xlu0 %3640 }
 0x40e   : > { %v5923_v26 = vsel %vm2330_vm12, %v13207_v57, -inf  ;;  %v5912_v17 = vsel %vm2330_vm12, %v5177_v39, -inf  ;;  %v5198_v42 = vmax.f32 %v5196_v36, %v5197_v27  ;;  %v5204_v33 = vrot.slane %v5203_v38, 1  ;;  %3713 = vst.msk [vmem:[#allocation5 + $0x180] sm:$0xff] %vm3688_vm5, %v3641_v51  ;;  %v4078_v41 = vpop.f32.mrb[16].mxu1 }
 0x40f   : > { %v5913_v1 = vmax.f32 %v13205_v23, %v5912_v17  ;;  %v6178_v15 = vsel %vm15176_vm1, %v5907_v47, %v5904_v14  ;;  %v5191_v50 = vmax.f32 %v5189_v48, %v5190_v58  ;;  %v5915_v54 = vsel %vm2330_vm12, %v5184_v45, -inf  ;;  %v4080_v59 = vpop.f32.mrb[17].mxu1 }
 0x410   : > { %v6179_v28 = vsel %vm15177_vm2, %v5910_v53, %v6178_v15  ;;  %v5205_v63 = vmax.f32 %v5203_v38, %v5204_v33  ;;  %v5916_v57 = vmax.f32 %v13210_v32, %v5915_v54  ;;  %v5921_v9 = vsel %vm2330_vm12, %v5198_v42, -inf  ;;  %v3643_v52 = vpop.permute.xlu1 %3642  ;;  %v4081_v46 = vpop.f32.mrb[18].mxu1 }
 0x411   : > { %v5918_v3 = vsel %vm2330_vm12, %v5191_v50, -inf  ;;  %v5922_v29 = vmax.f32 %v13213_v49, %v5921_v9  ;;  %v6180_v23 = vsel %vm6168_vm9, %v5913_v1, %v6179_v28  ;;  %v4079_v18 = vadd.f32 %v4078_v41, %v12903_v43  ;;  %3714 = vst.msk [vmem:[#allocation5 + $0x190] sm:$0xff] %vm3688_vm5, %v3643_v52  ;;  %v2753_v55 = vpop.permute.xlu0 %2752  ;;  %v4083_v21 = vpop.f32.mrb[19].mxu1 }
 0x412   : > { %v5919_v61 = vmax.f32 %v13219_v34, %v5918_v3  ;;  %v5924_v32 = vsel %vm2330_vm12, %v5205_v63, -inf  ;;  %v6181_v12 = vsel %vm6170_vm10, %v5916_v57, %v6180_v23  ;;  %v4082_v5 = vadd.f32 %v4081_v46, %v12903_v43  ;;  %2823 = vst.msk [vmem:[#allocation5 + $0x1a0] sm:$0xff] %vm2796_vm13, %v2753_v55 }
 0x413   : > { %v5925_v22 = vmax.f32 %v5923_v26, %v5924_v32  ;;  %v4181_v49 = vmax.f32 %v4079_v18, 0.0  ;;  %v3882_v47 = vpack.c.bf16 %v3846_v62, %v3844_v13  ;;  %v6250_v13 = vld [vmem:[#allocation4 + $0x30] sm:$0xff]  ;;  %vm15178_vm1 = vcmask 1040384  }
 0x414   : > { %v6182_v31 = vsel %vm6172_vm11, %v5919_v61, %v6181_v12  ;;  %v4182_v24 = vmax.f32 %v4082_v5, 0.0  ;;  %v2755_v40 = vpop.permute.xlu1 %2754  ;;  %vm15179_vm2 = vcmask 1046528  }
 0x415   : > { %v6183_v37 = vsel %vm6174_vm7, %v5922_v29, %v6182_v31  ;;  %v4217_v36 = vmul.f32 %v12911_v19, %v4181_v49  ;;  %2824 = vst.msk [vmem:[#allocation5 + $0x1b0] sm:$0xff] %vm2796_vm13, %v2755_v40  ;;  %v2978_v34 = vpop.permute.xlu0 %2977  ;;  %v3839_v60 = vld [vmem:[#allocation5 + $0x180] sm:$0xff] }
 0x416   : > { %v6184_v35 = vsel %vm6176_vm8, %v5925_v22, %v6183_v37  ;;  %v4218_v25 = vmul.f32 %v12911_v19, %v4182_v24  ;;  %3048 = vst.msk [vmem:[#allocation5 + $0x1a0] sm:$0xff] %vm3021_vm14, %v2978_v34 }
 0x417   : > { %6237 = vst.msk [vmem:[#allocation4 + $0x38] sm:$0xff] %vm2330_vm12, %v6184_v35  ;;  %v4253_v11 = vadd.f32 %v12916_v20, %v4217_v36 }
 0x418   : > { %v4254_v4 = vadd.f32 %v12916_v20, %v4218_v25  ;;  %v2980_v14 = vpop.permute.xlu1 %2979  ;;  %v3841_v48 = vld [vmem:[#allocation5 + $0x190] sm:$0xff] }
 0x419   : > { %v4445_v27 = vcombine.high %v4253_v11, %v4253_v11  ;;  %v4452_v39 = vrot.slane %v4253_v11, %v12924_v56  ;;  %3049 = vst.msk [vmem:[#allocation5 + $0x1b0] sm:$0xff] %vm3021_vm14, %v2980_v14  ;;  %v3115_v44 = vpop.permute.xlu0 %3114  ;;  %v3879_v2 = vpack.c.bf16 %v3841_v48, %v3839_v60  ;;  %v6252_v14 = vld [vmem:[#allocation4 + $0x40] sm:$0xff] }
 0x41a   : > { %v4462_v38 = vcombine.high %v4254_v4, %v4254_v4  ;;  %v4469_v30 = vrot.slane %v4254_v4, %v12924_v56  ;;  %3185 = vst.msk [vmem:[#allocation5 + $0x1a0] sm:$0xff] %vm3158_vm15, %v3115_v44 }
 0x41b   : > { %v4459_v53 = vrot.slane %v4445_v27, %v12924_v56  ;;  %v4460_v45 = vcombine.high %v4452_v39, %v4452_v39  ;;  %v5206_v58 = vsel %vm4981_vm6, %v4452_v39, -inf  ;;  %4141 = vmatmul.mubr.bf16.gmra.mrb[48].mxu1 %v3879_v2  ;;  %v6296_v2 = vrot.slane %v6250_v13, 7 }
 0x41c   : > { %v5207_v51 = vrot.slane %v5206_v58, 4  ;;  %v4476_v26 = vrot.slane %v4462_v38, %v12924_v56  ;;  %v4477_v17 = vcombine.high %v4469_v30, %v4469_v30  ;;  %v5234_v42 = vsel %vm4981_vm6, %v4469_v30, -inf  ;;  %v3117_v33 = vpop.permute.xlu1 %3116  ;;  %9883 = vmatprep.mubr.msk.bf16.mxu1 %vm2330_vm12, %v3882_v47 }
 0x41d   : > { %v4461_v41 = vcombine.high %v4459_v53, %v4459_v53  ;;  %v5213_v1 = vsel %vm4981_vm6, %v4460_v45, -inf  ;;  %v5220_v15 = vsel %vm4981_vm6, %v4459_v53, -inf  ;;  %v5235_v50 = vrot.slane %v5234_v42, 4  ;;  %3186 = vst.msk [vmem:[#allocation5 + $0x1b0] sm:$0xff] %vm3158_vm15, %v3117_v33  ;;  %v3244_v54 = vpop.permute.xlu0 %3243 }
 0x41e   : > { %v5208_v59 = vmax.f32 %v5206_v58, %v5207_v51  ;;  %v5214_v28 = vrot.slane %v5213_v1, 4  ;;  %v5221_v63 = vrot.slane %v5220_v15, 4  ;;  %v4478_v57 = vcombine.high %v4476_v26, %v4476_v26  ;;  %3314 = vst.msk [vmem:[#allocation5 + $0x1a0] sm:$0xff] %vm3287_vm0, %v3244_v54  ;;  %v13299_v39 = vld [vmem:[#allocation4 + $0x38] sm:$0xff] }
 0x41f   : > { %v5227_v9 = vsel %vm4981_vm6, %v4461_v41, -inf  ;;  %v5236_v52 = vmax.f32 %v5234_v42, %v5235_v50  ;;  %v5241_v46 = vsel %vm4981_vm6, %v4477_v17, -inf  ;;  %v5248_v3 = vsel %vm4981_vm6, %v4476_v26, -inf }
 0x420   : > { %v5215_v29 = vmax.f32 %v5213_v1, %v5214_v28  ;;  %v5228_v23 = vrot.slane %v5227_v9, 4  ;;  %v3246_v18 = vpop.permute.xlu1 %3245  ;;  %v5222_v55 = vmax.f32 %v5220_v15, %v5221_v63  ;;  %v5242_v21 = vrot.slane %v5241_v46, 4 }
 0x421   : > { %v5249_v61 = vrot.slane %v5248_v3, 4  ;;  %v5255_v32 = vsel %vm4981_vm6, %v4478_v57, -inf  ;;  %3315 = vst.msk [vmem:[#allocation5 + $0x1b0] sm:$0xff] %vm3287_vm0, %v3246_v18  ;;  %v3379_v12 = vpop.permute.xlu0 %3378  ;;  %v5209_v5 = vrot.slane %v5208_v59, 2  ;;  %v5237_v49 = vrot.slane %v5236_v52, 2 }
 0x422   : > { %v5229_v22 = vmax.f32 %v5227_v9, %v5228_v23  ;;  %3449 = vst.msk [vmem:[#allocation5 + $0x1a0] sm:$0xff] %vm3422_vm3, %v3379_v12  ;;  %v5243_v31 = vmax.f32 %v5241_v46, %v5242_v21  ;;  %v5256_v40 = vrot.slane %v5255_v32, 4  ;;  %v5216_v37 = vrot.slane %v5215_v29, 2  ;;  %v3848_v12 = vld [vmem:[#allocation5 + $0x1c8] sm:$0xff] }
 0x423   : > { %v5250_v24 = vmax.f32 %v5248_v3, %v5249_v61  ;;  %v5223_v34 = vrot.slane %v5222_v55, 2  ;;  %v5210_v4 = vmax.f32 %v5208_v59, %v5209_v5  ;;  %v5238_v60 = vmax.f32 %v5236_v52, %v5237_v49  ;;  %v3850_v5 = vld [vmem:[#allocation5 + $0x1d8] sm:$0xff] }
 0x424   : > { %v3381_v36 = vpop.permute.xlu1 %3380  ;;  %v5230_v35 = vrot.slane %v5229_v22, 2  ;;  %v5244_v25 = vrot.slane %v5243_v31, 2  ;;  %v5257_v11 = vmax.f32 %v5255_v32, %v5256_v40  ;;  %v5217_v44 = vmax.f32 %v5215_v29, %v5216_v37 }
 0x425   : > { %3450 = vst.msk [vmem:[#allocation5 + $0x1b0] sm:$0xff] %vm3422_vm3, %v3381_v36  ;;  %v3516_v62 = vpop.permute.xlu0 %3515  ;;  %v5251_v48 = vrot.slane %v5250_v24, 2  ;;  %v5224_v30 = vmax.f32 %v5222_v55, %v5223_v34  ;;  %v6377_v58 = vrot.slane %v6252_v14, 1  ;;  %v5211_v51 = vrot.slane %v5210_v4, 1 }
 0x426   : > { %3586 = vst.msk [vmem:[#allocation5 + $0x1a0] sm:$0xff] %vm3559_vm4, %v3516_v62  ;;  %v5258_v27 = vrot.slane %v5257_v11, 2  ;;  %v5231_v47 = vmax.f32 %v5229_v22, %v5230_v35  ;;  %v5245_v53 = vmax.f32 %v5243_v31, %v5244_v25  ;;  %v6297_v26 = vrot.slane %v13299_v39, 7 }
 0x427   : > { %v5239_v42 = vrot.slane %v5238_v60, 1  ;;  %v5252_v33 = vmax.f32 %v5250_v24, %v5251_v48  ;;  %v6376_v1 = vrot.slane %v13299_v39, 1  ;;  %v5218_v50 = vrot.slane %v5217_v44, 1 }
 0x428   : > { %v3518_v38 = vpop.permute.xlu1 %3517  ;;  %v5259_v41 = vmax.f32 %v5257_v11, %v5258_v27  ;;  %v6298_v54 = vsel %vm15178_vm1, %v6296_v2, %v6297_v26  ;;  %v5225_v57 = vrot.slane %v5224_v30, 1  ;;  %v5232_v9 = vrot.slane %v5231_v47, 1 }
 0x429   : > { %3587 = vst.msk [vmem:[#allocation5 + $0x1b0] sm:$0xff] %vm3559_vm4, %v3518_v38  ;;  %v3645_v45 = vpop.permute.xlu0 %3644  ;;  %v5246_v52 = vrot.slane %v5245_v53, 1  ;;  %6433 = vrot.lane.b32.xlu1 %v6298_v54, %s10109_s16  ;;  %6536 = vrot.lane.b32.xlu0 %v6298_v54, %s10112_s28  ;;  %v13311_v46 = vsel %vm15179_vm2, %v6376_v1, %v6377_v58  ;;  %v5212_v55 = vmax.f32 %v5210_v4, %v5211_v51  ;;  %v5253_v61 = vrot.slane %v5252_v33, 1 }
 0x42a   : > { %3715 = vst.msk [vmem:[#allocation5 + $0x1a0] sm:$0xff] %vm3688_vm5, %v3645_v45  ;;  %v5240_v21 = vmax.f32 %v5238_v60, %v5239_v42  ;;  %v5260_v32 = vrot.slane %v5259_v41, 1  ;;  %v5219_v22 = vmax.f32 %v5217_v44, %v5218_v50  ;;  %v5226_v40 = vmax.f32 %v5224_v30, %v5225_v57 }
 0x42b   : > { %v4086_v17 = vpop.f32.mrb[20].mxu1  ;;  %6324 = vst.msk [vmem:[#allocation5 + $0x20] sm:$0xff] %vm2330_vm12, %v6298_v54  ;;  %6612 = vst.msk [vmem:[#allocation5 + $0x8] sm:$0xff] %vm2330_vm12, %v13311_v46  ;;  %v5233_v37 = vmax.f32 %v5231_v47, %v5232_v9  ;;  %v5247_v36 = vmax.f32 %v5245_v53, %v5246_v52  ;;  %v3884_v11 = vpack.c.bf16 %v3850_v5, %v3848_v12  ;;  %v13328_v13 = vsel %vm2330_vm12, %v5212_v55, -inf }
 0x42c   : > { %v4088_v15 = vpop.f32.mrb[21].mxu1  ;;  %v4087_v59 = vadd.f32 %v4086_v17, %v12903_v43  ;;  %v3647_v28 = vpop.permute.xlu1 %3646  ;;  %v5254_v62 = vmax.f32 %v5252_v33, %v5253_v61  ;;  %v5261_v4 = vmax.f32 %v5259_v41, %v5260_v32  ;;  %v13331_v14 = vsel %vm2330_vm12, %v5240_v21, -inf }
 0x42d   : > { %v4089_v63 = vpop.f32.mrb[22].mxu1  ;;  %3716 = vst.msk [vmem:[#allocation5 + $0x1b0] sm:$0xff] %vm3688_vm5, %v3647_v28  ;;  %v2757_v3 = vpop.permute.xlu0 %2756  ;;  %6465 = vrot.lane.b32.xlu1 %v13299_v39, %s10110_s22  ;;  %6568 = vrot.lane.b32.xlu0 %v13299_v39, %s10113_s29  ;;  %v13334_v60 = vsel %vm2330_vm12, %v5219_v22, -inf  ;;  %v13339_v47 = vsel %vm2330_vm12, %v5226_v40, -inf  ;;  %v13342_v53 = vsel %vm2330_vm12, %v5233_v37, -inf  ;;  %v13345_v45 = vsel %vm2330_vm12, %v5247_v36, -inf }
 0x42e   : > { %v4091_v29 = vpop.f32.mrb[23].mxu1  ;;  %v4183_v23 = vmax.f32 %v4087_v59, 0.0  ;;  %v4090_v18 = vadd.f32 %v4089_v63, %v12903_v43  ;;  %2825 = vst.msk [vmem:[#allocation5 + $0x1c0] sm:$0xff] %vm2796_vm13, %v2757_v3  ;;  %v13356_v41 = vsel %vm2330_vm12, %v5254_v62, -inf  ;;  %v13359_v1 = vsel %vm2330_vm12, %v5261_v4, -inf }
 0x42f   : > { %vm15180_vm1 = vcmask 1041409   ;;  %vm15181_vm2 = vcmask 1042434  }
 0x430   : > { %v4219_v49 = vmul.f32 %v12911_v19, %v4183_v23  ;;  %v4184_v31 = vmax.f32 %v4090_v18, 0.0  ;;  %v2759_v24 = vpop.permute.xlu1 %2758 }
 0x431   : > { %2826 = vst.msk [vmem:[#allocation5 + $0x1d0] sm:$0xff] %vm2796_vm13, %v2759_v24  ;;  %v2982_v34 = vpop.permute.xlu0 %2981  ;;  %v3843_v38 = vld [vmem:[#allocation5 + $0x1a0] sm:$0xff]  ;;  %6501 = vrot.lane.b32.xlu1 %v13311_v46, %s10111_s25  ;;  %6334 = vrot.lane.b32.xlu0 %v13299_v39, %s10106_s15 }
 0x432   : > { %v4255_v35 = vadd.f32 %v12916_v20, %v4219_v49  ;;  %v4220_v25 = vmul.f32 %v12911_v19, %v4184_v31  ;;  %3050 = vst.msk [vmem:[#allocation5 + $0x1c0] sm:$0xff] %vm3021_vm14, %v2982_v34 }
 0x434   : > { %v4479_v48 = vcombine.high %v4255_v35, %v4255_v35  ;;  %v4486_v27 = vrot.slane %v4255_v35, %v12924_v56  ;;  %v4256_v44 = vadd.f32 %v12916_v20, %v4220_v25  ;;  %v2984_v2 = vpop.permute.xlu1 %2983  ;;  %v3845_v30 = vld [vmem:[#allocation5 + $0x1b0] sm:$0xff] }
 0x435   : > { %3051 = vst.msk [vmem:[#allocation5 + $0x1d0] sm:$0xff] %vm3021_vm14, %v2984_v2  ;;  %v3119_v58 = vpop.permute.xlu0 %3118  ;;  %v3881_v51 = vpack.c.bf16 %v3845_v30, %v3843_v38  ;;  %6398 = vrot.lane.b32.xlu0 %v13311_v46, %s10108_s12 }
 0x436   : > { %v4493_v26 = vrot.slane %v4479_v48, %v12924_v56  ;;  %v4494_v17 = vcombine.high %v4486_v27, %v4486_v27  ;;  %v5262_v42 = vsel %vm4981_vm6, %v4486_v27, -inf  ;;  %v4496_v33 = vcombine.high %v4256_v44, %v4256_v44  ;;  %3187 = vst.msk [vmem:[#allocation5 + $0x1c0] sm:$0xff] %vm3158_vm15, %v3119_v58 }
 0x437   : > { %v5263_v15 = vrot.slane %v5262_v42, 4  ;;  %v4503_v39 = vrot.slane %v4256_v44, %v12924_v56  ;;  %4149 = vmatmul.mubr.bf16.gmra.mrb[52].mxu1 %v3881_v51 }
 0x438   : > { %v4495_v50 = vcombine.high %v4493_v26, %v4493_v26  ;;  %v5269_v54 = vsel %vm4981_vm6, %v4494_v17, -inf  ;;  %v5276_v59 = vsel %vm4981_vm6, %v4493_v26, -inf  ;;  %v4510_v28 = vrot.slane %v4496_v33, %v12924_v56  ;;  %v3121_v63 = vpop.permute.xlu1 %3120  ;;  %9884 = vmatprep.mubr.msk.bf16.mxu1 %vm2330_vm12, %v3884_v11 }
 0x439   : > { %v5264_v57 = vmax.f32 %v5262_v42, %v5263_v15  ;;  %v5270_v9 = vrot.slane %v5269_v54, 4  ;;  %v5277_v52 = vrot.slane %v5276_v59, 4  ;;  %v4511_v3 = vcombine.high %v4503_v39, %v4503_v39  ;;  %3188 = vst.msk [vmem:[#allocation5 + $0x1d0] sm:$0xff] %vm3158_vm15, %v3121_v63  ;;  %v3248_v29 = vpop.permute.xlu0 %3247  ;;  %v10041_v63 = vld [vmem:[%s15149_s5] sm:$0xff]  }
 0x43a   : > { %v5283_v23 = vsel %vm4981_vm6, %v4495_v50, -inf  ;;  %v4512_v18 = vcombine.high %v4510_v28, %v4510_v28  ;;  %v5290_v55 = vsel %vm4981_vm6, %v4503_v39, -inf  ;;  %v5304_v21 = vsel %vm4981_vm6, %v4510_v28, -inf  ;;  %3316 = vst.msk [vmem:[#allocation5 + $0x1c0] sm:$0xff] %vm3287_vm0, %v3248_v29  ;;  %6734 = vmatpush1.bf16.msra.mxu0 %v10041_v63 }
 0x43b   : > { %v5265_v61 = vrot.slane %v5264_v57, 2  ;;  %v5271_v32 = vmax.f32 %v5269_v54, %v5270_v9  ;;  %v5278_v12 = vmax.f32 %v5276_v59, %v5277_v52  ;;  %v5284_v5 = vrot.slane %v5283_v23, 4  ;;  %6735 = vmatprep.subr.bf16.mxu0 %v10107_v8 }
 0x43c   : > { %v5291_v22 = vrot.slane %v5290_v55, 4  ;;  %v5297_v49 = vsel %vm4981_vm6, %v4511_v3, -inf  ;;  %v5305_v46 = vrot.slane %v5304_v21, 4  ;;  %v5311_v31 = vsel %vm4981_vm6, %v4512_v18, -inf  ;;  %v3250_v24 = vpop.permute.xlu1 %3249 }
 0x43d   : > { %v5266_v40 = vmax.f32 %v5264_v57, %v5265_v61  ;;  %v5272_v37 = vrot.slane %v5271_v32, 2  ;;  %v5279_v36 = vrot.slane %v5278_v12, 2  ;;  %v5285_v34 = vmax.f32 %v5283_v23, %v5284_v5  ;;  %3317 = vst.msk [vmem:[#allocation5 + $0x1d0] sm:$0xff] %vm3287_vm0, %v3250_v24  ;;  %v3383_v35 = vpop.permute.xlu0 %3382 }
 0x43e   : > { %v5292_v25 = vmax.f32 %v5290_v55, %v5291_v22  ;;  %v5298_v11 = vrot.slane %v5297_v49, 4  ;;  %v5306_v62 = vmax.f32 %v5304_v21, %v5305_v46  ;;  %v5312_v4 = vrot.slane %v5311_v31, 4  ;;  %3451 = vst.msk [vmem:[#allocation5 + $0x1c0] sm:$0xff] %vm3422_vm3, %v3383_v35 }
 0x43f   : > { %v5267_v48 = vrot.slane %v5266_v40, 1  ;;  %v5273_v27 = vmax.f32 %v5271_v32, %v5272_v37  ;;  %v5280_v44 = vmax.f32 %v5278_v12, %v5279_v36  ;;  %v5286_v2 = vrot.slane %v5285_v34, 2 }
 0x440   : > { %v5293_v38 = vrot.slane %v5292_v25, 2  ;;  %v5299_v30 = vmax.f32 %v5297_v49, %v5298_v11  ;;  %v5307_v58 = vrot.slane %v5306_v62, 2  ;;  %v5313_v51 = vmax.f32 %v5311_v31, %v5312_v4  ;;  %v3385_v26 = vpop.permute.xlu1 %3384 }
 0x441   : > { %v5268_v17 = vmax.f32 %v5266_v40, %v5267_v48  ;;  %v5274_v42 = vrot.slane %v5273_v27, 1  ;;  %v5281_v33 = vrot.slane %v5280_v44, 1  ;;  %v5287_v15 = vmax.f32 %v5285_v34, %v5286_v2  ;;  %3452 = vst.msk [vmem:[#allocation5 + $0x1d0] sm:$0xff] %vm3422_vm3, %v3385_v26  ;;  %v3520_v39 = vpop.permute.xlu0 %3519  ;;  %v10042_v40 = vld [vmem:[%s15149_s5 + $0x8] sm:$0xff]  }
 0x442   : > { %v5294_v50 = vmax.f32 %v5292_v25, %v5293_v38  ;;  %v5300_v54 = vrot.slane %v5299_v30, 2  ;;  %v5308_v59 = vmax.f32 %v5306_v62, %v5307_v58  ;;  %v5314_v28 = vrot.slane %v5313_v51, 2  ;;  %3588 = vst.msk [vmem:[#allocation5 + $0x1c0] sm:$0xff] %vm3559_vm4, %v3520_v39  ;;  %6736 = vmatpush1.bf16.msra.mxu0 %v10042_v40 }
 0x443   : > { %v5275_v57 = vmax.f32 %v5273_v27, %v5274_v42  ;;  %v5282_v9 = vmax.f32 %v5280_v44, %v5281_v33  ;;  %v5288_v52 = vrot.slane %v5287_v15, 1  ;;  %v5927_v3 = vsel %vm2330_vm12, %v5268_v17, -inf  ;;  %6737 = vmatprep.subr.bf16.mxu0 %v10107_v8 }
 0x444   : > { %v5928_v29 = vmax.f32 %v13328_v13, %v5927_v3  ;;  %v5295_v23 = vrot.slane %v5294_v50, 1  ;;  %v5301_v18 = vmax.f32 %v5299_v30, %v5300_v54  ;;  %v5309_v55 = vrot.slane %v5308_v59, 1  ;;  %v3522_v21 = vpop.permute.xlu1 %3521 }
 0x445   : > { %v5289_v61 = vmax.f32 %v5287_v15, %v5288_v52  ;;  %v5930_v32 = vsel %vm2330_vm12, %v5275_v57, -inf  ;;  %v5933_v12 = vsel %vm2330_vm12, %v5282_v9, -inf  ;;  %v5315_v5 = vmax.f32 %v5313_v51, %v5314_v28  ;;  %3589 = vst.msk [vmem:[#allocation5 + $0x1d0] sm:$0xff] %vm3559_vm4, %v3522_v21  ;;  %v3649_v22 = vpop.permute.xlu0 %3648  ;;  %v3852_v57 = vld [vmem:[#allocation5 + $0x1e8] sm:$0xff] }
 0x446   : > { %v5931_v49 = vmax.f32 %v13334_v60, %v5930_v32  ;;  %v5934_v13 = vmax.f32 %v13339_v47, %v5933_v12  ;;  %v5296_v46 = vmax.f32 %v5294_v50, %v5295_v23  ;;  %v5302_v31 = vrot.slane %v5301_v18, 1  ;;  %3717 = vst.msk [vmem:[#allocation5 + $0x1c0] sm:$0xff] %vm3688_vm5, %v3649_v22  ;;  %v4094_v24 = vpop.f32.mrb[24].mxu1 }
 0x447   : > { %v5936_v37 = vsel %vm2330_vm12, %v5289_v61, -inf  ;;  %v5310_v36 = vmax.f32 %v5308_v59, %v5309_v55  ;;  %v5316_v34 = vrot.slane %v5315_v5, 1  ;;  %v4095_v35 = vadd.f32 %v4094_v24, %v12903_v43  ;;  %v4096_v25 = vpop.f32.mrb[25].mxu1 }
 0x448   : > { %v5937_v60 = vmax.f32 %v13342_v53, %v5936_v37  ;;  %v6185_v47 = vsel %vm15180_vm1, %v5931_v49, %v5928_v29  ;;  %v5303_v11 = vmax.f32 %v5301_v18, %v5302_v31  ;;  %v5939_v62 = vsel %vm2330_vm12, %v5296_v46, -inf  ;;  %v4097_v48 = vpop.f32.mrb[26].mxu1  ;;  %v10045_v31 = vld [vmem:[%s15149_s5 + $0x20] sm:$0xff]  }
 0x449   : > { %v3651_v4 = vpop.permute.xlu1 %3650  ;;  %v6186_v27 = vsel %vm15181_vm2, %v5934_v13, %v6185_v47  ;;  %v5317_v44 = vmax.f32 %v5315_v5, %v5316_v34  ;;  %v5940_v2 = vmax.f32 %v13331_v14, %v5939_v62  ;;  %v5945_v38 = vsel %vm2330_vm12, %v5310_v36, -inf  ;;  %v2761_v30 = vpop.permute.xlu0 %2760  ;;  %v10043_v14 = vld [vmem:[%s15149_s5 + $0x10] sm:$0xff]  }
 0x44a   : > { %3718 = vst.msk [vmem:[#allocation5 + $0x1d0] sm:$0xff] %vm3688_vm5, %v3651_v4  ;;  %v4099_v58 = vpop.f32.mrb[27].mxu1  ;;  %v5942_v53 = vsel %vm2330_vm12, %v5303_v11, -inf  ;;  %v5946_v51 = vmax.f32 %v13356_v41, %v5945_v38  ;;  %v6187_v26 = vsel %vm6168_vm9, %v5937_v60, %v6186_v27  ;;  %v4185_v17 = vmax.f32 %v4095_v35, 0.0  ;;  %6738 = vmatpush1.bf16.msra.mxu0 %v10043_v14 }
 0x44b   : > { %2827 = vst.msk [vmem:[#allocation5 + $0x1e0] sm:$0xff] %vm2796_vm13, %v2761_v30  ;;  %v5943_v42 = vmax.f32 %v13345_v45, %v5942_v53  ;;  %v5948_v33 = vsel %vm2330_vm12, %v5317_v44, -inf  ;;  %v6188_v15 = vsel %vm6170_vm10, %v5940_v2, %v6187_v26  ;;  %v4098_v39 = vadd.f32 %v4097_v48, %v12903_v43  ;;  %v3854_v45 = vld [vmem:[#allocation5 + $0x1f8] sm:$0xff]  ;;  %6739 = vmatprep.subr.bf16.mxu0 %v10107_v8 }
 0x44c   : > { %v5949_v50 = vmax.f32 %v13359_v1, %v5948_v33  ;;  %v4221_v41 = vmul.f32 %v12911_v19, %v4185_v17  ;;  %v10044_v1 = vld [vmem:[%s15149_s5 + $0x18] sm:$0xff]   ;;  %v3886_v32 = vpack.c.bf16 %v3854_v45, %v3852_v57  ;;  %v10046_v2 = vld [vmem:[%s15149_s5 + $0x28] sm:$0xff]   ;;  %vm15182_vm1 = vcmask 1040384  }
 0x44d   : > { %v2763_v54 = vpop.permute.xlu1 %2762  ;;  %v6189_v59 = vsel %vm6172_vm11, %v5943_v42, %v6188_v15  ;;  %v4186_v28 = vmax.f32 %v4098_v39, 0.0  ;;  %v2986_v63 = vpop.permute.xlu0 %2985  ;;  %v3847_v21 = vld [vmem:[#allocation5 + $0x1c0] sm:$0xff]  ;;  %vm15183_vm2 = vcmask 1046528  }
 0x44e   : > { %2828 = vst.msk [vmem:[#allocation5 + $0x1f0] sm:$0xff] %vm2796_vm13, %v2763_v54  ;;  %v6190_v9 = vsel %vm6174_vm7, %v5946_v51, %v6189_v59  ;;  %v4257_v52 = vadd.f32 %v12916_v20, %v4221_v41  ;;  %6740 = vmatpush1.bf16.msra.mxu0 %v10044_v1  ;;  %v10047_v42 = vld [vmem:[%s15149_s5 + $0x30] sm:$0xff]  }
 0x44f   : > { %3052 = vst.msk [vmem:[#allocation5 + $0x1e0] sm:$0xff] %vm3021_vm14, %v2986_v63  ;;  %v6191_v3 = vsel %vm6176_vm8, %v5949_v50, %v6190_v9  ;;  %v4222_v29 = vmul.f32 %v12911_v19, %v4186_v28  ;;  %6741 = vmatprep.subr.bf16.mxu0 %v10107_v8 }
 0x450   : > { %6238 = vst.msk [vmem:[#allocation4 + $0x50] sm:$0xff] %vm2330_vm12, %v6191_v3  ;;  %v4513_v23 = vcombine.high %v4257_v52, %v4257_v52  ;;  %v4520_v18 = vrot.slane %v4257_v52, %v12924_v56  ;;  %v6253_v3 = vld [vmem:[#allocation4 + $0x48] sm:$0xff] }
 0x451   : > { %v2988_v55 = vpop.permute.xlu1 %2987  ;;  %v3849_v61 = vld [vmem:[#allocation5 + $0x1d0] sm:$0xff]  ;;  %v4258_v12 = vadd.f32 %v12916_v20, %v4222_v29  ;;  %v3123_v5 = vpop.permute.xlu0 %3122 }
 0x452   : > { %3053 = vst.msk [vmem:[#allocation5 + $0x1f0] sm:$0xff] %vm3021_vm14, %v2988_v55  ;;  %v3883_v22 = vpack.c.bf16 %v3849_v61, %v3847_v21  ;;  %v4527_v49 = vrot.slane %v4513_v23, %v12924_v56  ;;  %v4528_v13 = vcombine.high %v4520_v18, %v4520_v18  ;;  %v5318_v46 = vsel %vm4981_vm6, %v4520_v18, -inf  ;;  %6742 = vmatpush1.bf16.msra.mxu0 %v10045_v31 }
 0x453   : > { %3189 = vst.msk [vmem:[#allocation5 + $0x1e0] sm:$0xff] %vm3158_vm15, %v3123_v5  ;;  %v5319_v24 = vrot.slane %v5318_v46, 4  ;;  %v4530_v40 = vcombine.high %v4258_v12, %v4258_v12  ;;  %v4537_v37 = vrot.slane %v4258_v12, %v12924_v56  ;;  %6743 = vmatprep.subr.bf16.mxu0 %v10107_v8 }
 0x454   : > { %4157 = vmatmul.mubr.bf16.gmra.mrb[56].mxu1 %v3883_v22  ;;  %v4529_v36 = vcombine.high %v4527_v49, %v4527_v49  ;;  %v5325_v34 = vsel %vm4981_vm6, %v4528_v13, -inf  ;;  %v5332_v35 = vsel %vm4981_vm6, %v4527_v49, -inf  ;;  %v6255_v22 = vld [vmem:[#allocation4 + $0x58] sm:$0xff] }
 0x455   : > { %v3125_v25 = vpop.permute.xlu1 %3124  ;;  %9885 = vmatprep.mubr.msk.bf16.mxu1 %vm2330_vm12, %v3886_v32  ;;  %v5320_v60 = vmax.f32 %v5318_v46, %v5319_v24  ;;  %v5326_v47 = vrot.slane %v5325_v34, 4  ;;  %v5333_v11 = vrot.slane %v5332_v35, 4  ;;  %v4544_v62 = vrot.slane %v4530_v40, %v12924_v56  ;;  %v3252_v4 = vpop.permute.xlu0 %3251  ;;  %v10048_v49 = vld [vmem:[%s15149_s5 + $0x38] sm:$0xff]  }
 0x456   : > { %3190 = vst.msk [vmem:[#allocation5 + $0x1f0] sm:$0xff] %vm3158_vm15, %v3125_v25  ;;  %v5339_v48 = vsel %vm4981_vm6, %v4529_v36, -inf  ;;  %v4545_v27 = vcombine.high %v4537_v37, %v4537_v37  ;;  %v5346_v44 = vsel %vm4981_vm6, %v4537_v37, -inf  ;;  %6744 = vmatpush1.bf16.msra.mxu0 %v10046_v2  ;;  %v6299_v46 = vrot.slane %v6253_v3, 7 }
 0x457   : > { %3318 = vst.msk [vmem:[#allocation5 + $0x1e0] sm:$0xff] %vm3287_vm0, %v3252_v4  ;;  %v5327_v38 = vmax.f32 %v5325_v34, %v5326_v47  ;;  %v5334_v30 = vmax.f32 %v5332_v35, %v5333_v11  ;;  %v5340_v58 = vrot.slane %v5339_v48, 4  ;;  %v4546_v53 = vcombine.high %v4544_v62, %v4544_v62  ;;  %6745 = vmatprep.subr.bf16.mxu0 %v10107_v8  ;;  %v13463_v5 = vld [vmem:[#allocation4 + $0x50] sm:$0xff]  ;;  %v10049_v4 = vld [vmem:[%s15149_s5 + $0x40] sm:$0xff]  }
 0x458   : > { %v5347_v51 = vrot.slane %v5346_v44, 4  ;;  %v5353_v26 = vsel %vm4981_vm6, %v4545_v27, -inf  ;;  %v5360_v17 = vsel %vm4981_vm6, %v4544_v62, -inf  ;;  %v5321_v33 = vrot.slane %v5320_v60, 2 }
 0x459   : > { %v3254_v14 = vpop.permute.xlu1 %3253  ;;  %v5328_v15 = vrot.slane %v5327_v38, 2  ;;  %v5335_v39 = vrot.slane %v5334_v30, 2  ;;  %v5341_v50 = vmax.f32 %v5339_v48, %v5340_v58  ;;  %v3387_v41 = vpop.permute.xlu0 %3386  ;;  %v5354_v59 = vrot.slane %v5353_v26, 4 }
 0x45a   : > { %3319 = vst.msk [vmem:[#allocation5 + $0x1f0] sm:$0xff] %vm3287_vm0, %v3254_v14  ;;  %v5348_v54 = vmax.f32 %v5346_v44, %v5347_v51  ;;  %v5361_v28 = vrot.slane %v5360_v17, 4  ;;  %v5367_v63 = vsel %vm4981_vm6, %v4546_v53, -inf  ;;  %6746 = vmatpush1.bf16.msra.mxu0 %v10047_v42  ;;  %v5322_v23 = vmax.f32 %v5320_v60, %v5321_v33 }
 0x45b   : > { %3453 = vst.msk [vmem:[#allocation5 + $0x1e0] sm:$0xff] %vm3422_vm3, %v3387_v41  ;;  %v5342_v57 = vrot.slane %v5341_v50, 2  ;;  %v5355_v9 = vmax.f32 %v5353_v26, %v5354_v59  ;;  %v5368_v1 = vrot.slane %v5367_v63, 4  ;;  %v5329_v18 = vmax.f32 %v5327_v38, %v5328_v15  ;;  %6747 = vmatprep.subr.bf16.mxu0 %v10107_v8 }
 0x45c   : > { %v5349_v45 = vrot.slane %v5348_v54, 2  ;;  %v5362_v52 = vmax.f32 %v5360_v17, %v5361_v28  ;;  %v5336_v21 = vmax.f32 %v5334_v30, %v5335_v39  ;;  %v6300_v34 = vrot.slane %v13463_v5, 7 }
 0x45d   : > { %v3389_v29 = vpop.permute.xlu1 %3388  ;;  %v3524_v55 = vpop.permute.xlu0 %3523  ;;  %v5356_v61 = vrot.slane %v5355_v9, 2  ;;  %v5369_v12 = vmax.f32 %v5367_v63, %v5368_v1  ;;  %v5343_v13 = vmax.f32 %v5341_v50, %v5342_v57  ;;  %v6380_v25 = vrot.slane %v6255_v22, 1 }
 0x45e   : > { %3454 = vst.msk [vmem:[#allocation5 + $0x1f0] sm:$0xff] %vm3422_vm3, %v3389_v29  ;;  %v5363_v32 = vrot.slane %v5362_v52, 2  ;;  %v5350_v31 = vmax.f32 %v5348_v54, %v5349_v45  ;;  %6748 = vmatpush1.bf16.msra.mxu0 %v10048_v49  ;;  %v5323_v60 = vrot.slane %v5322_v23, 1  ;;  %v5330_v47 = vrot.slane %v5329_v18, 1 }
 0x45f   : > { %3590 = vst.msk [vmem:[#allocation5 + $0x1e0] sm:$0xff] %vm3559_vm4, %v3524_v55  ;;  %v5357_v24 = vmax.f32 %v5355_v9, %v5356_v61  ;;  %v5370_v37 = vrot.slane %v5369_v12, 2  ;;  %6749 = vmatprep.subr.bf16.mxu0 %v10107_v8  ;;  %v5337_v11 = vrot.slane %v5336_v21, 1  ;;  %v5344_v48 = vrot.slane %v5343_v13, 1 }
 0x460   : > { %v5364_v40 = vmax.f32 %v5362_v52, %v5363_v32  ;;  %v6301_v27 = vsel %vm15182_vm1, %v6299_v46, %v6300_v34  ;;  %v6379_v44 = vrot.slane %v13463_v5, 1  ;;  %v5351_v30 = vrot.slane %v5350_v31, 1 }
 0x461   : > { %v3526_v36 = vpop.permute.xlu1 %3525  ;;  %v3653_v35 = vpop.permute.xlu0 %3652  ;;  %v5358_v8 = vrot.slane %v5357_v24, 1  ;;  %v5371_v53 = vmax.f32 %v5369_v12, %v5370_v37  ;;  %6538 = vrot.lane.b32.xlu1 %v6301_v27, %s10112_s28  ;;  %6325 = vst.msk [vmem:[#allocation5 + $0x30] sm:$0xff] %vm2330_vm12, %v6301_v27  ;;  %6435 = vrot.lane.b32.xlu0 %v6301_v27, %s10109_s16  ;;  %v5324_v39 = vmax.f32 %v5322_v23, %v5323_v60  ;;  %vm15184_vm1 = vcmask 1041409  }
 0x462   : > { %3591 = vst.msk [vmem:[#allocation5 + $0x1f0] sm:$0xff] %vm3559_vm4, %v3526_v36  ;;  %v4102_v62 = vpop.f32.mrb[28].mxu1  ;;  %v5365_v58 = vrot.slane %v5364_v40, 1  ;;  %v13483_v17 = vsel %vm15183_vm2, %v6379_v44, %v6380_v25  ;;  %6750 = vmatpush1.bf16.msra.mxu0 %v10049_v4  ;;  %v5331_v50 = vmax.f32 %v5329_v18, %v5330_v47  ;;  %v5338_v41 = vmax.f32 %v5336_v21, %v5337_v11 }
 0x463   : > { %3719 = vst.msk [vmem:[#allocation5 + $0x1e0] sm:$0xff] %vm3688_vm5, %v3653_v35  ;;  %v4103_v2 = vadd.f32 %v4102_v62, %v12903_v43  ;;  %v4104_v38 = vpop.f32.mrb[29].mxu1  ;;  %9982 = vmatprep.subr.bf16.mxu0 %v10098_v0  ;;  %v5345_v54 = vmax.f32 %v5343_v13, %v5344_v48  ;;  %v5352_v63 = vmax.f32 %v5350_v31, %v5351_v30  ;;  %v5372_v9 = vrot.slane %v5371_v53, 1  ;;  %v6621_v35 = vld [vmem:[#allocation5 + $0x8] sm:$0xff] }
 0x464   : > { %v4105_v26 = vpop.f32.mrb[30].mxu1  ;;  %6613 = vst.msk [vmem:[#allocation5 + $0x18] sm:$0xff] %vm2330_vm12, %v13483_v17  ;;  %v5359_v57 = vmax.f32 %v5357_v24, %v5358_v8  ;;  %v5366_v45 = vmax.f32 %v5364_v40, %v5365_v58  ;;  %v13500_v23 = vsel %vm2330_vm12, %v5324_v39, -inf  ;;  %v13503_v18 = vsel %vm2330_vm12, %v5331_v50, -inf }
 0x465   : > { %v3655_v51 = vpop.permute.xlu1 %3654  ;;  %v4187_v14 = vmax.f32 %v4103_v2, 0.0  ;;  %v4106_v42 = vadd.f32 %v4105_v26, %v12903_v43  ;;  %v6331_v33 = vpop.permute.xlu0 %6330  ;;  %6570 = vrot.lane.b32.xlu1 %v13463_v5, %s10113_s29  ;;  %6467 = vrot.lane.b32.xlu0 %v13463_v5, %s10110_s22  ;;  %v13506_v55 = vsel %vm2330_vm12, %v5338_v41, -inf  ;;  %v13510_v21 = vsel %vm2330_vm12, %v5345_v54, -inf }
 0x466   : > { %3720 = vst.msk [vmem:[#allocation5 + $0x1f0] sm:$0xff] %vm3688_vm5, %v3655_v51  ;;  %v4107_v15 = vpop.f32.mrb[31].mxu1  ;;  %v13514_v49 = vmax.f32 %v5371_v53, %v5372_v9  ;;  %v13517_v13 = vsel %vm2330_vm12, %v5352_v63, -inf  ;;  %v13520_v46 = vsel %vm2330_vm12, %v5359_v57, -inf  ;;  %v13523_v31 = vsel %vm2330_vm12, %v5366_v45, -inf }
 0x467   : > { %6354 = vst.msk [vmem:[#allocation5] sm:$0xff] %vm2796_vm13, %v6331_v33  ;;  %v4223_v59 = vmul.f32 %v12911_v19, %v4187_v14  ;;  %v4188_v28 = vmax.f32 %v4106_v42, 0.0  ;;  %vm15185_vm2 = vcmask 1042434  }
 0x469   : > { %v6333_v52 = vpop.permute.xlu1 %6332  ;;  %v4259_v1 = vadd.f32 %v12916_v20, %v4223_v59  ;;  %v4224_v3 = vmul.f32 %v12911_v19, %v4188_v28  ;;  %v6395_v29 = vpop.permute.xlu0 %6394  ;;  %6336 = vrot.lane.b32.xlu1 %v13463_v5, %s10106_s15  ;;  %6503 = vrot.lane.b32.xlu0 %v13483_v17, %s10111_s25 }
 0x46a   : > { %6355 = vst.msk [vmem:[#allocation5 + $0x10] sm:$0xff] %vm2796_vm13, %v6333_v52  ;;  %v3851_v22 = vld [vmem:[#allocation5 + $0x1e0] sm:$0xff] }
 0x46b   : > { %6418 = vst.msk [vmem:[#allocation5] sm:$0xff] %vm3021_vm14, %v6395_v29  ;;  %v4547_v61 = vcombine.high %v4259_v1, %v4259_v1  ;;  %v4554_v32 = vrot.slane %v4259_v1, %v12924_v56  ;;  %v4260_v12 = vadd.f32 %v12916_v20, %v4224_v3  ;;  %v6623_v25 = vld [vmem:[#allocation5 + $0x18] sm:$0xff] }
 0x46c   : > { %v6637_v62 = vpack.c.bf16 %v6623_v25, %v6621_v35 }
 0x46d   : > { %v6397_v24 = vpop.permute.xlu1 %6396  ;;  %v3853_v40 = vld [vmem:[#allocation5 + $0x1f0] sm:$0xff]  ;;  %v4561_v37 = vrot.slane %v4547_v61, %v12924_v56  ;;  %v4562_v36 = vcombine.high %v4554_v32, %v4554_v32  ;;  %v5374_v34 = vsel %vm4981_vm6, %v4554_v32, -inf  ;;  %v4564_v60 = vcombine.high %v4260_v12, %v4260_v12  ;;  %v6432_v47 = vpop.permute.xlu0 %6431  ;;  %6400 = vrot.lane.b32.xlu1 %v13483_v17, %s10108_s12 }
 0x46e   : > { %6419 = vst.msk [vmem:[#allocation5 + $0x10] sm:$0xff] %vm3021_vm14, %v6397_v24  ;;  %v5375_v11 = vrot.slane %v5374_v34, 4  ;;  %v4571_v5 = vrot.slane %v4260_v12, %v12924_v56  ;;  %v3885_v4 = vpack.c.bf16 %v3853_v40, %v3851_v22  ;;  %9895 = vmatprep.mubr.msk.bf16.mxu0 %vm2330_vm12, %v6637_v62 }
 0x46f   : > { %6455 = vst.msk [vmem:[#allocation5] sm:$0xff] %vm3158_vm15, %v6432_v47  ;;  %v4563_v48 = vcombine.high %v4561_v37, %v4561_v37  ;;  %v5381_v27 = vsel %vm4981_vm6, %v4562_v36, -inf  ;;  %v5388_v44 = vsel %vm4981_vm6, %v4561_v37, -inf  ;;  %v4578_v2 = vrot.slane %v4564_v60, %v12924_v56 }
 0x470   : > { %v5376_v38 = vmax.f32 %v5374_v34, %v5375_v11  ;;  %v5382_v30 = vrot.slane %v5381_v27, 4  ;;  %v5389_v8 = vrot.slane %v5388_v44, 4  ;;  %v4579_v58 = vcombine.high %v4571_v5, %v4571_v5  ;;  %4165 = vmatmul.mubr.bf16.gmra.mrb[60].mxu1 %v3885_v4 }
 0x471   : > { %v5395_v53 = vsel %vm4981_vm6, %v4563_v48, -inf  ;;  %v4580_v51 = vcombine.high %v4578_v2, %v4578_v2  ;;  %v5402_v26 = vsel %vm4981_vm6, %v4571_v5, -inf  ;;  %v5416_v14 = vsel %vm4981_vm6, %v4578_v2, -inf  ;;  %v6464_v42 = vpop.permute.xlu0 %6463 }
 0x472   : > { %v5377_v33 = vrot.slane %v5376_v38, 2  ;;  %v5383_v15 = vmax.f32 %v5381_v27, %v5382_v30  ;;  %v5390_v39 = vmax.f32 %v5388_v44, %v5389_v8  ;;  %v5396_v50 = vrot.slane %v5395_v53, 4  ;;  %6487 = vst.msk [vmem:[#allocation5] sm:$0xff] %vm3287_vm0, %v6464_v42 }
 0x473   : > { %v5403_v41 = vrot.slane %v5402_v26, 4  ;;  %v5409_v54 = vsel %vm4981_vm6, %v4579_v58, -inf  ;;  %v5417_v59 = vrot.slane %v5416_v14, 4  ;;  %v5423_v17 = vsel %vm4981_vm6, %v4580_v51, -inf }
 0x474   : > { %v5378_v28 = vmax.f32 %v5376_v38, %v5377_v33  ;;  %v5384_v63 = vrot.slane %v5383_v15, 2  ;;  %v5391_v57 = vrot.slane %v5390_v39, 2  ;;  %v5397_v45 = vmax.f32 %v5395_v53, %v5396_v50 }
 0x475   : > { %v5404_v9 = vmax.f32 %v5402_v26, %v5403_v41  ;;  %v5410_v52 = vrot.slane %v5409_v54, 4  ;;  %v5418_v1 = vmax.f32 %v5416_v14, %v5417_v59  ;;  %v5424_v3 = vrot.slane %v5423_v17, 4  ;;  %v6500_v29 = vpop.permute.xlu0 %6499 }
 0x476   : > { %v5379_v61 = vrot.slane %v5378_v28, 1  ;;  %v5385_v32 = vmax.f32 %v5383_v15, %v5384_v63  ;;  %v5392_v12 = vmax.f32 %v5390_v39, %v5391_v57  ;;  %v5398_v22 = vrot.slane %v5397_v45, 2  ;;  %6523 = vst.msk [vmem:[#allocation5] sm:$0xff] %vm3422_vm3, %v6500_v29 }
 0x477   : > { %v5405_v24 = vrot.slane %v5404_v9, 2  ;;  %v5411_v40 = vmax.f32 %v5409_v54, %v5410_v52  ;;  %v5419_v37 = vrot.slane %v5418_v1, 2  ;;  %v5425_v36 = vmax.f32 %v5423_v17, %v5424_v3 }
 0x478   : > { %v5380_v34 = vmax.f32 %v5378_v28, %v5379_v61  ;;  %v5386_v35 = vrot.slane %v5385_v32, 1  ;;  %v5393_v25 = vrot.slane %v5392_v12, 1  ;;  %v5399_v60 = vmax.f32 %v5397_v45, %v5398_v22 }
 0x479   : > { %v5406_v47 = vmax.f32 %v5404_v9, %v5405_v24  ;;  %v5412_v11 = vrot.slane %v5411_v40, 2  ;;  %v5420_v62 = vmax.f32 %v5418_v1, %v5419_v37  ;;  %v5426_v5 = vrot.slane %v5425_v36, 2 }
 0x47a   : > { %v5387_v4 = vmax.f32 %v5385_v32, %v5386_v35  ;;  %v5394_v48 = vmax.f32 %v5392_v12, %v5393_v25  ;;  %v5400_v27 = vrot.slane %v5399_v60, 1  ;;  %v5951_v44 = vsel %vm2330_vm12, %v5380_v34, -inf }
 0x47b   : > { %v5952_v2 = vmax.f32 %v13500_v23, %v5951_v44  ;;  %v5407_v38 = vrot.slane %v5406_v47, 1  ;;  %v5413_v30 = vmax.f32 %v5411_v40, %v5412_v11  ;;  %v5421_v8 = vrot.slane %v5420_v62, 1 }
 0x47c   : > { %v5401_v58 = vmax.f32 %v5399_v60, %v5400_v27  ;;  %v5954_v53 = vsel %vm2330_vm12, %v5387_v4, -inf  ;;  %v5957_v51 = vsel %vm2330_vm12, %v5394_v48, -inf  ;;  %v5427_v26 = vmax.f32 %v5425_v36, %v5426_v5 }
 0x47d   : > { %v5955_v14 = vmax.f32 %v13503_v18, %v5954_v53  ;;  %v5958_v42 = vmax.f32 %v13506_v55, %v5957_v51  ;;  %v5408_v33 = vmax.f32 %v5406_v47, %v5407_v38  ;;  %v5414_v15 = vrot.slane %v5413_v30, 1 }
 0x47e   : > { %v5971_v39 = vsel %vm2330_vm12, %v13514_v49, -inf  ;;  %v5960_v23 = vsel %vm2330_vm12, %v5401_v58, -inf  ;;  %v5422_v50 = vmax.f32 %v5420_v62, %v5421_v8  ;;  %v5428_v41 = vrot.slane %v5427_v26, 1 }
 0x47f   : > { %v5961_v54 = vmax.f32 %v13510_v21, %v5960_v23  ;;  %v6192_v59 = vsel %vm15184_vm1, %v5955_v14, %v5952_v2  ;;  %v5415_v17 = vmax.f32 %v5413_v30, %v5414_v15  ;;  %v5963_v28 = vsel %vm2330_vm12, %v5408_v33, -inf  ;;  %v4110_v63 = vpop.f32.mrb[32].mxu1 }
 0x480   : > { %v6193_v18 = vsel %vm15185_vm2, %v5958_v42, %v6192_v59  ;;  %v5429_v55 = vmax.f32 %v5427_v26, %v5428_v41  ;;  %v5964_v57 = vmax.f32 %v13517_v13, %v5963_v28  ;;  %v5969_v45 = vsel %vm2330_vm12, %v5422_v50, -inf  ;;  %v4112_v49 = vpop.f32.mrb[33].mxu1 }
 0x481   : > { %v5966_v9 = vsel %vm2330_vm12, %v5415_v17, -inf  ;;  %v5970_v52 = vmax.f32 %v13523_v31, %v5969_v45  ;;  %v6194_v21 = vsel %vm6168_vm9, %v5961_v54, %v6193_v18  ;;  %v4111_v1 = vadd.f32 %v4110_v63, %v12903_v43  ;;  %v4113_v3 = vpop.f32.mrb[34].mxu1 }
 0x482   : > { %v5967_v29 = vmax.f32 %v13520_v46, %v5966_v9  ;;  %v5972_v61 = vsel %vm2330_vm12, %v5429_v55, -inf  ;;  %v6195_v32 = vsel %vm6170_vm10, %v5964_v57, %v6194_v21  ;;  %v4114_v13 = vadd.f32 %v4113_v3, %v12903_v43  ;;  %v4115_v12 = vpop.f32.mrb[35].mxu1 }
 0x483   : > { %v5973_v22 = vmax.f32 %v5971_v39, %v5972_v61  ;;  %v4189_v24 = vmax.f32 %v4111_v1, 0.0  ;;  %v6258_v61 = vld [vmem:[#allocation4 + $0x70] sm:$0xff]  ;;  %vm15186_vm1 = vcmask 1040384   ;;  %vm15187_vm2 = vcmask 1046528  }
 0x484   : > { %v6196_v40 = vsel %vm6172_vm11, %v5967_v29, %v6195_v32  ;;  %v4190_v37 = vmax.f32 %v4114_v13, 0.0  ;;  %v6256_v29 = vld [vmem:[#allocation4 + $0x60] sm:$0xff] }
 0x485   : > { %v6197_v31 = vsel %vm6174_vm7, %v5970_v52, %v6196_v40  ;;  %v4225_v36 = vmul.f32 %v12911_v19, %v4189_v24 }
 0x486   : > { %v6198_v34 = vsel %vm6176_vm8, %v5973_v22, %v6197_v31  ;;  %v4226_v46 = vmul.f32 %v12911_v19, %v4190_v37  ;;  %v6302_v37 = vrot.slane %v6256_v29, 7 }
 0x487   : > { %6239 = vst.msk [vmem:[#allocation4 + $0x68] sm:$0xff] %vm2330_vm12, %v6198_v34  ;;  %v4261_v35 = vadd.f32 %v12916_v20, %v4225_v36 }
 0x488   : > { %v4262_v25 = vadd.f32 %v12916_v20, %v4226_v46  ;;  %v6383_v46 = vrot.slane %v6258_v61, 1 }
 0x489   : > { %v4581_v60 = vcombine.high %v4261_v35, %v4261_v35  ;;  %v4588_v47 = vrot.slane %v4261_v35, %v12924_v56 }
 0x48a   : > { %v4598_v11 = vcombine.high %v4262_v25, %v4262_v25  ;;  %v4605_v62 = vrot.slane %v4262_v25, %v12924_v56 }
 0x48b   : > { %v4595_v5 = vrot.slane %v4581_v60, %v12924_v56  ;;  %v4596_v4 = vcombine.high %v4588_v47, %v4588_v47  ;;  %v5430_v48 = vsel %vm4981_vm6, %v4588_v47, -inf }
 0x48c   : > { %v5431_v27 = vrot.slane %v5430_v48, 4  ;;  %v4612_v44 = vrot.slane %v4598_v11, %v12924_v56  ;;  %v4613_v2 = vcombine.high %v4605_v62, %v4605_v62  ;;  %v5458_v38 = vsel %vm4981_vm6, %v4605_v62, -inf }
 0x48d   : > { %v4597_v30 = vcombine.high %v4595_v5, %v4595_v5  ;;  %v5437_v8 = vsel %vm4981_vm6, %v4596_v4, -inf  ;;  %v5444_v58 = vsel %vm4981_vm6, %v4595_v5, -inf  ;;  %v5459_v53 = vrot.slane %v5458_v38, 4 }
 0x48e   : > { %v5438_v51 = vrot.slane %v5437_v8, 4  ;;  %v5445_v26 = vrot.slane %v5444_v58, 4  ;;  %v4614_v14 = vcombine.high %v4612_v44, %v4612_v44  ;;  %v5432_v42 = vmax.f32 %v5430_v48, %v5431_v27  ;;  %v13590_v22 = vld [vmem:[#allocation4 + $0x68] sm:$0xff] }
 0x48f   : > { %v5451_v33 = vsel %vm4981_vm6, %v4597_v30, -inf  ;;  %v5465_v15 = vsel %vm4981_vm6, %v4613_v2, -inf  ;;  %v5472_v39 = vsel %vm4981_vm6, %v4612_v44, -inf  ;;  %v5460_v41 = vmax.f32 %v5458_v38, %v5459_v53 }
 0x490   : > { %v5439_v23 = vmax.f32 %v5437_v8, %v5438_v51  ;;  %v5452_v50 = vrot.slane %v5451_v33, 4  ;;  %v5446_v54 = vmax.f32 %v5444_v58, %v5445_v26  ;;  %v5466_v59 = vrot.slane %v5465_v15, 4 }
 0x491   : > { %v5473_v17 = vrot.slane %v5472_v39, 4  ;;  %v5479_v28 = vsel %vm4981_vm6, %v4614_v14, -inf  ;;  %v5433_v18 = vrot.slane %v5432_v42, 2  ;;  %v5461_v9 = vrot.slane %v5460_v41, 2 }
 0x492   : > { %v5453_v63 = vmax.f32 %v5451_v33, %v5452_v50  ;;  %v5467_v55 = vmax.f32 %v5465_v15, %v5466_v59  ;;  %v5480_v45 = vrot.slane %v5479_v28, 4  ;;  %v5440_v49 = vrot.slane %v5439_v23, 2 }
 0x493   : > { %v5474_v57 = vmax.f32 %v5472_v39, %v5473_v17  ;;  %v5447_v52 = vrot.slane %v5446_v54, 2  ;;  %v5434_v32 = vmax.f32 %v5432_v42, %v5433_v18  ;;  %v5462_v40 = vmax.f32 %v5460_v41, %v5461_v9 }
 0x494   : > { %v5454_v21 = vrot.slane %v5453_v63, 2  ;;  %v5468_v1 = vrot.slane %v5467_v55, 2  ;;  %v5481_v3 = vmax.f32 %v5479_v28, %v5480_v45  ;;  %v5441_v24 = vmax.f32 %v5439_v23, %v5440_v49 }
 0x495   : > { %v5475_v13 = vrot.slane %v5474_v57, 2  ;;  %v5448_v31 = vmax.f32 %v5446_v54, %v5447_v52  ;;  %v6303_v35 = vrot.slane %v13590_v22, 7  ;;  %v5435_v60 = vrot.slane %v5434_v32, 1 }
 0x496   : > { %v5482_v12 = vrot.slane %v5481_v3, 2  ;;  %v5455_v36 = vmax.f32 %v5453_v63, %v5454_v21  ;;  %v5469_v34 = vmax.f32 %v5467_v55, %v5468_v1  ;;  %v6382_v62 = vrot.slane %v13590_v22, 1 }
 0x497   : > { %v5476_v47 = vmax.f32 %v5474_v57, %v5475_v13  ;;  %v5442_v4 = vrot.slane %v5441_v24, 1  ;;  %v5463_v48 = vrot.slane %v5462_v40, 1  ;;  %v6304_v27 = vsel %vm15186_vm1, %v6302_v37, %v6303_v35 }
 0x498   : > { %v5483_v11 = vmax.f32 %v5481_v3, %v5482_v12  ;;  %v5449_v38 = vrot.slane %v5448_v31, 1  ;;  %v5456_v30 = vrot.slane %v5455_v36, 1  ;;  %v5470_v8 = vrot.slane %v5469_v34, 1  ;;  %6437 = vrot.lane.b32.xlu1 %v6304_v27, %s10109_s16  ;;  %6326 = vst.msk [vmem:[#allocation5 + $0x40] sm:$0xff] %vm2330_vm12, %v6304_v27  ;;  %6540 = vrot.lane.b32.xlu0 %v6304_v27, %s10112_s28 }
 0x499   : > { %v6384_v58 = vsel %vm15187_vm2, %v6382_v62, %v6383_v46  ;;  %v5436_v14 = vmax.f32 %v5434_v32, %v5435_v60  ;;  %v5477_v42 = vrot.slane %v5476_v47, 1  ;;  %v5443_v23 = vmax.f32 %v5441_v24, %v5442_v4 }
 0x49a   : > { %v4118_v25 = vpop.f32.mrb[36].mxu1  ;;  %6614 = vst.msk [vmem:[#allocation5 + $0x28] sm:$0xff] %vm2330_vm12, %v6384_v58  ;;  %v5484_v33 = vrot.slane %v5483_v11, 1  ;;  %v5464_v50 = vmax.f32 %v5462_v40, %v5463_v48  ;;  %v5450_v59 = vmax.f32 %v5448_v31, %v5449_v38  ;;  %v5457_v17 = vmax.f32 %v5455_v36, %v5456_v30 }
 0x49b   : > { %v4120_v5 = vpop.f32.mrb[37].mxu1  ;;  %v4119_v44 = vadd.f32 %v4118_v25, %v12903_v43  ;;  %v6434_v15 = vpop.permute.xlu1 %6433  ;;  %v5471_v28 = vmax.f32 %v5469_v34, %v5470_v8  ;;  %v13612_v55 = vsel %vm2330_vm12, %v5436_v14, -inf  ;;  %v5478_v57 = vmax.f32 %v5476_v47, %v5477_v42 }
 0x49c   : > { %v4121_v2 = vpop.f32.mrb[38].mxu1  ;;  %v6537_v39 = vpop.permute.xlu0 %6536  ;;  %6456 = vst.msk [vmem:[#allocation5 + $0x10] sm:$0xff] %vm3158_vm15, %v6434_v15  ;;  %6469 = vrot.lane.b32.xlu1 %v13590_v22, %s10110_s22  ;;  %6572 = vrot.lane.b32.xlu0 %v13590_v22, %s10113_s29  ;;  %v5485_v45 = vmax.f32 %v5483_v11, %v5484_v33  ;;  %v13615_v52 = vsel %vm2330_vm12, %v5464_v50, -inf  ;;  %v13622_v29 = vsel %vm2330_vm12, %v5443_v23, -inf  ;;  %v13625_v61 = vsel %vm2330_vm12, %v5450_v59, -inf }
 0x49d   : > { %v4123_v53 = vpop.f32.mrb[39].mxu1  ;;  %v4191_v51 = vmax.f32 %v4119_v44, 0.0  ;;  %v4122_v26 = vadd.f32 %v4121_v2, %v12903_v43  ;;  %6560 = vst.msk [vmem:[#allocation5] sm:$0xff] %vm3559_vm4, %v6537_v39  ;;  %v13628_v32 = vsel %vm2330_vm12, %v5457_v17, -inf  ;;  %v13631_v13 = vsel %vm2330_vm12, %v5471_v28, -inf }
 0x49e   : > { %v13639_v31 = vsel %vm2330_vm12, %v5478_v57, -inf  ;;  %v13642_v36 = vsel %vm2330_vm12, %v5485_v45, -inf  ;;  %vm15188_vm1 = vcmask 1041409   ;;  %vm15189_vm2 = vcmask 1042434  }
 0x49f   : > { %v4227_v41 = vmul.f32 %v12911_v19, %v4191_v51  ;;  %v4192_v54 = vmax.f32 %v4122_v26, 0.0  ;;  %v6466_v49 = vpop.permute.xlu1 %6465 }
 0x4a0   : > { %v6569_v9 = vpop.permute.xlu0 %6568  ;;  %6488 = vst.msk [vmem:[#allocation5 + $0x10] sm:$0xff] %vm3287_vm0, %v6466_v49  ;;  %6505 = vrot.lane.b32.xlu1 %v6384_v58, %s10111_s25  ;;  %6338 = vrot.lane.b32.xlu0 %v13590_v22, %s10106_s15 }
 0x4a1   : > { %v4263_v63 = vadd.f32 %v12916_v20, %v4227_v41  ;;  %v4228_v18 = vmul.f32 %v12911_v19, %v4192_v54  ;;  %6592 = vst.msk [vmem:[#allocation5] sm:$0xff] %vm3688_vm5, %v6569_v9 }
 0x4a3   : > { %v4615_v21 = vcombine.high %v4263_v63, %v4263_v63  ;;  %v4622_v1 = vrot.slane %v4263_v63, %v12924_v56  ;;  %v4264_v3 = vadd.f32 %v12916_v20, %v4228_v18  ;;  %v6502_v46 = vpop.permute.xlu1 %6501 }
 0x4a4   : > { %v6335_v35 = vpop.permute.xlu0 %6334  ;;  %6524 = vst.msk [vmem:[#allocation5 + $0x10] sm:$0xff] %vm3422_vm3, %v6502_v46  ;;  %6402 = vrot.lane.b32.xlu0 %v6384_v58, %s10108_s12 }
 0x4a5   : > { %v4629_v12 = vrot.slane %v4615_v21, %v12924_v56  ;;  %v4630_v24 = vcombine.high %v4622_v1, %v4622_v1  ;;  %v5486_v40 = vsel %vm4981_vm6, %v4622_v1, -inf  ;;  %v4632_v37 = vcombine.high %v4264_v3, %v4264_v3  ;;  %6356 = vst.msk [vmem:[#allocation5 + $0x20] sm:$0xff] %vm2796_vm13, %v6335_v35 }
 0x4a6   : > { %v5487_v34 = vrot.slane %v5486_v40, 4  ;;  %v4639_v25 = vrot.slane %v4264_v3, %v12924_v56 }
 0x4a7   : > { %v4631_v60 = vcombine.high %v4629_v12, %v4629_v12  ;;  %v5493_v22 = vsel %vm4981_vm6, %v4630_v24, -inf  ;;  %v5500_v47 = vsel %vm4981_vm6, %v4629_v12, -inf  ;;  %v4646_v11 = vrot.slane %v4632_v37, %v12924_v56 }
 0x4a8   : > { %v5488_v62 = vmax.f32 %v5486_v40, %v5487_v34  ;;  %v5494_v5 = vrot.slane %v5493_v22, 4  ;;  %v5501_v4 = vrot.slane %v5500_v47, 4  ;;  %v4647_v48 = vcombine.high %v4639_v25, %v4639_v25  ;;  %v6399_v26 = vpop.permute.xlu0 %6398 }
 0x4a9   : > { %v5507_v27 = vsel %vm4981_vm6, %v4631_v60, -inf  ;;  %v4648_v44 = vcombine.high %v4646_v11, %v4646_v11  ;;  %v5514_v2 = vsel %vm4981_vm6, %v4639_v25, -inf  ;;  %v5528_v38 = vsel %vm4981_vm6, %v4646_v11, -inf  ;;  %6420 = vst.msk [vmem:[#allocation5 + $0x20] sm:$0xff] %vm3021_vm14, %v6399_v26 }
 0x4aa   : > { %v5489_v30 = vrot.slane %v5488_v62, 2  ;;  %v5495_v8 = vmax.f32 %v5493_v22, %v5494_v5  ;;  %v5502_v53 = vmax.f32 %v5500_v47, %v5501_v4  ;;  %v5508_v51 = vrot.slane %v5507_v27, 4 }
 0x4ab   : > { %v5515_v14 = vrot.slane %v5514_v2, 4  ;;  %v5521_v42 = vsel %vm4981_vm6, %v4647_v48, -inf  ;;  %v5529_v33 = vrot.slane %v5528_v38, 4  ;;  %v5535_v15 = vsel %vm4981_vm6, %v4648_v44, -inf }
 0x4ac   : > { %v5490_v58 = vmax.f32 %v5488_v62, %v5489_v30  ;;  %v5496_v39 = vrot.slane %v5495_v8, 2  ;;  %v5503_v23 = vrot.slane %v5502_v53, 2  ;;  %v5509_v50 = vmax.f32 %v5507_v27, %v5508_v51 }
 0x4ad   : > { %v5516_v41 = vmax.f32 %v5514_v2, %v5515_v14  ;;  %v5522_v54 = vrot.slane %v5521_v42, 4  ;;  %v5530_v59 = vmax.f32 %v5528_v38, %v5529_v33  ;;  %v5536_v17 = vrot.slane %v5535_v15, 4 }
 0x4ae   : > { %v5491_v28 = vrot.slane %v5490_v58, 1  ;;  %v5497_v63 = vmax.f32 %v5495_v8, %v5496_v39  ;;  %v5504_v18 = vmax.f32 %v5502_v53, %v5503_v23  ;;  %v5510_v57 = vrot.slane %v5509_v50, 2 }
 0x4af   : > { %v5517_v45 = vrot.slane %v5516_v41, 2  ;;  %v5523_v49 = vmax.f32 %v5521_v42, %v5522_v54  ;;  %v5531_v9 = vrot.slane %v5530_v59, 2  ;;  %v5537_v21 = vmax.f32 %v5535_v15, %v5536_v17 }
 0x4b0   : > { %v5492_v1 = vmax.f32 %v5490_v58, %v5491_v28  ;;  %v5498_v3 = vrot.slane %v5497_v63, 1  ;;  %v5505_v12 = vrot.slane %v5504_v18, 1  ;;  %v5511_v24 = vmax.f32 %v5509_v50, %v5510_v57 }
 0x4b1   : > { %v5518_v40 = vmax.f32 %v5516_v41, %v5517_v45  ;;  %v5524_v37 = vrot.slane %v5523_v49, 2  ;;  %v5532_v34 = vmax.f32 %v5530_v59, %v5531_v9  ;;  %v5538_v46 = vrot.slane %v5537_v21, 2 }
 0x4b2   : > { %v5499_v35 = vmax.f32 %v5497_v63, %v5498_v3  ;;  %v5506_v25 = vmax.f32 %v5504_v18, %v5505_v12  ;;  %v5512_v60 = vrot.slane %v5511_v24, 1  ;;  %v5975_v22 = vsel %vm2330_vm12, %v5492_v1, -inf }
 0x4b3   : > { %v5976_v47 = vmax.f32 %v13612_v55, %v5975_v22  ;;  %v5519_v11 = vrot.slane %v5518_v40, 1  ;;  %v5525_v62 = vmax.f32 %v5523_v49, %v5524_v37  ;;  %v5533_v5 = vrot.slane %v5532_v34, 1 }
 0x4b4   : > { %v5513_v4 = vmax.f32 %v5511_v24, %v5512_v60  ;;  %v5978_v48 = vsel %vm2330_vm12, %v5499_v35, -inf  ;;  %v5981_v27 = vsel %vm2330_vm12, %v5506_v25, -inf  ;;  %v5539_v44 = vmax.f32 %v5537_v21, %v5538_v46 }
 0x4b5   : > { %v5979_v2 = vmax.f32 %v13622_v29, %v5978_v48  ;;  %v5982_v38 = vmax.f32 %v13625_v61, %v5981_v27  ;;  %v5520_v30 = vmax.f32 %v5518_v40, %v5519_v11  ;;  %v5526_v8 = vrot.slane %v5525_v62, 1 }
 0x4b6   : > { %v5984_v51 = vsel %vm2330_vm12, %v5513_v4, -inf  ;;  %v5534_v26 = vmax.f32 %v5532_v34, %v5533_v5  ;;  %v5540_v55 = vrot.slane %v5539_v44, 1 }
 0x4b7   : > { %v4126_v53 = vpop.f32.mrb[40].mxu1  ;;  %v5985_v33 = vmax.f32 %v13628_v32, %v5984_v51  ;;  %v6199_v15 = vsel %vm15188_vm1, %v5979_v2, %v5976_v47  ;;  %v5527_v58 = vmax.f32 %v5525_v62, %v5526_v8  ;;  %v5987_v39 = vsel %vm2330_vm12, %v5520_v30, -inf }
 0x4b8   : > { %v4127_v14 = vadd.f32 %v4126_v53, %v12903_v43  ;;  %v4128_v42 = vpop.f32.mrb[41].mxu1  ;;  %v6200_v61 = vsel %vm15189_vm2, %v5982_v38, %v6199_v15  ;;  %v5541_v23 = vmax.f32 %v5539_v44, %v5540_v55  ;;  %v5988_v50 = vmax.f32 %v13615_v52, %v5987_v39 }
 0x4b9   : > { %v4129_v29 = vpop.f32.mrb[42].mxu1  ;;  %v5993_v41 = vsel %vm2330_vm12, %v5534_v26, -inf  ;;  %v5990_v59 = vsel %vm2330_vm12, %v5527_v58, -inf  ;;  %v6201_v32 = vsel %vm6168_vm9, %v5985_v33, %v6200_v61  ;;  %vm15190_vm1 = vcmask 1040384  }
 0x4ba   : > { %v4131_v54 = vpop.f32.mrb[43].mxu1  ;;  %v5994_v17 = vmax.f32 %v13639_v31, %v5993_v41  ;;  %v4193_v28 = vmax.f32 %v4127_v14, 0.0  ;;  %v5991_v63 = vmax.f32 %v13631_v13, %v5990_v59  ;;  %v5996_v18 = vsel %vm2330_vm12, %v5541_v23, -inf }
 0x4bb   : > { %v6202_v57 = vsel %vm6170_vm10, %v5988_v50, %v6201_v32  ;;  %v4130_v45 = vadd.f32 %v4129_v29, %v12903_v43  ;;  %v5997_v52 = vmax.f32 %v13642_v36, %v5996_v18  ;;  %v6259_v54 = vld [vmem:[#allocation4 + $0x78] sm:$0xff]  ;;  %v6261_v18 = vld [vmem:[#allocation4 + $0x88] sm:$0xff]  ;;  %vm15191_vm2 = vcmask 1046528  }
 0x4bc   : > { %v4229_v49 = vmul.f32 %v12911_v19, %v4193_v28  ;;  %v6203_v9 = vsel %vm6172_vm11, %v5991_v63, %v6202_v57 }
 0x4bd   : > { %v4194_v21 = vmax.f32 %v4130_v45, 0.0  ;;  %v6204_v31 = vsel %vm6174_vm7, %v5994_v17, %v6203_v9  ;;  %v6305_v45 = vrot.slane %v6259_v54, 7 }
 0x4be   : > { %v4265_v1 = vadd.f32 %v12916_v20, %v4229_v49  ;;  %v6205_v3 = vsel %vm6176_vm8, %v5997_v52, %v6204_v31 }
 0x4bf   : > { %v4230_v13 = vmul.f32 %v12911_v19, %v4194_v21  ;;  %6240 = vst.msk [vmem:[#allocation4 + $0x80] sm:$0xff] %vm2330_vm12, %v6205_v3  ;;  %v6386_v3 = vrot.slane %v6261_v18, 1 }
 0x4c0   : > { %v4649_v12 = vcombine.high %v4265_v1, %v4265_v1  ;;  %v4656_v24 = vrot.slane %v4265_v1, %v12924_v56 }
 0x4c1   : > { %v4266_v36 = vadd.f32 %v12916_v20, %v4230_v13 }
 0x4c2   : > { %v4663_v40 = vrot.slane %v4649_v12, %v12924_v56  ;;  %v4664_v37 = vcombine.high %v4656_v24, %v4656_v24  ;;  %v5542_v34 = vsel %vm4981_vm6, %v4656_v24, -inf }
 0x4c3   : > { %v5543_v46 = vrot.slane %v5542_v34, 4  ;;  %v4666_v35 = vcombine.high %v4266_v36, %v4266_v36  ;;  %v4673_v25 = vrot.slane %v4266_v36, %v12924_v56 }
 0x4c4   : > { %v4665_v60 = vcombine.high %v4663_v40, %v4663_v40  ;;  %v5549_v22 = vsel %vm4981_vm6, %v4664_v37, -inf  ;;  %v5556_v47 = vsel %vm4981_vm6, %v4663_v40, -inf }
 0x4c5   : > { %v5550_v11 = vrot.slane %v5549_v22, 4  ;;  %v5557_v62 = vrot.slane %v5556_v47, 4  ;;  %v4680_v5 = vrot.slane %v4666_v35, %v12924_v56  ;;  %v4681_v48 = vcombine.high %v4673_v25, %v4673_v25 }
 0x4c6   : > { %v5563_v4 = vsel %vm4981_vm6, %v4665_v60, -inf  ;;  %v5570_v27 = vsel %vm4981_vm6, %v4673_v25, -inf  ;;  %v5544_v44 = vmax.f32 %v5542_v34, %v5543_v46  ;;  %v6260_v63 = vld [vmem:[#allocation4 + $0x80] sm:$0xff] }
 0x4c7   : > { %v5551_v2 = vmax.f32 %v5549_v22, %v5550_v11  ;;  %v5558_v38 = vmax.f32 %v5556_v47, %v5557_v62  ;;  %v5564_v30 = vrot.slane %v5563_v4, 4  ;;  %v4682_v8 = vcombine.high %v4680_v5, %v4680_v5 }
 0x4c8   : > { %v5571_v53 = vrot.slane %v5570_v27, 4  ;;  %v5577_v51 = vsel %vm4981_vm6, %v4681_v48, -inf  ;;  %v5584_v26 = vsel %vm4981_vm6, %v4680_v5, -inf  ;;  %v5545_v58 = vrot.slane %v5544_v44, 2 }
 0x4c9   : > { %v5565_v55 = vmax.f32 %v5563_v4, %v5564_v30  ;;  %v5578_v42 = vrot.slane %v5577_v51, 4  ;;  %v5585_v33 = vrot.slane %v5584_v26, 4  ;;  %v5591_v15 = vsel %vm4981_vm6, %v4682_v8, -inf }
 0x4ca   : > { %v5572_v14 = vmax.f32 %v5570_v27, %v5571_v53  ;;  %v5552_v39 = vrot.slane %v5551_v2, 2  ;;  %v5559_v29 = vrot.slane %v5558_v38, 2  ;;  %v5592_v41 = vrot.slane %v5591_v15, 4 }
 0x4cb   : > { %v5566_v61 = vrot.slane %v5565_v55, 2  ;;  %v5579_v23 = vmax.f32 %v5577_v51, %v5578_v42  ;;  %v5586_v50 = vmax.f32 %v5584_v26, %v5585_v33  ;;  %v5546_v57 = vmax.f32 %v5544_v44, %v5545_v58 }
 0x4cc   : > { %v5573_v59 = vrot.slane %v5572_v14, 2  ;;  %v5593_v28 = vmax.f32 %v5591_v15, %v5592_v41  ;;  %v5553_v52 = vmax.f32 %v5551_v2, %v5552_v39  ;;  %v5560_v49 = vmax.f32 %v5558_v38, %v5559_v29 }
 0x4cd   : > { %v5580_v17 = vrot.slane %v5579_v23, 2  ;;  %v5587_v32 = vrot.slane %v5586_v50, 2  ;;  %v5567_v9 = vmax.f32 %v5565_v55, %v5566_v61  ;;  %v6306_v1 = vrot.slane %v6260_v63, 7 }
 0x4ce   : > { %v5574_v21 = vmax.f32 %v5572_v14, %v5573_v59  ;;  %v5594_v31 = vrot.slane %v5593_v28, 2  ;;  %v5547_v24 = vrot.slane %v5546_v57, 1  ;;  %v6385_v40 = vrot.slane %v6260_v63, 1 }
 0x4cf   : > { %v5581_v13 = vmax.f32 %v5579_v23, %v5580_v17  ;;  %v5588_v12 = vmax.f32 %v5586_v50, %v5587_v32  ;;  %v6307_v36 = vsel %vm15190_vm1, %v6305_v45, %v6306_v1  ;;  %v5554_v34 = vrot.slane %v5553_v52, 1 }
 0x4d0   : > { %v5561_v46 = vrot.slane %v5560_v49, 1  ;;  %v5568_v35 = vrot.slane %v5567_v9, 1  ;;  %6542 = vrot.lane.b32.xlu1 %v6307_v36, %s10112_s28  ;;  %6327 = vst.msk [vmem:[#allocation5 + $0x50] sm:$0xff] %vm2330_vm12, %v6307_v36  ;;  %6439 = vrot.lane.b32.xlu0 %v6307_v36, %s10109_s16  ;;  %v5575_v60 = vrot.slane %v5574_v21, 1  ;;  %v5595_v22 = vmax.f32 %v5593_v28, %v5594_v31  ;;  %v13746_v31 = vld [vmem:[#allocation5 + $0x28] sm:$0xff] }
 0x4d1   : > { %v6387_v47 = vsel %vm15191_vm2, %v6385_v40, %v6386_v3  ;;  %v5582_v5 = vrot.slane %v5581_v13, 1  ;;  %v5589_v4 = vrot.slane %v5588_v12, 1  ;;  %v5548_v2 = vmax.f32 %v5546_v57, %v5547_v24 }
 0x4d2   : > { %6615 = vst.msk [vmem:[#allocation5 + $0x38] sm:$0xff] %vm2330_vm12, %v6387_v47  ;;  %v5555_v8 = vmax.f32 %v5553_v52, %v5554_v34  ;;  %v5562_v53 = vmax.f32 %v5560_v49, %v5561_v46  ;;  %v5569_v51 = vmax.f32 %v5567_v9, %v5568_v35  ;;  %v5576_v55 = vmax.f32 %v5574_v21, %v5575_v60 }
 0x4d3   : > { %v4134_v37 = vpop.f32.mrb[44].mxu1  ;;  %v6539_v48 = vpop.permute.xlu1 %6538  ;;  %v5596_v14 = vrot.slane %v5595_v22, 1  ;;  %v5583_v33 = vmax.f32 %v5581_v13, %v5582_v5  ;;  %v5590_v15 = vmax.f32 %v5588_v12, %v5589_v4  ;;  %v13714_v61 = vsel %vm2330_vm12, %v5548_v2, -inf }
 0x4d4   : > { %v4136_v25 = vpop.f32.mrb[45].mxu1  ;;  %v4135_v11 = vadd.f32 %v4134_v37, %v12903_v43  ;;  %v6436_v27 = vpop.permute.xlu0 %6435  ;;  %6561 = vst.msk [vmem:[#allocation5 + $0x10] sm:$0xff] %vm3559_vm4, %v6539_v48  ;;  %6574 = vrot.lane.b32.xlu1 %v6260_v63, %s10113_s29  ;;  %6471 = vrot.lane.b32.xlu0 %v6260_v63, %s10110_s22  ;;  %v13720_v50 = vsel %vm2330_vm12, %v5555_v8, -inf  ;;  %v13723_v41 = vsel %vm2330_vm12, %v5562_v53, -inf  ;;  %v13726_v54 = vsel %vm2330_vm12, %v5569_v51, -inf }
 0x4d5   : > { %v4137_v62 = vpop.f32.mrb[46].mxu1  ;;  %6457 = vst.msk [vmem:[#allocation5 + $0x20] sm:$0xff] %vm3158_vm15, %v6436_v27  ;;  %v13731_v17 = vmax.f32 %v5595_v22, %v5596_v14  ;;  %v13734_v32 = vsel %vm2330_vm12, %v5576_v55, -inf  ;;  %v13740_v45 = vsel %vm2330_vm12, %v5583_v33, -inf  ;;  %v13743_v52 = vsel %vm2330_vm12, %v5590_v15, -inf }
 0x4d6   : > { %v4138_v44 = vadd.f32 %v4137_v62, %v12903_v43  ;;  %v4195_v38 = vmax.f32 %v4135_v11, 0.0  ;;  %v4139_v30 = vpop.f32.mrb[47].mxu1  ;;  %vm15192_vm1 = vcmask 1041409   ;;  %vm15193_vm2 = vcmask 1042434  }
 0x4d7   : > { %v6571_v58 = vpop.permute.xlu1 %6570 }
 0x4d8   : > { %v4196_v26 = vmax.f32 %v4138_v44, 0.0  ;;  %v4231_v42 = vmul.f32 %v12911_v19, %v4195_v38  ;;  %v6468_v39 = vpop.permute.xlu0 %6467  ;;  %6593 = vst.msk [vmem:[#allocation5 + $0x10] sm:$0xff] %vm3688_vm5, %v6571_v58  ;;  %6340 = vrot.lane.b32.xlu1 %v6260_v63, %s10106_s15  ;;  %6507 = vrot.lane.b32.xlu0 %v6387_v47, %s10111_s25 }
 0x4d9   : > { %6489 = vst.msk [vmem:[#allocation5 + $0x20] sm:$0xff] %vm3287_vm0, %v6468_v39  ;;  %v13737_v57 = vld [vmem:[#allocation5 + $0x38] sm:$0xff] }
 0x4da   : > { %v4232_v29 = vmul.f32 %v12911_v19, %v4196_v26  ;;  %v4267_v23 = vadd.f32 %v12916_v20, %v4231_v42  ;;  %v6639_v12 = vpack.c.bf16 %v13737_v57, %v13746_v31 }
 0x4db   : > { %v6337_v63 = vpop.permute.xlu1 %6336 }
 0x4dc   : > { %v4268_v59 = vadd.f32 %v12916_v20, %v4232_v29  ;;  %v4683_v28 = vcombine.high %v4267_v23, %v4267_v23  ;;  %v4690_v18 = vrot.slane %v4267_v23, %v12924_v56  ;;  %v6504_v49 = vpop.permute.xlu0 %6503  ;;  %6357 = vst.msk [vmem:[#allocation5 + $0x30] sm:$0xff] %vm2796_vm13, %v6337_v63  ;;  %6404 = vrot.lane.b32.xlu1 %v6387_v47, %s10108_s12 }
 0x4dd   : > { %6525 = vst.msk [vmem:[#allocation5 + $0x20] sm:$0xff] %vm3422_vm3, %v6504_v49 }
 0x4de   : > { %v4700_v9 = vcombine.high %v4268_v59, %v4268_v59  ;;  %v4707_v21 = vrot.slane %v4268_v59, %v12924_v56  ;;  %v4697_v1 = vrot.slane %v4683_v28, %v12924_v56  ;;  %v4698_v3 = vcombine.high %v4690_v18, %v4690_v18 }
 0x4df   : > { %v5598_v13 = vsel %vm4981_vm6, %v4690_v18, -inf  ;;  %v6401_v5 = vpop.permute.xlu1 %6400 }
 0x4e0   : > { %v5599_v24 = vrot.slane %v5598_v13, 4  ;;  %v4714_v36 = vrot.slane %v4700_v9, %v12924_v56  ;;  %v4715_v40 = vcombine.high %v4707_v21, %v4707_v21  ;;  %v5626_v37 = vsel %vm4981_vm6, %v4707_v21, -inf  ;;  %6421 = vst.msk [vmem:[#allocation5 + $0x30] sm:$0xff] %vm3021_vm14, %v6401_v5 }
 0x4e1   : > { %v4699_v34 = vcombine.high %v4697_v1, %v4697_v1  ;;  %v5605_v46 = vsel %vm4981_vm6, %v4698_v3, -inf  ;;  %v5612_v35 = vsel %vm4981_vm6, %v4697_v1, -inf  ;;  %v5627_v25 = vrot.slane %v5626_v37, 4 }
 0x4e2   : > { %v5600_v60 = vmax.f32 %v5598_v13, %v5599_v24  ;;  %v5606_v22 = vrot.slane %v5605_v46, 4  ;;  %v5613_v11 = vrot.slane %v5612_v35, 4  ;;  %v4716_v62 = vcombine.high %v4714_v36, %v4714_v36 }
 0x4e3   : > { %v5619_v4 = vsel %vm4981_vm6, %v4699_v34, -inf  ;;  %v5628_v48 = vmax.f32 %v5626_v37, %v5627_v25  ;;  %v5633_v27 = vsel %vm4981_vm6, %v4715_v40, -inf  ;;  %v5640_v44 = vsel %vm4981_vm6, %v4714_v36, -inf }
 0x4e4   : > { %v5601_v47 = vrot.slane %v5600_v60, 2  ;;  %v5607_v2 = vmax.f32 %v5605_v46, %v5606_v22  ;;  %v5614_v38 = vmax.f32 %v5612_v35, %v5613_v11  ;;  %v5620_v30 = vrot.slane %v5619_v4, 4 }
 0x4e5   : > { %v5629_v8 = vrot.slane %v5628_v48, 2  ;;  %v5634_v53 = vrot.slane %v5633_v27, 4  ;;  %v5641_v51 = vrot.slane %v5640_v44, 4  ;;  %v5647_v26 = vsel %vm4981_vm6, %v4716_v62, -inf }
 0x4e6   : > { %v5602_v55 = vmax.f32 %v5600_v60, %v5601_v47  ;;  %v5608_v14 = vrot.slane %v5607_v2, 2  ;;  %v5615_v42 = vrot.slane %v5614_v38, 2  ;;  %v5621_v33 = vmax.f32 %v5619_v4, %v5620_v30  ;;  %v6622_v4 = vld [vmem:[#allocation5 + $0x10] sm:$0xff] }
 0x4e7   : > { %v5630_v15 = vmax.f32 %v5628_v48, %v5629_v8  ;;  %v5635_v58 = vmax.f32 %v5633_v27, %v5634_v53  ;;  %v5642_v39 = vmax.f32 %v5640_v44, %v5641_v51  ;;  %v5648_v29 = vrot.slane %v5647_v26, 4  ;;  %v6620_v51 = vld [vmem:[#allocation5] sm:$0xff] }
 0x4e8   : > { %v5603_v23 = vrot.slane %v5602_v55, 1  ;;  %v5609_v59 = vmax.f32 %v5607_v2, %v5608_v14  ;;  %v5616_v28 = vmax.f32 %v5614_v38, %v5615_v42  ;;  %v5622_v18 = vrot.slane %v5621_v33, 2 }
 0x4e9   : > { %v5631_v63 = vrot.slane %v5630_v15, 1  ;;  %v5636_v49 = vrot.slane %v5635_v58, 2  ;;  %v5643_v9 = vrot.slane %v5642_v39, 2  ;;  %v5649_v21 = vmax.f32 %v5647_v26, %v5648_v29 }
 0x4ea   : > { %v5604_v1 = vmax.f32 %v5602_v55, %v5603_v23  ;;  %v5610_v3 = vrot.slane %v5609_v59, 1  ;;  %v5617_v13 = vrot.slane %v5616_v28, 1  ;;  %v5623_v24 = vmax.f32 %v5621_v33, %v5622_v18 }
 0x4eb   : > { %v5632_v36 = vmax.f32 %v5630_v15, %v5631_v63  ;;  %v5637_v40 = vmax.f32 %v5635_v58, %v5636_v49  ;;  %v5644_v37 = vmax.f32 %v5642_v39, %v5643_v9  ;;  %v5650_v34 = vrot.slane %v5649_v21, 2 }
 0x4ec   : > { %v5611_v46 = vmax.f32 %v5609_v59, %v5610_v3  ;;  %v5618_v35 = vmax.f32 %v5616_v28, %v5617_v13  ;;  %v5624_v25 = vrot.slane %v5623_v24, 1  ;;  %v5999_v60 = vsel %vm2330_vm12, %v5604_v1, -inf }
 0x4ed   : > { %v6000_v22 = vmax.f32 %v13714_v61, %v5999_v60  ;;  %v5638_v11 = vrot.slane %v5637_v40, 1  ;;  %v5645_v62 = vrot.slane %v5644_v37, 1  ;;  %v5651_v5 = vmax.f32 %v5649_v21, %v5650_v34 }
 0x4ee   : > { %v5625_v48 = vmax.f32 %v5623_v24, %v5624_v25  ;;  %v6002_v27 = vsel %vm2330_vm12, %v5611_v46, -inf  ;;  %v6005_v44 = vsel %vm2330_vm12, %v5618_v35, -inf  ;;  %v6011_v47 = vsel %vm2330_vm12, %v5632_v36, -inf  ;;  %v4142_v2 = vpop.f32.mrb[48].mxu1 }
 0x4ef   : > { %v6003_v38 = vmax.f32 %v13720_v50, %v6002_v27  ;;  %v6006_v30 = vmax.f32 %v13723_v41, %v6005_v44  ;;  %v5639_v8 = vmax.f32 %v5637_v40, %v5638_v11  ;;  %v5646_v53 = vmax.f32 %v5644_v37, %v5645_v62  ;;  %v4144_v61 = vpop.f32.mrb[49].mxu1 }
 0x4f0   : > { %v6008_v26 = vsel %vm2330_vm12, %v5625_v48, -inf  ;;  %v5652_v55 = vrot.slane %v5651_v5, 1  ;;  %v6012_v14 = vmax.f32 %v13734_v32, %v6011_v47  ;;  %v6636_v42 = vpack.c.bf16 %v6622_v4, %v6620_v51  ;;  %v4145_v33 = vpop.f32.mrb[50].mxu1 }
 0x4f1   : > { %v6009_v15 = vmax.f32 %v13726_v54, %v6008_v26  ;;  %v6206_v58 = vsel %vm15192_vm1, %v6003_v38, %v6000_v22  ;;  %v6014_v39 = vsel %vm2330_vm12, %v5639_v8, -inf  ;;  %v6017_v50 = vsel %vm2330_vm12, %v5646_v53, -inf  ;;  %v4147_v41 = vpop.f32.mrb[51].mxu1 }
 0x4f2   : > { %v6207_v29 = vsel %vm15193_vm2, %v6006_v30, %v6206_v58  ;;  %v5653_v23 = vmax.f32 %v5651_v5, %v5652_v55  ;;  %v6015_v59 = vmax.f32 %v13740_v45, %v6014_v39  ;;  %v6018_v28 = vmax.f32 %v13743_v52, %v6017_v50  ;;  %6766 = vmatmul.mubr.bf16.vlgmr.msra.gmra.mrb[32].mxu0 %v6636_v42 }
 0x4f3   : > { %v6208_v32 = vsel %vm6168_vm9, %v6009_v15, %v6207_v29  ;;  %9896 = vmatprep.mubr.msk.bf16.mxu0 %vm2330_vm12, %v6639_v12  ;;  %v4143_v54 = vadd.f32 %v4142_v2, %v12903_v43  ;;  %v4146_v18 = vadd.f32 %v4145_v33, %v12903_v43  ;;  %v6019_v63 = vsel %vm2330_vm12, %v13731_v17, -inf }
 0x4f4   : > { %v6020_v49 = vsel %vm2330_vm12, %v5653_v23, -inf  ;;  %v6209_v45 = vsel %vm6170_vm10, %v6012_v14, %v6208_v32  ;;  %vm15194_vm1 = vcmask 1040384   ;;  %vm15195_vm2 = vcmask 1046528  }
 0x4f5   : > { %v6021_v52 = vmax.f32 %v6019_v63, %v6020_v49  ;;  %v6210_v9 = vsel %vm6172_vm11, %v6015_v59, %v6209_v45  ;;  %v4197_v21 = vmax.f32 %v4143_v54, 0.0  ;;  %v4198_v1 = vmax.f32 %v4146_v18, 0.0  ;;  %v6262_v54 = vld [vmem:[#allocation4 + $0x90] sm:$0xff] }
 0x4f6   : > { %v6211_v57 = vsel %vm6174_vm7, %v6018_v28, %v6210_v9 }
 0x4f7   : > { %v6212_v31 = vsel %vm6176_vm8, %v6021_v52, %v6211_v57  ;;  %v4233_v12 = vmul.f32 %v12911_v19, %v4197_v21  ;;  %v4234_v3 = vmul.f32 %v12911_v19, %v4198_v1  ;;  %v6264_v21 = vld [vmem:[#allocation4 + $0xa0] sm:$0xff]  ;;  %v6308_v57 = vrot.slane %v6262_v54, 7 }
 0x4f8   : > { %6241 = vst.msk [vmem:[#allocation4 + $0x98] sm:$0xff] %vm2330_vm12, %v6212_v31 }
 0x4f9   : > { %v4269_v17 = vadd.f32 %v12916_v20, %v4233_v12  ;;  %v4270_v13 = vadd.f32 %v12916_v20, %v4234_v3 }
 0x4fb   : > { %v4717_v24 = vcombine.high %v4269_v17, %v4269_v17  ;;  %v4724_v36 = vrot.slane %v4269_v17, %v12924_v56  ;;  %v4734_v40 = vcombine.high %v4270_v13, %v4270_v13  ;;  %v4741_v37 = vrot.slane %v4270_v13, %v12924_v56 }
 0x4fd   : > { %v4731_v34 = vrot.slane %v4717_v24, %v12924_v56  ;;  %v4732_v46 = vcombine.high %v4724_v36, %v4724_v36  ;;  %v5654_v35 = vsel %vm4981_vm6, %v4724_v36, -inf  ;;  %v4748_v25 = vrot.slane %v4734_v40, %v12924_v56 }
 0x4fe   : > { %v5655_v60 = vrot.slane %v5654_v35, 4  ;;  %v4749_v22 = vcombine.high %v4741_v37, %v4741_v37  ;;  %v5682_v11 = vsel %vm4981_vm6, %v4741_v37, -inf  ;;  %v6389_v36 = vrot.slane %v6264_v21, 1 }
 0x4ff   : > { %v4733_v62 = vcombine.high %v4731_v34, %v4731_v34  ;;  %v5661_v5 = vsel %vm4981_vm6, %v4732_v46, -inf  ;;  %v5668_v4 = vsel %vm4981_vm6, %v4731_v34, -inf  ;;  %v4750_v48 = vcombine.high %v4748_v25, %v4748_v25  ;;  %v13811_v9 = vld [vmem:[#allocation4 + $0x98] sm:$0xff] }
 0x500   : > { %v5656_v27 = vmax.f32 %v5654_v35, %v5655_v60  ;;  %v5662_v44 = vrot.slane %v5661_v5, 4  ;;  %v5669_v47 = vrot.slane %v5668_v4, 4  ;;  %v5683_v2 = vrot.slane %v5682_v11, 4 }
 0x501   : > { %v5675_v38 = vsel %vm4981_vm6, %v4733_v62, -inf  ;;  %v5689_v30 = vsel %vm4981_vm6, %v4749_v22, -inf  ;;  %v5696_v8 = vsel %vm4981_vm6, %v4748_v25, -inf  ;;  %v5703_v53 = vsel %vm4981_vm6, %v4750_v48, -inf }
 0x502   : > { %v5663_v51 = vmax.f32 %v5661_v5, %v5662_v44  ;;  %v5670_v61 = vmax.f32 %v5668_v4, %v5669_v47  ;;  %v5676_v26 = vrot.slane %v5675_v38, 4  ;;  %v5684_v55 = vmax.f32 %v5682_v11, %v5683_v2 }
 0x503   : > { %v5690_v14 = vrot.slane %v5689_v30, 4  ;;  %v5697_v42 = vrot.slane %v5696_v8, 4  ;;  %v5704_v33 = vrot.slane %v5703_v53, 4  ;;  %v5657_v15 = vrot.slane %v5656_v27, 2 }
 0x504   : > { %v5664_v58 = vrot.slane %v5663_v51, 2  ;;  %v5677_v39 = vmax.f32 %v5675_v38, %v5676_v26  ;;  %v5671_v50 = vrot.slane %v5670_v61, 2  ;;  %v5685_v41 = vrot.slane %v5684_v55, 2 }
 0x505   : > { %v5691_v29 = vmax.f32 %v5689_v30, %v5690_v14  ;;  %v5698_v23 = vmax.f32 %v5696_v8, %v5697_v42  ;;  %v5705_v59 = vmax.f32 %v5703_v53, %v5704_v33  ;;  %v5658_v63 = vmax.f32 %v5656_v27, %v5657_v15 }
 0x506   : > { %v5678_v28 = vrot.slane %v5677_v39, 2  ;;  %v5665_v49 = vmax.f32 %v5663_v51, %v5664_v58  ;;  %v5672_v45 = vmax.f32 %v5670_v61, %v5671_v50  ;;  %v5686_v52 = vmax.f32 %v5684_v55, %v5685_v41 }
 0x507   : > { %v5692_v32 = vrot.slane %v5691_v29, 2  ;;  %v5699_v18 = vrot.slane %v5698_v23, 2  ;;  %v5706_v1 = vrot.slane %v5705_v59, 2  ;;  %v6309_v24 = vrot.slane %v13811_v9, 7 }
 0x508   : > { %v5679_v12 = vmax.f32 %v5677_v39, %v5678_v28  ;;  %v5659_v37 = vrot.slane %v5658_v63, 1  ;;  %v5666_v34 = vrot.slane %v5665_v49, 1  ;;  %v5673_v46 = vrot.slane %v5672_v45, 1 }
 0x509   : > { %v5693_v3 = vmax.f32 %v5691_v29, %v5692_v32  ;;  %v5700_v13 = vmax.f32 %v5698_v23, %v5699_v18  ;;  %v5687_v35 = vrot.slane %v5686_v52, 1  ;;  %v5707_v60 = vmax.f32 %v5705_v59, %v5706_v1 }
 0x50a   : > { %v4150_v31 = vpop.f32.mrb[52].mxu1  ;;  %v6310_v22 = vsel %vm15194_vm1, %v6308_v57, %v6309_v24  ;;  %v6388_v11 = vrot.slane %v13811_v9, 1  ;;  %v5680_v5 = vrot.slane %v5679_v12, 1  ;;  %v6438_v48 = vpop.permute.xlu1 %6437  ;;  %v5660_v30 = vmax.f32 %v5658_v63, %v5659_v37 }
 0x50b   : > { %v4152_v17 = vpop.f32.mrb[53].mxu1  ;;  %v4151_v62 = vadd.f32 %v4150_v31, %v12903_v43  ;;  %v5694_v4 = vrot.slane %v5693_v3, 1  ;;  %6441 = vrot.lane.b32.xlu1 %v6310_v22, %s10109_s16  ;;  %6328 = vst.msk [vmem:[#allocation5 + $0x60] sm:$0xff] %vm2330_vm12, %v6310_v22  ;;  %6544 = vrot.lane.b32.xlu0 %v6310_v22, %s10112_s28  ;;  %v6541_v27 = vpop.permute.xlu0 %6540  ;;  %v5701_v47 = vrot.slane %v5700_v13, 1  ;;  %v5667_v8 = vmax.f32 %v5665_v49, %v5666_v34 }
 0x50c   : > { %v4153_v40 = vpop.f32.mrb[54].mxu1  ;;  %6458 = vst.msk [vmem:[#allocation5 + $0x30] sm:$0xff] %vm3158_vm15, %v6438_v48  ;;  %v6390_v2 = vsel %vm15195_vm2, %v6388_v11, %v6389_v36  ;;  %v5674_v53 = vmax.f32 %v5672_v45, %v5673_v46  ;;  %v5688_v61 = vmax.f32 %v5686_v52, %v5687_v35  ;;  %v5708_v26 = vrot.slane %v5707_v60, 1 }
 0x50d   : > { %v4155_v25 = vpop.f32.mrb[55].mxu1  ;;  %v4154_v44 = vadd.f32 %v4153_v40, %v12903_v43  ;;  %6562 = vst.msk [vmem:[#allocation5 + $0x20] sm:$0xff] %vm3559_vm4, %v6541_v27  ;;  %v4199_v38 = vmax.f32 %v4151_v62, 0.0  ;;  %v5681_v14 = vmax.f32 %v5679_v12, %v5680_v5  ;;  %v5695_v42 = vmax.f32 %v5693_v3, %v5694_v4 }
 0x50e   : > { %6616 = vst.msk [vmem:[#allocation5 + $0x48] sm:$0xff] %vm2330_vm12, %v6390_v2  ;;  %v6470_v33 = vpop.permute.xlu1 %6469  ;;  %v5702_v39 = vmax.f32 %v5700_v13, %v5701_v47  ;;  %v13835_v41 = vsel %vm2330_vm12, %v5660_v30, -inf  ;;  %v13838_v29 = vsel %vm2330_vm12, %v5667_v8, -inf  ;;  %v13841_v23 = vsel %vm2330_vm12, %v5674_v53, -inf }
 0x50f   : > { %v4200_v51 = vmax.f32 %v4154_v44, 0.0  ;;  %v4235_v55 = vmul.f32 %v12911_v19, %v4199_v38  ;;  %6473 = vrot.lane.b32.xlu1 %v13811_v9, %s10110_s22  ;;  %6576 = vrot.lane.b32.xlu0 %v13811_v9, %s10113_s29  ;;  %v6573_v15 = vpop.permute.xlu0 %6572  ;;  %6490 = vst.msk [vmem:[#allocation5 + $0x30] sm:$0xff] %vm3287_vm0, %v6470_v33  ;;  %v13844_v28 = vmax.f32 %v5707_v60, %v5708_v26  ;;  %v13847_v32 = vsel %vm2330_vm12, %v5688_v61, -inf }
 0x510   : > { %6594 = vst.msk [vmem:[#allocation5 + $0x20] sm:$0xff] %vm3688_vm5, %v6573_v15  ;;  %v13851_v63 = vsel %vm2330_vm12, %v5681_v14, -inf  ;;  %v13854_v49 = vsel %vm2330_vm12, %v5695_v42, -inf  ;;  %v13861_v57 = vsel %vm2330_vm12, %v5702_v39, -inf  ;;  %vm15196_vm1 = vcmask 1041409  }
 0x511   : > { %v4236_v58 = vmul.f32 %v12911_v19, %v4200_v51  ;;  %v4271_v50 = vadd.f32 %v12916_v20, %v4235_v55  ;;  %vm15197_vm2 = vcmask 1042434  }
 0x512   : > { %v6506_v45 = vpop.permute.xlu1 %6505 }
 0x513   : > { %v4272_v59 = vadd.f32 %v12916_v20, %v4236_v58  ;;  %v4751_v54 = vcombine.high %v4271_v50, %v4271_v50  ;;  %v4758_v18 = vrot.slane %v4271_v50, %v12924_v56  ;;  %6509 = vrot.lane.b32.xlu1 %v6390_v2, %s10111_s25  ;;  %6342 = vrot.lane.b32.xlu0 %v13811_v9, %s10106_s15  ;;  %v6339_v52 = vpop.permute.xlu0 %6338 }
 0x514   : > { %6526 = vst.msk [vmem:[#allocation5 + $0x30] sm:$0xff] %vm3422_vm3, %v6506_v45 }
 0x515   : > { %v4768_v21 = vcombine.high %v4272_v59, %v4272_v59  ;;  %v4775_v1 = vrot.slane %v4272_v59, %v12924_v56  ;;  %v4765_v31 = vrot.slane %v4751_v54, %v12924_v56  ;;  %v4766_v12 = vcombine.high %v4758_v18, %v4758_v18  ;;  %6358 = vst.msk [vmem:[#allocation5 + $0x40] sm:$0xff] %vm2796_vm13, %v6339_v52 }
 0x516   : > { %v5710_v3 = vsel %vm4981_vm6, %v4758_v18, -inf }
 0x517   : > { %v5711_v17 = vrot.slane %v5710_v3, 4  ;;  %v4782_v9 = vrot.slane %v4768_v21, %v12924_v56  ;;  %v4783_v13 = vcombine.high %v4775_v1, %v4775_v1  ;;  %v5738_v24 = vsel %vm4981_vm6, %v4775_v1, -inf  ;;  %6406 = vrot.lane.b32.xlu0 %v6390_v2, %s10108_s12  ;;  %v6403_v22 = vpop.permute.xlu0 %6402 }
 0x518   : > { %v4767_v36 = vcombine.high %v4765_v31, %v4765_v31  ;;  %v5717_v40 = vsel %vm4981_vm6, %v4766_v12, -inf  ;;  %v5724_v37 = vsel %vm4981_vm6, %v4765_v31, -inf  ;;  %v5739_v34 = vrot.slane %v5738_v24, 4  ;;  %6422 = vst.msk [vmem:[#allocation5 + $0x40] sm:$0xff] %vm3021_vm14, %v6403_v22 }
 0x519   : > { %v5712_v46 = vmax.f32 %v5710_v3, %v5711_v17  ;;  %v5718_v35 = vrot.slane %v5717_v40, 4  ;;  %v5725_v25 = vrot.slane %v5724_v37, 4  ;;  %v4784_v60 = vcombine.high %v4782_v9, %v4782_v9 }
 0x51a   : > { %v5731_v11 = vsel %vm4981_vm6, %v4767_v36, -inf  ;;  %v5740_v62 = vmax.f32 %v5738_v24, %v5739_v34  ;;  %v5745_v5 = vsel %vm4981_vm6, %v4783_v13, -inf  ;;  %v5752_v4 = vsel %vm4981_vm6, %v4782_v9, -inf }
 0x51b   : > { %v5713_v48 = vrot.slane %v5712_v46, 2  ;;  %v5719_v27 = vmax.f32 %v5717_v40, %v5718_v35  ;;  %v5726_v44 = vmax.f32 %v5724_v37, %v5725_v25  ;;  %v5732_v47 = vrot.slane %v5731_v11, 4 }
 0x51c   : > { %v5741_v38 = vrot.slane %v5740_v62, 2  ;;  %v5746_v30 = vrot.slane %v5745_v5, 4  ;;  %v5753_v8 = vrot.slane %v5752_v4, 4  ;;  %v5759_v53 = vsel %vm4981_vm6, %v4784_v60, -inf }
 0x51d   : > { %v5714_v2 = vmax.f32 %v5712_v46, %v5713_v48  ;;  %v5720_v51 = vrot.slane %v5719_v27, 2  ;;  %v5727_v61 = vrot.slane %v5726_v44, 2  ;;  %v5733_v26 = vmax.f32 %v5731_v11, %v5732_v47 }
 0x51e   : > { %v5742_v55 = vmax.f32 %v5740_v62, %v5741_v38  ;;  %v5747_v14 = vmax.f32 %v5745_v5, %v5746_v30  ;;  %v5754_v42 = vmax.f32 %v5752_v4, %v5753_v8  ;;  %v5760_v33 = vrot.slane %v5759_v53, 4 }
 0x51f   : > { %v5715_v15 = vrot.slane %v5714_v2, 1  ;;  %v5721_v58 = vmax.f32 %v5719_v27, %v5720_v51  ;;  %v5728_v39 = vmax.f32 %v5726_v44, %v5727_v61  ;;  %v5734_v50 = vrot.slane %v5733_v26, 2 }
 0x520   : > { %v5743_v59 = vrot.slane %v5742_v55, 1  ;;  %v5748_v54 = vrot.slane %v5747_v14, 2  ;;  %v5755_v18 = vrot.slane %v5754_v42, 2  ;;  %v5761_v45 = vmax.f32 %v5759_v53, %v5760_v33 }
 0x521   : > { %v5716_v52 = vmax.f32 %v5714_v2, %v5715_v15  ;;  %v5722_v21 = vrot.slane %v5721_v58, 1  ;;  %v5729_v1 = vrot.slane %v5728_v39, 1  ;;  %v5735_v31 = vmax.f32 %v5733_v26, %v5734_v50 }
 0x522   : > { %v5744_v12 = vmax.f32 %v5742_v55, %v5743_v59  ;;  %v5749_v3 = vmax.f32 %v5747_v14, %v5748_v54  ;;  %v5756_v17 = vmax.f32 %v5754_v42, %v5755_v18  ;;  %v5762_v9 = vrot.slane %v5761_v45, 2 }
 0x523   : > { %v5723_v13 = vmax.f32 %v5721_v58, %v5722_v21  ;;  %v5730_v24 = vmax.f32 %v5728_v39, %v5729_v1  ;;  %v5736_v36 = vrot.slane %v5735_v31, 1  ;;  %v6023_v40 = vsel %vm2330_vm12, %v5716_v52, -inf }
 0x524   : > { %v6024_v37 = vmax.f32 %v13835_v41, %v6023_v40  ;;  %v5750_v34 = vrot.slane %v5749_v3, 1  ;;  %v5757_v46 = vrot.slane %v5756_v17, 1  ;;  %v5763_v35 = vmax.f32 %v5761_v45, %v5762_v9 }
 0x525   : > { %v5737_v60 = vmax.f32 %v5735_v31, %v5736_v36  ;;  %v6026_v22 = vsel %vm2330_vm12, %v5723_v13, -inf  ;;  %v6029_v11 = vsel %vm2330_vm12, %v5730_v24, -inf  ;;  %v6035_v62 = vsel %vm2330_vm12, %v5744_v12, -inf }
 0x526   : > { %v6027_v4 = vmax.f32 %v13838_v29, %v6026_v22  ;;  %v6030_v48 = vmax.f32 %v13841_v23, %v6029_v11  ;;  %v5751_v27 = vmax.f32 %v5749_v3, %v5750_v34  ;;  %v5758_v44 = vmax.f32 %v5756_v17, %v5757_v46 }
 0x527   : > { %v4158_v25 = vpop.f32.mrb[56].mxu1  ;;  %v6032_v41 = vsel %vm2330_vm12, %v5737_v60, -inf  ;;  %v5764_v38 = vrot.slane %v5763_v35, 1  ;;  %v6036_v30 = vmax.f32 %v13847_v32, %v6035_v62 }
 0x528   : > { %v4160_v5 = vpop.f32.mrb[57].mxu1  ;;  %v4159_v8 = vadd.f32 %v4158_v25, %v12903_v43  ;;  %v6033_v2 = vmax.f32 %v13851_v63, %v6032_v41  ;;  %v6213_v51 = vsel %vm15196_vm1, %v6027_v4, %v6024_v37  ;;  %v6038_v61 = vsel %vm2330_vm12, %v5751_v27, -inf }
 0x529   : > { %v4161_v47 = vpop.f32.mrb[58].mxu1  ;;  %v6041_v29 = vsel %vm2330_vm12, %v5758_v44, -inf  ;;  %v6214_v23 = vsel %vm15197_vm2, %v6030_v48, %v6213_v51  ;;  %v5765_v26 = vmax.f32 %v5763_v35, %v5764_v38  ;;  %v6039_v55 = vmax.f32 %v13854_v49, %v6038_v61 }
 0x52a   : > { %v4163_v53 = vpop.f32.mrb[59].mxu1  ;;  %v6042_v14 = vmax.f32 %v13861_v57, %v6041_v29  ;;  %v6215_v32 = vsel %vm6168_vm9, %v6033_v2, %v6214_v23  ;;  %v4201_v42 = vmax.f32 %v4159_v8, 0.0  ;;  %v4162_v33 = vadd.f32 %v4161_v47, %v12903_v43  ;;  %v6265_v23 = vld [vmem:[#allocation4 + $0xa8] sm:$0xff] }
 0x52b   : > { %v6043_v63 = vsel %vm2330_vm12, %v13844_v28, -inf  ;;  %v6044_v15 = vsel %vm2330_vm12, %v5765_v26, -inf  ;;  %v6216_v58 = vsel %vm6170_vm10, %v6036_v30, %v6215_v32  ;;  %vm15198_vm1 = vcmask 1040384  }
 0x52c   : > { %v6045_v39 = vmax.f32 %v6043_v63, %v6044_v15  ;;  %v6217_v50 = vsel %vm6172_vm11, %v6039_v55, %v6216_v58  ;;  %v4237_v59 = vmul.f32 %v12911_v19, %v4201_v42  ;;  %v4202_v49 = vmax.f32 %v4162_v33, 0.0  ;;  %v6267_v33 = vld [vmem:[#allocation4 + $0xb8] sm:$0xff] }
 0x52d   : > { %v6218_v57 = vsel %vm6174_vm7, %v6042_v14, %v6217_v50  ;;  %v6311_v15 = vrot.slane %v6265_v23, 7  ;;  %vm15199_vm2 = vcmask 1046528  }
 0x52e   : > { %v6219_v54 = vsel %vm6176_vm8, %v6045_v39, %v6218_v57  ;;  %v4273_v18 = vadd.f32 %v12916_v20, %v4237_v59  ;;  %v4238_v45 = vmul.f32 %v12911_v19, %v4202_v49  ;;  %v6392_v57 = vrot.slane %v6267_v33, 1 }
 0x52f   : > { %6242 = vst.msk [vmem:[#allocation4 + $0xb0] sm:$0xff] %vm2330_vm12, %v6219_v54 }
 0x530   : > { %v4785_v28 = vcombine.high %v4273_v18, %v4273_v18  ;;  %v4792_v52 = vrot.slane %v4273_v18, %v12924_v56  ;;  %v4274_v21 = vadd.f32 %v12916_v20, %v4238_v45 }
 0x532   : > { %v4799_v1 = vrot.slane %v4785_v28, %v12924_v56  ;;  %v4800_v31 = vcombine.high %v4792_v52, %v4792_v52  ;;  %v5766_v12 = vsel %vm4981_vm6, %v4792_v52, -inf  ;;  %v4802_v3 = vcombine.high %v4274_v21, %v4274_v21 }
 0x533   : > { %v5767_v17 = vrot.slane %v5766_v12, 4  ;;  %v4809_v9 = vrot.slane %v4274_v21, %v12924_v56 }
 0x534   : > { %v4801_v13 = vcombine.high %v4799_v1, %v4799_v1  ;;  %v5773_v24 = vsel %vm4981_vm6, %v4800_v31, -inf  ;;  %v5780_v36 = vsel %vm4981_vm6, %v4799_v1, -inf  ;;  %v4816_v40 = vrot.slane %v4802_v3, %v12924_v56 }
 0x535   : > { %v5768_v37 = vmax.f32 %v5766_v12, %v5767_v17  ;;  %v5774_v34 = vrot.slane %v5773_v24, 4  ;;  %v5781_v46 = vrot.slane %v5780_v36, 4  ;;  %v4817_v35 = vcombine.high %v4809_v9, %v4809_v9 }
 0x536   : > { %v5787_v25 = vsel %vm4981_vm6, %v4801_v13, -inf  ;;  %v4818_v60 = vcombine.high %v4816_v40, %v4816_v40  ;;  %v5794_v22 = vsel %vm4981_vm6, %v4809_v9, -inf  ;;  %v5808_v11 = vsel %vm4981_vm6, %v4816_v40, -inf  ;;  %v13920_v42 = vld [vmem:[#allocation4 + $0xb0] sm:$0xff] }
 0x537   : > { %v5775_v62 = vmax.f32 %v5773_v24, %v5774_v34  ;;  %v5782_v5 = vmax.f32 %v5780_v36, %v5781_v46  ;;  %v5788_v4 = vrot.slane %v5787_v25, 4  ;;  %v5795_v48 = vrot.slane %v5794_v22, 4 }
 0x538   : > { %v5801_v27 = vsel %vm4981_vm6, %v4817_v35, -inf  ;;  %v5809_v44 = vrot.slane %v5808_v11, 4  ;;  %v5815_v47 = vsel %vm4981_vm6, %v4818_v60, -inf  ;;  %v5769_v38 = vrot.slane %v5768_v37, 2 }
 0x539   : > { %v5789_v41 = vmax.f32 %v5787_v25, %v5788_v4  ;;  %v5776_v30 = vrot.slane %v5775_v62, 2  ;;  %v5802_v8 = vrot.slane %v5801_v27, 4  ;;  %v5816_v53 = vrot.slane %v5815_v47, 4 }
 0x53a   : > { %v5783_v2 = vrot.slane %v5782_v5, 2  ;;  %v5796_v61 = vmax.f32 %v5794_v22, %v5795_v48  ;;  %v5810_v29 = vmax.f32 %v5808_v11, %v5809_v44  ;;  %v5770_v55 = vmax.f32 %v5768_v37, %v5769_v38 }
 0x53b   : > { %v5790_v51 = vrot.slane %v5789_v41, 2  ;;  %v5803_v26 = vmax.f32 %v5801_v27, %v5802_v8  ;;  %v5777_v14 = vmax.f32 %v5775_v62, %v5776_v30  ;;  %v5817_v32 = vmax.f32 %v5815_v47, %v5816_v53 }
 0x53c   : > { %v5784_v63 = vmax.f32 %v5782_v5, %v5783_v2  ;;  %v5797_v39 = vrot.slane %v5796_v61, 2  ;;  %v5811_v50 = vrot.slane %v5810_v29, 2  ;;  %v6312_v49 = vrot.slane %v13920_v42, 7 }
 0x53d   : > { %v5791_v58 = vmax.f32 %v5789_v41, %v5790_v51  ;;  %v5804_v59 = vrot.slane %v5803_v26, 2  ;;  %v5771_v54 = vrot.slane %v5770_v55, 1  ;;  %v5778_v18 = vrot.slane %v5777_v14, 1 }
 0x53e   : > { %v5818_v45 = vrot.slane %v5817_v32, 2  ;;  %v5785_v52 = vrot.slane %v5784_v63, 1  ;;  %v6313_v21 = vsel %vm15198_vm1, %v6311_v15, %v6312_v49  ;;  %v6391_v1 = vrot.slane %v13920_v42, 1  ;;  %v6629_v49 = vld [vmem:[#allocation5 + $0x48] sm:$0xff] }
 0x53f   : > { %v5792_v3 = vrot.slane %v5791_v58, 1  ;;  %v5798_v17 = vmax.f32 %v5796_v61, %v5797_v39  ;;  %v5812_v9 = vmax.f32 %v5810_v29, %v5811_v50  ;;  %6546 = vrot.lane.b32.xlu1 %v6313_v21, %s10112_s28  ;;  %6329 = vst.msk [vmem:[#allocation5 + $0x70] sm:$0xff] %vm2330_vm12, %v6313_v21  ;;  %6443 = vrot.lane.b32.xlu0 %v6313_v21, %s10109_s16  ;;  %vm15201_vm1 = vcmask 1042434  }
 0x540   : > { %v5805_v36 = vmax.f32 %v5803_v26, %v5804_v59  ;;  %v6393_v40 = vsel %vm15199_vm2, %v6391_v1, %v6392_v57  ;;  %v5772_v46 = vmax.f32 %v5770_v55, %v5771_v54  ;;  %v5819_v35 = vmax.f32 %v5817_v32, %v5818_v45 }
 0x541   : > { %6617 = vst.msk [vmem:[#allocation5 + $0x58] sm:$0xff] %vm2330_vm12, %v6393_v40  ;;  %v5779_v22 = vmax.f32 %v5777_v14, %v5778_v18  ;;  %v5786_v11 = vmax.f32 %v5784_v63, %v5785_v52  ;;  %v5793_v5 = vmax.f32 %v5791_v58, %v5792_v3  ;;  %v5799_v4 = vrot.slane %v5798_v17, 1 }
 0x542   : > { %v6543_v13 = vpop.permute.xlu1 %6542  ;;  %v6440_v24 = vpop.permute.xlu0 %6439  ;;  %v5813_v48 = vrot.slane %v5812_v9, 1  ;;  %v5806_v41 = vrot.slane %v5805_v36, 1  ;;  %v13943_v38 = vsel %vm2330_vm12, %v5772_v46, -inf  ;;  %v5820_v30 = vrot.slane %v5819_v35, 1 }
 0x543   : > { %v4166_v28 = vpop.f32.mrb[60].mxu1  ;;  %6563 = vst.msk [vmem:[#allocation5 + $0x30] sm:$0xff] %vm3559_vm4, %v6543_v13  ;;  %6578 = vrot.lane.b32.xlu1 %v13920_v42, %s10113_s29  ;;  %6475 = vrot.lane.b32.xlu0 %v13920_v42, %s10110_s22  ;;  %v13947_v53 = vsel %vm2330_vm12, %v5779_v22, -inf  ;;  %v13950_v2 = vsel %vm2330_vm12, %v5786_v11, -inf  ;;  %v13954_v29 = vsel %vm2330_vm12, %v5793_v5, -inf  ;;  %v13956_v23 = vmax.f32 %v5798_v17, %v5799_v4 }
 0x544   : > { %v4167_v31 = vadd.f32 %v4166_v28, %v12903_v43  ;;  %v4168_v12 = vpop.f32.mrb[61].mxu1  ;;  %6459 = vst.msk [vmem:[#allocation5 + $0x40] sm:$0xff] %vm3158_vm15, %v6440_v24  ;;  %v13958_v26 = vmax.f32 %v5812_v9, %v5813_v48  ;;  %v13964_v32 = vmax.f32 %v5805_v36, %v5806_v41  ;;  %v13970_v39 = vmax.f32 %v5819_v35, %v5820_v30 }
 0x545   : > { %v4169_v34 = vpop.f32.mrb[62].mxu1  ;;  %vm15202_vm2 = vcmask 1040384  }
 0x546   : > { %v4203_v37 = vmax.f32 %v4167_v31, 0.0  ;;  %v4170_v25 = vadd.f32 %v4169_v34, %v12903_v43  ;;  %v4171_v60 = vpop.f32.mrb[63].mxu1  ;;  %v6575_v27 = vpop.permute.xlu1 %6574  ;;  %v6624_v31 = vld [vmem:[#allocation5 + $0x20] sm:$0xff] }
 0x547   : > { %v6472_v44 = vpop.permute.xlu0 %6471  ;;  %6595 = vst.msk [vmem:[#allocation5 + $0x30] sm:$0xff] %vm3688_vm5, %v6575_v27  ;;  %6344 = vrot.lane.b32.xlu1 %v13920_v42, %s10106_s15  ;;  %6511 = vrot.lane.b32.xlu0 %v6393_v40, %s10111_s25  ;;  %s14830_s15 = scalar_lea.vmem %s15155_s11, %s9918_s19 }
 0x548   : > { %v4239_v62 = vmul.f32 %v12911_v19, %v4203_v37  ;;  %v4204_v47 = vmax.f32 %v4170_v25, 0.0  ;;  %6491 = vst.msk [vmem:[#allocation5 + $0x40] sm:$0xff] %vm3287_vm0, %v6472_v44  ;;  %v6631_v58 = vld [vmem:[#allocation5 + $0x58] sm:$0xff] }
 0x549   : > { %v6641_v18 = vpack.c.bf16 %v6631_v58, %v6629_v49 }
 0x54a   : > { %v4275_v43 = vadd.f32 %v12916_v20, %v4239_v62  ;;  %v4240_v8 = vmul.f32 %v12911_v19, %v4204_v47  ;;  %v6341_v19 = vpop.permute.xlu1 %6340 }
 0x54b   : > { %v6508_v55 = vpop.permute.xlu0 %6507  ;;  %6359 = vst.msk [vmem:[#allocation5 + $0x50] sm:$0xff] %vm2796_vm13, %v6341_v19  ;;  %6408 = vrot.lane.b32.xlu1 %v6393_v40, %s10108_s12 }
 0x54c   : > { %v4819_v51 = vcombine.high %v4275_v43, %v4275_v43  ;;  %v4826_v61 = vrot.slane %v4275_v43, %v12924_v56  ;;  %v4276_v14 = vadd.f32 %v12916_v20, %v4240_v8  ;;  %6527 = vst.msk [vmem:[#allocation5 + $0x40] sm:$0xff] %vm3422_vm3, %v6508_v55 }
 0x54e   : > { %v4833_v33 = vrot.slane %v4819_v51, %v12924_v56  ;;  %v4834_v63 = vcombine.high %v4826_v61, %v4826_v61  ;;  %v5822_v15 = vsel %vm4981_vm6, %v4826_v61, -inf  ;;  %v4836_v50 = vcombine.high %v4276_v14, %v4276_v14  ;;  %v6405_v1 = vpop.permute.xlu1 %6404  ;;  %v6626_v12 = vld [vmem:[#allocation5 + $0x30] sm:$0xff] }
 0x54f   : > { %v5823_v42 = vrot.slane %v5822_v15, 4  ;;  %v4843_v59 = vrot.slane %v4276_v14, %v12924_v56  ;;  %6423 = vst.msk [vmem:[#allocation5 + $0x50] sm:$0xff] %vm3021_vm14, %v6405_v1  ;;  %v6638_v13 = vpack.c.bf16 %v6626_v12, %v6624_v31 }
 0x550   : > { %v4835_v20 = vcombine.high %v4833_v33, %v4833_v33  ;;  %v5829_v57 = vsel %vm4981_vm6, %v4834_v63, -inf  ;;  %v5836_v54 = vsel %vm4981_vm6, %v4833_v33, -inf  ;;  %v4850_v21 = vrot.slane %v4836_v50, %v12924_v56 }
 0x551   : > { %v5824_v45 = vmax.f32 %v5822_v15, %v5823_v42  ;;  %v5830_v28 = vrot.slane %v5829_v57, 4  ;;  %v5837_v52 = vrot.slane %v5836_v54, 4  ;;  %v4851_v17 = vcombine.high %v4843_v59, %v4843_v59  ;;  %6774 = vmatmul.mubr.bf16.gmra.mrb[36].mxu0 %v6638_v13 }
 0x552   : > { %v5843_v3 = vsel %vm4981_vm6, %v4835_v20, -inf  ;;  %v5850_v9 = vsel %vm4981_vm6, %v4843_v59, -inf  ;;  %v4852_v46 = vcombine.high %v4850_v21, %v4850_v21  ;;  %v5864_v40 = vsel %vm4981_vm6, %v4850_v21, -inf  ;;  %9897 = vmatprep.mubr.msk.bf16.mxu0 %vm2330_vm12, %v6641_v18 }
 0x553   : > { %v5825_v24 = vrot.slane %v5824_v45, 2  ;;  %v5831_v36 = vmax.f32 %v5829_v57, %v5830_v28  ;;  %v5838_v37 = vmax.f32 %v5836_v54, %v5837_v52  ;;  %v5844_v34 = vrot.slane %v5843_v3, 4 }
 0x554   : > { %v5851_v35 = vrot.slane %v5850_v9, 4  ;;  %v5857_v25 = vsel %vm4981_vm6, %v4851_v17, -inf  ;;  %v5865_v48 = vrot.slane %v5864_v40, 4  ;;  %v5871_v27 = vsel %vm4981_vm6, %v4852_v46, -inf }
 0x555   : > { %v5826_v60 = vmax.f32 %v5824_v45, %v5825_v24  ;;  %v5832_v22 = vrot.slane %v5831_v36, 2  ;;  %v5839_v11 = vrot.slane %v5838_v37, 2  ;;  %v5845_v62 = vmax.f32 %v5843_v3, %v5844_v34 }
 0x556   : > { %v5852_v5 = vmax.f32 %v5850_v9, %v5851_v35  ;;  %v5858_v4 = vrot.slane %v5857_v25, 4  ;;  %v5866_v51 = vmax.f32 %v5864_v40, %v5865_v48  ;;  %v5872_v61 = vrot.slane %v5871_v27, 4 }
 0x557   : > { %v5827_v44 = vrot.slane %v5826_v60, 1  ;;  %v5833_v47 = vmax.f32 %v5831_v36, %v5832_v22  ;;  %v5840_v41 = vmax.f32 %v5838_v37, %v5839_v11  ;;  %v5846_v43 = vrot.slane %v5845_v62, 2 }
 0x558   : > { %v5853_v30 = vrot.slane %v5852_v5, 2  ;;  %v5859_v8 = vmax.f32 %v5857_v25, %v5858_v4  ;;  %v5867_v58 = vrot.slane %v5866_v51, 2  ;;  %v5873_v42 = vmax.f32 %v5871_v27, %v5872_v61 }
 0x559   : > { %v5828_v19 = vmax.f32 %v5826_v60, %v5827_v44  ;;  %v5834_v55 = vrot.slane %v5833_v47, 1  ;;  %v5841_v14 = vrot.slane %v5840_v41, 1  ;;  %v5847_v33 = vmax.f32 %v5845_v62, %v5846_v43  ;;  %v6270_v43 = vld [vmem:[#allocation4 + $0xd0] sm:$0xff] }
 0x55a   : > { %v5854_v63 = vmax.f32 %v5852_v5, %v5853_v30  ;;  %v5860_v15 = vrot.slane %v5859_v8, 2  ;;  %v5868_v45 = vmax.f32 %v5866_v51, %v5867_v58  ;;  %v5874_v1 = vrot.slane %v5873_v42, 2 }
 0x55b   : > { %v5835_v50 = vmax.f32 %v5833_v47, %v5834_v55  ;;  %v5842_v59 = vmax.f32 %v5840_v41, %v5841_v14  ;;  %v5848_v49 = vrot.slane %v5847_v33, 1  ;;  %v6047_v20 = vsel %vm2330_vm12, %v5828_v19, -inf  ;;  %v6268_v41 = vld [vmem:[#allocation4 + $0xc0] sm:$0xff]  ;;  %v6271_v14 = vld [vmem:[#allocation4 + $0xd8] sm:$0xff] }
 0x55c   : > { %v6048_v57 = vmax.f32 %v13943_v38, %v6047_v20  ;;  %v5855_v54 = vrot.slane %v5854_v63, 1  ;;  %v5861_v18 = vmax.f32 %v5859_v8, %v5860_v15  ;;  %v6058_v9 = vsel %vm2330_vm12, %v13956_v23, -inf }
 0x55d   : > { %v5849_v28 = vmax.f32 %v5847_v33, %v5848_v49  ;;  %v6050_v52 = vsel %vm2330_vm12, %v5835_v50, -inf  ;;  %v6053_v21 = vsel %vm2330_vm12, %v5842_v59, -inf  ;;  %v5869_v13 = vrot.slane %v5868_v45, 1 }
 0x55e   : > { %v6051_v31 = vmax.f32 %v13947_v53, %v6050_v52  ;;  %v6054_v12 = vmax.f32 %v13950_v2, %v6053_v21  ;;  %v5856_v3 = vmax.f32 %v5854_v63, %v5855_v54  ;;  %v5862_v17 = vrot.slane %v5861_v18, 1  ;;  %v10089_v63 = vld [vmem:[#allocation4 + $0xe0] sm:$0xff] }
 0x55f   : > { %v6056_v38 = vsel %vm2330_vm12, %v5849_v28, -inf  ;;  %v5875_v24 = vmax.f32 %v5873_v42, %v5874_v1  ;;  %vm15200_vm6 = vcmask 1041409   ;;  %v5870_v35 = vmax.f32 %v5868_v45, %v5869_v13  ;;  %v6662_v21 = vld [vmem:[%s15150_s6] sm:$0x7] }
 0x560   : > { %v6057_v36 = vmax.f32 %v13954_v29, %v6056_v38  ;;  %v6220_v37 = vsel %vm15200_vm6, %v6051_v31, %v6048_v57  ;;  %v5863_v34 = vmax.f32 %v5861_v18, %v5862_v17  ;;  %v6059_v46 = vsel %vm2330_vm12, %v5856_v3, -inf  ;;  %v6635_v17 = vld [vmem:[#allocation5 + $0x78] sm:$0xff] }
 0x561   : > { %v6221_v53 = vsel %vm15201_vm1, %v6054_v12, %v6220_v37  ;;  %v5876_v2 = vrot.slane %v5875_v24, 1  ;;  %v6060_v25 = vmax.f32 %v6058_v9, %v6059_v46  ;;  %v6061_v40 = vsel %vm2330_vm12, %v13964_v32, -inf  ;;  %vm15204_vm1 = vmmov %vm15202_vm2 }
 0x562   : > { %v6064_v23 = vsel %vm2330_vm12, %v13958_v26, -inf  ;;  %v6062_v60 = vsel %vm2330_vm12, %v5863_v34, -inf  ;;  %v6222_v29 = vsel %vm6168_vm9, %v6057_v36, %v6221_v53  ;;  %v6065_v62 = vsel %vm2330_vm12, %v5870_v35, -inf }
 0x563   : > { %v5877_v22 = vmax.f32 %v5875_v24, %v5876_v2  ;;  %v6063_v11 = vmax.f32 %v6061_v40, %v6062_v60  ;;  %v6223_v5 = vsel %vm6170_vm10, %v6060_v25, %v6222_v29  ;;  %v6066_v4 = vmax.f32 %v6064_v23, %v6065_v62 }
 0x564   : > { %v6067_v48 = vsel %vm2330_vm12, %v13970_v39, -inf  ;;  %v6428_v30 = vrot.slane %v6268_v41, 7  ;;  %v6497_v8 = vrot.slane %v6270_v43, 1  ;;  %vm15203_vm6 = vcmask 1046528  }
 0x565   : > { %v6068_v27 = vsel %vm2330_vm12, %v5877_v22, -inf  ;;  %v6224_v32 = vsel %vm6172_vm11, %v6063_v11, %v6223_v5  ;;  %v6533_v33 = vrot.slane %v6271_v14, 7  ;;  %v6534_v15 = vrot.slane %v10089_v63, 7 }
 0x566   : > { %v6069_v44 = vmax.f32 %v6067_v48, %v6068_v27  ;;  %v6225_v26 = vsel %vm6174_vm7, %v6066_v4, %v6224_v32  ;;  %v14040_v12 = vrot.slane %v6662_v21, %v11479_v7  ;;  %v14045_v34 = vrot.slane %v6662_v21, %v11494_v6 }
 0x567   : > { %v6535_v58 = vsel %vm15204_vm1, %v6533_v33, %v6534_v15  ;;  %v14048_v25 = vrot.slane %v6662_v21, %v11498_v16 }
 0x568   : > { %v6226_v47 = vsel %vm6176_vm8, %v6069_v44, %v6225_v26 }
 0x569   : > { %6243 = vst.msk [vmem:[#allocation4 + $0xc8] sm:$0xff] %vm2330_vm12, %v6226_v47 }
 0x570   : > { %v6269_v51 = vld [vmem:[#allocation4 + $0xc8] sm:$0xff] }
 0x571   : > { %v6429_v61 = vrot.slane %v6269_v51, 7  ;;  %v6496_v19 = vrot.slane %v6269_v51, 1 }
 0x573   : > { %v6430_v39 = vsel %vm15202_vm2, %v6428_v30, %v6429_v61  ;;  %v6498_v55 = vsel %vm15203_vm6, %v6496_v19, %v6497_v8  ;;  %vm15205_vm2 = vcmask 1041409   ;;  %vm15206_vm6 = vcmask 1042434  }
 0x574   : > { %6445 = vrot.lane.b32.xlu1 %v6430_v39, %s10109_s16  ;;  %6548 = vrot.lane.b32.xlu0 %v6430_v39, %s10112_s28  ;;  %6618 = vst.msk [vmem:[#allocation5 + $0x68] sm:$0xff] %vm2330_vm12, %v6498_v55 }
 0x578   : > { %6477 = vrot.lane.b32.xlu1 %v6269_v51, %s10110_s22  ;;  %6580 = vrot.lane.b32.xlu0 %v6269_v51, %s10113_s29 }
 0x57b   : > { %v6633_v3 = vld [vmem:[#allocation5 + $0x68] sm:$0xff] }
 0x57c   : > { %6513 = vrot.lane.b32.xlu1 %v6498_v55, %s10111_s25  ;;  %v6643_v53 = vpack.c.bf16 %v6635_v17, %v6633_v3 }
 0x57d   : > { %v6442_v42 = vpop.permute.xlu1 %6441  ;;  %v6545_v50 = vpop.permute.xlu0 %6544 }
 0x57e   : > { %6460 = vst.msk [vmem:[#allocation5 + $0x50] sm:$0xff] %vm3158_vm15, %v6442_v42 }
 0x57f   : > { %6564 = vst.msk [vmem:[#allocation5 + $0x40] sm:$0xff] %vm3559_vm4, %v6545_v50 }
 0x580   : > { %6550 = vrot.lane.b32.xlu1 %v6535_v58, %s10112_s28 }
 0x581   : > { %v6474_v59 = vpop.permute.xlu1 %6473  ;;  %v6577_v49 = vpop.permute.xlu0 %6576 }
 0x582   : > { %6492 = vst.msk [vmem:[#allocation5 + $0x50] sm:$0xff] %vm3287_vm0, %v6474_v59 }
 0x583   : > { %6596 = vst.msk [vmem:[#allocation5 + $0x40] sm:$0xff] %vm3688_vm5, %v6577_v49 }
 0x584   : > { %6582 = vrot.lane.b32.xlu1 %v10089_v63, %s10113_s29 }
 0x585   : > { %v6510_v20 = vpop.permute.xlu1 %6509  ;;  %v6343_v57 = vpop.permute.xlu0 %6342 }
 0x586   : > { %6528 = vst.msk [vmem:[#allocation5 + $0x50] sm:$0xff] %vm3422_vm3, %v6510_v20 }
 0x587   : > { %6360 = vst.msk [vmem:[#allocation5 + $0x60] sm:$0xff] %vm2796_vm13, %v6343_v57 }
 0x589   : > { %v6407_v54 = vpop.permute.xlu0 %6406 }
 0x58a   : > { %6424 = vst.msk [vmem:[#allocation5 + $0x60] sm:$0xff] %vm3021_vm14, %v6407_v54  ;;  %v6628_v38 = vld [vmem:[#allocation5 + $0x40] sm:$0xff] }
 0x5b1   : > { %v6547_v18 = vpop.permute.xlu1 %6546  ;;  %v6444_v45 = vpop.permute.xlu0 %6443 }
 0x5b2   : > { %6565 = vst.msk [vmem:[#allocation5 + $0x50] sm:$0xff] %vm3559_vm4, %v6547_v18 }
 0x5b3   : > { %6461 = vst.msk [vmem:[#allocation5 + $0x60] sm:$0xff] %vm3158_vm15, %v6444_v45 }
 0x5b5   : > { %v6579_v28 = vpop.permute.xlu1 %6578  ;;  %v6476_v52 = vpop.permute.xlu0 %6475 }
 0x5b6   : > { %6597 = vst.msk [vmem:[#allocation5 + $0x50] sm:$0xff] %vm3688_vm5, %v6579_v28 }
 0x5b7   : > { %6493 = vst.msk [vmem:[#allocation5 + $0x60] sm:$0xff] %vm3287_vm0, %v6476_v52 }
 0x5b9   : > { %v6345_v1 = vpop.permute.xlu1 %6344  ;;  %v6512_v31 = vpop.permute.xlu0 %6511 }
 0x5ba   : > { %6361 = vst.msk [vmem:[#allocation5 + $0x70] sm:$0xff] %vm2796_vm13, %v6345_v1  ;;  %vm7006_vm13 = vcmask 254976  }
 0x5bb   : > { %6529 = vst.msk [vmem:[#allocation5 + $0x60] sm:$0xff] %vm3422_vm3, %v6512_v31 }
 0x5bd   : > { %v6409_v9 = vpop.permute.xlu1 %6408  ;;  %v6630_v13 = vld [vmem:[#allocation5 + $0x50] sm:$0xff] }
 0x5be   : > { %6425 = vst.msk [vmem:[#allocation5 + $0x70] sm:$0xff] %vm3021_vm14, %v6409_v9  ;;  %v6640_v36 = vpack.c.bf16 %v6630_v13, %v6628_v38  ;;  %vm7231_vm14 = vcmask 261120  }
 0x5c0   : > { %6782 = vmatmul.mubr.bf16.gmra.mrb[40].mxu0 %v6640_v36 }
 0x5c1   : > { %9898 = vmatprep.mubr.msk.bf16.mxu0 %vm2330_vm12, %v6643_v53 }
 0x5c5   : > { %v6767_v24 = vpop.f32.mrb[32].mxu0 }
 0x5c6   : > { %v6768_v37 = vadd.f32 %v6767_v24, %v14040_v12  ;;  %v6769_v46 = vpop.f32.mrb[33].mxu0 }
 0x5c7   : > { %v6770_v35 = vpop.f32.mrb[34].mxu0 }
 0x5c8   : > { %v6798_v2 = vmax.f32 %v6768_v37, 0.0  ;;  %v6771_v40 = vadd.f32 %v6770_v35, %v14040_v12  ;;  %v6772_v23 = vpop.f32.mrb[35].mxu0 }
 0x5ca   : > { %v6810_v60 = vmul.f32 %v14045_v34, %v6798_v2  ;;  %v6799_v29 = vmax.f32 %v6771_v40, 0.0 }
 0x5cc   : > { %v6822_v22 = vadd.f32 %v14048_v25, %v6810_v60  ;;  %v6811_v11 = vmul.f32 %v14045_v34, %v6799_v29 }
 0x5ce   : > { %v6838_v62 = vcombine.high %v6822_v22, %v6822_v22  ;;  %v6845_v5 = vrot.slane %v6822_v22, %v12924_v56  ;;  %v6823_v4 = vadd.f32 %v14048_v25, %v6811_v11 }
 0x5d0   : > { %v6852_v48 = vrot.slane %v6838_v62, %v12924_v56  ;;  %v6853_v27 = vcombine.high %v6845_v5, %v6845_v5  ;;  %v7007_v32 = vsel %vm7006_vm13, %v6845_v5, -inf  ;;  %v6855_v44 = vcombine.high %v6823_v4, %v6823_v4 }
 0x5d1   : > { %v7008_v26 = vrot.slane %v7007_v32, 4  ;;  %v6862_v47 = vrot.slane %v6823_v4, %v12924_v56 }
 0x5d2   : > { %v6854_v41 = vcombine.high %v6852_v48, %v6852_v48  ;;  %v7014_v43 = vsel %vm7006_vm13, %v6853_v27, -inf  ;;  %v7021_v30 = vsel %vm7006_vm13, %v6852_v48, -inf  ;;  %v6869_v8 = vrot.slane %v6855_v44, %v12924_v56 }
 0x5d3   : > { %v7009_v51 = vmax.f32 %v7007_v32, %v7008_v26  ;;  %v7015_v61 = vrot.slane %v7014_v43, 4  ;;  %v7022_v19 = vrot.slane %v7021_v30, 4  ;;  %v6870_v39 = vcombine.high %v6862_v47, %v6862_v47 }
 0x5d4   : > { %v7028_v55 = vsel %vm7006_vm13, %v6854_v41, -inf  ;;  %v6871_v14 = vcombine.high %v6869_v8, %v6869_v8  ;;  %v7035_v33 = vsel %vm7006_vm13, %v6862_v47, -inf  ;;  %v7049_v63 = vsel %vm7006_vm13, %v6869_v8, -inf }
 0x5d5   : > { %v7010_v15 = vrot.slane %v7009_v51, 2  ;;  %v7016_v58 = vmax.f32 %v7014_v43, %v7015_v61  ;;  %v7023_v42 = vmax.f32 %v7021_v30, %v7022_v19  ;;  %v7029_v50 = vrot.slane %v7028_v55, 4 }
 0x5d6   : > { %v7036_v59 = vrot.slane %v7035_v33, 4  ;;  %v7042_v49 = vsel %vm7006_vm13, %v6870_v39, -inf  ;;  %v7050_v20 = vrot.slane %v7049_v63, 4  ;;  %v7056_v57 = vsel %vm7006_vm13, %v6871_v14, -inf }
 0x5d7   : > { %v7011_v54 = vmax.f32 %v7009_v51, %v7010_v15  ;;  %v7017_v18 = vrot.slane %v7016_v58, 2  ;;  %v7024_v45 = vrot.slane %v7023_v42, 2  ;;  %v7030_v28 = vmax.f32 %v7028_v55, %v7029_v50 }
 0x5d8   : > { %v7037_v52 = vmax.f32 %v7035_v33, %v7036_v59  ;;  %v7043_v21 = vrot.slane %v7042_v49, 4  ;;  %v7051_v1 = vmax.f32 %v7049_v63, %v7050_v20  ;;  %v7057_v31 = vrot.slane %v7056_v57, 4 }
 0x5d9   : > { %v7012_v3 = vrot.slane %v7011_v54, 1  ;;  %v7018_v17 = vmax.f32 %v7016_v58, %v7017_v18  ;;  %v7025_v9 = vmax.f32 %v7023_v42, %v7024_v45  ;;  %v7031_v38 = vrot.slane %v7030_v28, 2 }
 0x5da   : > { %v7038_v13 = vrot.slane %v7037_v52, 2  ;;  %v7044_v24 = vmax.f32 %v7042_v49, %v7043_v21  ;;  %v7052_v36 = vrot.slane %v7051_v1, 2  ;;  %v7058_v37 = vmax.f32 %v7056_v57, %v7057_v31 }
 0x5db   : > { %v7019_v46 = vrot.slane %v7018_v17, 1  ;;  %v7026_v53 = vrot.slane %v7025_v9, 1  ;;  %v7032_v35 = vmax.f32 %v7030_v28, %v7031_v38  ;;  %v7013_v29 = vmax.f32 %v7011_v54, %v7012_v3 }
 0x5dc   : > { %v7039_v2 = vmax.f32 %v7037_v52, %v7038_v13  ;;  %v7045_v40 = vrot.slane %v7044_v24, 2  ;;  %v7053_v23 = vmax.f32 %v7051_v1, %v7052_v36  ;;  %v7059_v60 = vrot.slane %v7058_v37, 2 }
 0x5dd   : > { %v7027_v22 = vmax.f32 %v7025_v9, %v7026_v53  ;;  %v7033_v11 = vrot.slane %v7032_v35, 1  ;;  %v7020_v27 = vmax.f32 %v7018_v17, %v7019_v46  ;;  %v7232_v43 = vsel %vm7231_vm14, %v7013_v29, -inf }
 0x5de   : > { %v7040_v62 = vrot.slane %v7039_v2, 1  ;;  %v7046_v5 = vmax.f32 %v7044_v24, %v7045_v40  ;;  %v7054_v4 = vrot.slane %v7053_v23, 1  ;;  %v7060_v48 = vmax.f32 %v7058_v37, %v7059_v60 }
 0x5df   : > { %v7034_v32 = vmax.f32 %v7032_v35, %v7033_v11  ;;  %v7238_v30 = vsel %vm7231_vm14, %v7027_v22, -inf  ;;  %v7235_v14 = vsel %vm7231_vm14, %v7020_v27, -inf }
 0x5e0   : > { %v7041_v44 = vmax.f32 %v7039_v2, %v7040_v62  ;;  %v7047_v26 = vrot.slane %v7046_v5, 1  ;;  %v7055_v47 = vmax.f32 %v7053_v23, %v7054_v4  ;;  %v7061_v41 = vrot.slane %v7060_v48, 1 }
 0x5e1   : > { %v7241_v33 = vsel %vm7231_vm14, %v7034_v32, -inf }
 0x5e2   : > { %v7048_v8 = vmax.f32 %v7046_v5, %v7047_v26  ;;  %v7062_v51 = vmax.f32 %v7060_v48, %v7061_v41  ;;  %v7233_v61 = vsel %vm7231_vm14, %v7041_v44, -inf  ;;  %v7239_v19 = vsel %vm7231_vm14, %v7055_v47, -inf }
 0x5e3   : > { %v7234_v39 = vmax.f32 %v7232_v43, %v7233_v61  ;;  %v7240_v55 = vmax.f32 %v7238_v30, %v7239_v19 }
 0x5e4   : > { %v7236_v63 = vsel %vm7231_vm14, %v7048_v8, -inf  ;;  %v7242_v15 = vsel %vm7231_vm14, %v7062_v51, -inf }
 0x5e5   : > { %v7237_v58 = vmax.f32 %v7235_v14, %v7236_v63  ;;  %v7243_v42 = vmax.f32 %v7241_v33, %v7242_v15  ;;  %v7280_v50 = vpack.c.bf16 %v7234_v39, %v7234_v39  ;;  %v7282_v59 = vpack.c.bf16 %v7240_v55, %v7240_v55 }
 0x5e6   : > { %v6446_v57 = vpop.permute.xlu1 %6445  ;;  %v6549_v54 = vpop.permute.xlu0 %6548 }
 0x5e7   : > { %v7281_v49 = vpack.c.bf16 %v7237_v58, %v7237_v58  ;;  %v7283_v20 = vpack.c.bf16 %v7243_v42, %v7243_v42  ;;  %v7323_v18 = vunpack.c.l.b16 %v7282_v59  ;;  %6462 = vst.msk [vmem:[#allocation5 + $0x70] sm:$0xff] %vm3158_vm15, %v6446_v57  ;;  %v7321_v45 = vunpack.c.l.b16 %v7280_v50 }
 0x5e8   : > { %6566 = vst.msk [vmem:[#allocation5 + $0x60] sm:$0xff] %vm3559_vm4, %v6549_v54  ;;  %vm10115_vm15 = vmmov 0  }
 0x5e9   : > { %v7322_v28 = vunpack.c.l.b16 %v7281_v49  ;;  %v7324_v52 = vunpack.c.l.b16 %v7283_v20 }
 0x5ea   : > { %v6478_v1 = vpop.permute.xlu1 %6477  ;;  %v6581_v31 = vpop.permute.xlu0 %6580 }
 0x5eb   : > { %v7337_v21 = vsel %vm15205_vm2, %v7322_v28, %v7321_v45  ;;  %6494 = vst.msk [vmem:[#allocation5 + $0x70] sm:$0xff] %vm3287_vm0, %v6478_v1  ;;  %vm15207_vm0 = vmmov %vm15205_vm2 }
 0x5ec   : > { %v7338_v3 = vsel %vm15206_vm6, %v7323_v18, %v7337_v21  ;;  %6598 = vst.msk [vmem:[#allocation5 + $0x60] sm:$0xff] %vm3688_vm5, %v6581_v31  ;;  %vm15218_vm2 = vmmov %vm15204_vm1 }
 0x5ed   : > { %v14083_v17 = vsel %vm6168_vm9, %v7324_v52, %v7338_v3 }
 0x5ee   : > { %v6514_v9 = vpop.permute.xlu1 %6513 }
 0x5ef   : > { %6530 = vst.msk [vmem:[#allocation5 + $0x70] sm:$0xff] %vm3422_vm3, %v6514_v9  ;;  %vm15208_vm3 = vmmov %vm15206_vm6 }
 0x5f0   : > { %vm15219_vm6 = vmmov %vm15204_vm1 }
 0x5f2   : > { %v6551_v38 = vpop.permute.xlu1 %6550 }
 0x5f3   : > { %6567 = vst.msk [vmem:[#allocation5 + $0x70] sm:$0xff] %vm3559_vm4, %v6551_v38  ;;  %v6632_v24 = vld [vmem:[#allocation5 + $0x60] sm:$0xff]  ;;  %vm15209_vm4 = vmmov %vm15204_vm1 }
 0x5f6   : > { %v6583_v13 = vpop.permute.xlu1 %6582 }
 0x5f7   : > { %6599 = vst.msk [vmem:[#allocation5 + $0x70] sm:$0xff] %vm3688_vm5, %v6583_v13  ;;  %vm15210_vm5 = vmmov %vm15204_vm1 }
 0x5fe   : > { %v6634_v36 = vld [vmem:[#allocation5 + $0x70] sm:$0xff] }
 0x5ff   : > { %v6642_v37 = vpack.c.bf16 %v6634_v36, %v6632_v24 }
 0x601   : > { %6790 = vmatmul.mubr.bf16.gmra.mrb[44].mxu0 %v6642_v37 }
 0x602   : > { %9986 = vmatprep.mubr.msk.bf16.mxu0 %vm10115_vm15, %v10098_v0  ;;  %vm15220_vm15 = vmmov %vm15204_vm1 }
 0x624   : > { %v6775_v46 = vpop.f32.mrb[36].mxu0 }
 0x625   : > { %v6776_v53 = vadd.f32 %v6775_v46, %v14040_v12  ;;  %v6777_v35 = vpop.f32.mrb[37].mxu0 }
 0x626   : > { %v6778_v2 = vpop.f32.mrb[38].mxu0 }
 0x627   : > { %v6800_v40 = vmax.f32 %v6776_v53, 0.0  ;;  %v6779_v23 = vadd.f32 %v6778_v2, %v14040_v12  ;;  %v6780_v60 = vpop.f32.mrb[39].mxu0 }
 0x629   : > { %v6812_v29 = vmul.f32 %v14045_v34, %v6800_v40  ;;  %v6801_v22 = vmax.f32 %v6779_v23, 0.0 }
 0x62b   : > { %v6824_v11 = vadd.f32 %v14048_v25, %v6812_v29  ;;  %v6813_v62 = vmul.f32 %v14045_v34, %v6801_v22 }
 0x62d   : > { %v6872_v5 = vcombine.high %v6824_v11, %v6824_v11  ;;  %v6879_v4 = vrot.slane %v6824_v11, %v12924_v56  ;;  %v6825_v48 = vadd.f32 %v14048_v25, %v6813_v62 }
 0x62f   : > { %v6886_v27 = vrot.slane %v6872_v5, %v12924_v56  ;;  %v6887_v32 = vcombine.high %v6879_v4, %v6879_v4  ;;  %v7063_v44 = vsel %vm7006_vm13, %v6879_v4, -inf  ;;  %v6889_v26 = vcombine.high %v6825_v48, %v6825_v48 }
 0x630   : > { %v7064_v47 = vrot.slane %v7063_v44, 4  ;;  %v6896_v41 = vrot.slane %v6825_v48, %v12924_v56 }
 0x631   : > { %v6888_v43 = vcombine.high %v6886_v27, %v6886_v27  ;;  %v7070_v30 = vsel %vm7006_vm13, %v6887_v32, -inf  ;;  %v7077_v8 = vsel %vm7006_vm13, %v6886_v27, -inf  ;;  %v6903_v51 = vrot.slane %v6889_v26, %v12924_v56 }
 0x632   : > { %v7065_v61 = vmax.f32 %v7063_v44, %v7064_v47  ;;  %v7071_v19 = vrot.slane %v7070_v30, 4  ;;  %v7078_v39 = vrot.slane %v7077_v8, 4  ;;  %v6904_v55 = vcombine.high %v6896_v41, %v6896_v41 }
 0x633   : > { %v7084_v14 = vsel %vm7006_vm13, %v6888_v43, -inf  ;;  %v6905_v33 = vcombine.high %v6903_v51, %v6903_v51  ;;  %v7091_v63 = vsel %vm7006_vm13, %v6896_v41, -inf  ;;  %v7105_v15 = vsel %vm7006_vm13, %v6903_v51, -inf }
 0x634   : > { %v7066_v58 = vrot.slane %v7065_v61, 2  ;;  %v7072_v42 = vmax.f32 %v7070_v30, %v7071_v19  ;;  %v7079_v50 = vmax.f32 %v7077_v8, %v7078_v39  ;;  %v7085_v59 = vrot.slane %v7084_v14, 4 }
 0x635   : > { %v7092_v49 = vrot.slane %v7091_v63, 4  ;;  %v7098_v20 = vsel %vm7006_vm13, %v6904_v55, -inf  ;;  %v7106_v57 = vrot.slane %v7105_v15, 4  ;;  %v7112_v54 = vsel %vm7006_vm13, %v6905_v33, -inf }
 0x636   : > { %v7067_v18 = vmax.f32 %v7065_v61, %v7066_v58  ;;  %v7073_v45 = vrot.slane %v7072_v42, 2  ;;  %v7080_v28 = vrot.slane %v7079_v50, 2  ;;  %v7086_v52 = vmax.f32 %v7084_v14, %v7085_v59 }
 0x637   : > { %v7093_v21 = vmax.f32 %v7091_v63, %v7092_v49  ;;  %v7099_v1 = vrot.slane %v7098_v20, 4  ;;  %v7107_v31 = vmax.f32 %v7105_v15, %v7106_v57  ;;  %v7113_v3 = vrot.slane %v7112_v54, 4 }
 0x638   : > { %v7068_v9 = vrot.slane %v7067_v18, 1  ;;  %v7074_v38 = vmax.f32 %v7072_v42, %v7073_v45  ;;  %v7081_v13 = vmax.f32 %v7079_v50, %v7080_v28  ;;  %v7087_v24 = vrot.slane %v7086_v52, 2 }
 0x639   : > { %v7094_v36 = vrot.slane %v7093_v21, 2  ;;  %v7100_v37 = vmax.f32 %v7098_v20, %v7099_v1  ;;  %v7108_v46 = vrot.slane %v7107_v31, 2  ;;  %v7114_v53 = vmax.f32 %v7112_v54, %v7113_v3 }
 0x63a   : > { %v7075_v35 = vrot.slane %v7074_v38, 1  ;;  %v7082_v2 = vrot.slane %v7081_v13, 1  ;;  %v7088_v40 = vmax.f32 %v7086_v52, %v7087_v24  ;;  %v7069_v11 = vmax.f32 %v7067_v18, %v7068_v9  ;;  %v10050_v9 = vld [vmem:[%s15151_s7] sm:$0xff]  }
 0x63b   : > { %v7095_v23 = vmax.f32 %v7093_v21, %v7094_v36  ;;  %v7101_v60 = vrot.slane %v7100_v37, 2  ;;  %v7109_v29 = vmax.f32 %v7107_v31, %v7108_v46  ;;  %v7115_v22 = vrot.slane %v7114_v53, 2  ;;  %9983 = vmatpush3.bf16.msra.mxu0 %v10050_v9 }
 0x63c   : > { %v7083_v62 = vmax.f32 %v7081_v13, %v7082_v2  ;;  %v7089_v5 = vrot.slane %v7088_v40, 1  ;;  %v7076_v44 = vmax.f32 %v7074_v38, %v7075_v35  ;;  %v7244_v8 = vsel %vm7231_vm14, %v7069_v11, -inf  ;;  %v10051_v38 = vld [vmem:[%s15151_s7 + $0x8] sm:$0xff]   ;;  %9984 = vmatprep.subr.bf16.mxu0 %v10098_v0 }
 0x63d   : > { %v7096_v4 = vrot.slane %v7095_v23, 1  ;;  %v7102_v48 = vmax.f32 %v7100_v37, %v7101_v60  ;;  %v7110_v27 = vrot.slane %v7109_v29, 1  ;;  %v7116_v32 = vmax.f32 %v7114_v53, %v7115_v22 }
 0x63e   : > { %v7090_v26 = vmax.f32 %v7088_v40, %v7089_v5  ;;  %v7250_v51 = vsel %vm7231_vm14, %v7083_v62, -inf  ;;  %v7247_v63 = vsel %vm7231_vm14, %v7076_v44, -inf }
 0x63f   : > { %v7097_v47 = vmax.f32 %v7095_v23, %v7096_v4  ;;  %v7103_v41 = vrot.slane %v7102_v48, 1  ;;  %v7111_v43 = vmax.f32 %v7109_v29, %v7110_v27  ;;  %v7117_v30 = vrot.slane %v7116_v32, 1  ;;  %9985 = vmatpush3.bf16.msra.mxu0 %v10051_v38 }
 0x640   : > { %v7253_v15 = vsel %vm7231_vm14, %v7090_v26, -inf }
 0x641   : > { %v7104_v61 = vmax.f32 %v7102_v48, %v7103_v41  ;;  %v7118_v19 = vmax.f32 %v7116_v32, %v7117_v30  ;;  %v7245_v39 = vsel %vm7231_vm14, %v7097_v47, -inf  ;;  %v7251_v55 = vsel %vm7231_vm14, %v7111_v43, -inf }
 0x642   : > { %v7246_v14 = vmax.f32 %v7244_v8, %v7245_v39  ;;  %v7252_v33 = vmax.f32 %v7250_v51, %v7251_v55 }
 0x643   : > { %v7248_v58 = vsel %vm7231_vm14, %v7104_v61, -inf  ;;  %v7254_v42 = vsel %vm7231_vm14, %v7118_v19, -inf }
 0x644   : > { %v7249_v50 = vmax.f32 %v7247_v63, %v7248_v58  ;;  %v7255_v59 = vmax.f32 %v7253_v15, %v7254_v42  ;;  %v7284_v49 = vpack.c.bf16 %v7246_v14, %v7246_v14  ;;  %v7286_v20 = vpack.c.bf16 %v7252_v33, %v7252_v33 }
 0x646   : > { %v7285_v57 = vpack.c.bf16 %v7249_v50, %v7249_v50  ;;  %v7287_v54 = vpack.c.bf16 %v7255_v59, %v7255_v59  ;;  %v7325_v18 = vunpack.c.l.b16 %v7284_v49  ;;  %v7327_v45 = vunpack.c.l.b16 %v7286_v20 }
 0x648   : > { %v7326_v28 = vunpack.c.l.b16 %v7285_v57  ;;  %v7328_v52 = vunpack.c.l.b16 %v7287_v54  ;;  %v7340_v21 = vsel %vm6170_vm10, %v7325_v18, %v14083_v17 }
 0x64a   : > { %v7341_v1 = vsel %vm6172_vm11, %v7326_v28, %v7340_v21 }
 0x64b   : > { %v7342_v31 = vsel %vm6174_vm7, %v7327_v45, %v7341_v1 }
 0x64c   : > { %v14119_v3 = vsel %vm6176_vm8, %v7328_v52, %v7342_v31 }
 0x693   : > { %v6783_v17 = vpop.f32.mrb[40].mxu0 }
 0x694   : > { %v6784_v13 = vadd.f32 %v6783_v17, %v14040_v12  ;;  %v6785_v24 = vpop.f32.mrb[41].mxu0 }
 0x695   : > { %v6786_v36 = vpop.f32.mrb[42].mxu0 }
 0x696   : > { %v6802_v37 = vmax.f32 %v6784_v13, 0.0  ;;  %v6787_v46 = vadd.f32 %v6786_v36, %v14040_v12  ;;  %v6788_v53 = vpop.f32.mrb[43].mxu0 }
 0x698   : > { %v6814_v35 = vmul.f32 %v14045_v34, %v6802_v37  ;;  %v6803_v2 = vmax.f32 %v6787_v46, 0.0 }
 0x69a   : > { %v6826_v40 = vadd.f32 %v14048_v25, %v6814_v35  ;;  %v6815_v23 = vmul.f32 %v14045_v34, %v6803_v2 }
 0x69c   : > { %v6906_v60 = vcombine.high %v6826_v40, %v6826_v40  ;;  %v6913_v0 = vrot.slane %v6826_v40, %v12924_v56  ;;  %v6827_v29 = vadd.f32 %v14048_v25, %v6815_v23 }
 0x69e   : > { %v6920_v22 = vrot.slane %v6906_v60, %v12924_v56  ;;  %v6921_v11 = vcombine.high %v6913_v0, %v6913_v0  ;;  %v7119_v62 = vsel %vm7006_vm13, %v6913_v0, -inf  ;;  %v6923_v5 = vcombine.high %v6827_v29, %v6827_v29 }
 0x69f   : > { %v7120_v4 = vrot.slane %v7119_v62, 4  ;;  %v6930_v48 = vrot.slane %v6827_v29, %v12924_v56 }
 0x6a0   : > { %v6922_v27 = vcombine.high %v6920_v22, %v6920_v22  ;;  %v7126_v32 = vsel %vm7006_vm13, %v6921_v11, -inf  ;;  %v7133_v44 = vsel %vm7006_vm13, %v6920_v22, -inf  ;;  %v6937_v26 = vrot.slane %v6923_v5, %v12924_v56 }
 0x6a1   : > { %v7121_v47 = vmax.f32 %v7119_v62, %v7120_v4  ;;  %v7127_v41 = vrot.slane %v7126_v32, 4  ;;  %v7134_v43 = vrot.slane %v7133_v44, 4  ;;  %v6938_v30 = vcombine.high %v6930_v48, %v6930_v48 }
 0x6a2   : > { %v7140_v8 = vsel %vm7006_vm13, %v6922_v27, -inf  ;;  %v6939_v51 = vcombine.high %v6937_v26, %v6937_v26  ;;  %v7147_v61 = vsel %vm7006_vm13, %v6930_v48, -inf  ;;  %v7161_v19 = vsel %vm7006_vm13, %v6937_v26, -inf }
 0x6a3   : > { %v7122_v39 = vrot.slane %v7121_v47, 2  ;;  %v7128_v55 = vmax.f32 %v7126_v32, %v7127_v41  ;;  %v7135_v14 = vmax.f32 %v7133_v44, %v7134_v43  ;;  %v7141_v33 = vrot.slane %v7140_v8, 4 }
 0x6a4   : > { %v7148_v63 = vrot.slane %v7147_v61, 4  ;;  %v7154_v15 = vsel %vm7006_vm13, %v6938_v30, -inf  ;;  %v7162_v58 = vrot.slane %v7161_v19, 4  ;;  %v7168_v42 = vsel %vm7006_vm13, %v6939_v51, -inf }
 0x6a5   : > { %v7123_v50 = vmax.f32 %v7121_v47, %v7122_v39  ;;  %v7129_v59 = vrot.slane %v7128_v55, 2  ;;  %v7136_v49 = vrot.slane %v7135_v14, 2  ;;  %v7142_v20 = vmax.f32 %v7140_v8, %v7141_v33 }
 0x6a6   : > { %v7149_v57 = vmax.f32 %v7147_v61, %v7148_v63  ;;  %v7155_v54 = vrot.slane %v7154_v15, 4  ;;  %v7163_v18 = vmax.f32 %v7161_v19, %v7162_v58  ;;  %v7169_v45 = vrot.slane %v7168_v42, 4 }
 0x6a7   : > { %v7124_v28 = vrot.slane %v7123_v50, 1  ;;  %v7130_v52 = vmax.f32 %v7128_v55, %v7129_v59  ;;  %v7137_v21 = vmax.f32 %v7135_v14, %v7136_v49  ;;  %v7143_v1 = vrot.slane %v7142_v20, 2 }
 0x6a8   : > { %v7150_v31 = vrot.slane %v7149_v57, 2  ;;  %v7156_v9 = vmax.f32 %v7154_v15, %v7155_v54  ;;  %v7164_v38 = vrot.slane %v7163_v18, 2  ;;  %v7170_v17 = vmax.f32 %v7168_v42, %v7169_v45 }
 0x6a9   : > { %v7131_v13 = vrot.slane %v7130_v52, 1  ;;  %v7138_v24 = vrot.slane %v7137_v21, 1  ;;  %v7144_v36 = vmax.f32 %v7142_v20, %v7143_v1  ;;  %v7125_v2 = vmax.f32 %v7123_v50, %v7124_v28 }
 0x6aa   : > { %v7151_v37 = vmax.f32 %v7149_v57, %v7150_v31  ;;  %v7157_v46 = vrot.slane %v7156_v9, 2  ;;  %v7165_v53 = vmax.f32 %v7163_v18, %v7164_v38  ;;  %v7171_v35 = vrot.slane %v7170_v17, 2 }
 0x6ab   : > { %v7139_v40 = vmax.f32 %v7137_v21, %v7138_v24  ;;  %v7145_v23 = vrot.slane %v7144_v36, 1  ;;  %v7132_v11 = vmax.f32 %v7130_v52, %v7131_v13  ;;  %v7256_v32 = vsel %vm7231_vm14, %v7125_v2, -inf }
 0x6ac   : > { %v7152_v60 = vrot.slane %v7151_v37, 1  ;;  %v7158_v0 = vmax.f32 %v7156_v9, %v7157_v46  ;;  %v7166_v29 = vrot.slane %v7165_v53, 1  ;;  %v7172_v22 = vmax.f32 %v7170_v17, %v7171_v35 }
 0x6ad   : > { %v7146_v62 = vmax.f32 %v7144_v36, %v7145_v23  ;;  %v7262_v44 = vsel %vm7231_vm14, %v7139_v40, -inf  ;;  %v7259_v51 = vsel %vm7231_vm14, %v7132_v11, -inf }
 0x6ae   : > { %v7153_v5 = vmax.f32 %v7151_v37, %v7152_v60  ;;  %v7159_v4 = vrot.slane %v7158_v0, 1  ;;  %v7167_v48 = vmax.f32 %v7165_v53, %v7166_v29  ;;  %v7173_v27 = vrot.slane %v7172_v22, 1 }
 0x6af   : > { %v7265_v61 = vsel %vm7231_vm14, %v7146_v62, -inf }
 0x6b0   : > { %v7160_v26 = vmax.f32 %v7158_v0, %v7159_v4  ;;  %v7174_v47 = vmax.f32 %v7172_v22, %v7173_v27  ;;  %v7257_v41 = vsel %vm7231_vm14, %v7153_v5, -inf  ;;  %v7263_v43 = vsel %vm7231_vm14, %v7167_v48, -inf }
 0x6b1   : > { %v7258_v30 = vmax.f32 %v7256_v32, %v7257_v41  ;;  %v7264_v8 = vmax.f32 %v7262_v44, %v7263_v43 }
 0x6b2   : > { %v7260_v19 = vsel %vm7231_vm14, %v7160_v26, -inf  ;;  %v7266_v39 = vsel %vm7231_vm14, %v7174_v47, -inf }
 0x6b3   : > { %v7261_v55 = vmax.f32 %v7259_v51, %v7260_v19  ;;  %v7267_v14 = vmax.f32 %v7265_v61, %v7266_v39  ;;  %v7288_v33 = vpack.c.bf16 %v7258_v30, %v7258_v30  ;;  %v7290_v63 = vpack.c.bf16 %v7264_v8, %v7264_v8 }
 0x6b5   : > { %v7289_v15 = vpack.c.bf16 %v7261_v55, %v7261_v55  ;;  %v7291_v58 = vpack.c.bf16 %v7267_v14, %v7267_v14  ;;  %v7331_v42 = vunpack.c.l.b16 %v7290_v63  ;;  %v7329_v50 = vunpack.c.l.b16 %v7288_v33 }
 0x6b7   : > { %v7330_v59 = vunpack.c.l.b16 %v7289_v15  ;;  %v7332_v49 = vunpack.c.l.b16 %v7291_v58 }
 0x6b9   : > { %v7344_v20 = vsel %vm15207_vm0, %v7330_v59, %v7329_v50  ;;  %vm15221_vm0 = vmmov %vm15204_vm1 }
 0x6ba   : > { %v7345_v57 = vsel %vm15208_vm3, %v7331_v42, %v7344_v20  ;;  %vm15222_vm3 = vmmov %vm15221_vm0 }
 0x6bb   : > { %v14158_v54 = vsel %vm6168_vm9, %v7332_v49, %v7345_v57  ;;  %vm15213_vm9 = vmmov %vm15204_vm1 }
 0x6d4   : > { %v6791_v18 = vpop.f32.mrb[44].mxu0 }
 0x6d5   : > { %v6792_v45 = vadd.f32 %v6791_v18, %v14040_v12  ;;  %v6793_v28 = vpop.f32.mrb[45].mxu0 }
 0x6d6   : > { %v6794_v52 = vpop.f32.mrb[46].mxu0 }
 0x6d7   : > { %v6804_v21 = vmax.f32 %v6792_v45, 0.0  ;;  %v6795_v1 = vadd.f32 %v6794_v52, %v14040_v12  ;;  %v6796_v31 = vpop.f32.mrb[47].mxu0 }
 0x6d9   : > { %v6816_v9 = vmul.f32 %v14045_v34, %v6804_v21  ;;  %v6805_v38 = vmax.f32 %v6795_v1, 0.0 }
 0x6db   : > { %v6828_v17 = vadd.f32 %v14048_v25, %v6816_v9  ;;  %v6817_v13 = vmul.f32 %v14045_v34, %v6805_v38 }
 0x6dd   : > { %v6940_v24 = vcombine.high %v6828_v17, %v6828_v17  ;;  %v6947_v36 = vrot.slane %v6828_v17, %v12924_v56  ;;  %v6829_v37 = vadd.f32 %v14048_v25, %v6817_v13 }
 0x6df   : > { %v6954_v46 = vrot.slane %v6940_v24, %v12924_v56  ;;  %v6955_v53 = vcombine.high %v6947_v36, %v6947_v36  ;;  %v7175_v35 = vsel %vm7006_vm13, %v6947_v36, -inf  ;;  %v6957_v2 = vcombine.high %v6829_v37, %v6829_v37 }
 0x6e0   : > { %v7176_v12 = vrot.slane %v7175_v35, 4  ;;  %v6964_v40 = vrot.slane %v6829_v37, %v12924_v56 }
 0x6e1   : > { %v6956_v23 = vcombine.high %v6954_v46, %v6954_v46  ;;  %v7182_v60 = vsel %vm7006_vm13, %v6955_v53, -inf  ;;  %v7189_v0 = vsel %vm7006_vm13, %v6954_v46, -inf  ;;  %v6971_v34 = vrot.slane %v6957_v2, %v12924_v56 }
 0x6e2   : > { %v7177_v29 = vmax.f32 %v7175_v35, %v7176_v12  ;;  %v7183_v22 = vrot.slane %v7182_v60, 4  ;;  %v7190_v11 = vrot.slane %v7189_v0, 4  ;;  %v6972_v25 = vcombine.high %v6964_v40, %v6964_v40 }
 0x6e3   : > { %v7196_v62 = vsel %vm7006_vm13, %v6956_v23, -inf  ;;  %v6973_v5 = vcombine.high %v6971_v34, %v6971_v34  ;;  %v7203_v4 = vsel %vm7006_vm13, %v6964_v40, -inf  ;;  %v7217_v48 = vsel %vm7006_vm13, %v6971_v34, -inf }
 0x6e4   : > { %v7178_v27 = vrot.slane %v7177_v29, 2  ;;  %v7184_v32 = vmax.f32 %v7182_v60, %v7183_v22  ;;  %v7191_v44 = vmax.f32 %v7189_v0, %v7190_v11  ;;  %v7197_v26 = vrot.slane %v7196_v62, 4 }
 0x6e5   : > { %v7204_v47 = vrot.slane %v7203_v4, 4  ;;  %v7210_v41 = vsel %vm7006_vm13, %v6972_v25, -inf  ;;  %v7218_v43 = vrot.slane %v7217_v48, 4  ;;  %v7224_v30 = vsel %vm7006_vm13, %v6973_v5, -inf  ;;  %vm15216_vm13 = vmmov %vm15204_vm1 }
 0x6e6   : > { %v7179_v8 = vmax.f32 %v7177_v29, %v7178_v27  ;;  %v7185_v51 = vrot.slane %v7184_v32, 2  ;;  %v7192_v61 = vrot.slane %v7191_v44, 2  ;;  %v7198_v19 = vmax.f32 %v7196_v62, %v7197_v26 }
 0x6e7   : > { %v7205_v39 = vmax.f32 %v7203_v4, %v7204_v47  ;;  %v7211_v55 = vrot.slane %v7210_v41, 4  ;;  %v7219_v14 = vmax.f32 %v7217_v48, %v7218_v43  ;;  %v7225_v33 = vrot.slane %v7224_v30, 4 }
 0x6e8   : > { %v7180_v63 = vrot.slane %v7179_v8, 1  ;;  %v7186_v15 = vmax.f32 %v7184_v32, %v7185_v51  ;;  %v7193_v58 = vmax.f32 %v7191_v44, %v7192_v61  ;;  %v7199_v42 = vrot.slane %v7198_v19, 2 }
 0x6e9   : > { %v7206_v50 = vrot.slane %v7205_v39, 2  ;;  %v7212_v59 = vmax.f32 %v7210_v41, %v7211_v55  ;;  %v7220_v49 = vrot.slane %v7219_v14, 2  ;;  %v7226_v20 = vmax.f32 %v7224_v30, %v7225_v33 }
 0x6ea   : > { %v7187_v57 = vrot.slane %v7186_v15, 1  ;;  %v7194_v18 = vrot.slane %v7193_v58, 1  ;;  %v7200_v45 = vmax.f32 %v7198_v19, %v7199_v42  ;;  %v7181_v31 = vmax.f32 %v7179_v8, %v7180_v63 }
 0x6eb   : > { %v7207_v28 = vmax.f32 %v7205_v39, %v7206_v50  ;;  %v7213_v52 = vrot.slane %v7212_v59, 2  ;;  %v7221_v21 = vmax.f32 %v7219_v14, %v7220_v49  ;;  %v7227_v1 = vrot.slane %v7226_v20, 2  ;;  %v7300_v14 = vld [vmem:[%s15152_s8] sm:$0x7] }
 0x6ec   : > { %v7195_v9 = vmax.f32 %v7193_v58, %v7194_v18  ;;  %v7201_v38 = vrot.slane %v7200_v45, 1  ;;  %v7188_v37 = vmax.f32 %v7186_v15, %v7187_v57  ;;  %v7268_v40 = vsel %vm7231_vm14, %v7181_v31, -inf }
 0x6ed   : > { %v7208_v17 = vrot.slane %v7207_v28, 1  ;;  %v7214_v13 = vmax.f32 %v7212_v59, %v7213_v52  ;;  %v7222_v24 = vrot.slane %v7221_v21, 1  ;;  %v7228_v36 = vmax.f32 %v7226_v20, %v7227_v1 }
 0x6ee   : > { %v7202_v46 = vmax.f32 %v7200_v45, %v7201_v38  ;;  %v7274_v23 = vsel %vm7231_vm14, %v7195_v9, -inf  ;;  %v7271_v25 = vsel %vm7231_vm14, %v7188_v37, -inf  ;;  %v10116_v33 = vmov 1966171168  }
 0x6ef   : > { %v7209_v53 = vmax.f32 %v7207_v28, %v7208_v17  ;;  %v7215_v35 = vrot.slane %v7214_v13, 1  ;;  %v7223_v2 = vmax.f32 %v7221_v21, %v7222_v24  ;;  %v7229_v12 = vrot.slane %v7228_v36, 1 }
 0x6f0   : > { %v7277_v62 = vsel %vm7231_vm14, %v7202_v46, -inf  ;;  %v7426_v63 = vunpack.c.l.s4 %v10116_v33  ;;  %v7304_v15 = vrot.slane %v7300_v14, %v11479_v7  ;;  %v7413_v50 = vrot.slane %v7300_v14, %v11494_v6 }
 0x6f1   : > { %v7216_v60 = vmax.f32 %v7214_v13, %v7215_v35  ;;  %v7230_v0 = vmax.f32 %v7228_v36, %v7229_v12  ;;  %v7269_v34 = vsel %vm7231_vm14, %v7209_v53, -inf  ;;  %v7275_v29 = vsel %vm7231_vm14, %v7223_v2, -inf }
 0x6f2   : > { %v7270_v22 = vmax.f32 %v7268_v40, %v7269_v34  ;;  %v7276_v11 = vmax.f32 %v7274_v23, %v7275_v29 }
 0x6f3   : > { %v7272_v5 = vsel %vm7231_vm14, %v7216_v60, -inf  ;;  %v7278_v4 = vsel %vm7231_vm14, %v7230_v0, -inf }
 0x6f4   : > { %v7273_v48 = vmax.f32 %v7271_v25, %v7272_v5  ;;  %v7279_v27 = vmax.f32 %v7277_v62, %v7278_v4  ;;  %v7292_v32 = vpack.c.bf16 %v7270_v22, %v7270_v22  ;;  %v7294_v44 = vpack.c.bf16 %v7276_v11, %v7276_v11 }
 0x6f6   : > { %v7293_v26 = vpack.c.bf16 %v7273_v48, %v7273_v48  ;;  %v7295_v47 = vpack.c.bf16 %v7279_v27, %v7279_v27  ;;  %v7333_v41 = vunpack.c.l.b16 %v7292_v32  ;;  %v7335_v43 = vunpack.c.l.b16 %v7294_v44 }
 0x6f8   : > { %v7334_v30 = vunpack.c.l.b16 %v7293_v26  ;;  %v7336_v8 = vunpack.c.l.b16 %v7295_v47  ;;  %v7347_v51 = vsel %vm6170_vm10, %v7333_v41, %v14158_v54  ;;  %v7427_v54 = vunpack.c.0.s8 %v7426_v63  ;;  %vm15214_vm10 = vmmov %vm15204_vm1 }
 0x6fa   : > { %v7348_v61 = vsel %vm6172_vm11, %v7334_v30, %v7347_v51  ;;  %v14200_v45 = vsub.s32 %v7427_v54, %v11470_v10  ;;  %vm15215_vm11 = vmmov %vm15204_vm1 }
 0x6fb   : > { %v7349_v19 = vsel %vm6174_vm7, %v7335_v43, %v7348_v61  ;;  %vm15211_vm7 = vmmov %vm15204_vm1 }
 0x6fc   : > { %v7350_v39 = vsel %vm6176_vm8, %v7336_v8, %v7349_v19  ;;  %vm15212_vm8 = vmmov %vm15204_vm1 }
 0x6fd   : > { %v7351_v55 = vpack.c.b16 %v7350_v39, %v14119_v3  ;;  %v7419_v3 = vrot.slane %v7300_v14, %v11498_v16 }
 0x6ff   : > { %9987 = vmatmul.mubr.msk.bf16.vlgmr.msra.gmra.mrb[48].mxu0 %vm7231_vm14, %v7351_v55  ;;  %vm15217_vm14 = vmmov %vm15204_vm1 }
 0x7d2   : > { %v7401_v58 = vpop.f32.mrb[48].mxu0 }
 0x7d3   : > { %v7402_v42 = vadd.f32 %v7401_v58, %v7304_v15  ;;  %v9988_v59 = vpop.f32.mrb[49].mxu0 }
 0x7d4   : > { %v7404_v49 = vpop.f32.mrb[50].mxu0 }
 0x7d5   : > { %v7408_v20 = vmax.f32 %v7402_v42, 0.0  ;;  %v7405_v57 = vadd.f32 %v7404_v49, %v7304_v15  ;;  %v9989_v18 = vpop.f32.mrb[51].mxu0  ;;  %v10052_v42 = vld [vmem:[%s15153_s9] sm:$0xff]  }
 0x7d6   : > { %9990 = vmatprep.subr.bf16.mxu0 %v10052_v42 }
 0x7d7   : > { %v7414_v28 = vmul.f32 %v7413_v50, %v7408_v20  ;;  %v7409_v52 = vmax.f32 %v7405_v57, 0.0  ;;  %9991 = vmatpush3.bf16.msra.mxu0 %v10052_v42 }
 0x7d9   : > { %v7420_v21 = vadd.f32 %v7419_v3, %v7414_v28  ;;  %v7415_v1 = vmul.f32 %v7413_v50, %v7409_v52 }
 0x7db   : > { %v7424_v31 = vcombine.high %v7420_v21, %v7420_v21  ;;  %v7431_v9 = vrot.slane %v7420_v21, %v14200_v45  ;;  %v7421_v13 = vadd.f32 %v7419_v3, %v7415_v1 }
 0x7dd   : > { %v7438_v38 = vrot.slane %v7424_v31, %v14200_v45  ;;  %v7439_v6 = vcombine.high %v7431_v9, %v7431_v9  ;;  %v7447_v17 = vrot.slane %v7431_v9, %v14200_v45  ;;  %v7480_v37 = vrot.slane %v7421_v13, %v14200_v45 }
 0x7de   : > { %v7473_v34 = vcombine.high %v7421_v13, %v7421_v13 }
 0x7df   : > { %v7461_v16 = vrot.slane %v7439_v6, %v14200_v45  ;;  %v7541_v24 = vrot.slane %v7447_v17, %v11479_v7  ;;  %v7469_v36 = vcombine.high %v7447_v17, %v7447_v17  ;;  %v7440_v10 = vcombine.high %v7438_v38, %v7438_v38 }
 0x7e0   : > { %v14212_v35 = vrot.slane %v7438_v38, %v14200_v45  ;;  %v7488_v12 = vcombine.high %v7480_v37, %v7480_v37  ;;  %v14222_v60 = vrot.slane %v7480_v37, %v14200_v45  ;;  %v7487_v62 = vrot.slane %v7473_v34, %v14200_v45 }
 0x7e1   : > { %v7545_v46 = vrot.slane %v7461_v16, %v11479_v7  ;;  %v7471_v53 = vcombine.high %v7461_v16, %v7461_v16  ;;  %7602 = vrot.lane.b32.xlu0 %v7541_v24, %s10113_s29  ;;  %v7549_v2 = vrot.slane %v7469_v36, %v11479_v7  ;;  %v14217_v23 = vrot.slane %v7440_v10, %v14200_v45 }
 0x7e2   : > { %v7557_v0 = vrot.slane %v14212_v35, %v11479_v7  ;;  %v14227_v29 = vrot.slane %v7488_v12, %v14200_v45  ;;  %v7573_v11 = vrot.slane %v14222_v60, %v11479_v7  ;;  %v14237_v25 = vcombine.high %v14212_v35, %v14212_v35 }
 0x7e3   : > { %7604 = vrot.lane.b32.xlu1 %v7545_v46, %s10113_s29  ;;  %v7553_v40 = vrot.slane %v7471_v53, %v11479_v7  ;;  %v7561_v22 = vrot.slane %v14217_v23, %v11479_v7  ;;  %v14244_v4 = vcombine.high %v14217_v23, %v14217_v23  ;;  %v14252_v27 = vcombine.high %v14222_v60, %v14222_v60 }
 0x7e4   : > { %v7577_v5 = vrot.slane %v14227_v29, %v11479_v7  ;;  %v7565_v48 = vrot.slane %v14237_v25, %v11479_v7  ;;  %v7489_v32 = vcombine.high %v7487_v62, %v7487_v62  ;;  %v14258_v26 = vcombine.high %v14227_v29, %v14227_v29 }
 0x7e5   : > { %7606 = vrot.lane.b32.xlu0 %v7549_v2, %s10113_s29  ;;  %v7569_v44 = vrot.slane %v14244_v4, %v11479_v7  ;;  %v14263_v47 = vrot.slane %v7487_v62, %v14200_v45  ;;  %v7581_v41 = vrot.slane %v14252_v27, %v11479_v7 }
 0x7e6   : > { %v7585_v43 = vrot.slane %v14258_v26, %v11479_v7  ;;  %v14270_v30 = vrot.slane %v7489_v32, %v14200_v45 }
 0x7e7   : > { %7608 = vrot.lane.b32.xlu1 %v7553_v40, %s10113_s29  ;;  %v7589_v8 = vrot.slane %v14263_v47, %v11479_v7  ;;  %v14278_v51 = vcombine.high %v14263_v47, %v14263_v47 }
 0x7e8   : > { %v7593_v61 = vrot.slane %v14270_v30, %v11479_v7  ;;  %v14284_v19 = vcombine.high %v14270_v30, %v14270_v30 }
 0x7e9   : > { %7610 = vrot.lane.b32.xlu0 %v7557_v0, %s10113_s29  ;;  %v7597_v39 = vrot.slane %v14278_v51, %v11479_v7 }
 0x7ea   : > { %v7601_v55 = vrot.slane %v14284_v19, %v11479_v7 }
 0x7eb   : > { %7612 = vrot.lane.b32.xlu1 %v7561_v22, %s10113_s29 }
 0x7ed   : > { %7618 = vrot.lane.b32.xlu0 %v7573_v11, %s10113_s29 }
 0x7ef   : > { %7620 = vrot.lane.b32.xlu1 %v7577_v5, %s10113_s29 }
 0x7f1   : > { %7614 = vrot.lane.b32.xlu0 %v7565_v48, %s10113_s29 }
 0x7f3   : > { %7616 = vrot.lane.b32.xlu1 %v7569_v44, %s10113_s29 }
 0x7f5   : > { %7622 = vrot.lane.b32.xlu0 %v7581_v41, %s10113_s29 }
 0x7f7   : > { %7624 = vrot.lane.b32.xlu1 %v7585_v43, %s10113_s29 }
 0x7f9   : > { %7626 = vrot.lane.b32.xlu0 %v7589_v8, %s10113_s29 }
 0x7fb   : > { %7628 = vrot.lane.b32.xlu1 %v7593_v61, %s10113_s29 }
 0x7fd   : > { %7630 = vrot.lane.b32.xlu0 %v7597_v39, %s10113_s29 }
 0x7ff   : > { %7632 = vrot.lane.b32.xlu1 %v7601_v55, %s10113_s29 }
 0x853   : > { %v7603_v14 = vpop.permute.xlu0 %7602 }
 0x854   : > { %v7650_v33 = vsel %vm15209_vm4, %v7447_v17, %v7603_v14  ;;  %vm15223_vm4 = vmmov %vm15221_vm0 }
 0x855   : > { %v7605_v63 = vpop.permute.xlu1 %7604  ;;  %7682 = vrot.lane.b32.xlu0 %v7650_v33, %s10112_s28 }
 0x856   : > { %v7651_v15 = vsel %vm15210_vm5, %v7461_v16, %v7605_v63  ;;  %vm15241_vm5 = vmmov %vm15221_vm0 }
 0x857   : > { %v7714_v58 = vcombine.low %v7650_v33, %v7651_v15  ;;  %7684 = vrot.lane.b32.xlu1 %v7651_v15, %s10112_s28  ;;  %v7607_v54 = vpop.permute.xlu0 %7606 }
 0x858   : > { %v7652_v50 = vsel %vm15211_vm7, %v7469_v36, %v7607_v54  ;;  %vm15242_vm7 = vmmov %vm15221_vm0 }
 0x859   : > { %v7609_v59 = vpop.permute.xlu1 %7608  ;;  %7686 = vrot.lane.b32.xlu0 %v7652_v50, %s10112_s28  ;;  %v14306_v57 = vrot.slane %v7714_v58, %v12924_v56 }
 0x85a   : > { %v7653_v49 = vsel %vm15212_vm8, %v7471_v53, %v7609_v59  ;;  %vm15243_vm8 = vmmov %vm15221_vm0 }
 0x85b   : > { %v7715_v20 = vcombine.low %v7652_v50, %v7653_v49  ;;  %7688 = vrot.lane.b32.xlu1 %v7653_v49, %s10112_s28  ;;  %v7611_v3 = vpop.permute.xlu0 %7610 }
 0x85c   : > { %v7654_v28 = vsel %vm15213_vm9, %v14212_v35, %v7611_v3  ;;  %vm9746_vm9 = vcmask 7168  }
 0x85d   : > { %v14309_v18 = vrot.slane %v7715_v20, %v12924_v56  ;;  %v7613_v52 = vpop.permute.xlu1 %7612  ;;  %7690 = vrot.lane.b32.xlu0 %v7654_v28, %s10112_s28 }
 0x85e   : > { %v7655_v21 = vsel %vm15214_vm10, %v14217_v23, %v7613_v52  ;;  %vm15244_vm10 = vmmov %vm15221_vm0 }
 0x85f   : > { %v7730_v1 = vcombine.low %v14306_v57, %v14309_v18  ;;  %v7748_v31 = vcombine.low %v7654_v28, %v7655_v21  ;;  %7692 = vrot.lane.b32.xlu1 %v7655_v21, %s10112_s28  ;;  %v7619_v9 = vpop.permute.xlu0 %7618 }
 0x860   : > { %v7658_v38 = vsel %vm15215_vm11, %v14222_v60, %v7619_v9  ;;  %vm15245_vm11 = vmmov %vm15221_vm0 }
 0x861   : > { %v7621_v6 = vpop.permute.xlu1 %7620  ;;  %7698 = vrot.lane.b32.xlu0 %v7658_v38, %s10112_s28  ;;  %v7756_v53 = vrot.slane %v7748_v31, %v12924_v56 }
 0x862   : > { %v7659_v17 = vsel %vm15204_vm1, %v14227_v29, %v7621_v6  ;;  %vm15246_vm1 = vmmov %vm15221_vm0 }
 0x863   : > { %v7782_v13 = vcombine.low %v7658_v38, %v7659_v17  ;;  %7700 = vrot.lane.b32.xlu1 %v7659_v17, %s10112_s28  ;;  %v7615_v16 = vpop.permute.xlu0 %7614 }
 0x864   : > { %v7656_v24 = vsel %vm15216_vm13, %v14237_v25, %v7615_v16  ;;  %vm15247_vm13 = vmmov %vm15221_vm0 }
 0x865   : > { %v7617_v36 = vpop.permute.xlu1 %7616  ;;  %7694 = vrot.lane.b32.xlu0 %v7656_v24, %s10112_s28  ;;  %v7790_v34 = vrot.slane %v7782_v13, %v12924_v56 }
 0x866   : > { %v7657_v10 = vsel %vm15217_vm14, %v14244_v4, %v7617_v36  ;;  %vm15248_vm14 = vmmov %vm15221_vm0 }
 0x867   : > { %v7749_v37 = vcombine.low %v7656_v24, %v7657_v10  ;;  %7696 = vrot.lane.b32.xlu1 %v7657_v10, %s10112_s28  ;;  %v7623_v46 = vpop.permute.xlu0 %7622 }
 0x868   : > { %v7660_v2 = vsel %vm15218_vm2, %v14252_v27, %v7623_v46  ;;  %vm15249_vm2 = vmmov %vm15221_vm0 }
 0x869   : > { %v7763_v35 = vrot.slane %v7749_v37, %v12924_v56  ;;  %v7625_v12 = vpop.permute.xlu1 %7624  ;;  %7702 = vrot.lane.b32.xlu0 %v7660_v2, %s10112_s28 }
 0x86a   : > { %v7661_v40 = vsel %vm15219_vm6, %v14258_v26, %v7625_v12  ;;  %vm15250_vm6 = vmmov %vm15221_vm0 }
 0x86b   : > { %v7764_v23 = vcombine.low %v7756_v53, %v7763_v35  ;;  %v7783_v60 = vcombine.low %v7660_v2, %v7661_v40  ;;  %7704 = vrot.lane.b32.xlu1 %v7661_v40, %s10112_s28  ;;  %v7627_v0 = vpop.permute.xlu0 %7626  ;;  %v9902_v2 = vld [vmem:[%s15154_s10] ss:$0 sm:$0xff] }
 0x86c   : > { %v7662_v22 = vsel %vm15220_vm15, %v14263_v47, %v7627_v0  ;;  %vm15251_vm15 = vmmov %vm15221_vm0 }
 0x86d   : > { %v7797_v29 = vrot.slane %v7783_v60, %v12924_v56  ;;  %v7629_v11 = vpop.permute.xlu1 %7628  ;;  %7706 = vrot.lane.b32.xlu0 %v7662_v22, %s10112_s28 }
 0x86e   : > { %v7663_v25 = vsel %vm15221_vm0, %v14270_v30, %v7629_v11 }
 0x86f   : > { %v7798_v62 = vcombine.low %v7790_v34, %v7797_v29  ;;  %v7816_v5 = vcombine.low %v7662_v22, %v7663_v25  ;;  %7708 = vrot.lane.b32.xlu1 %v7663_v25, %s10112_s28  ;;  %v7631_v4 = vpop.permute.xlu0 %7630 }
 0x870   : > { %v7664_v48 = vsel %vm15222_vm3, %v14278_v51, %v7631_v4  ;;  %vm15252_vm3 = vmmov %vm15221_vm0 }
 0x871   : > { %v7633_v27 = vpop.permute.xlu1 %7632  ;;  %7710 = vrot.lane.b32.xlu0 %v7664_v48, %s10112_s28  ;;  %v7824_v26 = vrot.slane %v7816_v5, %v12924_v56 }
 0x872   : > { %v7665_v32 = vsel %vm15223_vm4, %v14284_v19, %v7633_v27  ;;  %vm15253_vm4 = vmmov %vm15221_vm0 }
 0x873   : > { %v7817_v44 = vcombine.low %v7664_v48, %v7665_v32  ;;  %7712 = vrot.lane.b32.xlu1 %v7665_v32, %s10112_s28 }
 0x875   : > { %v7831_v47 = vrot.slane %v7817_v44, %v12924_v56 }
 0x877   : > { %v7832_v41 = vcombine.low %v7824_v26, %v7831_v47 }
 0x8c7   : > { %v7683_v43 = vpop.permute.xlu0 %7682 }
 0x8c9   : > { %v7685_v30 = vpop.permute.xlu1 %7684 }
 0x8ca   : > { %v7731_v8 = vcombine.low %v7683_v43, %v7685_v30 }
 0x8cb   : > { %v7687_v61 = vpop.permute.xlu0 %7686 }
 0x8cc   : > { %v7739_v55 = vrot.slane %v7731_v8, %v12924_v56 }
 0x8cd   : > { %v7689_v39 = vpop.permute.xlu1 %7688 }
 0x8ce   : > { %v7732_v51 = vcombine.low %v7687_v61, %v7689_v39 }
 0x8cf   : > { %v7691_v33 = vpop.permute.xlu0 %7690 }
 0x8d0   : > { %v7746_v14 = vrot.slane %v7732_v51, %v12924_v56 }
 0x8d1   : > { %v7693_v19 = vpop.permute.xlu1 %7692 }
 0x8d2   : > { %v7747_v63 = vcombine.low %v7739_v55, %v7746_v14  ;;  %v7765_v42 = vcombine.low %v7691_v33, %v7693_v19 }
 0x8d3   : > { %v7699_v15 = vpop.permute.xlu0 %7698 }
 0x8d4   : > { %v7858_v58 = vpack.c.bf16 %v7747_v63, %v7730_v1  ;;  %v7773_v20 = vrot.slane %v7765_v42, %v12924_v56 }
 0x8d5   : > { %v7701_v54 = vpop.permute.xlu1 %7700 }
 0x8d6   : > { %9992 = vmatprep.mubr.msk.bf16.mxu0 %vm2330_vm12, %v7858_v58  ;;  %v7799_v3 = vcombine.low %v7699_v15, %v7701_v54 }
 0x8d7   : > { %v7695_v50 = vpop.permute.xlu0 %7694 }
 0x8d8   : > { %v7807_v31 = vrot.slane %v7799_v3, %v12924_v56 }
 0x8d9   : > { %v7697_v59 = vpop.permute.xlu1 %7696 }
 0x8da   : > { %v7766_v49 = vcombine.low %v7695_v50, %v7697_v59 }
 0x8db   : > { %v7703_v18 = vpop.permute.xlu0 %7702 }
 0x8dc   : > { %v7780_v57 = vrot.slane %v7766_v49, %v12924_v56 }
 0x8dd   : > { %v7705_v28 = vpop.permute.xlu1 %7704 }
 0x8de   : > { %v7781_v52 = vcombine.low %v7773_v20, %v7780_v57  ;;  %v7800_v21 = vcombine.low %v7703_v18, %v7705_v28 }
 0x8df   : > { %v7707_v38 = vpop.permute.xlu0 %7706 }
 0x8e0   : > { %v7859_v9 = vpack.c.bf16 %v7781_v52, %v7764_v23  ;;  %v7814_v1 = vrot.slane %v7800_v21, %v12924_v56 }
 0x8e1   : > { %v7709_v6 = vpop.permute.xlu1 %7708 }
 0x8e2   : > { %v7815_v17 = vcombine.low %v7807_v31, %v7814_v1  ;;  %9993 = vmatmul.mubr.msk.bf16.vlgmr.msra.gmra.mrb[52].mxu0 %vm2330_vm12, %v7859_v9  ;;  %v7833_v13 = vcombine.low %v7707_v38, %v7709_v6 }
 0x8e3   : > { %v7711_v24 = vpop.permute.xlu0 %7710 }
 0x8e4   : > { %v7860_v16 = vpack.c.bf16 %v7815_v17, %v7798_v62  ;;  %v7841_v37 = vrot.slane %v7833_v13, %v12924_v56 }
 0x8e5   : > { %v7713_v36 = vpop.permute.xlu1 %7712 }
 0x8e6   : > { %v7834_v10 = vcombine.low %v7711_v24, %v7713_v36  ;;  %9996 = vmatprep.mubr.msk.bf16.mxu0 %vm2330_vm12, %v7860_v16 }
 0x8e8   : > { %v7848_v46 = vrot.slane %v7834_v10, %v12924_v56 }
 0x8ea   : > { %v7849_v53 = vcombine.low %v7841_v37, %v7848_v46 }
 0x8ec   : > { %v7861_v35 = vpack.c.bf16 %v7849_v53, %v7832_v41 }
 0x8ee   : > { %9997 = vmatmul.mubr.msk.bf16.gmra.mrb[56].mxu0 %vm2330_vm12, %v7861_v35  ;;  %vm15240_vm12 = vmmov %vm15221_vm0 }
 0x9b5   : > { %v9994_v12 = vpop.f32.mrb[52].mxu0 }
 0x9b6   : > { %v7932_v40 = vadd.f32 %v9994_v12, %v9902_v2  ;;  %v7923_v23 = vpop.f32.mrb[53].mxu0 }
 0x9b7   : > { %v7924_v60 = vadd.f32 %v9902_v2, %v7923_v23  ;;  %v9995_v0 = vpop.f32.mrb[54].mxu0 }
 0x9b8   : > { %v9910_v34 = vmul.f32 -1.442695, %v7932_v40  ;;  %v7935_v29 = vadd.f32 %v9995_v0, %v9902_v2  ;;  %v7926_v22 = vpop.f32.mrb[55].mxu0 }
 0x9b9   : > { %v9908_v11 = vmul.f32 -1.442695, %v7924_v60  ;;  %v7927_v5 = vadd.f32 %v9902_v2, %v7926_v22 }
 0x9ba   : > { %10053 = vpow2.f32 %v9910_v34  ;;  %v9911_v25 = vmul.f32 -1.442695, %v7935_v29 }
 0x9bb   : > { %10055 = vpow2.f32 %v9908_v11  ;;  %v9909_v61 = vmul.f32 -1.442695, %v7927_v5 }
 0x9bc   : > { %10057 = vpow2.f32 %v9911_v25 }
 0x9c1   : > { %v9998_v62 = vpop.f32.mrb[56].mxu0 }
 0x9c2   : > { %v14370_v4 = vadd.f32 %v9998_v62, %v9902_v2  ;;  %v7939_v48 = vpop.f32.mrb[57].mxu0 }
 0x9c3   : > { %v14372_v27 = vadd.f32 %v9902_v2, %v7939_v48  ;;  %v9999_v32 = vpop.f32.mrb[58].mxu0 }
 0x9c4   : > { %v10054_v44 = vpop.eup %10053  ;;  %v14374_v26 = vadd.f32 %v9999_v32, %v9902_v2  ;;  %v7942_v47 = vpop.f32.mrb[59].mxu0  ;;  %v9914_v29 = vmul.f32 -1.442695, %v14370_v4 }
 0x9c5   : > { %v10056_v41 = vpop.eup %10055  ;;  %v7980_v43 = vadd.f32 1.0, %v10054_v44  ;;  %v14376_v30 = vadd.f32 %v9902_v2, %v7942_v47  ;;  %v9912_v4 = vmul.f32 -1.442695, %v14372_v27 }
 0x9c6   : > { %v7978_v8 = vadd.f32 1.0, %v10056_v41  ;;  %v10058_v39 = vpop.eup %10057 }
 0x9c7   : > { %10059 = vrcp.f32 %v7980_v43  ;;  %v7981_v51 = vadd.f32 1.0, %v10058_v39 }
 0x9c8   : > { %10061 = vrcp.f32 %v7978_v8 }
 0x9c9   : > { %10063 = vpow2.f32 %v9909_v61 }
 0x9ca   : > { %10065 = vrcp.f32 %v7981_v51 }
 0x9d1   : > { %v10060_v55 = vpop.eup %10059 }
 0x9d2   : > { %v10062_v14 = vpop.eup %10061  ;;  %v8115_v33 = vrot.slane %v10060_v55, %v14200_v45  ;;  %v8108_v15 = vcombine.high %v10060_v55, %v10060_v55 }
 0x9d3   : > { %v8017_v19 = vrot.slane %v10062_v14, %v14200_v45  ;;  %v10064_v63 = vpop.eup %10063  ;;  %v8010_v13 = vcombine.high %v10062_v14, %v10062_v14 }
 0x9d4   : > { %v14381_v58 = vrot.slane %v8115_v33, %v14200_v45  ;;  %v8123_v54 = vcombine.high %v8115_v33, %v8115_v33  ;;  %v7979_v20 = vadd.f32 1.0, %v10064_v63  ;;  %v8122_v18 = vrot.slane %v8108_v15, %v14200_v45  ;;  %v10066_v28 = vpop.eup %10065 }
 0x9d5   : > { %v8025_v42 = vcombine.high %v8017_v19, %v8017_v19  ;;  %v14389_v49 = vrot.slane %v8017_v19, %v14200_v45  ;;  %v8164_v38 = vrot.slane %v10066_v28, %v14200_v45  ;;  %v8024_v35 = vrot.slane %v8010_v13, %v14200_v45 }
 0x9d6   : > { %v8533_v50 = vrot.slane %v14381_v58, %v11479_v7  ;;  %v14386_v59 = vrot.slane %v8123_v54, %v14200_v45  ;;  %v14403_v21 = vcombine.high %v14381_v58, %v14381_v58  ;;  %10067 = vrcp.f32 %v7979_v20 }
 0x9d7   : > { %v14395_v57 = vrot.slane %v8025_v42, %v14200_v45  ;;  %v8469_v52 = vrot.slane %v14389_v49, %v11479_v7  ;;  %v8124_v1 = vcombine.high %v8122_v18, %v8122_v18  ;;  %v14417_v17 = vrot.slane %v8122_v18, %v14200_v45 }
 0x9d8   : > { %8754 = vrot.lane.b32.xlu0 %v8533_v50, %s10117_s26  ;;  %v8537_v3 = vrot.slane %v14386_v59, %v11479_v7  ;;  %v14410_v9 = vcombine.high %v14386_v59, %v14386_v59  ;;  %v8541_v6 = vrot.slane %v14403_v21, %v11479_v7  ;;  %v8172_v36 = vcombine.high %v8164_v38, %v8164_v38 }
 0x9d9   : > { %v8473_v31 = vrot.slane %v14395_v57, %v11479_v7  ;;  %v14423_v24 = vrot.slane %v8124_v1, %v14200_v45  ;;  %v8549_v10 = vrot.slane %v14417_v17, %v11479_v7  ;;  %v14429_v37 = vrot.slane %v8164_v38, %v14200_v45 }
 0x9da   : > { %8756 = vrot.lane.b32.xlu1 %v8537_v3, %s10117_s26  ;;  %v8545_v16 = vrot.slane %v14410_v9, %v11479_v7  ;;  %v14435_v53 = vrot.slane %v8172_v36, %v14200_v45  ;;  %v14443_v40 = vcombine.high %v14389_v49, %v14389_v49  ;;  %v14450_v60 = vcombine.high %v14395_v57, %v14395_v57 }
 0x9db   : > { %v8553_v46 = vrot.slane %v14423_v24, %v11479_v7  ;;  %v8565_v12 = vrot.slane %v14429_v37, %v11479_v7  ;;  %v8026_v0 = vcombine.high %v8024_v35, %v8024_v35  ;;  %v14458_v11 = vrot.slane %v8024_v35, %v14200_v45 }
 0x9dc   : > { %8722 = vrot.lane.b32.xlu0 %v8469_v52, %s10117_s26  ;;  %v8569_v23 = vrot.slane %v14435_v53, %v11479_v7  ;;  %v8477_v22 = vrot.slane %v14443_v40, %v11479_v7  ;;  %v8481_v25 = vrot.slane %v14450_v60, %v11479_v7  ;;  %10069 = vpow2.f32 %v9914_v29 }
 0x9dd   : > { %v14464_v62 = vrot.slane %v8026_v0, %v14200_v45  ;;  %v8485_v48 = vrot.slane %v14458_v11, %v11479_v7  ;;  %v8157_v44 = vcombine.high %v10066_v28, %v10066_v28  ;;  %10071 = vpow2.f32 %v9912_v4 }
 0x9de   : > { %8724 = vrot.lane.b32.xlu1 %v8473_v31, %s10117_s26  ;;  %v14484_v43 = vcombine.high %v14417_v17, %v14417_v17  ;;  %v14491_v61 = vcombine.high %v14423_v24, %v14423_v24  ;;  %v14499_v55 = vcombine.high %v14429_v37, %v14429_v37  ;;  %v14506_v19 = vcombine.high %v14435_v53, %v14435_v53 }
 0x9df   : > { %v8489_v47 = vrot.slane %v14464_v62, %v11479_v7  ;;  %v8171_v39 = vrot.slane %v8157_v44, %v14200_v45  ;;  %v9915_v15 = vmul.f32 -1.442695, %v14374_v26  ;;  %v14526_v52 = vcombine.high %v14458_v11, %v14458_v11 }
 0x9e0   : > { %8758 = vrot.lane.b32.xlu0 %v8541_v6, %s10117_s26  ;;  %v10068_v2 = vpop.eup %10067  ;;  %v8557_v51 = vrot.slane %v14484_v43, %v11479_v7  ;;  %v8561_v33 = vrot.slane %v14491_v61, %v11479_v7  ;;  %v8573_v54 = vrot.slane %v14499_v55, %v11479_v7  ;;  %v8577_v18 = vrot.slane %v14506_v19, %v11479_v7 }
 0x9e1   : > { %v8066_v34 = vrot.slane %v10068_v2, %v14200_v45  ;;  %v8173_v63 = vcombine.high %v8171_v39, %v8171_v39  ;;  %v14513_v42 = vrot.slane %v8171_v39, %v14200_v45  ;;  %v8059_v3 = vcombine.high %v10068_v2, %v10068_v2 }
 0x9e2   : > { %8760 = vrot.lane.b32.xlu1 %v8545_v16, %s10117_s26  ;;  %10073 = vpow2.f32 %v9915_v15  ;;  %v14533_v38 = vcombine.high %v14464_v62, %v14464_v62  ;;  %v8493_v13 = vrot.slane %v14526_v52, %v11479_v7  ;;  %v9913_v35 = vmul.f32 -1.442695, %v14376_v30 }
 0x9e3   : > { %v8074_v5 = vcombine.high %v8066_v34, %v8066_v34  ;;  %v14471_v32 = vrot.slane %v8066_v34, %v14200_v45  ;;  %v14519_v28 = vrot.slane %v8173_v63, %v14200_v45  ;;  %v8581_v26 = vrot.slane %v14513_v42, %v11479_v7 }
 0x9e4   : > { %8762 = vrot.lane.b32.xlu0 %v8549_v10, %s10117_s26  ;;  %v8073_v6 = vrot.slane %v8059_v3, %v14200_v45  ;;  %v8497_v36 = vrot.slane %v14533_v38, %v11479_v7 }
 0x9e5   : > { %v14477_v41 = vrot.slane %v8074_v5, %v14200_v45  ;;  %v8501_v27 = vrot.slane %v14471_v32, %v11479_v7  ;;  %v8585_v1 = vrot.slane %v14519_v28, %v11479_v7  ;;  %v14541_v16 = vcombine.high %v14471_v32, %v14471_v32 }
 0x9e6   : > { %8764 = vrot.lane.b32.xlu1 %v8553_v46, %s10117_s26  ;;  %v10070_v14 = vpop.eup %10069  ;;  %v8075_v46 = vcombine.high %v8073_v6, %v8073_v6  ;;  %v14575_v4 = vcombine.high %v14519_v28, %v14519_v28 }
 0x9e7   : > { %v8505_v8 = vrot.slane %v14477_v41, %v11479_v7  ;;  %v7984_v50 = vadd.f32 1.0, %v10070_v14  ;;  %v10072_v20 = vpop.eup %10071  ;;  %v14548_v10 = vcombine.high %v14477_v41, %v14477_v41  ;;  %v8509_v2 = vrot.slane %v14541_v16, %v11479_v7 }
 0x9e8   : > { %8770 = vrot.lane.b32.xlu0 %v8565_v12, %s10117_s26  ;;  %v7982_v31 = vadd.f32 1.0, %v10072_v20  ;;  %v14555_v12 = vrot.slane %v8073_v6, %v14200_v45  ;;  %v14561_v34 = vrot.slane %v8075_v46, %v14200_v45 }
 0x9e9   : > { %10075 = vrcp.f32 %v7984_v50  ;;  %v8513_v0 = vrot.slane %v14548_v10, %v11479_v7 }
 0x9ea   : > { %8772 = vrot.lane.b32.xlu1 %v8569_v23, %s10117_s26  ;;  %10077 = vrcp.f32 %v7982_v31  ;;  %v8517_v30 = vrot.slane %v14555_v12, %v11479_v7  ;;  %v8521_v5 = vrot.slane %v14561_v34, %v11479_v7  ;;  %v14590_v39 = vcombine.high %v14561_v34, %v14561_v34 }
 0x9eb   : > { %10079 = vpow2.f32 %v9913_v35 }
 0x9ec   : > { %8726 = vrot.lane.b32.xlu0 %v8477_v22, %s10117_s26  ;;  %v10074_v23 = vpop.eup %10073  ;;  %v14568_v22 = vcombine.high %v14513_v42, %v14513_v42  ;;  %v8529_v50 = vrot.slane %v14590_v39, %v11479_v7 }
 0x9ee   : > { %8728 = vrot.lane.b32.xlu1 %v8481_v25, %s10117_s26  ;;  %v7985_v25 = vadd.f32 1.0, %v10074_v23 }
 0x9f0   : > { %8730 = vrot.lane.b32.xlu0 %v8485_v48, %s10117_s26  ;;  %10081 = vrcp.f32 %v7985_v25 }
 0x9f2   : > { %8732 = vrot.lane.b32.xlu1 %v8489_v47, %s10117_s26  ;;  %v8589_v47 = vrot.slane %v14568_v22, %v11479_v7 }
 0x9f3   : > { %v10076_v29 = vpop.eup %10075 }
 0x9f4   : > { %8738 = vrot.lane.b32.xlu0 %v8501_v27, %s10117_s26  ;;  %v8311_v48 = vrot.slane %v10076_v29, %v14200_v45  ;;  %v10078_v44 = vpop.eup %10077  ;;  %v14583_v27 = vcombine.high %v14555_v12, %v14555_v12 }
 0x9f5   : > { %v8213_v14 = vrot.slane %v10078_v44, %v14200_v45  ;;  %v10080_v15 = vpop.eup %10079 }
 0x9f6   : > { %8740 = vrot.lane.b32.xlu1 %v8505_v8, %s10117_s26  ;;  %v8593_v8 = vrot.slane %v14575_v4, %v11479_v7  ;;  %v14597_v63 = vrot.slane %v8311_v48, %v14200_v45  ;;  %v7983_v31 = vadd.f32 1.0, %v10080_v15 }
 0x9f7   : > { %v8221_v3 = vcombine.high %v8213_v14, %v8213_v14 }
 0x9f8   : > { %8766 = vrot.lane.b32.xlu0 %v8557_v51, %s10117_s26  ;;  %v8319_v51 = vcombine.high %v8311_v48, %v8311_v48  ;;  %v14623_v35 = vcombine.high %v14597_v63, %v14597_v63  ;;  %10083 = vrcp.f32 %v7983_v31 }
 0x9f9   : > { %v14615_v6 = vrot.slane %v8221_v3, %v14200_v45 }
 0x9fa   : > { %8768 = vrot.lane.b32.xlu1 %v8561_v33, %s10117_s26  ;;  %v8525_v33 = vrot.slane %v14583_v27, %v11479_v7  ;;  %v14603_v20 = vrot.slane %v8319_v51, %v14200_v45 }
 0x9fb   : > { %v14670_v31 = vcombine.high %v14615_v6, %v14615_v6 }
 0x9fc   : > { %8774 = vrot.lane.b32.xlu0 %v8573_v54, %s10117_s26  ;;  %v8304_v54 = vcombine.high %v10076_v29, %v10076_v29  ;;  %v14630_v23 = vcombine.high %v14603_v20, %v14603_v20 }
 0x9fe   : > { %8776 = vrot.lane.b32.xlu1 %v8577_v18, %s10117_s26  ;;  %v8661_v18 = vrot.slane %v14597_v63, %v11479_v7  ;;  %v8673_v48 = vrot.slane %v14630_v23, %v11479_v7 }
 0xa00   : > { %8778 = vrot.lane.b32.xlu0 %v8581_v26, %s10117_s26  ;;  %v14609_v26 = vrot.slane %v8213_v14, %v14200_v45 }
 0xa02   : > { %8780 = vrot.lane.b32.xlu1 %v8585_v1, %s10117_s26  ;;  %v8665_v1 = vrot.slane %v14603_v20, %v11479_v7  ;;  %v8597_v46 = vrot.slane %v14609_v26, %v11479_v7  ;;  %v14663_v3 = vcombine.high %v14609_v26, %v14609_v26 }
 0xa04   : > { %8734 = vrot.lane.b32.xlu0 %v8493_v13, %s10117_s26  ;;  %v8318_v13 = vrot.slane %v8304_v54, %v14200_v45 }
 0xa06   : > { %8736 = vrot.lane.b32.xlu1 %v8497_v36, %s10117_s26  ;;  %v10082_v36 = vpop.eup %10081  ;;  %v14637_v25 = vrot.slane %v8318_v13, %v14200_v45 }
 0xa07   : > { %v8360_v29 = vrot.slane %v10082_v36, %v14200_v45  ;;  %v10084_v54 = vpop.eup %10083 }
 0xa08   : > { %8742 = vrot.lane.b32.xlu0 %v8509_v2, %s10117_s26  ;;  %v8601_v2 = vrot.slane %v14615_v6, %v11479_v7  ;;  %v8677_v51 = vrot.slane %v14637_v25, %v11479_v7 }
 0xa09   : > { %v14649_v14 = vrot.slane %v8360_v29, %v14200_v45 }
 0xa0a   : > { %8744 = vrot.lane.b32.xlu1 %v8513_v0, %s10117_s26  ;;  %v8320_v0 = vcombine.high %v8318_v13, %v8318_v13  ;;  %v8262_v13 = vrot.slane %v10084_v54, %v14200_v45 }
 0xa0c   : > { %8746 = vrot.lane.b32.xlu0 %v8517_v30, %s10117_s26  ;;  %v8669_v30 = vrot.slane %v14623_v35, %v11479_v7 }
 0xa0e   : > { %8748 = vrot.lane.b32.xlu1 %v8521_v5, %s10117_s26  ;;  %v8206_v5 = vcombine.high %v10078_v44, %v10078_v44 }
 0xa10   : > { %8782 = vrot.lane.b32.xlu0 %v8589_v47, %s10117_s26  ;;  %v14643_v47 = vrot.slane %v8320_v0, %v14200_v45  ;;  %v8220_v15 = vrot.slane %v8206_v5, %v14200_v45  ;;  %v8609_v0 = vrot.slane %v14670_v31, %v11479_v7 }
 0xa12   : > { %8784 = vrot.lane.b32.xlu1 %v8593_v8, %s10117_s26  ;;  %v8368_v8 = vcombine.high %v8360_v29, %v8360_v29  ;;  %v8681_v44 = vrot.slane %v14643_v47, %v11479_v7 }
 0xa14   : > { %8750 = vrot.lane.b32.xlu0 %v8525_v33, %s10117_s26  ;;  %v14655_v33 = vrot.slane %v8368_v8, %v14200_v45  ;;  %v8353_v8 = vcombine.high %v10082_v36, %v10082_v36 }
 0xa16   : > { %8752 = vrot.lane.b32.xlu1 %v8529_v50, %s10117_s26  ;;  %v8693_v50 = vrot.slane %v14649_v14, %v11479_v7 }
 0xa18   : > { %8818 = vrot.lane.b32.xlu0 %v8661_v18, %s10117_s26  ;;  %v8697_v18 = vrot.slane %v14655_v33, %v11479_v7 }
 0xa1a   : > { %8820 = vrot.lane.b32.xlu1 %v8665_v1, %s10117_s26  ;;  %v8222_v1 = vcombine.high %v8220_v15, %v8220_v15 }
 0xa1c   : > { %8786 = vrot.lane.b32.xlu0 %v8597_v46, %s10117_s26  ;;  %v8605_v46 = vrot.slane %v14663_v3, %v11479_v7  ;;  %v14683_v29 = vrot.slane %v8222_v1, %v14200_v45  ;;  %v8367_v1 = vrot.slane %v8353_v8, %v14200_v45 }
 0xa1e   : > { %8788 = vrot.lane.b32.xlu1 %v8601_v2, %s10117_s26  ;;  %v14677_v2 = vrot.slane %v8220_v15, %v14200_v45  ;;  %15224 = vst [vmem:[#allocation6_spill] sm:$0xff] %v14683_v29 }
 0xa20   : > { %8822 = vrot.lane.b32.xlu0 %v8669_v30, %s10117_s26  ;;  %v8270_v30 = vcombine.high %v8262_v13, %v8262_v13  ;;  %v8613_v5 = vrot.slane %v14677_v2, %v11479_v7 }
 0xa22   : > { %8824 = vrot.lane.b32.xlu1 %v8673_v48, %s10117_s26  ;;  %v14689_v48 = vrot.slane %v8262_v13, %v14200_v45 }
 0xa24   : > { %8826 = vrot.lane.b32.xlu0 %v8677_v51, %s10117_s26  ;;  %15225 = vst [vmem:[#allocation7_spill] sm:$0xff] %v14689_v48  ;;  %v8617_v51 = vrot.slane %v14683_v29, %v11479_v7  ;;  %v8629_v15 = vrot.slane %v14689_v48, %v11479_v7 }
 0xa26   : > { %8828 = vrot.lane.b32.xlu1 %v8681_v44, %s10117_s26  ;;  %v14695_v44 = vrot.slane %v8270_v30, %v14200_v45  ;;  %v14724_v30 = vcombine.high %v14655_v33, %v14655_v33 }
 0xa28   : > { %8834 = vrot.lane.b32.xlu0 %v8693_v50, %s10117_s26  ;;  %15226 = vst [vmem:[#allocation8_spill] sm:$0xff] %v14695_v44  ;;  %v14702_v50 = vcombine.high %v14637_v25, %v14637_v25  ;;  %v8633_v36 = vrot.slane %v14695_v44, %v11479_v7  ;;  %15228 = vst [vmem:[#allocation10_spill] sm:$0xff] %v14724_v30 }
 0xa2a   : > { %8836 = vrot.lane.b32.xlu1 %v8697_v18, %s10117_s26  ;;  %v14709_v18 = vcombine.high %v14643_v47, %v14643_v47  ;;  %v8685_v13 = vrot.slane %v14702_v50, %v11479_v7 }
 0xa2c   : > { %8790 = vrot.lane.b32.xlu0 %v8605_v46, %s10117_s26  ;;  %v14717_v46 = vcombine.high %v14649_v14, %v14649_v14 }
 0xa2e   : > { %8792 = vrot.lane.b32.xlu1 %v8609_v0, %s10117_s26  ;;  %15227 = vst [vmem:[#allocation9_spill] sm:$0xff] %v14717_v46  ;;  %v8689_v0 = vrot.slane %v14709_v18, %v11479_v7  ;;  %v8701_v8 = vrot.slane %v14717_v46, %v11479_v7  ;;  %v14743_v46 = vcombine.high %v14677_v2, %v14677_v2 }
 0xa30   : > { %8794 = vrot.lane.b32.xlu0 %v8613_v5, %s10117_s26  ;;  %v8369_v5 = vcombine.high %v8367_v1, %v8367_v1  ;;  %15231 = vst [vmem:[#allocation13_spill] sm:$0xff] %v14743_v46 }
 0xa32   : > { %8796 = vrot.lane.b32.xlu1 %v8617_v51, %s10117_s26  ;;  %v14730_v51 = vrot.slane %v8367_v1, %v14200_v45  ;;  %v14750_v1 = vcombine.high %v14683_v29, %v14683_v29 }
 0xa34   : > { %8802 = vrot.lane.b32.xlu0 %v8629_v15, %s10117_s26  ;;  %15229 = vst [vmem:[#allocation11_spill] sm:$0xff] %v14730_v51  ;;  %v8255_v15 = vcombine.high %v10084_v54, %v10084_v54  ;;  %15232 = vst [vmem:[#allocation14_spill] sm:$0xff] %v14750_v1 }
 0xa36   : > { %8804 = vrot.lane.b32.xlu1 %v8633_v36, %s10117_s26  ;;  %v8705_v36 = vrot.slane %v14724_v30, %v11479_v7  ;;  %v14765_v30 = vcombine.high %v14695_v44, %v14695_v44 }
 0xa38   : > { %8830 = vrot.lane.b32.xlu0 %v8685_v13, %s10117_s26  ;;  %v14736_v13 = vrot.slane %v8369_v5, %v14200_v45  ;;  %v8269_v5 = vrot.slane %v8255_v15, %v14200_v45  ;;  %15234 = vst [vmem:[#allocation16_spill] sm:$0xff] %v14765_v30 }
 0xa3a   : > { %8832 = vrot.lane.b32.xlu1 %v8689_v0, %s10117_s26  ;;  %15230 = vst [vmem:[#allocation12_spill] sm:$0xff] %v14736_v13  ;;  %v8709_v0 = vrot.slane %v14730_v51, %v11479_v7  ;;  %v8713_v54 = vrot.slane %v14736_v13, %v11479_v7  ;;  %v8271_v29 = vcombine.high %v8269_v5, %v8269_v5 }
 0xa3c   : > { %8838 = vrot.lane.b32.xlu0 %v8701_v8, %s10117_s26  ;;  %v8621_v8 = vrot.slane %v14743_v46, %v11479_v7 }
 0xa3e   : > { %8840 = vrot.lane.b32.xlu1 %v8705_v36, %s10117_s26  ;;  %v14758_v36 = vcombine.high %v14689_v48, %v14689_v48 }
 0xa40   : > { %8842 = vrot.lane.b32.xlu0 %v8709_v0, %s10117_s26  ;;  %15233 = vst [vmem:[#allocation15_spill] sm:$0xff] %v14758_v36  ;;  %v8625_v0 = vrot.slane %v14750_v1, %v11479_v7  ;;  %v8637_v15 = vrot.slane %v14758_v36, %v11479_v7  ;;  %v14777_v1 = vrot.slane %v8271_v29, %v14200_v45 }
 0xa41   : > { %v14784_v36 = vcombine.high %v14730_v51, %v14730_v51 }
 0xa42   : > { %8844 = vrot.lane.b32.xlu1 %v8713_v54, %s10117_s26  ;;  %v14771_v54 = vrot.slane %v8269_v5, %v14200_v45  ;;  %15236 = vst [vmem:[#allocation18_spill] sm:$0xff] %v14777_v1  ;;  %v14791_v45 = vcombine.high %v14736_v13, %v14736_v13  ;;  %v14805_v13 = vcombine.high %v14777_v1, %v14777_v1 }
 0xa43   : > { %15237 = vst [vmem:[#allocation19_spill] sm:$0xff] %v14784_v36 }
 0xa44   : > { %8798 = vrot.lane.b32.xlu0 %v8621_v8, %s10117_s26  ;;  %15235 = vst [vmem:[#allocation17_spill] sm:$0xff] %v14771_v54  ;;  %v8641_v8 = vrot.slane %v14765_v30, %v11479_v7  ;;  %15238 = vst [vmem:[#allocation20_spill] sm:$0xff] %v14791_v45  ;;  %v14798_v51 = vcombine.high %v14771_v54, %v14771_v54 }
 0xa46   : > { %8800 = vrot.lane.b32.xlu1 %v8625_v0, %s10117_s26  ;;  %v8645_v0 = vrot.slane %v14771_v54, %v11479_v7  ;;  %15239 = vst [vmem:[#allocation21_spill] sm:$0xff] %v14798_v51  ;;  %v8653_v54 = vrot.slane %v14798_v51, %v11479_v7 }
 0xa48   : > { %8806 = vrot.lane.b32.xlu0 %v8637_v15, %s10117_s26  ;;  %v8649_v15 = vrot.slane %v14777_v1, %v11479_v7 }
 0xa4a   : > { %v8755_v46 = vpop.permute.xlu0 %8754  ;;  %8808 = vrot.lane.b32.xlu1 %v8641_v8, %s10117_s26  ;;  %v8717_v8 = vrot.slane %v14784_v36, %v11479_v7 }
 0xa4c   : > { %v8757_v5 = vpop.permute.xlu1 %8756  ;;  %8810 = vrot.lane.b32.xlu0 %v8645_v0, %s10117_s26  ;;  %v8721_v0 = vrot.slane %v14791_v45, %v11479_v7  ;;  %v8657_v45 = vrot.slane %v14805_v13, %v11479_v7 }
 0xa4e   : > { %v8723_v29 = vpop.permute.xlu0 %8722  ;;  %8812 = vrot.lane.b32.xlu1 %v8649_v15, %s10117_s26  ;;  %v8931_v15 = vsel %vm15240_vm12, %v14386_v59, %v8757_v5  ;;  %vm15254_vm12 = vmmov %vm15221_vm0 }
 0xa50   : > { %v8725_v30 = vpop.permute.xlu1 %8724  ;;  %8846 = vrot.lane.b32.xlu0 %v8717_v8, %s10117_s26  ;;  %v8930_v8 = vsel %vm15241_vm5, %v14381_v58, %v8755_v46  ;;  %vm15255_vm5 = vmmov %vm15221_vm0 }
 0xa51   : > { %v9306_v36 = vcombine.low %v8930_v8, %v8931_v15 }
 0xa52   : > { %v8759_v44 = vpop.permute.xlu0 %8758  ;;  %8848 = vrot.lane.b32.xlu1 %v8721_v0, %s10117_s26 }
 0xa53   : > { %v8932_v59 = vsel %vm15242_vm7, %v14403_v21, %v8759_v44  ;;  %v9314_v51 = vrot.slane %v9306_v36, %v12924_v56  ;;  %v8915_v44 = vsel %vm15245_vm11, %v14395_v57, %v8725_v30  ;;  %vm15256_vm7 = vmmov %vm15221_vm0 }
 0xa54   : > { %v8761_v48 = vpop.permute.xlu1 %8760  ;;  %8814 = vrot.lane.b32.xlu0 %v8653_v54, %s10117_s26  ;;  %vm15259_vm11 = vmmov %vm15221_vm0 }
 0xa55   : > { %v8933_v5 = vsel %vm15243_vm8, %v14410_v9, %v8761_v48  ;;  %v8914_v9 = vsel %vm15244_vm10, %v14389_v49, %v8723_v29  ;;  %vm15257_vm8 = vmmov %vm15221_vm0 }
 0xa56   : > { %v9307_v0 = vcombine.low %v8932_v59, %v8933_v5  ;;  %v8763_v1 = vpop.permute.xlu0 %8762  ;;  %8816 = vrot.lane.b32.xlu1 %v8657_v45, %s10117_s26  ;;  %v9170_v54 = vcombine.low %v8914_v9, %v8915_v44  ;;  %vm15258_vm10 = vmmov %vm15221_vm0 }
 0xa57   : > { %v8934_v57 = vsel %vm15248_vm14, %v14417_v17, %v8763_v1  ;;  %vm15262_vm14 = vmmov %vm15221_vm0 }
 0xa58   : > { %v9321_v58 = vrot.slane %v9307_v0, %v12924_v56  ;;  %v8765_v46 = vpop.permute.xlu1 %8764  ;;  %9074 = vrot.lane.b32.xlu0 %v8930_v8, %s10118_s27  ;;  %v9178_v30 = vrot.slane %v9170_v54, %v12924_v56 }
 0xa5a   : > { %v9322_v7 = vcombine.low %v9314_v51, %v9321_v58  ;;  %v8771_v21 = vpop.permute.xlu0 %8770  ;;  %9076 = vrot.lane.b32.xlu1 %v8931_v15, %s10118_s27 }
 0xa5c   : > { %9755 = vst.msk [vmem:[%s14830_s15 + $0x40] sm:$0xff] %vm9746_vm9, %v9322_v7  ;;  %v8773_v48 = vpop.permute.xlu1 %8772  ;;  %9042 = vrot.lane.b32.xlu0 %v8914_v9, %s10118_s27 }
 0xa5d   : > { %v8939_v1 = vsel %vm15251_vm15, %v14435_v53, %v8773_v48  ;;  %vm15265_vm15 = vmmov %vm15221_vm0 }
 0xa5e   : > { %v8727_v36 = vpop.permute.xlu0 %8726  ;;  %9044 = vrot.lane.b32.xlu1 %v8915_v44, %s10118_s27 }
 0xa5f   : > { %v8916_v51 = vsel %vm15246_vm1, %v14443_v40, %v8727_v36  ;;  %v8935_v40 = vsel %vm15249_vm2, %v14423_v24, %v8765_v46  ;;  %vm15260_vm1 = vmmov %vm15221_vm0 }
 0xa60   : > { %v8729_v45 = vpop.permute.xlu1 %8728  ;;  %9078 = vrot.lane.b32.xlu0 %v8932_v59, %s10118_s27  ;;  %v9323_v7 = vcombine.low %v8934_v57, %v8935_v40  ;;  %vm15263_vm2 = vmmov %vm15221_vm0 }
 0xa61   : > { %v8917_v49 = vsel %vm15247_vm13, %v14450_v60, %v8729_v45  ;;  %v8938_v60 = vsel %vm15250_vm6, %v14429_v37, %v8771_v21  ;;  %vm15261_vm13 = vmmov %vm15221_vm0 }
 0xa62   : > { %v9171_v29 = vcombine.low %v8916_v51, %v8917_v49  ;;  %v8731_v15 = vpop.permute.xlu0 %8730  ;;  %9080 = vrot.lane.b32.xlu1 %v8933_v5, %s10118_s27  ;;  %v9331_v48 = vrot.slane %v9323_v7, %v12924_v56  ;;  %v9374_v44 = vcombine.low %v8938_v60, %v8939_v1  ;;  %vm15264_vm6 = vmmov %vm15221_vm0 }
 0xa63   : > { %v8918_v53 = vsel %vm15253_vm4, %v14458_v11, %v8731_v15  ;;  %vm15267_vm4 = vmmov %vm15221_vm0 }
 0xa64   : > { %v9185_v8 = vrot.slane %v9171_v29, %v12924_v56  ;;  %9082 = vrot.lane.b32.xlu0 %v8934_v57, %s10118_s27  ;;  %v8733_v59 = vpop.permute.xlu1 %8732  ;;  %v9382_v15 = vrot.slane %v9374_v44, %v12924_v56 }
 0xa66   : > { %v9186_v0 = vcombine.low %v9178_v30, %v9185_v8  ;;  %v8739_v58 = vpop.permute.xlu0 %8738  ;;  %9084 = vrot.lane.b32.xlu1 %v8935_v40, %s10118_s27 }
 0xa67   : > { %v8922_v29 = vsel %vm15257_vm8, %v14471_v32, %v8739_v58  ;;  %vm15271_vm8 = vmmov %vm15221_vm0 }
 0xa68   : > { %9747 = vst.msk [vmem:[%s14830_s15] sm:$0xff] %vm9746_vm9, %v9186_v0  ;;  %9090 = vrot.lane.b32.xlu0 %v8938_v60, %s10118_s27  ;;  %v8741_v17 = vpop.permute.xlu1 %8740 }
 0xa6a   : > { %v8767_v5 = vpop.permute.xlu0 %8766  ;;  %9092 = vrot.lane.b32.xlu1 %v8939_v1, %s10118_s27 }
 0xa6b   : > { %v8936_v46 = vsel %vm15221_vm0, %v14484_v43, %v8767_v5  ;;  %v8919_v43 = vsel %vm15254_vm12, %v14464_v62, %v8733_v59  ;;  %vm15268_vm12 = vmmov %vm15221_vm0 }
 0xa6c   : > { %9046 = vrot.lane.b32.xlu0 %v8916_v51, %s10118_s27  ;;  %v8769_v24 = vpop.permute.xlu1 %8768  ;;  %v9187_v8 = vcombine.low %v8918_v53, %v8919_v43 }
 0xa6d   : > { %v8937_v37 = vsel %vm15252_vm3, %v14491_v61, %v8769_v24  ;;  %vm15266_vm3 = vmmov %vm15221_vm0 }
 0xa6e   : > { %v9324_v21 = vcombine.low %v8936_v46, %v8937_v37  ;;  %v8775_v9 = vpop.permute.xlu0 %8774  ;;  %9048 = vrot.lane.b32.xlu1 %v8917_v49, %s10118_s27 }
 0xa6f   : > { %v8940_v61 = vsel %vm15255_vm5, %v14499_v55, %v8775_v9  ;;  %vm15269_vm5 = vmmov %vm15221_vm0 }
 0xa70   : > { %v9338_v36 = vrot.slane %v9324_v21, %v12924_v56  ;;  %9050 = vrot.lane.b32.xlu0 %v8918_v53, %s10118_s27  ;;  %v8777_v54 = vpop.permute.xlu1 %8776 }
 0xa71   : > { %v8941_v45 = vsel %vm15256_vm7, %v14506_v19, %v8777_v54  ;;  %v8923_v19 = vsel %vm15258_vm10, %v14477_v41, %v8741_v17  ;;  %v9195_v41 = vrot.slane %v9187_v8, %v12924_v56  ;;  %vm15270_vm7 = vmmov %vm15221_vm0 }
 0xa72   : > { %v9339_v51 = vcombine.low %v9331_v48, %v9338_v36  ;;  %v9375_v11 = vcombine.low %v8940_v61, %v8941_v45  ;;  %v8779_v49 = vpop.permute.xlu0 %8778  ;;  %9052 = vrot.lane.b32.xlu1 %v8919_v43, %s10118_s27  ;;  %v9238_v60 = vcombine.low %v8922_v29, %v8923_v19  ;;  %vm15272_vm10 = vmmov %vm15221_vm0 }
 0xa74   : > { %9756 = vst.msk [vmem:[%s14830_s15 + $0x48] sm:$0xff] %vm9746_vm9, %v9339_v51  ;;  %v9389_v62 = vrot.slane %v9375_v11, %v12924_v56  ;;  %9058 = vrot.lane.b32.xlu0 %v8922_v29, %s10118_s27  ;;  %v8781_v55 = vpop.permute.xlu1 %8780 }
 0xa76   : > { %v9390_v57 = vcombine.low %v9382_v15, %v9389_v62  ;;  %v8735_v30 = vpop.permute.xlu0 %8734  ;;  %9060 = vrot.lane.b32.xlu1 %v8923_v19, %s10118_s27 }
 0xa77   : > { %v8920_v59 = vsel %vm15259_vm11, %v14526_v52, %v8735_v30  ;;  %vm15273_vm11 = vmmov %vm15221_vm0 }
 0xa78   : > { %9759 = vst.msk [vmem:[%s14830_s15 + $0x60] sm:$0xff] %vm9746_vm9, %v9390_v57  ;;  %9086 = vrot.lane.b32.xlu0 %v8936_v46, %s10118_s27  ;;  %v8737_v32 = vpop.permute.xlu1 %8736  ;;  %v8942_v46 = vsel %vm15263_vm2, %v14513_v42, %v8779_v49  ;;  %vm15277_vm2 = vmmov %vm15221_vm0 }
 0xa79   : > { %v8921_v40 = vsel %vm15260_vm1, %v14533_v38, %v8737_v32  ;;  %vm15274_vm1 = vmmov %vm15221_vm0 }
 0xa7a   : > { %v9188_v0 = vcombine.low %v8920_v59, %v8921_v40  ;;  %v8743_v58 = vpop.permute.xlu0 %8742  ;;  %9088 = vrot.lane.b32.xlu1 %v8937_v37, %s10118_s27  ;;  %v9246_v37 = vrot.slane %v9238_v60, %v12924_v56 }
 0xa7b   : > { %v8924_v5 = vsel %vm15261_vm13, %v14541_v16, %v8743_v58  ;;  %vm15275_vm13 = vmmov %vm15221_vm0 }
 0xa7c   : > { %v9202_v17 = vrot.slane %v9188_v0, %v12924_v56  ;;  %9094 = vrot.lane.b32.xlu0 %v8940_v61, %s10118_s27  ;;  %v8745_v1 = vpop.permute.xlu1 %8744 }
 0xa7d   : > { %v8925_v52 = vsel %vm15262_vm14, %v14548_v10, %v8745_v1  ;;  %v8943_v10 = vsel %vm15264_vm6, %v14519_v28, %v8781_v55  ;;  %vm15276_vm14 = vmmov %vm15221_vm0 }
 0xa7e   : > { %v9203_v38 = vcombine.low %v9195_v41, %v9202_v17  ;;  %v9239_v7 = vcombine.low %v8924_v5, %v8925_v52  ;;  %v8747_v24 = vpop.permute.xlu0 %8746  ;;  %9096 = vrot.lane.b32.xlu1 %v8941_v45, %s10118_s27  ;;  %v9391_v48 = vcombine.low %v8942_v46, %v8943_v10  ;;  %vm15278_vm6 = vmmov %vm15221_vm0 }
 0xa7f   : > { %v8926_v61 = vsel %vm15267_vm4, %v14555_v12, %v8747_v24  ;;  %vm15281_vm4 = vmmov %vm15221_vm0 }
 0xa80   : > { %9748 = vst.msk [vmem:[%s14830_s15 + $0x8] sm:$0xff] %vm9746_vm9, %v9203_v38  ;;  %v9253_v21 = vrot.slane %v9239_v7, %v12924_v56  ;;  %9098 = vrot.lane.b32.xlu0 %v8942_v46, %s10118_s27  ;;  %v8749_v16 = vpop.permute.xlu1 %8748  ;;  %v9399_v45 = vrot.slane %v9391_v48, %v12924_v56 }
 0xa81   : > { %v8927_v44 = vsel %vm15265_vm15, %v14561_v34, %v8749_v16  ;;  %vm15279_vm15 = vmmov %vm15221_vm0 }
 0xa82   : > { %v9254_v9 = vcombine.low %v9246_v37, %v9253_v21  ;;  %v8783_v53 = vpop.permute.xlu0 %8782  ;;  %9100 = vrot.lane.b32.xlu1 %v8943_v10, %s10118_s27  ;;  %v9255_v51 = vcombine.low %v8926_v61, %v8927_v44 }
 0xa83   : > { %v8944_v36 = vsel %vm15221_vm0, %v14568_v22, %v8783_v53 }
 0xa84   : > { %9751 = vst.msk [vmem:[%s14830_s15 + $0x20] sm:$0xff] %vm9746_vm9, %v9254_v9  ;;  %9054 = vrot.lane.b32.xlu0 %v8920_v59, %s10118_s27  ;;  %v8785_v42 = vpop.permute.xlu1 %8784  ;;  %v9263_v12 = vrot.slane %v9255_v51, %v12924_v56 }
 0xa85   : > { %v8945_v54 = vsel %vm15266_vm3, %v14575_v4, %v8785_v42  ;;  %vm15280_vm3 = vmmov %vm15221_vm0 }
 0xa86   : > { %v9392_v28 = vcombine.low %v8944_v36, %v8945_v54  ;;  %v8751_v43 = vpop.permute.xlu0 %8750  ;;  %9056 = vrot.lane.b32.xlu1 %v8921_v40, %s10118_s27 }
 0xa87   : > { %v8928_v22 = vsel %vm15268_vm12, %v14583_v27, %v8751_v43  ;;  %vm15282_vm12 = vmmov %vm15221_vm0 }
 0xa88   : > { %v9406_v11 = vrot.slane %v9392_v28, %v12924_v56  ;;  %9062 = vrot.lane.b32.xlu0 %v8924_v5, %s10118_s27  ;;  %v8753_v34 = vpop.permute.xlu1 %8752 }
 0xa89   : > { %v8929_v4 = vsel %vm15269_vm5, %v14590_v39, %v8753_v34  ;;  %vm15283_vm5 = vmmov %vm15221_vm0 }
 0xa8a   : > { %v9407_v49 = vcombine.low %v9399_v45, %v9406_v11  ;;  %v9256_v29 = vcombine.low %v8928_v22, %v8929_v4  ;;  %v8819_v15 = vpop.permute.xlu0 %8818  ;;  %9064 = vrot.lane.b32.xlu1 %v8925_v52, %s10118_s27 }
 0xa8b   : > { %v8962_v8 = vsel %vm15271_vm8, %v14597_v63, %v8819_v15  ;;  %vm15287_vm8 = vmmov %vm15221_vm0  ;;  %v15290_v15 = vld [vmem:[#allocation7_spill] sm:$0xff] }
 0xa8c   : > { %9760 = vst.msk [vmem:[%s14830_s15 + $0x68] sm:$0xff] %vm9746_vm9, %v9407_v49  ;;  %v9270_v62 = vrot.slane %v9256_v29, %v12924_v56  ;;  %9066 = vrot.lane.b32.xlu0 %v8926_v61, %s10118_s27  ;;  %v8821_v55 = vpop.permute.xlu1 %8820 }
 0xa8d   : > { %v8963_v39 = vsel %vm15270_vm7, %v14603_v20, %v8821_v55  ;;  %vm15285_vm7 = vmmov %vm15221_vm0 }
 0xa8e   : > { %v9271_v19 = vcombine.low %v9263_v12, %v9270_v62  ;;  %v8787_v57 = vpop.permute.xlu0 %8786  ;;  %9068 = vrot.lane.b32.xlu1 %v8927_v44, %s10118_s27  ;;  %v9578_v32 = vcombine.low %v8962_v8, %v8963_v39 }
 0xa90   : > { %9752 = vst.msk [vmem:[%s14830_s15 + $0x28] sm:$0xff] %vm9746_vm9, %v9271_v19  ;;  %9102 = vrot.lane.b32.xlu0 %v8944_v36, %s10118_s27  ;;  %v8789_v27 = vpop.permute.xlu1 %8788  ;;  %v9586_v20 = vrot.slane %v9578_v32, %v12924_v56 }
 0xa91   : > { %v8947_v5 = vsel %vm15275_vm13, %v14615_v6, %v8789_v27  ;;  %vm15295_vm13 = vmmov %vm15221_vm0 }
 0xa92   : > { %v8823_v30 = vpop.permute.xlu0 %8822  ;;  %9104 = vrot.lane.b32.xlu1 %v8945_v54, %s10118_s27 }
 0xa93   : > { %v8964_v40 = vsel %vm15272_vm10, %v14623_v35, %v8823_v30  ;;  %v8946_v35 = vsel %vm15274_vm1, %v14609_v26, %v8787_v57  ;;  %vm15289_vm10 = vmmov %vm15221_vm0  ;;  %v15292_v57 = vld [vmem:[#allocation8_spill] sm:$0xff] }
 0xa94   : > { %9070 = vrot.lane.b32.xlu0 %v8928_v22, %s10118_s27  ;;  %v8825_v59 = vpop.permute.xlu1 %8824  ;;  %v9442_v38 = vcombine.low %v8946_v35, %v8947_v5  ;;  %v15288_v22 = vld [vmem:[#allocation10_spill] sm:$0xff]  ;;  %vm15293_vm1 = vmmov %vm15221_vm0 }
 0xa95   : > { %v8965_v0 = vsel %vm15273_vm11, %v14630_v23, %v8825_v59  ;;  %vm15291_vm11 = vmmov %vm15221_vm0  ;;  %v15294_v59 = vld [vmem:[#allocation13_spill] sm:$0xff] }
 0xa96   : > { %v9579_v58 = vcombine.low %v8964_v40, %v8965_v0  ;;  %v8827_v41 = vpop.permute.xlu0 %8826  ;;  %9072 = vrot.lane.b32.xlu1 %v8929_v4, %s10118_s27  ;;  %v9450_v21 = vrot.slane %v9442_v38, %v12924_v56 }
 0xa97   : > { %v8966_v6 = vsel %vm15278_vm6, %v14637_v25, %v8827_v41  ;;  %vm15301_vm6 = vmmov %vm15221_vm0 }
 0xa98   : > { %v9593_v60 = vrot.slane %v9579_v58, %v12924_v56  ;;  %9138 = vrot.lane.b32.xlu0 %v8962_v8, %s10118_s27  ;;  %v8829_v63 = vpop.permute.xlu1 %8828 }
 0xa9a   : > { %v9594_v17 = vcombine.low %v9586_v20, %v9593_v60  ;;  %v8835_v1 = vpop.permute.xlu0 %8834  ;;  %9140 = vrot.lane.b32.xlu1 %v8963_v39, %s10118_s27 }
 0xa9c   : > { %9771 = vst.msk [vmem:[%s14830_s15 + $0xc0] sm:$0xff] %vm9746_vm9, %v9594_v17  ;;  %9106 = vrot.lane.b32.xlu0 %v8946_v35, %s10118_s27  ;;  %v8837_v23 = vpop.permute.xlu1 %8836  ;;  %v15298_v35 = vld [vmem:[#allocation15_spill] sm:$0xff] }
 0xa9d   : > { %v8971_v48 = vsel %vm15280_vm3, %v14655_v33, %v8837_v23  ;;  %vm15306_vm3 = vmmov %vm15221_vm0 }
 0xa9e   : > { %v8791_v52 = vpop.permute.xlu0 %8790  ;;  %9108 = vrot.lane.b32.xlu1 %v8947_v5, %s10118_s27  ;;  %v15300_v5 = vld [vmem:[#allocation16_spill] sm:$0xff] }
 0xa9f   : > { %v8948_v24 = vsel %vm15276_vm14, %v14663_v3, %v8791_v52  ;;  %v8967_v3 = vsel %vm15279_vm15, %v14643_v47, %v8829_v63  ;;  %vm15297_vm14 = vmmov %vm15221_vm0 }
 0xaa0   : > { %9142 = vrot.lane.b32.xlu0 %v8964_v40, %s10118_s27  ;;  %v8793_v7 = vpop.permute.xlu1 %8792  ;;  %v9595_v44 = vcombine.low %v8966_v6, %v8967_v3  ;;  %vm15303_vm15 = vmmov %vm15221_vm0 }
 0xaa1   : > { %v8949_v26 = vsel %vm15277_vm2, %v14670_v31, %v8793_v7  ;;  %v8970_v31 = vsel %vm15221_vm0, %v14649_v14, %v8835_v1  ;;  %vm15299_vm2 = vmmov %vm15221_vm0 }
 0xaa2   : > { %v9443_v46 = vcombine.low %v8948_v24, %v8949_v26  ;;  %v8795_v37 = vpop.permute.xlu0 %8794  ;;  %9144 = vrot.lane.b32.xlu1 %v8965_v0, %s10118_s27  ;;  %v9603_v43 = vrot.slane %v9595_v44, %v12924_v56  ;;  %v9646_v61 = vcombine.low %v8970_v31, %v8971_v48  ;;  %v15296_v0 = vld [vmem:[#allocation14_spill] sm:$0xff] }
 0xaa3   : > { %v8950_v33 = vsel %vm15283_vm5, %v14677_v2, %v8795_v37  ;;  %vm15312_vm5 = vmmov %vm15221_vm0 }
 0xaa4   : > { %v9457_v16 = vrot.slane %v9443_v46, %v12924_v56  ;;  %9146 = vrot.lane.b32.xlu0 %v8966_v6, %s10118_s27  ;;  %v8797_v10 = vpop.permute.xlu1 %8796  ;;  %v9654_v62 = vrot.slane %v9646_v61, %v12924_v56 }
 0xaa6   : > { %v9458_v9 = vcombine.low %v9450_v21, %v9457_v16  ;;  %v8803_v53 = vpop.permute.xlu0 %8802  ;;  %9148 = vrot.lane.b32.xlu1 %v8967_v3, %s10118_s27  ;;  %v15304_v16 = vld [vmem:[#allocation12_spill] sm:$0xff] }
 0xaa7   : > { %v8954_v12 = vsel %vm15291_vm11, %v15290_v15, %v8803_v53 }
 0xaa8   : > { %9763 = vst.msk [vmem:[%s14830_s15 + $0x80] sm:$0xff] %vm9746_vm9, %v9458_v9  ;;  %9154 = vrot.lane.b32.xlu0 %v8970_v31, %s10118_s27  ;;  %v8805_v25 = vpop.permute.xlu1 %8804 }
 0xaa9   : > { %v8955_v27 = vsel %vm15293_vm1, %v15292_v57, %v8805_v25  ;;  %v15305_v25 = vld [vmem:[#allocation18_spill] sm:$0xff] }
 0xaaa   : > { %v8831_v42 = vpop.permute.xlu0 %8830  ;;  %9156 = vrot.lane.b32.xlu1 %v8971_v48, %s10118_s27  ;;  %v9510_v63 = vcombine.low %v8954_v12, %v8955_v27 }
 0xaab   : > { %v8968_v36 = vsel %vm15281_vm4, %v14702_v50, %v8831_v42  ;;  %v15284_v50 = vld [vmem:[#allocation6_spill] sm:$0xff]  ;;  %v15307_v42 = vld [vmem:[#allocation19_spill] sm:$0xff]  ;;  %vm15308_vm4 = vmmov %vm15221_vm0 }
 0xaac   : > { %9110 = vrot.lane.b32.xlu0 %v8948_v24, %s10118_s27  ;;  %v8833_v47 = vpop.permute.xlu1 %8832  ;;  %v8951_v11 = vsel %vm15285_vm7, %v15284_v50, %v8797_v10  ;;  %v9518_v37 = vrot.slane %v9510_v63, %v12924_v56  ;;  %v15313_v50 = vld [vmem:[#allocation21_spill] sm:$0xff]  ;;  %vm15314_vm7 = vmmov %vm15221_vm0 }
 0xaad   : > { %v8969_v14 = vsel %vm15282_vm12, %v14709_v18, %v8833_v47  ;;  %v15286_v18 = vld [vmem:[#allocation9_spill] sm:$0xff]  ;;  %v9459_v8 = vcombine.low %v8950_v33, %v8951_v11  ;;  %v15309_v47 = vld [vmem:[#allocation20_spill] sm:$0xff]  ;;  %vm15310_vm12 = vmmov %vm15221_vm0 }
 0xaae   : > { %v9596_v54 = vcombine.low %v8968_v36, %v8969_v14  ;;  %v8839_v28 = vpop.permute.xlu0 %8838  ;;  %9112 = vrot.lane.b32.xlu1 %v8949_v26, %s10118_s27  ;;  %v15302_v26 = vld [vmem:[#allocation11_spill] sm:$0xff] }
 0xaaf   : > { %v8972_v34 = vsel %vm15287_vm8, %v15286_v18, %v8839_v28  ;;  %v9467_v60 = vrot.slane %v9459_v8, %v12924_v56  ;;  %v15311_v28 = vld [vmem:[#allocation17_spill] sm:$0xff]  ;;  %vm15315_vm8 = vmmov %vm15221_vm0 }
 0xab0   : > { %v9610_v45 = vrot.slane %v9596_v54, %v12924_v56  ;;  %9114 = vrot.lane.b32.xlu0 %v8950_v33, %s10118_s27  ;;  %v8841_v51 = vpop.permute.xlu1 %8840 }
 0xab1   : > { %v8973_v4 = vsel %vm15289_vm10, %v15288_v22, %v8841_v51 }
 0xab2   : > { %v9611_v49 = vcombine.low %v9603_v43, %v9610_v45  ;;  %v9647_v2 = vcombine.low %v8972_v34, %v8973_v4  ;;  %v8843_v29 = vpop.permute.xlu0 %8842  ;;  %9116 = vrot.lane.b32.xlu1 %v8951_v11, %s10118_s27 }
 0xab3   : > { %v8974_v46 = vsel %vm15303_vm15, %v15302_v26, %v8843_v29 }
 0xab4   : > { %9772 = vst.msk [vmem:[%s14830_s15 + $0xc8] sm:$0xff] %vm9746_vm9, %v9611_v49  ;;  %v9661_v55 = vrot.slane %v9647_v2, %v12924_v56  ;;  %9122 = vrot.lane.b32.xlu0 %v8954_v12, %s10118_s27  ;;  %v8845_v19 = vpop.permute.xlu1 %8844 }
 0xab5   : > { %v8975_v10 = vsel %vm15221_vm0, %v15304_v16, %v8845_v19 }
 0xab6   : > { %v9662_v39 = vcombine.low %v9654_v62, %v9661_v55  ;;  %v8799_v30 = vpop.permute.xlu0 %8798  ;;  %9124 = vrot.lane.b32.xlu1 %v8955_v27, %s10118_s27  ;;  %v9663_v53 = vcombine.low %v8974_v46, %v8975_v10 }
 0xab7   : > { %v8952_v40 = vsel %vm15295_vm13, %v15294_v59, %v8799_v30 }
 0xab8   : > { %9775 = vst.msk [vmem:[%s14830_s15 + $0xe0] sm:$0xff] %vm9746_vm9, %v9662_v39  ;;  %9150 = vrot.lane.b32.xlu0 %v8968_v36, %s10118_s27  ;;  %v8801_v32 = vpop.permute.xlu1 %8800  ;;  %v9671_v43 = vrot.slane %v9663_v53, %v12924_v56 }
 0xab9   : > { %v8953_v58 = vsel %vm15297_vm14, %v15296_v0, %v8801_v32 }
 0xaba   : > { %v9460_v41 = vcombine.low %v8952_v40, %v8953_v58  ;;  %v8807_v20 = vpop.permute.xlu0 %8806  ;;  %9152 = vrot.lane.b32.xlu1 %v8969_v14, %s10118_s27 }
 0xabb   : > { %v8956_v23 = vsel %vm15299_vm2, %v15298_v35, %v8807_v20 }
 0xabc   : > { %v9474_v17 = vrot.slane %v9460_v41, %v12924_v56  ;;  %9158 = vrot.lane.b32.xlu0 %v8972_v34, %s10118_s27  ;;  %v8809_v1 = vpop.permute.xlu1 %8808 }
 0xabd   : > { %v8957_v52 = vsel %vm15301_vm6, %v15300_v5, %v8809_v1 }
 0xabe   : > { %v9475_v38 = vcombine.low %v9467_v60, %v9474_v17  ;;  %v9511_v7 = vcombine.low %v8956_v23, %v8957_v52  ;;  %v8811_v24 = vpop.permute.xlu0 %8810  ;;  %9160 = vrot.lane.b32.xlu1 %v8973_v4, %s10118_s27 }
 0xabf   : > { %v8958_v33 = vsel %vm15312_vm5, %v15311_v28, %v8811_v24 }
 0xac0   : > { %9764 = vst.msk [vmem:[%s14830_s15 + $0x88] sm:$0xff] %vm9746_vm9, %v9475_v38  ;;  %v9525_v6 = vrot.slane %v9511_v7, %v12924_v56  ;;  %9162 = vrot.lane.b32.xlu0 %v8974_v46, %s10118_s27  ;;  %v8813_v21 = vpop.permute.xlu1 %8812 }
 0xac1   : > { %v8959_v48 = vsel %vm15306_vm3, %v15305_v25, %v8813_v21 }
 0xac2   : > { %v9526_v3 = vcombine.low %v9518_v37, %v9525_v6  ;;  %v8847_v9 = vpop.permute.xlu0 %8846  ;;  %9164 = vrot.lane.b32.xlu1 %v8975_v10, %s10118_s27  ;;  %v9527_v61 = vcombine.low %v8958_v33, %v8959_v48 }
 0xac3   : > { %v8976_v44 = vsel %vm15308_vm4, %v15307_v42, %v8847_v9 }
 0xac4   : > { %9767 = vst.msk [vmem:[%s14830_s15 + $0xa0] sm:$0xff] %vm9746_vm9, %v9526_v3  ;;  %9118 = vrot.lane.b32.xlu0 %v8952_v40, %s10118_s27  ;;  %v8849_v31 = vpop.permute.xlu1 %8848  ;;  %v9535_v49 = vrot.slane %v9527_v61, %v12924_v56 }
 0xac5   : > { %v8977_v36 = vsel %vm15310_vm12, %v15309_v47, %v8849_v31 }
 0xac6   : > { %v9664_v14 = vcombine.low %v8976_v44, %v8977_v36  ;;  %v8815_v54 = vpop.permute.xlu0 %8814  ;;  %9120 = vrot.lane.b32.xlu1 %v8953_v58, %s10118_s27 }
 0xac7   : > { %v8960_v11 = vsel %vm15314_vm7, %v15313_v50, %v8815_v54 }
 0xac8   : > { %v9678_v45 = vrot.slane %v9664_v14, %v12924_v56  ;;  %9126 = vrot.lane.b32.xlu0 %v8956_v23, %s10118_s27  ;;  %v8817_v51 = vpop.permute.xlu1 %8816 }
 0xac9   : > { %v8961_v18 = vsel %vm15315_vm8, %v14805_v13, %v8817_v51 }
 0xaca   : > { %v9679_v34 = vcombine.low %v9671_v43, %v9678_v45  ;;  %v9528_v22 = vcombine.low %v8960_v11, %v8961_v18  ;;  %v9075_v4 = vpop.permute.xlu0 %9074  ;;  %9128 = vrot.lane.b32.xlu1 %v8957_v52, %s10118_s27 }
 0xacc   : > { %9776 = vst.msk [vmem:[%s14830_s15 + $0xe8] sm:$0xff] %vm9746_vm9, %v9679_v34  ;;  %v9542_v2 = vrot.slane %v9528_v22, %v12924_v56  ;;  %9130 = vrot.lane.b32.xlu0 %v8958_v33, %s10118_s27  ;;  %v9077_v29 = vpop.permute.xlu1 %9076 }
 0xacd   : > { %v9340_v55 = vcombine.low %v9075_v4, %v9077_v29 }
 0xace   : > { %v9543_v15 = vcombine.low %v9535_v49, %v9542_v2  ;;  %v9043_v12 = vpop.permute.xlu0 %9042  ;;  %9132 = vrot.lane.b32.xlu1 %v8959_v48, %s10118_s27 }
 0xacf   : > { %v9348_v39 = vrot.slane %v9340_v55, %v12924_v56 }
 0xad0   : > { %9768 = vst.msk [vmem:[%s14830_s15 + $0xa8] sm:$0xff] %vm9746_vm9, %v9543_v15  ;;  %9134 = vrot.lane.b32.xlu0 %v8960_v11, %s10118_s27  ;;  %v9045_v13 = vpop.permute.xlu1 %9044 }
 0xad1   : > { %v9204_v58 = vcombine.low %v9043_v12, %v9045_v13 }
 0xad2   : > { %v9079_v62 = vpop.permute.xlu0 %9078  ;;  %9136 = vrot.lane.b32.xlu1 %v8961_v18, %s10118_s27 }
 0xad3   : > { %v9212_v63 = vrot.slane %v9204_v58, %v12924_v56 }
 0xad4   : > { %9166 = vrot.lane.b32.xlu0 %v8976_v44, %s10118_s27  ;;  %v9081_v19 = vpop.permute.xlu1 %9080 }
 0xad5   : > { %v9341_v57 = vcombine.low %v9079_v62, %v9081_v19 }
 0xad6   : > { %v9083_v27 = vpop.permute.xlu0 %9082  ;;  %9168 = vrot.lane.b32.xlu1 %v8977_v36, %s10118_s27 }
 0xad7   : > { %v9355_v30 = vrot.slane %v9341_v57, %v12924_v56 }
 0xad8   : > { %v9085_v8 = vpop.permute.xlu1 %9084 }
 0xad9   : > { %v9356_v32 = vcombine.low %v9348_v39, %v9355_v30  ;;  %v9357_v38 = vcombine.low %v9083_v27, %v9085_v8 }
 0xada   : > { %v9091_v59 = vpop.permute.xlu0 %9090 }
 0xadb   : > { %9757 = vst.msk [vmem:[%s14830_s15 + $0x50] sm:$0xff] %vm9746_vm9, %v9356_v32  ;;  %v9365_v46 = vrot.slane %v9357_v38, %v12924_v56 }
 0xadc   : > { %v9093_v40 = vpop.permute.xlu1 %9092 }
 0xadd   : > { %v9408_v37 = vcombine.low %v9091_v59, %v9093_v40 }
 0xade   : > { %v9047_v0 = vpop.permute.xlu0 %9046 }
 0xadf   : > { %v9416_v9 = vrot.slane %v9408_v37, %v12924_v56 }
 0xae0   : > { %v9049_v41 = vpop.permute.xlu1 %9048 }
 0xae1   : > { %v9205_v20 = vcombine.low %v9047_v0, %v9049_v41 }
 0xae2   : > { %v9051_v60 = vpop.permute.xlu0 %9050 }
 0xae3   : > { %v9219_v17 = vrot.slane %v9205_v20, %v12924_v56 }
 0xae4   : > { %v9053_v1 = vpop.permute.xlu1 %9052 }
 0xae5   : > { %v9220_v35 = vcombine.low %v9212_v63, %v9219_v17  ;;  %v9221_v42 = vcombine.low %v9051_v60, %v9053_v1 }
 0xae6   : > { %v9059_v23 = vpop.permute.xlu0 %9058 }
 0xae7   : > { %9749 = vst.msk [vmem:[%s14830_s15 + $0x10] sm:$0xff] %vm9746_vm9, %v9220_v35  ;;  %v9229_v14 = vrot.slane %v9221_v42, %v12924_v56 }
 0xae8   : > { %v9061_v5 = vpop.permute.xlu1 %9060 }
 0xae9   : > { %v9272_v54 = vcombine.low %v9059_v23, %v9061_v5 }
 0xaea   : > { %v9087_v52 = vpop.permute.xlu0 %9086 }
 0xaeb   : > { %v9280_v51 = vrot.slane %v9272_v54, %v12924_v56 }
 0xaec   : > { %v9089_v7 = vpop.permute.xlu1 %9088 }
 0xaed   : > { %v9358_v24 = vcombine.low %v9087_v52, %v9089_v7 }
 0xaee   : > { %v9095_v26 = vpop.permute.xlu0 %9094 }
 0xaef   : > { %v9372_v6 = vrot.slane %v9358_v24, %v12924_v56 }
 0xaf0   : > { %v9097_v21 = vpop.permute.xlu1 %9096 }
 0xaf1   : > { %v9373_v16 = vcombine.low %v9365_v46, %v9372_v6  ;;  %v9409_v10 = vcombine.low %v9095_v26, %v9097_v21 }
 0xaf2   : > { %v9099_v3 = vpop.permute.xlu0 %9098 }
 0xaf3   : > { %9758 = vst.msk [vmem:[%s14830_s15 + $0x58] sm:$0xff] %vm9746_vm9, %v9373_v16  ;;  %v9423_v53 = vrot.slane %v9409_v10, %v12924_v56 }
 0xaf4   : > { %v9101_v31 = vpop.permute.xlu1 %9100 }
 0xaf5   : > { %v9424_v25 = vcombine.low %v9416_v9, %v9423_v53  ;;  %v9425_v22 = vcombine.low %v9099_v3, %v9101_v31 }
 0xaf6   : > { %v9055_v48 = vpop.permute.xlu0 %9054 }
 0xaf7   : > { %9761 = vst.msk [vmem:[%s14830_s15 + $0x70] sm:$0xff] %vm9746_vm9, %v9424_v25  ;;  %v9433_v29 = vrot.slane %v9425_v22, %v12924_v56 }
 0xaf8   : > { %v9057_v44 = vpop.permute.xlu1 %9056 }
 0xaf9   : > { %v9222_v47 = vcombine.low %v9055_v48, %v9057_v44 }
 0xafa   : > { %v9063_v36 = vpop.permute.xlu0 %9062 }
 0xafb   : > { %v9236_v28 = vrot.slane %v9222_v47, %v12924_v56 }
 0xafc   : > { %v9065_v33 = vpop.permute.xlu1 %9064 }
 0xafd   : > { %v9237_v43 = vcombine.low %v9229_v14, %v9236_v28  ;;  %v9273_v61 = vcombine.low %v9063_v36, %v9065_v33 }
 0xafe   : > { %v9067_v45 = vpop.permute.xlu0 %9066 }
 0xaff   : > { %9750 = vst.msk [vmem:[%s14830_s15 + $0x18] sm:$0xff] %vm9746_vm9, %v9237_v43  ;;  %v9287_v50 = vrot.slane %v9273_v61, %v12924_v56 }
 0xb00   : > { %v9069_v11 = vpop.permute.xlu1 %9068 }
 0xb01   : > { %v9288_v18 = vcombine.low %v9280_v51, %v9287_v50  ;;  %v9289_v15 = vcombine.low %v9067_v45, %v9069_v11 }
 0xb02   : > { %v9103_v34 = vpop.permute.xlu0 %9102 }
 0xb03   : > { %9753 = vst.msk [vmem:[%s14830_s15 + $0x30] sm:$0xff] %vm9746_vm9, %v9288_v18  ;;  %v9297_v57 = vrot.slane %v9289_v15, %v12924_v56 }
 0xb04   : > { %v9105_v4 = vpop.permute.xlu1 %9104 }
 0xb05   : > { %v9426_v49 = vcombine.low %v9103_v34, %v9105_v4 }
 0xb06   : > { %v9071_v2 = vpop.permute.xlu0 %9070 }
 0xb07   : > { %v9440_v12 = vrot.slane %v9426_v49, %v12924_v56 }
 0xb08   : > { %v9073_v13 = vpop.permute.xlu1 %9072 }
 0xb09   : > { %v9441_v62 = vcombine.low %v9433_v29, %v9440_v12  ;;  %v9290_v55 = vcombine.low %v9071_v2, %v9073_v13 }
 0xb0a   : > { %v9139_v19 = vpop.permute.xlu0 %9138 }
 0xb0b   : > { %9762 = vst.msk [vmem:[%s14830_s15 + $0x78] sm:$0xff] %vm9746_vm9, %v9441_v62  ;;  %v9304_v27 = vrot.slane %v9290_v55, %v12924_v56 }
 0xb0c   : > { %v9141_v39 = vpop.permute.xlu1 %9140 }
 0xb0d   : > { %v9305_v30 = vcombine.low %v9297_v57, %v9304_v27  ;;  %v9612_v40 = vcombine.low %v9139_v19, %v9141_v39 }
 0xb0e   : > { %v9107_v8 = vpop.permute.xlu0 %9106 }
 0xb0f   : > { %9754 = vst.msk [vmem:[%s14830_s15 + $0x38] sm:$0xff] %vm9746_vm9, %v9305_v30  ;;  %v9620_v20 = vrot.slane %v9612_v40, %v12924_v56 }
 0xb10   : > { %v9109_v32 = vpop.permute.xlu1 %9108 }
 0xb11   : > { %v9476_v5 = vcombine.low %v9107_v8, %v9109_v32 }
 0xb12   : > { %v9143_v59 = vpop.permute.xlu0 %9142 }
 0xb13   : > { %v9484_v24 = vrot.slane %v9476_v5, %v12924_v56 }
 0xb14   : > { %v9145_v0 = vpop.permute.xlu1 %9144 }
 0xb15   : > { %v9613_v58 = vcombine.low %v9143_v59, %v9145_v0 }
 0xb16   : > { %v9147_v41 = vpop.permute.xlu0 %9146 }
 0xb17   : > { %v9627_v60 = vrot.slane %v9613_v58, %v12924_v56 }
 0xb18   : > { %v9149_v63 = vpop.permute.xlu1 %9148 }
 0xb19   : > { %v9628_v17 = vcombine.low %v9620_v20, %v9627_v60  ;;  %v9629_v10 = vcombine.low %v9147_v41, %v9149_v63 }
 0xb1a   : > { %v9155_v1 = vpop.permute.xlu0 %9154 }
 0xb1b   : > { %9773 = vst.msk [vmem:[%s14830_s15 + $0xd0] sm:$0xff] %vm9746_vm9, %v9628_v17  ;;  %v9637_v31 = vrot.slane %v9629_v10, %v12924_v56 }
 0xb1c   : > { %v9157_v35 = vpop.permute.xlu1 %9156 }
 0xb1d   : > { %v9680_v25 = vcombine.low %v9155_v1, %v9157_v35 }
 0xb1e   : > { %v9111_v23 = vpop.permute.xlu0 %9110 }
 0xb1f   : > { %v9688_v14 = vrot.slane %v9680_v25, %v12924_v56 }
 0xb20   : > { %v9113_v52 = vpop.permute.xlu1 %9112 }
 0xb21   : > { %v9477_v38 = vcombine.low %v9111_v23, %v9113_v52 }
 0xb22   : > { %v9115_v7 = vpop.permute.xlu0 %9114 }
 0xb23   : > { %v9491_v26 = vrot.slane %v9477_v38, %v12924_v56 }
 0xb24   : > { %v9117_v46 = vpop.permute.xlu1 %9116 }
 0xb25   : > { %v9492_v37 = vcombine.low %v9484_v24, %v9491_v26  ;;  %v9493_v61 = vcombine.low %v9115_v7, %v9117_v46 }
 0xb26   : > { %v9123_v6 = vpop.permute.xlu0 %9122 }
 0xb27   : > { %9765 = vst.msk [vmem:[%s14830_s15 + $0x90] sm:$0xff] %vm9746_vm9, %v9492_v37  ;;  %v9501_v11 = vrot.slane %v9493_v61, %v12924_v56 }
 0xb28   : > { %v9125_v21 = vpop.permute.xlu1 %9124 }
 0xb29   : > { %v9544_v18 = vcombine.low %v9123_v6, %v9125_v21 }
 0xb2a   : > { %v9151_v16 = vpop.permute.xlu0 %9150 }
 0xb2b   : > { %v9552_v29 = vrot.slane %v9544_v18, %v12924_v56 }
 0xb2c   : > { %v9153_v3 = vpop.permute.xlu1 %9152 }
 0xb2d   : > { %v9630_v9 = vcombine.low %v9151_v16, %v9153_v3 }
 0xb2e   : > { %v9159_v53 = vpop.permute.xlu0 %9158 }
 0xb2f   : > { %v9644_v48 = vrot.slane %v9630_v9, %v12924_v56 }
 0xb30   : > { %v9161_v42 = vpop.permute.xlu1 %9160 }
 0xb31   : > { %v9645_v44 = vcombine.low %v9637_v31, %v9644_v48  ;;  %v9681_v47 = vcombine.low %v9159_v53, %v9161_v42 }
 0xb32   : > { %v9163_v36 = vpop.permute.xlu0 %9162 }
 0xb33   : > { %9774 = vst.msk [vmem:[%s14830_s15 + $0xd8] sm:$0xff] %vm9746_vm9, %v9645_v44  ;;  %v9695_v54 = vrot.slane %v9681_v47, %v12924_v56 }
 0xb34   : > { %v9165_v28 = vpop.permute.xlu1 %9164 }
 0xb35   : > { %v9696_v33 = vcombine.low %v9688_v14, %v9695_v54  ;;  %v9697_v27 = vcombine.low %v9163_v36, %v9165_v28 }
 0xb36   : > { %v9119_v43 = vpop.permute.xlu0 %9118 }
 0xb37   : > { %9777 = vst.msk [vmem:[%s14830_s15 + $0xf0] sm:$0xff] %vm9746_vm9, %v9696_v33  ;;  %v9705_v0 = vrot.slane %v9697_v27, %v12924_v56 }
 0xb38   : > { %v9121_v45 = vpop.permute.xlu1 %9120 }
 0xb39   : > { %v9494_v51 = vcombine.low %v9119_v43, %v9121_v45 }
 0xb3a   : > { %v9127_v50 = vpop.permute.xlu0 %9126 }
 0xb3b   : > { %v9508_v34 = vrot.slane %v9494_v51, %v12924_v56 }
 0xb3c   : > { %v9129_v22 = vpop.permute.xlu1 %9128 }
 0xb3d   : > { %v9509_v4 = vcombine.low %v9501_v11, %v9508_v34  ;;  %v9545_v49 = vcombine.low %v9127_v50, %v9129_v22 }
 0xb3e   : > { %v9131_v2 = vpop.permute.xlu0 %9130 }
 0xb3f   : > { %9766 = vst.msk [vmem:[%s14830_s15 + $0x98] sm:$0xff] %vm9746_vm9, %v9509_v4  ;;  %v9559_v15 = vrot.slane %v9545_v49, %v12924_v56 }
 0xb40   : > { %v9133_v12 = vpop.permute.xlu1 %9132 }
 0xb41   : > { %v9560_v13 = vcombine.low %v9552_v29, %v9559_v15  ;;  %v9561_v55 = vcombine.low %v9131_v2, %v9133_v12 }
 0xb42   : > { %v9135_v62 = vpop.permute.xlu0 %9134 }
 0xb43   : > { %9769 = vst.msk [vmem:[%s14830_s15 + $0xb0] sm:$0xff] %vm9746_vm9, %v9560_v13  ;;  %v9569_v39 = vrot.slane %v9561_v55, %v12924_v56 }
 0xb44   : > { %v9137_v19 = vpop.permute.xlu1 %9136 }
 0xb45   : > { %v9562_v57 = vcombine.low %v9135_v62, %v9137_v19 }
 0xb46   : > { %v9167_v8 = vpop.permute.xlu0 %9166 }
 0xb47   : > { %v9576_v30 = vrot.slane %v9562_v57, %v12924_v56 }
 0xb48   : > { %v9169_v32 = vpop.permute.xlu1 %9168 }
 0xb49   : > { %v9577_v59 = vcombine.low %v9569_v39, %v9576_v30  ;;  %v9698_v40 = vcombine.low %v9167_v8, %v9169_v32 }
 0xb4b   : > { %9770 = vst.msk [vmem:[%s14830_s15 + $0xb8] sm:$0xff] %vm9746_vm9, %v9577_v59  ;;  %v9712_v58 = vrot.slane %v9698_v40, %v12924_v56 }
 0xb4d   : > { %v9713_v41 = vcombine.low %v9705_v0, %v9712_v58 }
 0xb4f   : > { %9778 = vst.msk [vmem:[%s14830_s15 + $0xf8] sm:$0xff] %vm9746_vm9, %v9713_v41 }
 0xb50 PF: > { %s21_s17 = sadd.s32 1, %s10096_s17  }
 0xb51   : > { %p18_p4 = scmp.ge.s32.totalorder %s21_s17, 4  }
 0xb53   :  { %20 = sbr.rel (!%p18_p4) target bundleno = 1 (0x1), region = 97 }

</bundles_post_ra>
